<compile_context>
chip_gen: v7x
topology: tpu7x:2x2x1
jax: 0.10.0
libtpu: 0.0.40
codegen_flags: <defaults>
</compile_context>

<pallas_src>
import functools

import jax
import jax.numpy as jnp
from jax import lax
from jax.experimental import pallas as pl
from jax.experimental.pallas import tpu as pltpu


def proj_kernel(x_ref, w1_ref, s1_ref, t1_ref, w3_ref, s2_ref, t2_ref, w2_ref,
                o_ref, pad_ref):
    """One batch element per grid step. All refs live in VMEM.

    x_ref : (1, H, W, Cin)      input image (NHWC)
    w1_ref: (Cin, Cmid)         1x1 conv #1 weights (in, out)
    s1/t1 : (1, Cmid)           folded BN1 scale / shift
    w3_ref: (3, 3, Cmid, Cmid)  3x3 conv weights (kh, kw, in, out)
    s2/t2 : (1, Cmid)           folded BN2 scale / shift
    w2_ref: (Cmid, Cout)        1x1 conv #2 weights (in, out)
    o_ref : (1, H, W, Cout)     output (NHWC)
    pad_ref: (H+2, W+2, Cmid)   VMEM scratch: zero-padded hidden plane
    """
    _, H, W, Cin = x_ref.shape
    Cmid = w1_ref.shape[1]
    Cout = w2_ref.shape[1]

    # ---- stage 1: 1x1 conv + BN + ReLU -----------------------------------
    x = x_ref[...].reshape(H * W, Cin)
    h1 = jnp.dot(x, w1_ref[...], preferred_element_type=jnp.float32)
    h1 = jnp.maximum(h1 * s1_ref[...] + t1_ref[...], 0.0)          # [H*W, Cmid]

    # ---- stage 2: 3x3 conv (padding=1) as 9 shifted matmuls --------------
    pad_ref[...] = jnp.zeros_like(pad_ref)
    pad_ref[1:H + 1, 1:W + 1, :] = h1.reshape(H, W, Cmid)

    acc = jnp.zeros((H * W, Cmid), jnp.float32)
    for dh in range(3):
        for dw in range(3):
            win = pad_ref[dh:dh + H, dw:dw + W, :].reshape(H * W, Cmid)
            acc = acc + jnp.dot(win, w3_ref[dh, dw],
                                preferred_element_type=jnp.float32)
    h2 = jnp.maximum(acc * s2_ref[...] + t2_ref[...], 0.0)          # [H*W, Cmid]

    # ---- stage 3: 1x1 conv ------------------------------------------------
    y = jnp.dot(h2, w2_ref[...], preferred_element_type=jnp.float32)
    o_ref[...] = y.reshape(1, H, W, Cout).astype(o_ref.dtype)


def proj_forward(x_nchw, w1, g1, b1, m1, v1, w3, g2, b2, m2, v2, w2,
                 eps=1e-5):
    """Pallas implementation of Proj.forward (eval-mode BN).

    x_nchw: [B, Cin, H, W]
    w1: [Cmid, Cin, 1, 1]   (PyTorch OIHW, bias=False)
    w3: [Cmid, Cmid, 3, 3]
    w2: [Cout, Cmid, 1, 1]
    g*/b*/m*/v*: BN gamma / beta / running_mean / running_var, shape [Cmid]
    returns: [B, Cout, H, W]
    """
    B, Cin, H, W = x_nchw.shape
    Cmid = w1.shape[0]
    Cout = w2.shape[0]

    # NCHW -> NHWC (channels on the lane axis).
    x = jnp.transpose(x_nchw, (0, 2, 3, 1))

    # Fold eval-mode BatchNorm into per-channel scale/shift (rsqrt -> EUP).
    inv1 = lax.rsqrt(v1 + eps)
    inv2 = lax.rsqrt(v2 + eps)
    s1 = (g1 * inv1).reshape(1, Cmid)
    t1 = (b1 - m1 * g1 * inv1).reshape(1, Cmid)
    s2 = (g2 * inv2).reshape(1, Cmid)
    t2 = (b2 - m2 * g2 * inv2).reshape(1, Cmid)

    # PyTorch OIHW -> kernel-friendly (in, out) / (kh, kw, in, out) layouts.
    w1_t = jnp.transpose(w1[:, :, 0, 0], (1, 0))     # [Cin,  Cmid]
    w3_t = jnp.transpose(w3, (2, 3, 1, 0))           # [3, 3, Cmid, Cmid]
    w2_t = jnp.transpose(w2[:, :, 0, 0], (1, 0))     # [Cmid, Cout]

    flops = 2 * B * H * W * (Cin * Cmid + 9 * Cmid * Cmid + Cmid * Cout)
    bytes_accessed = 4 * (B * H * W * Cin            # x
                          + Cin * Cmid + 9 * Cmid * Cmid + Cmid * Cout  # weights
                          + 4 * Cmid                 # BN scale/shift
                          + B * H * W * Cout)        # output

    const2 = lambda b: (0, 0)
    grid_spec = pltpu.PrefetchScalarGridSpec(
        num_scalar_prefetch=0,
        grid=(B,),
        in_specs=[
            pl.BlockSpec((1, H, W, Cin), lambda b: (b, 0, 0, 0)),   # streamed
            pl.BlockSpec((Cin, Cmid), const2),                      # resident
            pl.BlockSpec((1, Cmid), const2),
            pl.BlockSpec((1, Cmid), const2),
            pl.BlockSpec((3, 3, Cmid, Cmid), lambda b: (0, 0, 0, 0)),
            pl.BlockSpec((1, Cmid), const2),
            pl.BlockSpec((1, Cmid), const2),
            pl.BlockSpec((Cmid, Cout), const2),
        ],
        out_specs=pl.BlockSpec((1, H, W, Cout), lambda b: (b, 0, 0, 0)),
        scratch_shapes=[pltpu.VMEM((H + 2, W + 2, Cmid), jnp.float32)],
    )

    out_nhwc = pl.pallas_call(
        proj_kernel,
        out_shape=jax.ShapeDtypeStruct((B, H, W, Cout), jnp.float32),
        grid_spec=grid_spec,
        compiler_params=pltpu.CompilerParams(
            dimension_semantics=("parallel",),       # megacore split on v7x
            vmem_limit_bytes=32 * 1024 * 1024),
        cost_estimate=pl.CostEstimate(flops=flops, transcendentals=0,
                                      bytes_accessed=bytes_accessed),
    )(x, w1_t, s1, t1, w3_t, s2, t2, w2_t)

    return jnp.transpose(out_nhwc, (0, 3, 1, 2))     # NHWC -> NCHW


def _reference(x, w1, g1, b1, m1, v1, w3, g2, b2, m2, v2, w2, eps=1e-5):
    """Pure-JAX reference (lax convolutions, f32-accurate precision)."""
    dn = ("NCHW", "OIHW", "NCHW")
    conv = functools.partial(lax.conv_general_dilated,
                             window_strides=(1, 1), dimension_numbers=dn,
                             precision=lax.Precision.HIGHEST)

    def bn(y, g, b, m, v):
        scale = (g * lax.rsqrt(v + eps))[None, :, None, None]
        return (y - m[None, :, None, None]) * scale + b[None, :, None, None]

    y = conv(x, w1, padding="VALID")
    y = jnp.maximum(bn(y, g1, b1, m1, v1), 0.0)
    y = conv(y, w3, padding=((1, 1), (1, 1)))
    y = jnp.maximum(bn(y, g2, b2, m2, v2), 0.0)
    y = conv(y, w2, padding="VALID")
    return y


if __name__ == "__main__":
    # Module defaults: num_input_channels=1024, num_target_channels=128,
    # num_mid_channel=256.  Small spatial extent for the test.
    B, Cin, H, W = 2, 1024, 16, 16
    Cout = 128
    Cmid = 2 * Cout

    key = jax.random.PRNGKey(0)
    (kx, kw1, kw3, kw2,
     kg1, kb1, km1, kv1,
     kg2, kb2, km2, kv2) = jax.random.split(key, 12)

    x = jax.random.normal(kx, (B, Cin, H, W), dtype=jnp.float32)

    # PyTorch-Conv2d-like init (bias=False everywhere in Proj).
    bw1 = 1.0 / (Cin * 1 * 1) ** 0.5
    bw3 = 1.0 / (Cmid * 3 * 3) ** 0.5
    bw2 = 1.0 / (Cmid * 1 * 1) ** 0.5
    w1 = jax.random.uniform(kw1, (Cmid, Cin, 1, 1), jnp.float32, -bw1, bw1)
    w3 = jax.random.uniform(kw3, (Cmid, Cmid, 3, 3), jnp.float32, -bw3, bw3)
    w2 = jax.random.uniform(kw2, (Cout, Cmid, 1, 1), jnp.float32, -bw2, bw2)

    # Non-trivial BatchNorm parameters / running stats (eval mode).
    g1 = jax.random.uniform(kg1, (Cmid,), jnp.float32, 0.5, 1.5)
    b1 = 0.1 * jax.random.normal(kb1, (Cmid,), jnp.float32)
    m1 = 0.1 * jax.random.normal(km1, (Cmid,), jnp.float32)
    v1 = jax.random.uniform(kv1, (Cmid,), jnp.float32, 0.5, 1.5)
    g2 = jax.random.uniform(kg2, (Cmid,), jnp.float32, 0.5, 1.5)
    b2 = 0.1 * jax.random.normal(kb2, (Cmid,), jnp.float32)
    m2 = 0.1 * jax.random.normal(km2, (Cmid,), jnp.float32)
    v2 = jax.random.uniform(kv2, (Cmid,), jnp.float32, 0.5, 1.5)

    out = jax.block_until_ready(
        proj_forward(x, w1, g1, b1, m1, v1, w3, g2, b2, m2, v2, w2))

    ref = _reference(x, w1, g1, b1, m1, v1, w3, g2, b2, m2, v2, w2)
    assert out.shape == (B, Cout, H, W), out.shape
    max_err = float(jnp.max(jnp.abs(out - ref)))
    assert jnp.allclose(out, ref, atol=1e-4, rtol=1e-4), max_err

    print("KERNEL_OK")
</pallas_src>

<mosaic_0001>
module attributes {stable_mosaic.version = 11 : i64} {
  func.func @proj_kernel(%arg0: i32, %arg1: memref<1x16x16x1024xf32, #tpu.memory_space<vmem>>, %arg2: memref<1024x256xf32, #tpu.memory_space<vmem>>, %arg3: memref<1x256xf32, #tpu.memory_space<vmem>>, %arg4: memref<1x256xf32, #tpu.memory_space<vmem>>, %arg5: memref<3x3x256x256xf32, #tpu.memory_space<vmem>>, %arg6: memref<1x256xf32, #tpu.memory_space<vmem>>, %arg7: memref<1x256xf32, #tpu.memory_space<vmem>>, %arg8: memref<256x128xf32, #tpu.memory_space<vmem>>, %arg9: memref<1x16x16x128xf32, #tpu.memory_space<vmem>>, %arg10: memref<18x18x256xf32, #tpu.memory_space<vmem>>) attributes {dimension_semantics = [#tpu.dimension_semantics<parallel>], iteration_bounds = array<i64: 2>, scalar_prefetch = 0 : i64, scratch_operands = 1 : i64, tpu.core_type = #tpu.core_type<tc>, window_params = [{transform_indices = @transform_0, window_bounds = array<i64: 1, 16, 16, 1024>}, {pipeline_mode = #tpu.pipeline_mode<synchronous>, transform_indices = @transform_1, window_bounds = array<i64: 1024, 256>}, {pipeline_mode = #tpu.pipeline_mode<synchronous>, transform_indices = @transform_2, window_bounds = array<i64: 1, 256>}, {pipeline_mode = #tpu.pipeline_mode<synchronous>, transform_indices = @transform_3, window_bounds = array<i64: 1, 256>}, {pipeline_mode = #tpu.pipeline_mode<synchronous>, transform_indices = @transform_4, window_bounds = array<i64: 3, 3, 256, 256>}, {pipeline_mode = #tpu.pipeline_mode<synchronous>, transform_indices = @transform_5, window_bounds = array<i64: 1, 256>}, {pipeline_mode = #tpu.pipeline_mode<synchronous>, transform_indices = @transform_6, window_bounds = array<i64: 1, 256>}, {pipeline_mode = #tpu.pipeline_mode<synchronous>, transform_indices = @transform_7, window_bounds = array<i64: 256, 128>}, {transform_indices = @transform_8, window_bounds = array<i64: 1, 16, 16, 128>}]} {
    %c0 = arith.constant 0 : index
    %c0_0 = arith.constant 0 : index
    %c0_1 = arith.constant 0 : index
    %c0_2 = arith.constant 0 : index
    %0 = vector.load %arg1[%c0, %c0_0, %c0_1, %c0_2] : memref<1x16x16x1024xf32, #tpu.memory_space<vmem>>, vector<1x16x16x1024xf32>
    %1 = vector.shape_cast %0 : vector<1x16x16x1024xf32> to vector<256x1024xf32>
    %c0_3 = arith.constant 0 : index
    %c0_4 = arith.constant 0 : index
    %2 = vector.load %arg2[%c0_3, %c0_4] : memref<1024x256xf32, #tpu.memory_space<vmem>>, vector<1024x256xf32>
    %cst = arith.constant dense<0.000000e+00> : vector<256x256xf32>
    %3 = tpu.matmul %1, %2, %cst {dimension_numbers = #tpu.dot_dimension_numbers<[1], [0], [0], [1], [0, 0, 1, 1], [], []>} : vector<256x1024xf32>, vector<1024x256xf32>, vector<256x256xf32> -> vector<256x256xf32>
    %c0_5 = arith.constant 0 : index
    %c0_6 = arith.constant 0 : index
    %4 = vector.load %arg3[%c0_5, %c0_6] : memref<1x256xf32, #tpu.memory_space<vmem>>, vector<1x256xf32>
    %5 = vector.broadcast %4 : vector<1x256xf32> to vector<256x256xf32>
    %6 = arith.mulf %3, %5 : vector<256x256xf32>
    %c0_7 = arith.constant 0 : index
    %c0_8 = arith.constant 0 : index
    %7 = vector.load %arg4[%c0_7, %c0_8] : memref<1x256xf32, #tpu.memory_space<vmem>>, vector<1x256xf32>
    %8 = vector.broadcast %7 : vector<1x256xf32> to vector<256x256xf32>
    %9 = arith.addf %6, %8 : vector<256x256xf32>
    %cst_9 = arith.constant 0.000000e+00 : f32
    %10 = vector.broadcast %cst_9 : f32 to vector<256x256xf32>
    %11 = arith.maximumf %9, %10 : vector<256x256xf32>
    %cst_10 = arith.constant 0.000000e+00 : f32
    %12 = vector.broadcast %cst_10 : f32 to vector<18x18x256xf32>
    %c0_11 = arith.constant 0 : index
    %c0_12 = arith.constant 0 : index
    %c0_13 = arith.constant 0 : index
    %13 = vector.load %arg10[%c0_11, %c0_12, %c0_13] : memref<18x18x256xf32, #tpu.memory_space<vmem>>, vector<18x18x256xf32>
    tpu.vector_store %arg10[%c0_11, %c0_12, %c0_13], %12 {strides = array<i32>} : memref<18x18x256xf32, #tpu.memory_space<vmem>>, vector<18x18x256xf32>,
    %14 = vector.shape_cast %11 : vector<256x256xf32> to vector<16x16x256xf32>
    %c1 = arith.constant 1 : index
    %c1_14 = arith.constant 1 : index
    %c0_15 = arith.constant 0 : index
    %15 = vector.load %arg10[%c1, %c1_14, %c0_15] : memref<18x18x256xf32, #tpu.memory_space<vmem>>, vector<16x16x256xf32>
    tpu.vector_store %arg10[%c1, %c1_14, %c0_15], %14 {strides = array<i32>} : memref<18x18x256xf32, #tpu.memory_space<vmem>>, vector<16x16x256xf32>,
    %cst_16 = arith.constant 0.000000e+00 : f32
    %16 = vector.broadcast %cst_16 : f32 to vector<256x256xf32>
    %c0_17 = arith.constant 0 : index
    %c0_18 = arith.constant 0 : index
    %c0_19 = arith.constant 0 : index
    %17 = vector.load %arg10[%c0_17, %c0_18, %c0_19] : memref<18x18x256xf32, #tpu.memory_space<vmem>>, vector<16x16x256xf32>
    %18 = vector.shape_cast %17 : vector<16x16x256xf32> to vector<256x256xf32>
    %c0_20 = arith.constant 0 : index
    %c0_21 = arith.constant 0 : index
    %c0_22 = arith.constant 0 : index
    %c0_23 = arith.constant 0 : index
    %19 = vector.load %arg5[%c0_20, %c0_21, %c0_22, %c0_23] : memref<3x3x256x256xf32, #tpu.memory_space<vmem>>, vector<1x1x256x256xf32>
    %20 = vector.shape_cast %19 : vector<1x1x256x256xf32> to vector<256x256xf32>
    %cst_24 = arith.constant dense<0.000000e+00> : vector<256x256xf32>
    %21 = tpu.matmul %18, %20, %cst_24 {dimension_numbers = #tpu.dot_dimension_numbers<[1], [0], [0], [1], [0, 0, 1, 1], [], []>} : vector<256x256xf32>, vector<256x256xf32>, vector<256x256xf32> -> vector<256x256xf32>
    %22 = arith.addf %16, %21 : vector<256x256xf32>
    %c0_25 = arith.constant 0 : index
    %c1_26 = arith.constant 1 : index
    %c0_27 = arith.constant 0 : index
    %23 = vector.load %arg10[%c0_25, %c1_26, %c0_27] : memref<18x18x256xf32, #tpu.memory_space<vmem>>, vector<16x16x256xf32>
    %24 = vector.shape_cast %23 : vector<16x16x256xf32> to vector<256x256xf32>
    %c0_28 = arith.constant 0 : index
    %c1_29 = arith.constant 1 : index
    %c0_30 = arith.constant 0 : index
    %c0_31 = arith.constant 0 : index
    %25 = vector.load %arg5[%c0_28, %c1_29, %c0_30, %c0_31] : memref<3x3x256x256xf32, #tpu.memory_space<vmem>>, vector<1x1x256x256xf32>
    %26 = vector.shape_cast %25 : vector<1x1x256x256xf32> to vector<256x256xf32>
    %cst_32 = arith.constant dense<0.000000e+00> : vector<256x256xf32>
    %27 = tpu.matmul %24, %26, %cst_32 {dimension_numbers = #tpu.dot_dimension_numbers<[1], [0], [0], [1], [0, 0, 1, 1], [], []>} : vector<256x256xf32>, vector<256x256xf32>, vector<256x256xf32> -> vector<256x256xf32>
    %28 = arith.addf %22, %27 : vector<256x256xf32>
    %c0_33 = arith.constant 0 : index
    %c2 = arith.constant 2 : index
    %c0_34 = arith.constant 0 : index
    %29 = vector.load %arg10[%c0_33, %c2, %c0_34] : memref<18x18x256xf32, #tpu.memory_space<vmem>>, vector<16x16x256xf32>
    %30 = vector.shape_cast %29 : vector<16x16x256xf32> to vector<256x256xf32>
    %c0_35 = arith.constant 0 : index
    %c2_36 = arith.constant 2 : index
    %c0_37 = arith.constant 0 : index
    %c0_38 = arith.constant 0 : index
    %31 = vector.load %arg5[%c0_35, %c2_36, %c0_37, %c0_38] : memref<3x3x256x256xf32, #tpu.memory_space<vmem>>, vector<1x1x256x256xf32>
    %32 = vector.shape_cast %31 : vector<1x1x256x256xf32> to vector<256x256xf32>
    %cst_39 = arith.constant dense<0.000000e+00> : vector<256x256xf32>
    %33 = tpu.matmul %30, %32, %cst_39 {dimension_numbers = #tpu.dot_dimension_numbers<[1], [0], [0], [1], [0, 0, 1, 1], [], []>} : vector<256x256xf32>, vector<256x256xf32>, vector<256x256xf32> -> vector<256x256xf32>
    %34 = arith.addf %28, %33 : vector<256x256xf32>
    %c1_40 = arith.constant 1 : index
    %c0_41 = arith.constant 0 : index
    %c0_42 = arith.constant 0 : index
    %35 = vector.load %arg10[%c1_40, %c0_41, %c0_42] : memref<18x18x256xf32, #tpu.memory_space<vmem>>, vector<16x16x256xf32>
    %36 = vector.shape_cast %35 : vector<16x16x256xf32> to vector<256x256xf32>
    %c1_43 = arith.constant 1 : index
    %c0_44 = arith.constant 0 : index
    %c0_45 = arith.constant 0 : index
    %c0_46 = arith.constant 0 : index
    %37 = vector.load %arg5[%c1_43, %c0_44, %c0_45, %c0_46] : memref<3x3x256x256xf32, #tpu.memory_space<vmem>>, vector<1x1x256x256xf32>
    %38 = vector.shape_cast %37 : vector<1x1x256x256xf32> to vector<256x256xf32>
    %cst_47 = arith.constant dense<0.000000e+00> : vector<256x256xf32>
    %39 = tpu.matmul %36, %38, %cst_47 {dimension_numbers = #tpu.dot_dimension_numbers<[1], [0], [0], [1], [0, 0, 1, 1], [], []>} : vector<256x256xf32>, vector<256x256xf32>, vector<256x256xf32> -> vector<256x256xf32>
    %40 = arith.addf %34, %39 : vector<256x256xf32>
    %c1_48 = arith.constant 1 : index
    %c1_49 = arith.constant 1 : index
    %c0_50 = arith.constant 0 : index
    %41 = vector.load %arg10[%c1_48, %c1_49, %c0_50] : memref<18x18x256xf32, #tpu.memory_space<vmem>>, vector<16x16x256xf32>
    %42 = vector.shape_cast %41 : vector<16x16x256xf32> to vector<256x256xf32>
    %c1_51 = arith.constant 1 : index
    %c1_52 = arith.constant 1 : index
    %c0_53 = arith.constant 0 : index
    %c0_54 = arith.constant 0 : index
    %43 = vector.load %arg5[%c1_51, %c1_52, %c0_53, %c0_54] : memref<3x3x256x256xf32, #tpu.memory_space<vmem>>, vector<1x1x256x256xf32>
    %44 = vector.shape_cast %43 : vector<1x1x256x256xf32> to vector<256x256xf32>
    %cst_55 = arith.constant dense<0.000000e+00> : vector<256x256xf32>
    %45 = tpu.matmul %42, %44, %cst_55 {dimension_numbers = #tpu.dot_dimension_numbers<[1], [0], [0], [1], [0, 0, 1, 1], [], []>} : vector<256x256xf32>, vector<256x256xf32>, vector<256x256xf32> -> vector<256x256xf32>
    %46 = arith.addf %40, %45 : vector<256x256xf32>
    %c1_56 = arith.constant 1 : index
    %c2_57 = arith.constant 2 : index
    %c0_58 = arith.constant 0 : index
    %47 = vector.load %arg10[%c1_56, %c2_57, %c0_58] : memref<18x18x256xf32, #tpu.memory_space<vmem>>, vector<16x16x256xf32>
    %48 = vector.shape_cast %47 : vector<16x16x256xf32> to vector<256x256xf32>
    %c1_59 = arith.constant 1 : index
    %c2_60 = arith.constant 2 : index
    %c0_61 = arith.constant 0 : index
    %c0_62 = arith.constant 0 : index
    %49 = vector.load %arg5[%c1_59, %c2_60, %c0_61, %c0_62] : memref<3x3x256x256xf32, #tpu.memory_space<vmem>>, vector<1x1x256x256xf32>
    %50 = vector.shape_cast %49 : vector<1x1x256x256xf32> to vector<256x256xf32>
    %cst_63 = arith.constant dense<0.000000e+00> : vector<256x256xf32>
    %51 = tpu.matmul %48, %50, %cst_63 {dimension_numbers = #tpu.dot_dimension_numbers<[1], [0], [0], [1], [0, 0, 1, 1], [], []>} : vector<256x256xf32>, vector<256x256xf32>, vector<256x256xf32> -> vector<256x256xf32>
    %52 = arith.addf %46, %51 : vector<256x256xf32>
    %c2_64 = arith.constant 2 : index
    %c0_65 = arith.constant 0 : index
    %c0_66 = arith.constant 0 : index
    %53 = vector.load %arg10[%c2_64, %c0_65, %c0_66] : memref<18x18x256xf32, #tpu.memory_space<vmem>>, vector<16x16x256xf32>
    %54 = vector.shape_cast %53 : vector<16x16x256xf32> to vector<256x256xf32>
    %c2_67 = arith.constant 2 : index
    %c0_68 = arith.constant 0 : index
    %c0_69 = arith.constant 0 : index
    %c0_70 = arith.constant 0 : index
    %55 = vector.load %arg5[%c2_67, %c0_68, %c0_69, %c0_70] : memref<3x3x256x256xf32, #tpu.memory_space<vmem>>, vector<1x1x256x256xf32>
    %56 = vector.shape_cast %55 : vector<1x1x256x256xf32> to vector<256x256xf32>
    %cst_71 = arith.constant dense<0.000000e+00> : vector<256x256xf32>
    %57 = tpu.matmul %54, %56, %cst_71 {dimension_numbers = #tpu.dot_dimension_numbers<[1], [0], [0], [1], [0, 0, 1, 1], [], []>} : vector<256x256xf32>, vector<256x256xf32>, vector<256x256xf32> -> vector<256x256xf32>
    %58 = arith.addf %52, %57 : vector<256x256xf32>
    %c2_72 = arith.constant 2 : index
    %c1_73 = arith.constant 1 : index
    %c0_74 = arith.constant 0 : index
    %59 = vector.load %arg10[%c2_72, %c1_73, %c0_74] : memref<18x18x256xf32, #tpu.memory_space<vmem>>, vector<16x16x256xf32>
    %60 = vector.shape_cast %59 : vector<16x16x256xf32> to vector<256x256xf32>
    %c2_75 = arith.constant 2 : index
    %c1_76 = arith.constant 1 : index
    %c0_77 = arith.constant 0 : index
    %c0_78 = arith.constant 0 : index
    %61 = vector.load %arg5[%c2_75, %c1_76, %c0_77, %c0_78] : memref<3x3x256x256xf32, #tpu.memory_space<vmem>>, vector<1x1x256x256xf32>
    %62 = vector.shape_cast %61 : vector<1x1x256x256xf32> to vector<256x256xf32>
    %cst_79 = arith.constant dense<0.000000e+00> : vector<256x256xf32>
    %63 = tpu.matmul %60, %62, %cst_79 {dimension_numbers = #tpu.dot_dimension_numbers<[1], [0], [0], [1], [0, 0, 1, 1], [], []>} : vector<256x256xf32>, vector<256x256xf32>, vector<256x256xf32> -> vector<256x256xf32>
    %64 = arith.addf %58, %63 : vector<256x256xf32>
    %c2_80 = arith.constant 2 : index
    %c2_81 = arith.constant 2 : index
    %c0_82 = arith.constant 0 : index
    %65 = vector.load %arg10[%c2_80, %c2_81, %c0_82] : memref<18x18x256xf32, #tpu.memory_space<vmem>>, vector<16x16x256xf32>
    %66 = vector.shape_cast %65 : vector<16x16x256xf32> to vector<256x256xf32>
    %c2_83 = arith.constant 2 : index
    %c2_84 = arith.constant 2 : index
    %c0_85 = arith.constant 0 : index
    %c0_86 = arith.constant 0 : index
    %67 = vector.load %arg5[%c2_83, %c2_84, %c0_85, %c0_86] : memref<3x3x256x256xf32, #tpu.memory_space<vmem>>, vector<1x1x256x256xf32>
    %68 = vector.shape_cast %67 : vector<1x1x256x256xf32> to vector<256x256xf32>
    %cst_87 = arith.constant dense<0.000000e+00> : vector<256x256xf32>
    %69 = tpu.matmul %66, %68, %cst_87 {dimension_numbers = #tpu.dot_dimension_numbers<[1], [0], [0], [1], [0, 0, 1, 1], [], []>} : vector<256x256xf32>, vector<256x256xf32>, vector<256x256xf32> -> vector<256x256xf32>
    %70 = arith.addf %64, %69 : vector<256x256xf32>
    %c0_88 = arith.constant 0 : index
    %c0_89 = arith.constant 0 : index
    %71 = vector.load %arg6[%c0_88, %c0_89] : memref<1x256xf32, #tpu.memory_space<vmem>>, vector<1x256xf32>
    %72 = vector.broadcast %71 : vector<1x256xf32> to vector<256x256xf32>
    %73 = arith.mulf %70, %72 : vector<256x256xf32>
    %c0_90 = arith.constant 0 : index
    %c0_91 = arith.constant 0 : index
    %74 = vector.load %arg7[%c0_90, %c0_91] : memref<1x256xf32, #tpu.memory_space<vmem>>, vector<1x256xf32>
    %75 = vector.broadcast %74 : vector<1x256xf32> to vector<256x256xf32>
    %76 = arith.addf %73, %75 : vector<256x256xf32>
    %cst_92 = arith.constant 0.000000e+00 : f32
    %77 = vector.broadcast %cst_92 : f32 to vector<256x256xf32>
    %78 = arith.maximumf %76, %77 : vector<256x256xf32>
    %c0_93 = arith.constant 0 : index
    %c0_94 = arith.constant 0 : index
    %79 = vector.load %arg8[%c0_93, %c0_94] : memref<256x128xf32, #tpu.memory_space<vmem>>, vector<256x128xf32>
    %cst_95 = arith.constant dense<0.000000e+00> : vector<256x128xf32>
    %80 = tpu.matmul %78, %79, %cst_95 {dimension_numbers = #tpu.dot_dimension_numbers<[1], [0], [0], [1], [0, 0, 1, 1], [], []>} : vector<256x256xf32>, vector<256x128xf32>, vector<256x128xf32> -> vector<256x128xf32>
    %81 = vector.shape_cast %80 : vector<256x128xf32> to vector<1x16x16x128xf32>
    %c0_96 = arith.constant 0 : index
    %c0_97 = arith.constant 0 : index
    %c0_98 = arith.constant 0 : index
    %c0_99 = arith.constant 0 : index
    %82 = vector.load %arg9[%c0_96, %c0_97, %c0_98, %c0_99] : memref<1x16x16x128xf32, #tpu.memory_space<vmem>>, vector<1x16x16x128xf32>
    tpu.vector_store %arg9[%c0_96, %c0_97, %c0_98, %c0_99], %81 {strides = array<i32>} : memref<1x16x16x128xf32, #tpu.memory_space<vmem>>, vector<1x16x16x128xf32>,
    return
  }
  func.func @transform_0(%arg0: i32) -> (i32, i32, i32, i32) {
    %c0_i32 = arith.constant 0 : i32
    %c0_i32_0 = arith.constant 0 : i32
    %c0_i32_1 = arith.constant 0 : i32
    %c0_i32_2 = arith.constant 0 : i32
    return %arg0, %c0_i32, %c0_i32_0, %c0_i32_1 : i32, i32, i32, i32
  }
  func.func @transform_1(%arg0: i32) -> (i32, i32) {
    %c0_i32 = arith.constant 0 : i32
    %c0_i32_0 = arith.constant 0 : i32
    %c0_i32_1 = arith.constant 0 : i32
    return %c0_i32, %c0_i32_0 : i32, i32
  }
  func.func @transform_2(%arg0: i32) -> (i32, i32) {
    %c0_i32 = arith.constant 0 : i32
    %c0_i32_0 = arith.constant 0 : i32
    %c0_i32_1 = arith.constant 0 : i32
    return %c0_i32, %c0_i32_0 : i32, i32
  }
  func.func @transform_3(%arg0: i32) -> (i32, i32) {
    %c0_i32 = arith.constant 0 : i32
    %c0_i32_0 = arith.constant 0 : i32
    %c0_i32_1 = arith.constant 0 : i32
    return %c0_i32, %c0_i32_0 : i32, i32
  }
  func.func @transform_4(%arg0: i32) -> (i32, i32, i32, i32) {
    %c0_i32 = arith.constant 0 : i32
    %c0_i32_0 = arith.constant 0 : i32
    %c0_i32_1 = arith.constant 0 : i32
    %c0_i32_2 = arith.constant 0 : i32
    %c0_i32_3 = arith.constant 0 : i32
    return %c0_i32, %c0_i32_0, %c0_i32_1, %c0_i32_2 : i32, i32, i32, i32
  }
  func.func @transform_5(%arg0: i32) -> (i32, i32) {
    %c0_i32 = arith.constant 0 : i32
    %c0_i32_0 = arith.constant 0 : i32
    %c0_i32_1 = arith.constant 0 : i32
    return %c0_i32, %c0_i32_0 : i32, i32
  }
  func.func @transform_6(%arg0: i32) -> (i32, i32) {
    %c0_i32 = arith.constant 0 : i32
    %c0_i32_0 = arith.constant 0 : i32
    %c0_i32_1 = arith.constant 0 : i32
    return %c0_i32, %c0_i32_0 : i32, i32
  }
  func.func @transform_7(%arg0: i32) -> (i32, i32) {
    %c0_i32 = arith.constant 0 : i32
    %c0_i32_0 = arith.constant 0 : i32
    %c0_i32_1 = arith.constant 0 : i32
    return %c0_i32, %c0_i32_0 : i32, i32
  }
  func.func @transform_8(%arg0: i32) -> (i32, i32, i32, i32) {
    %c0_i32 = arith.constant 0 : i32
    %c0_i32_0 = arith.constant 0 : i32
    %c0_i32_1 = arith.constant 0 : i32
    %c0_i32_2 = arith.constant 0 : i32
    return %arg0, %c0_i32, %c0_i32_0, %c0_i32_1 : i32, i32, i32, i32
  }
}

</mosaic_0001>

<bundles_post_ra>
// kernel: tpu_custom_call.1
= control target key start
LH: loop header
LB: loop body
LE: loop exit
PB: predicated region body
PF: predicated region fallthrough
CT: control target
= control target key end

     0   :  { %s13494_s0 = inlined_call_operand.hbm [shape: f32[2,16,16,1024], index: 0, kind: input, shape index: {}]   ;;  %s13495_s1 = inlined_call_operand.hbm [shape: f32[1024,256], index: 1, kind: input, shape index: {}]   ;;  %s13496_s2 = inlined_call_operand.hbm [shape: f32[1,256], index: 2, kind: input, shape index: {}]   ;;  %s13497_s3 = inlined_call_operand.hbm [shape: f32[1,256], index: 3, kind: input, shape index: {}]   ;;  %s13498_s4 = inlined_call_operand.hbm [shape: f32[3,3,256,256], index: 4, kind: input, shape index: {}]   ;;  %s13499_s5 = inlined_call_operand.hbm [shape: f32[1,256], index: 5, kind: input, shape index: {}]   ;;  %s13500_s6 = inlined_call_operand.hbm [shape: f32[1,256], index: 6, kind: input, shape index: {}]   ;;  %s13501_s7 = inlined_call_operand.hbm [shape: f32[256,128], index: 7, kind: input, shape index: {}]   ;;  %s13502_s8 = inlined_call_operand.hbm [shape: f32[2,16,16,128], index: 8, kind: output, shape index: {}]  }
   0x1   :  { %13507 = sst [smem:[#allocation79_spill]] %s13495_s1 }
   0x2   :  { %13 = vsyncpa [#allocation4], 0 }
   0x3   :  { %15 = vsyncpa [#allocation4 + $0x1], 0 }
   0x4   :  { %16 = vsyncpa [#allocation7], 0 }
   0x5   :  { %17 = vsyncpa [#allocation10], 0 }
   0x6   :  { %18 = vsyncpa [#allocation13], 0 }
   0x7   :  { %19 = vsyncpa [#allocation16], 0 }
   0x8   :  { %20 = vsyncpa [#allocation5], 0 }
   0x9   :  { %22 = vsyncpa [#allocation5 + $0x1], 0  ;;  %s11314_s27 = smov 0   ;;  %s11316_s28 = smov 0  }
   0xa   :  { %s11318_s29 = smov 0   ;;  %s11320_s30 = smov 0  }
   0xb LB: > { %s11250_s9 = smov [#allocation6]   ;;  %s11335_s11 = sadd.s32 4294967295, %s11248_s30   ;;  %s11248_s30 = sphi %s11320_s30, %s13643_s30   ;;  %s11244_s29 = sphi %s11318_s29, %s13642_s29   ;;  %s11240_s28 = sphi %s11316_s28, %s13641_s28   ;;  %s11236_s27 = sphi %s11314_s27, %s13640_s27  }
   0xc   : > { %s244_s10 = sshll.u32 %s11250_s9, 4  ;;  %p9108_p0 = scmp.ge.s32.totalorder %s11248_s30, 1  ;;  %s11340_s10 = int_to_ptr.vmem [resolvable:$true] %s244_s10 }
   0xd   : > { %p13504_p1 = scmp.eq.s32.totalorder %s11335_s11, 0  ;;  %p232_p2 = scmp.lt.s32.totalorder %s11248_s30, 3 }
   0xe   : > { %s11251_s13 = smov [#allocation9]   ;;  %s11252_s16 = smov [#allocation12]  }
   0xf   : > { %p11342_p3 = pnand %p9108_p0, %p232_p2  ;;  %s269_s14 = sshll.u32 %s11251_s13, 4  ;;  %s11355_s14 = int_to_ptr.vmem [resolvable:$true] %s269_s14 }
  0x10   : > { %s293_s17 = sshll.u32 %s11252_s16, 4  ;;  %s13510_s1 = sld [smem:[#allocation79_spill]]  ;;  %s11357_s17 = int_to_ptr.vmem [resolvable:$true] %s293_s17 }
  0x11   : > { %s13508_s12 = scalar_select %p11342_p3, 1, 0 }
  0x12   : > { %p10753_p5 = pneg %p11342_p3 }
  0x14   : > { %p11351_p6 = pnand %p10753_p5, %p13504_p1 }
  0x16   : > { %s10940_s20 = scalar_lea.hbm %s13510_s1, 32768  ;;  %p11367_p8 = pneg %p11351_p6 }
  0x17   : > { %p10941_p7 = scmp.ne.s32.totalorder %s13510_s1, %s10940_s20  ;;  %p10947_p11 = scmp.lt.u32.totalorder %s10940_s20, %s13510_s1 }
  0x19   : > { %p10943_p9 = pnand %p11367_p8, %p10941_p7 }
  0x1b   : > { %p10944_p10 = pneg %p10943_p9 }
  0x1d   : > { %p10949_p12 = pnand %p10947_p11, %p10944_p10 }
  0x1f   : > { %10952 = shalt.err (!%p10949_p12)
}
  0x20   : > { %s10953_s26 = scalar_lea.vmem %s11340_s10, 32768  ;;  %p10961_p5 = scmp.lt.s32.totalorder %s11340_s10, %s11340_s10 }
  0x21   : > { %p10954_p13 = scmp.ne.s32.totalorder %s11340_s10, %s10953_s26  ;;  %p10962_p4 = scmp.lt.s32.totalorder %s10953_s26, %s10953_s26 }
  0x23   : > { %p10956_p0 = pnand %p10954_p13, %p11367_p8  ;;  %p10963_p7 = por %p10962_p4, %p10961_p5 }
  0x25   : > { %p10957_p2 = pneg %p10956_p0 }
  0x27   : > { %p10964_p9 = pnand %p10963_p7, %p10957_p2 }
  0x29   : > { %10967 = shalt.err (!%p10964_p9)
}
  0x2a   : > { %s13503_s9 = smov 256   ;;  %s11254_s13 = smov 16  }
  0x2b   : > { %10756 = dma.hbm_to_vmem [thread:$0]  (!%p11351_p6), %s13510_s1, 32768, %s11340_s10, [#allocation7], %s13503_s9, %s13503_s9, %s11254_s13  }
  0x2c   : > { %s10968_s21 = scalar_lea.hbm %s13497_s3, 32 }
  0x2d   : > { %p10969_p4 = scmp.ne.s32.totalorder %s13497_s3, %s10968_s21  ;;  %p10975_p12 = scmp.lt.u32.totalorder %s10968_s21, %s13497_s3 }
  0x2f   : > { %p10971_p10 = pnand %p10969_p4, %p11367_p8 }
  0x31   : > { %p10972_p11 = pneg %p10971_p10 }
  0x33   : > { %p10977_p13 = pnand %p10975_p12, %p10972_p11 }
  0x35   : > { %10980 = shalt.err (!%p10977_p13)
}
  0x36   : > { %s10981_s10 = scalar_lea.vmem %s11355_s14, 32  ;;  %p10989_p7 = scmp.lt.s32.totalorder %s11355_s14, %s11355_s14 }
  0x37   : > { %p10982_p0 = scmp.ne.s32.totalorder %s11355_s14, %s10981_s10  ;;  %p10990_p9 = scmp.lt.s32.totalorder %s10981_s10, %s10981_s10 }
  0x39   : > { %p10984_p2 = pnand %p10982_p0, %p11367_p8  ;;  %p10991_p4 = por %p10990_p9, %p10989_p7 }
  0x3b   : > { %p10985_p5 = pneg %p10984_p2 }
  0x3d   : > { %p10992_p10 = pnand %p10991_p4, %p10985_p5 }
  0x3f   : > { %10995 = shalt.err (!%p10992_p10)
}
  0x40   : > { %10762 = dma.hbm_to_vmem [thread:$0]  (!%p11351_p6), %s13497_s3, 32, %s11355_s14, [#allocation10]  }
  0x41   : > { %s10996_s21 = scalar_lea.hbm %s13499_s5, 32 }
  0x42   : > { %p10997_p11 = scmp.ne.s32.totalorder %s13499_s5, %s10996_s21  ;;  %p11003_p0 = scmp.lt.u32.totalorder %s10996_s21, %s13499_s5 }
  0x44   : > { %p10999_p12 = pnand %p10997_p11, %p11367_p8 }
  0x46   : > { %p11000_p13 = pneg %p10999_p12 }
  0x48   : > { %p11005_p2 = pnand %p11003_p0, %p11000_p13 }
  0x4a   : > { %11008 = shalt.err (!%p11005_p2)
}
  0x4b   : > { %s11009_s14 = scalar_lea.vmem %s11357_s17, 32  ;;  %p11017_p4 = scmp.lt.s32.totalorder %s11357_s17, %s11357_s17 }
  0x4c   : > { %p11010_p5 = scmp.ne.s32.totalorder %s11357_s17, %s11009_s14  ;;  %p11018_p10 = scmp.lt.s32.totalorder %s11009_s14, %s11009_s14 }
  0x4e   : > { %p11012_p7 = pnand %p11010_p5, %p11367_p8  ;;  %p11019_p11 = por %p11018_p10, %p11017_p4 }
  0x50   : > { %p11013_p9 = pneg %p11012_p7 }
  0x52   : > { %p11020_p12 = pnand %p11019_p11, %p11013_p9 }
  0x54   : > { %11023 = shalt.err (!%p11020_p12)
}
  0x55   : > { %10768 = dma.hbm_to_vmem [thread:$0]  (!%p11351_p6), %s13499_s5, 32, %s11357_s17, [#allocation13]  }
  0x56   : > { %s11255_s18 = smov [#allocation8]   ;;  %s11256_s20 = smov [#allocation11]  }
  0x57   : > { %s258_s19 = sshll.u32 %s11255_s18, 4  ;;  %s279_s21 = sshll.u32 %s11256_s20, 4  ;;  %s259_s19 = int_to_ptr.vmem [resolvable:$true] %s258_s19  ;;  %s280_s21 = int_to_ptr.vmem [resolvable:$true] %s279_s21 }
  0x58   : > { %s11024_s25 = scalar_lea.hbm %s13496_s2, 32 }
  0x59   : > { %p11025_p13 = scmp.ne.s32.totalorder %s13496_s2, %s11024_s25  ;;  %p11031_p5 = scmp.lt.u32.totalorder %s11024_s25, %s13496_s2 }
  0x5b   : > { %p11027_p0 = pnand %p11025_p13, %p11367_p8 }
  0x5d   : > { %p11028_p2 = pneg %p11027_p0 }
  0x5f   : > { %p11033_p7 = pnand %p11031_p5, %p11028_p2 }
  0x61   : > { %11036 = shalt.err (!%p11033_p7)
}
  0x62   : > { %s11037_s17 = scalar_lea.vmem %s259_s19, 32  ;;  %p11045_p11 = scmp.lt.s32.totalorder %s259_s19, %s259_s19 }
  0x63   : > { %p11038_p9 = scmp.ne.s32.totalorder %s259_s19, %s11037_s17  ;;  %p11046_p12 = scmp.lt.s32.totalorder %s11037_s17, %s11037_s17 }
  0x65   : > { %p11040_p4 = pnand %p11038_p9, %p11367_p8  ;;  %p11047_p1 = por %p11046_p12, %p11045_p11 }
  0x67   : > { %p11041_p10 = pneg %p11040_p4 }
  0x69   : > { %p11048_p3 = pnand %p11047_p1, %p11041_p10 }
  0x6b   : > { %11051 = shalt.err (!%p11048_p3)
}
  0x6c   : > { %10759 = dma.hbm_to_vmem [thread:$0]  (!%p11351_p6), %s13496_s2, 32, %s259_s19, [#allocation7]  }
  0x6d   : > { %s11052_s22 = scalar_lea.hbm %s13498_s4, 73728 }
  0x6e   : > { %p11053_p13 = scmp.ne.s32.totalorder %s13498_s4, %s11052_s22  ;;  %p11059_p3 = scmp.lt.u32.totalorder %s11052_s22, %s13498_s4 }
  0x70   : > { %p11055_p0 = pnand %p11053_p13, %p11367_p8 }
  0x72   : > { %p11056_p1 = pneg %p11055_p0 }
  0x74   : > { %p11061_p2 = pnand %p11059_p3, %p11056_p1 }
  0x76   : > { %11064 = shalt.err (!%p11061_p2)
}
  0x77   : > { %s11065_s10 = scalar_lea.vmem %s280_s21, 73728  ;;  %p11073_p4 = scmp.lt.s32.totalorder %s280_s21, %s280_s21 }
  0x78   : > { %p11066_p5 = scmp.ne.s32.totalorder %s280_s21, %s11065_s10  ;;  %p11074_p10 = scmp.lt.s32.totalorder %s11065_s10, %s11065_s10 }
  0x7a   : > { %p11068_p7 = pnand %p11066_p5, %p11367_p8  ;;  %p11075_p11 = por %p11074_p10, %p11073_p4 }
  0x7c   : > { %p11069_p9 = pneg %p11068_p7 }
  0x7e   : > { %p11076_p12 = pnand %p11075_p11, %p11069_p9 }
  0x80   : > { %11079 = shalt.err (!%p11076_p12)
}
  0x81   : > { %s13512_s19 = smov 256   ;;  %s11257_s18 = smov [#allocation14]  }
  0x82   : > { %10765 = dma.hbm_to_vmem [thread:$0]  (!%p11351_p6), %s13498_s4, 73728, %s280_s21, [#allocation10], %s13512_s19, %s13512_s19, %s11254_s13  }
  0x83   : > { %s304_s9 = sshll.u32 %s11257_s18, 4  ;;  %s11258_s20 = smov [#allocation15]   ;;  %s305_s9 = int_to_ptr.vmem [resolvable:$true] %s304_s9 }
  0x84   : > { %s314_s22 = sshll.u32 %s11258_s20, 4  ;;  %s11080_s26 = scalar_lea.hbm %s13500_s6, 32  ;;  %s315_s22 = int_to_ptr.vmem [resolvable:$true] %s314_s22 }
  0x85   : > { %p11081_p13 = scmp.ne.s32.totalorder %s13500_s6, %s11080_s26  ;;  %p11087_p3 = scmp.lt.u32.totalorder %s11080_s26, %s13500_s6 }
  0x87   : > { %p11083_p0 = pnand %p11081_p13, %p11367_p8 }
  0x89   : > { %p11084_p1 = pneg %p11083_p0 }
  0x8b   : > { %p11089_p2 = pnand %p11087_p3, %p11084_p1 }
  0x8d   : > { %11092 = shalt.err (!%p11089_p2)
}
  0x8e   : > { %s11093_s13 = scalar_lea.vmem %s305_s9, 32  ;;  %p11101_p4 = scmp.lt.s32.totalorder %s305_s9, %s305_s9 }
  0x8f   : > { %p11094_p5 = scmp.ne.s32.totalorder %s305_s9, %s11093_s13  ;;  %p11102_p10 = scmp.lt.s32.totalorder %s11093_s13, %s11093_s13 }
  0x91   : > { %p11096_p7 = pnand %p11094_p5, %p11367_p8  ;;  %p11103_p11 = por %p11102_p10, %p11101_p4 }
  0x93   : > { %p11097_p9 = pneg %p11096_p7 }
  0x95   : > { %p11104_p12 = pnand %p11103_p11, %p11097_p9 }
  0x97   : > { %11107 = shalt.err (!%p11104_p12)
}
  0x98   : > { %10771 = dma.hbm_to_vmem [thread:$0]  (!%p11351_p6), %s13500_s6, 32, %s305_s9, [#allocation13]  }
  0x99   : > { %s11108_s18 = scalar_lea.hbm %s13501_s7, 4096 }
  0x9a   : > { %p11109_p13 = scmp.ne.s32.totalorder %s13501_s7, %s11108_s18  ;;  %p11115_p3 = scmp.lt.u32.totalorder %s11108_s18, %s13501_s7 }
  0x9c   : > { %p11111_p0 = pnand %p11109_p13, %p11367_p8 }
  0x9e   : > { %p11112_p1 = pneg %p11111_p0 }
  0xa0   : > { %p11117_p2 = pnand %p11115_p3, %p11112_p1 }
  0xa2   : > { %11120 = shalt.err (!%p11117_p2)
}
  0xa3   : > { %s11121_s14 = scalar_lea.vmem %s315_s22, 4096  ;;  %p11129_p4 = scmp.lt.s32.totalorder %s315_s22, %s315_s22 }
  0xa4   : > { %p11122_p5 = scmp.ne.s32.totalorder %s315_s22, %s11121_s14  ;;  %p11130_p10 = scmp.lt.s32.totalorder %s11121_s14, %s11121_s14 }
  0xa6   : > { %p11124_p7 = pnand %p11122_p5, %p11367_p8  ;;  %p11131_p11 = por %p11130_p10, %p11129_p4 }
  0xa8   : > { %p11125_p9 = pneg %p11124_p7 }
  0xaa   : > { %p11132_p12 = pnand %p11131_p11, %p11125_p9 }
  0xac   : > { %11135 = shalt.err (!%p11132_p12)
}
  0xad   : > { %s11259_s9 = smov 128   ;;  %s11260_s23 = smov 8  }
  0xae   : > { %10774 = dma.hbm_to_vmem [thread:$0]  (!%p11351_p6), %s13501_s7, 4096, %s315_s22, [#allocation16], %s11259_s9, %s11259_s9, %s11260_s23  }
  0xaf   : > { %s9107_s13 = sadd.s32 4294967294, %s11248_s30   ;;  %s11514_s21 = sadd.s32 1, %s11248_s30  }
  0xb0   : > { %s35_s19 = sadd.s32 1, %s11244_s29  ;;  %s32_s1 = ssub.s32 %s11248_s30, %s11514_s21 }
  0xb1   : > { %p42_p8 = scmp.ne.s32.totalorder %s11244_s29, %s11240_s28  ;;  %p33_p13 = scmp.eq.s32.totalorder %s32_s1, 0 }
  0xb2   : > { %p43_p0 = scmp.eq.s32.totalorder %s11248_s30, 0  ;;  %p48_p1 = scmp.ne.s32.totalorder %s11240_s28, %s11236_s27 }
  0xb3   : > { %p219_p3 = scmp.eq.s32.totalorder %s11335_s11, 1  ;;  %p13513_p5 = scmp.eq.s32.totalorder %s11335_s11, 0 }
  0xb4   : > { %s11526_s16 = scalar_select %p33_p13, %s11244_s29, %s35_s19  }
  0xb5   : > { %p44_p2 = por %p43_p0, %p42_p8  ;;  %p11530_p7 = por %p13513_p5, %p48_p1 }
  0xb6   : > { %p11534_p6 = por %p219_p3, %p42_p8  ;;  %p225_p9 = scmp.eq.s32.totalorder %s9107_s13, 1 }
  0xb7   : > { %p10790_p4 = scmp.lt.s32.totalorder %s11248_s30, 2  ;;  %s328_s18 = sand.u32 1, %s11244_s29  }
  0xb8   : > { %s13515_s22 = scalar_select %p11534_p6, 1, 0 }
  0xb9   : > { %p11540_p10 = por %p225_p9, %p48_p1  ;;  %s9117_s24 = sshll.u32 %s328_s18, 11 }
  0xba   : > { %s9135_s25 = sshll.u32 %s11248_s30, 15  ;;  %s332_s23 = scalar_lea.vmem [#allocation3], %s9117_s24 }
  0xbb   : > { %s13516_s20 = scalar_select %p11540_p10, 1, 0 }
  0xbc   : > { %s11548_s9 = scalar_lea.hbm %s13494_s0, %s9135_s25  ;;  %s339_s10 = sshll.u32 %s332_s23, 4  ;;  %s11554_s10 = int_to_ptr.vmem [resolvable:$true] %s339_s10 }
  0xbd   : > { %p11550_p11 = pnand %p10790_p4, %p44_p2  ;;  %s11556_s13 = scalar_lea.sflag [#allocation4], %s328_s18 }
  0xbe   : > { %s11136_s19 = scalar_lea.hbm %s11548_s9, 32768  ;;  %s11141_s25 = scalar_lea.hbm %s13494_s0, 65536 }
  0xbf   : > { %p11137_p12 = scmp.ne.s32.totalorder %s11548_s9, %s11136_s19  ;;  %p11138_p8 = pneg %p11550_p11 }
  0xc0   : > { %p11142_p1 = scmp.lt.u32.totalorder %s11548_s9, %s13494_s0  ;;  %p11143_p3 = scmp.lt.u32.totalorder %s11141_s25, %s11136_s19 }
  0xc1   : > { %p11139_p13 = pnand %p11138_p8, %p11137_p12  ;;  %p11145_p5 = scmp.lt.u32.totalorder %s11136_s19, %s11548_s9 }
  0xc2   : > { %p11144_p2 = por %p11143_p3, %p11142_p1 }
  0xc3   : > { %p11140_p0 = pneg %p11139_p13 }
  0xc4   : > { %p11146_p9 = por %p11145_p5, %p11144_p2 }
  0xc6   : > { %p11147_p4 = pnand %p11146_p9, %p11140_p0 }
  0xc8   : > { %11150 = shalt.err (!%p11147_p4)
}
  0xc9   : > { %s11151_s18 = scalar_lea.vmem %s11554_s10, 32768  ;;  %s11261_s23 = smov [#allocation3]  }
  0xca   : > { %p11152_p12 = scmp.ne.s32.totalorder %s11554_s10, %s11151_s18  ;;  %s11156_s1 = sshll.u32 %s11261_s23, 4  ;;  %s11157_s1 = int_to_ptr.vmem [resolvable:$false] %s11156_s1 }
  0xcb   : > { %s11158_s24 = scalar_lea.vmem %s11157_s1, 65536  ;;  %p11159_p6 = scmp.lt.s32.totalorder %s11554_s10, %s11157_s1 }
  0xcc   : > { %p11154_p13 = pnand %p11152_p12, %p11138_p8  ;;  %p11160_p1 = scmp.lt.s32.totalorder %s11158_s24, %s11151_s18 }
  0xce   : > { %p11155_p10 = pneg %p11154_p13  ;;  %p11161_p3 = por %p11160_p1, %p11159_p6 }
  0xd0   : > { %p11162_p2 = pnand %p11161_p3, %p11155_p10 }
  0xd2   : > { %11165 = shalt.err (!%p11162_p2)
}
  0xd3   : > { %s11262_s19 = smov 1024   ;;  %s11263_s25 = smov 64  }
  0xd4   : > { %10778 = dma.hbm_to_vmem [thread:$0]  (!%p11550_p11), %s11548_s9, 32768, %s11554_s10, %s11556_s13, %s11262_s19, %s11262_s19, %s11263_s25  }
  0xd5   : > { %p13518_p8 = scmp.ne.s32.totalorder %s13508_s12, 0 }
  0xd7   : > { %351 = sbr.rel (%p13518_p8) target bundleno = 2283 (0x8eb), region = 52 }
  0xde   : > { %s11587_s26 = sand.u32 1, %s11240_s28  }
  0xdf   : > { %s9121_s14 = sshll.u32 %s11587_s26, 11  ;;  %s354_s18 = scalar_lea.sflag [#allocation4], %s11587_s26 }
  0xe0   : > { %s11591_s23 = scalar_lea.vmem [#allocation3], %s9121_s14 }
  0xe1   : > { %11211 = dma.done.wait (%p11530_p7), %s354_s18, 32768  }
  0xe2   : > { %11213 = vsyncadd (%p11530_p7), %s354_s18, 4294934528  ;;  %p13519_p6 = scmp.eq.s32.totalorder %s11335_s11, 0 }
  0xe4   : > { %11215 = dma.done.wait (%p13519_p6), [#allocation7], 32800   ;;  %p13520_p10 = pmov %p13519_p6 }
  0xe5   : > { %p13521_p11 = pmov %p13519_p6 }
  0xe6   : > { %11217 = vsyncadd (%p13520_p10), [#allocation7], 4294934496 }
  0xe7   : > { %11219 = dma.done.wait (%p13521_p11), [#allocation10], 73760   ;;  %p13522_p0 = pmov %p13519_p6 }
  0xe9   : > { %11221 = vsyncadd (%p13522_p0), [#allocation10], 4294893536  ;;  %p13523_p5 = pmov %p13522_p0 }
  0xea   : > { %p13524_p9 = pmov %p13522_p0 }
  0xeb   : > { %11223 = dma.done.wait (%p13523_p5), [#allocation13], 64  }
  0xec   : > { %11225 = vsyncadd (%p13524_p9), [#allocation13], 4294967232  ;;  %p13525_p7 = pmov %p13522_p0 }
  0xed   : > { %p13526_p4 = pmov %p13522_p0 }
  0xee   : > { %11227 = dma.done.wait (%p13525_p7), [#allocation16], 4096  }
  0xef   : > { %11229 = vsyncadd (%p13526_p4), [#allocation16], 4294963200  ;;  %v675_v0 = vld [vmem:[#allocation6 + $0x8] sm:$0xff]  ;;  %v677_v1 = vld [vmem:[#allocation6 + $0x18] sm:$0xff]  ;;  %vm3856_vm0 = vcmask 1045504   ;;  %vm2924_vm1 = vcmask 1046528  }
  0xf0   : > { %v674_v2 = vld [vmem:[#allocation6] sm:$0xff]  ;;  %v9137_v3 = vpack.c.bf16 %v677_v1, %v675_v0  ;;  %v676_v4 = vld [vmem:[#allocation6 + $0x10] sm:$0xff]  ;;  %v679_v5 = vld [vmem:[#allocation6 + $0x28] sm:$0xff]  ;;  %vm2346_vm2 = vcmask 1040384   ;;  %s9129_s12 = sshll.u32 %s11587_s26, 8  ;;  %s9136_s9 = sshll.u32 %s11335_s11, 12 }
  0xf1   : > { %v681_v6 = vld [vmem:[#allocation6 + $0x38] sm:$0xff]  ;;  %v9139_v7 = vpack.c.bf16 %v676_v4, %v674_v2  ;;  %v678_v9 = vld [vmem:[#allocation6 + $0x20] sm:$0xff]  ;;  %v680_v10 = vld [vmem:[#allocation6 + $0x30] sm:$0xff]  ;;  %s13409_s15 = scalar_lea.vmem [#allocation17], %s9129_s12  ;;  %s13447_s1 = scalar_lea.hbm %s13502_s8, %s9136_s9 }
  0xf2   : > { %v9141_v8 = vpack.c.bf16 %v681_v6, %v679_v5  ;;  %v683_v11 = vld [vmem:[#allocation6 + $0x48] sm:$0xff]  ;;  %9138 = vmatprep.subr.bf16.mxu0 %v9137_v3  ;;  %v685_v12 = vld [vmem:[#allocation6 + $0x58] sm:$0xff]  ;;  %v9143_v13 = vpack.c.bf16 %v680_v10, %v678_v9  ;;  %v682_v15 = vld [vmem:[#allocation6 + $0x40] sm:$0xff]  ;;  %s8967_s10 = sshll.u32 %s13409_s15, 4  ;;  %s8954_s24 = scalar_lea.sflag [#allocation5], %s11587_s26  ;;  %s13449_s10 = int_to_ptr.vmem [resolvable:$true] %s8967_s10 }
  0xf3   : > { %9140 = vmatpush1.bf16.msra.mxu0 %v9139_v7  ;;  %v9145_v14 = vpack.c.bf16 %v685_v12, %v683_v11  ;;  %v684_v16 = vld [vmem:[#allocation6 + $0x50] sm:$0xff]  ;;  %v687_v17 = vld [vmem:[#allocation6 + $0x68] sm:$0xff]  ;;  %v689_v18 = vld [vmem:[#allocation6 + $0x78] sm:$0xff]  ;;  %s11166_s19 = scalar_lea.vmem %s13449_s10, 4096  ;;  %p13637_p13 = scmp.ne.s32.totalorder %s13515_s22, 0 }
  0xf4   : > { %9142 = vmatprep.subr.bf16.mxu0 %v9141_v8  ;;  %v9147_v19 = vpack.c.bf16 %v684_v16, %v682_v15  ;;  %v9149_v20 = vpack.c.bf16 %v689_v18, %v687_v17  ;;  %v686_v21 = vld [vmem:[#allocation6 + $0x60] sm:$0xff]  ;;  %v688_v22 = vld [vmem:[#allocation6 + $0x70] sm:$0xff]  ;;  %v691_v23 = vld [vmem:[#allocation6 + $0x88] sm:$0xff]  ;;  %p11167_p12 = scmp.ne.s32.totalorder %s13449_s10, %s11166_s19  ;;  %s11266_s11 = smov [#allocation17]  }
  0xf5   : > { %v693_v24 = vld [vmem:[#allocation6 + $0x98] sm:$0xff]  ;;  %v9151_v25 = vpack.c.bf16 %v688_v22, %v686_v21  ;;  %v690_v27 = vld [vmem:[#allocation6 + $0x80] sm:$0xff]  ;;  %v692_v28 = vld [vmem:[#allocation6 + $0x90] sm:$0xff]  ;;  %s11170_s25 = sshll.u32 %s11266_s11, 4  ;;  %s11171_s25 = int_to_ptr.vmem [resolvable:$false] %s11170_s25 }
  0xf6   : > { %v9153_v26 = vpack.c.bf16 %v693_v24, %v691_v23  ;;  %v695_v29 = vld [vmem:[#allocation6 + $0xa8] sm:$0xff]  ;;  %v697_v30 = vld [vmem:[#allocation6 + $0xb8] sm:$0xff]  ;;  %v9155_v31 = vpack.c.bf16 %v692_v28, %v690_v27  ;;  %v694_v33 = vld [vmem:[#allocation6 + $0xa0] sm:$0xff]  ;;  %p11168_p1 = pnand %p11167_p12, %p13637_p13  ;;  %s11172_s14 = scalar_lea.vmem %s11171_s25, 8192 }
  0xf7   : > { %9144 = vmatpush1.bf16.msra.mxu0 %v9143_v13  ;;  %v9157_v32 = vpack.c.bf16 %v697_v30, %v695_v29  ;;  %v696_v34 = vld [vmem:[#allocation6 + $0xb0] sm:$0xff]  ;;  %v699_v35 = vld [vmem:[#allocation6 + $0xc8] sm:$0xff]  ;;  %v701_v36 = vld [vmem:[#allocation6 + $0xd8] sm:$0xff]  ;;  %p11173_p2 = scmp.lt.s32.totalorder %s13449_s10, %s11171_s25  ;;  %p11174_p8 = scmp.lt.s32.totalorder %s11172_s14, %s11166_s19 }
  0xf8   : > { %9146 = vmatprep.subr.bf16.mxu0 %v9145_v14  ;;  %v9159_v37 = vpack.c.bf16 %v696_v34, %v694_v33  ;;  %v9161_v38 = vpack.c.bf16 %v701_v36, %v699_v35  ;;  %v698_v39 = vld [vmem:[#allocation6 + $0xc0] sm:$0xff]  ;;  %v700_v40 = vld [vmem:[#allocation6 + $0xd0] sm:$0xff]  ;;  %v419_v41 = vld [vmem:[%s11591_s23 + $0x8] sm:$0xff]  ;;  %p11169_p3 = pneg %p11168_p1 }
  0xf9   : > { %v703_v42 = vld [vmem:[#allocation6 + $0xe8] sm:$0xff]  ;;  %v705_v43 = vld [vmem:[#allocation6 + $0xf8] sm:$0xff]  ;;  %994 = vmatprep.mubr.f32.mxu0 %v419_v41  ;;  %v9163_v44 = vpack.c.bf16 %v700_v40, %v698_v39  ;;  %v702_v46 = vld [vmem:[#allocation6 + $0xe0] sm:$0xff]  ;;  %p11175_p6 = por %p11174_p8, %p11173_p2 }
  0xfa   : > { %v9165_v45 = vpack.c.bf16 %v705_v43, %v703_v42  ;;  %v704_v47 = vld [vmem:[#allocation6 + $0xf0] sm:$0xff]  ;;  %v707_v48 = vld [vmem:[#allocation6 + $0x108] sm:$0xff]  ;;  %v709_v49 = vld [vmem:[#allocation6 + $0x118] sm:$0xff] }
  0xfb   : > { %9148 = vmatpush1.bf16.msra.mxu0 %v9147_v19  ;;  %v9167_v50 = vpack.c.bf16 %v704_v47, %v702_v46  ;;  %v9169_v51 = vpack.c.bf16 %v709_v49, %v707_v48  ;;  %v706_v52 = vld [vmem:[#allocation6 + $0x100] sm:$0xff]  ;;  %v708_v53 = vld [vmem:[#allocation6 + $0x110] sm:$0xff]  ;;  %v711_v54 = vld [vmem:[#allocation6 + $0x128] sm:$0xff]  ;;  %p11176_p10 = pnand %p11175_p6, %p11169_p3 }
  0xfc   : > { %9150 = vmatprep.subr.bf16.mxu0 %v9149_v20  ;;  %v713_v55 = vld [vmem:[#allocation6 + $0x138] sm:$0xff]  ;;  %v9171_v56 = vpack.c.bf16 %v708_v53, %v706_v52  ;;  %v710_v58 = vld [vmem:[#allocation6 + $0x120] sm:$0xff]  ;;  %v712_v59 = vld [vmem:[#allocation6 + $0x130] sm:$0xff] }
  0xfd   : > { %v9173_v57 = vpack.c.bf16 %v713_v55, %v711_v54  ;;  %v715_v60 = vld [vmem:[#allocation6 + $0x148] sm:$0xff]  ;;  %v717_v61 = vld [vmem:[#allocation6 + $0x158] sm:$0xff]  ;;  %v9175_v62 = vpack.c.bf16 %v712_v59, %v710_v58  ;;  %v714_v0 = vld [vmem:[#allocation6 + $0x140] sm:$0xff] }
  0xfe   : > { %v9177_v63 = vpack.c.bf16 %v717_v61, %v715_v60  ;;  %v716_v1 = vld [vmem:[#allocation6 + $0x150] sm:$0xff]  ;;  %v719_v2 = vld [vmem:[#allocation6 + $0x168] sm:$0xff]  ;;  %v721_v3 = vld [vmem:[#allocation6 + $0x178] sm:$0xff] }
  0xff   : > { %9152 = vmatpush1.bf16.msra.mxu0 %v9151_v25  ;;  %v9179_v4 = vpack.c.bf16 %v716_v1, %v714_v0  ;;  %v9181_v5 = vpack.c.bf16 %v721_v3, %v719_v2  ;;  %v718_v6 = vld [vmem:[#allocation6 + $0x160] sm:$0xff]  ;;  %v720_v7 = vld [vmem:[#allocation6 + $0x170] sm:$0xff]  ;;  %v723_v8 = vld [vmem:[#allocation6 + $0x188] sm:$0xff] }
 0x100   : > { %9154 = vmatprep.subr.bf16.mxu0 %v9153_v26  ;;  %v725_v9 = vld [vmem:[#allocation6 + $0x198] sm:$0xff]  ;;  %v9183_v10 = vpack.c.bf16 %v720_v7, %v718_v6  ;;  %v722_v12 = vld [vmem:[#allocation6 + $0x180] sm:$0xff]  ;;  %v724_v13 = vld [vmem:[#allocation6 + $0x190] sm:$0xff] }
 0x101   : > { %v9185_v11 = vpack.c.bf16 %v725_v9, %v723_v8  ;;  %v727_v14 = vld [vmem:[#allocation6 + $0x1a8] sm:$0xff]  ;;  %v729_v15 = vld [vmem:[#allocation6 + $0x1b8] sm:$0xff]  ;;  %v9187_v16 = vpack.c.bf16 %v724_v13, %v722_v12  ;;  %v726_v18 = vld [vmem:[#allocation6 + $0x1a0] sm:$0xff] }
 0x102   : > { %v9189_v17 = vpack.c.bf16 %v729_v15, %v727_v14  ;;  %v728_v19 = vld [vmem:[#allocation6 + $0x1b0] sm:$0xff]  ;;  %v731_v20 = vld [vmem:[#allocation6 + $0x1c8] sm:$0xff]  ;;  %v733_v21 = vld [vmem:[#allocation6 + $0x1d8] sm:$0xff] }
 0x103   : > { %9156 = vmatpush1.bf16.msra.mxu0 %v9155_v31  ;;  %v9191_v22 = vpack.c.bf16 %v728_v19, %v726_v18  ;;  %v9193_v23 = vpack.c.bf16 %v733_v21, %v731_v20  ;;  %v730_v24 = vld [vmem:[#allocation6 + $0x1c0] sm:$0xff]  ;;  %v732_v25 = vld [vmem:[#allocation6 + $0x1d0] sm:$0xff]  ;;  %v735_v26 = vld [vmem:[#allocation6 + $0x1e8] sm:$0xff] }
 0x104   : > { %9158 = vmatprep.subr.bf16.mxu0 %v9157_v32  ;;  %v737_v27 = vld [vmem:[#allocation6 + $0x1f8] sm:$0xff]  ;;  %v9195_v28 = vpack.c.bf16 %v732_v25, %v730_v24  ;;  %v734_v30 = vld [vmem:[#allocation6 + $0x1e0] sm:$0xff]  ;;  %v736_v31 = vld [vmem:[#allocation6 + $0x1f0] sm:$0xff] }
 0x105   : > { %v9197_v29 = vpack.c.bf16 %v737_v27, %v735_v26  ;;  %v739_v32 = vld [vmem:[#allocation6 + $0x208] sm:$0xff]  ;;  %v741_v33 = vld [vmem:[#allocation6 + $0x218] sm:$0xff]  ;;  %v9199_v34 = vpack.c.bf16 %v736_v31, %v734_v30  ;;  %v738_v36 = vld [vmem:[#allocation6 + $0x200] sm:$0xff] }
 0x106   : > { %v9201_v35 = vpack.c.bf16 %v741_v33, %v739_v32  ;;  %v745_v39 = vld [vmem:[#allocation6 + $0x238] sm:$0xff]  ;;  %v418_v40 = vld [vmem:[%s11591_s23] sm:$0xff]  ;;  %v427_v42 = vld [vmem:[%s11591_s23 + $0x48] sm:$0xff] }
 0x107   : > { %9160 = vmatpush1.bf16.msra.mxu0 %v9159_v37  ;;  %v740_v37 = vld [vmem:[#allocation6 + $0x210] sm:$0xff]  ;;  %v747_v46 = vld [vmem:[#allocation6 + $0x248] sm:$0xff]  ;;  %v749_v47 = vld [vmem:[#allocation6 + $0x258] sm:$0xff] }
 0x108   : > { %9162 = vmatprep.subr.bf16.mxu0 %v9161_v38  ;;  %v743_v38 = vld [vmem:[#allocation6 + $0x228] sm:$0xff]  ;;  %v9203_v41 = vpack.c.bf16 %v740_v37, %v738_v36  ;;  %v426_v48 = vld [vmem:[%s11591_s23 + $0x40] sm:$0xff]  ;;  %v748_v53 = vld [vmem:[#allocation6 + $0x250] sm:$0xff] }
 0x109   : > { %v9205_v43 = vpack.c.bf16 %v745_v39, %v743_v38  ;;  %v746_v52 = vld [vmem:[#allocation6 + $0x240] sm:$0xff]  ;;  %v751_v54 = vld [vmem:[#allocation6 + $0x268] sm:$0xff]  ;;  %v753_v55 = vld [vmem:[#allocation6 + $0x278] sm:$0xff] }
 0x10a   : > { %v443_v58 = vld [vmem:[%s11591_s23 + $0xc8] sm:$0xff]  ;;  %v9213_v59 = vpack.c.bf16 %v753_v55, %v751_v54  ;;  %v750_v60 = vld [vmem:[#allocation6 + $0x260] sm:$0xff]  ;;  %v752_v61 = vld [vmem:[#allocation6 + $0x270] sm:$0xff] }
 0x10b   : > { %9164 = vmatpush1.bf16.msra.mxu0 %v9163_v44  ;;  %v742_v44 = vld [vmem:[#allocation6 + $0x220] sm:$0xff]  ;;  %v9215_v1 = vpack.c.bf16 %v752_v61, %v750_v60  ;;  %v451_v2 = vld [vmem:[%s11591_s23 + $0x108] sm:$0xff]  ;;  %v761_v7 = vld [vmem:[#allocation6 + $0x2b8] sm:$0xff] }
 0x10c   : > { %9166 = vmatprep.subr.bf16.mxu0 %v9165_v45  ;;  %v744_v45 = vld [vmem:[#allocation6 + $0x230] sm:$0xff]  ;;  %v442_v0 = vld [vmem:[%s11591_s23 + $0xc0] sm:$0xff]  ;;  %v759_v6 = vld [vmem:[#allocation6 + $0x2a8] sm:$0xff] }
 0x10d   : > { %v9207_v49 = vpack.c.bf16 %v744_v45, %v742_v44  ;;  %v450_v8 = vld [vmem:[%s11591_s23 + $0x100] sm:$0xff]  ;;  %v760_v13 = vld [vmem:[#allocation6 + $0x2b0] sm:$0xff]  ;;  %v763_v14 = vld [vmem:[#allocation6 + $0x2c8] sm:$0xff] }
 0x10e   : > { %v758_v12 = vld [vmem:[#allocation6 + $0x2a0] sm:$0xff]  ;;  %v765_v15 = vld [vmem:[#allocation6 + $0x2d8] sm:$0xff]  ;;  %v467_v18 = vld [vmem:[%s11591_s23 + $0x188] sm:$0xff] }
 0x10f   : > { %9168 = vmatpush1.bf16.msra.mxu0 %v9167_v50  ;;  %v435_v50 = vld [vmem:[%s11591_s23 + $0x88] sm:$0xff]  ;;  %v9225_v19 = vpack.c.bf16 %v765_v15, %v763_v14  ;;  %v762_v20 = vld [vmem:[#allocation6 + $0x2c0] sm:$0xff]  ;;  %v764_v21 = vld [vmem:[#allocation6 + $0x2d0] sm:$0xff] }
 0x110   : > { %9170 = vmatprep.subr.bf16.mxu0 %v9169_v51  ;;  %v9209_v51 = vpack.c.bf16 %v749_v47, %v747_v46  ;;  %v466_v24 = vld [vmem:[%s11591_s23 + $0x180] sm:$0xff]  ;;  %v9227_v25 = vpack.c.bf16 %v764_v21, %v762_v20  ;;  %v475_v26 = vld [vmem:[%s11591_s23 + $0x1c8] sm:$0xff]  ;;  %v773_v31 = vld [vmem:[#allocation6 + $0x318] sm:$0xff] }
 0x111   : > { %v771_v30 = vld [vmem:[#allocation6 + $0x308] sm:$0xff]  ;;  %v474_v32 = vld [vmem:[%s11591_s23 + $0x1c0] sm:$0xff]  ;;  %v772_v37 = vld [vmem:[#allocation6 + $0x310] sm:$0xff] }
 0x112   : > { %v770_v36 = vld [vmem:[#allocation6 + $0x300] sm:$0xff]  ;;  %v775_v38 = vld [vmem:[#allocation6 + $0x328] sm:$0xff]  ;;  %v777_v39 = vld [vmem:[#allocation6 + $0x338] sm:$0xff] }
 0x113   : > { %9172 = vmatpush1.bf16.msra.mxu0 %v9171_v56  ;;  %v434_v56 = vld [vmem:[%s11591_s23 + $0x80] sm:$0xff]  ;;  %v776_v45 = vld [vmem:[#allocation6 + $0x330] sm:$0xff]  ;;  %v779_v46 = vld [vmem:[#allocation6 + $0x348] sm:$0xff] }
 0x114   : > { %9174 = vmatprep.subr.bf16.mxu0 %v9173_v57  ;;  %v9211_v57 = vpack.c.bf16 %v748_v53, %v746_v52  ;;  %v774_v44 = vld [vmem:[#allocation6 + $0x320] sm:$0xff]  ;;  %v781_v47 = vld [vmem:[#allocation6 + $0x358] sm:$0xff]  ;;  %v780_v53 = vld [vmem:[#allocation6 + $0x350] sm:$0xff] }
 0x115   : > { %v778_v52 = vld [vmem:[#allocation6 + $0x340] sm:$0xff]  ;;  %v783_v54 = vld [vmem:[#allocation6 + $0x368] sm:$0xff]  ;;  %v785_v55 = vld [vmem:[#allocation6 + $0x378] sm:$0xff] }
 0x116   : > { %v782_v60 = vld [vmem:[#allocation6 + $0x360] sm:$0xff]  ;;  %v784_v61 = vld [vmem:[#allocation6 + $0x370] sm:$0xff]  ;;  %v795_v14 = vld [vmem:[#allocation6 + $0x3c8] sm:$0xff] }
 0x117   : > { %9176 = vmatpush1.bf16.msra.mxu0 %v9175_v62  ;;  %v755_v62 = vld [vmem:[#allocation6 + $0x288] sm:$0xff]  ;;  %v797_v15 = vld [vmem:[#allocation6 + $0x3d8] sm:$0xff]  ;;  %v794_v20 = vld [vmem:[#allocation6 + $0x3c0] sm:$0xff] }
 0x118   : > { %9178 = vmatprep.subr.bf16.mxu0 %v9177_v63  ;;  %v757_v63 = vld [vmem:[#allocation6 + $0x298] sm:$0xff]  ;;  %v796_v21 = vld [vmem:[#allocation6 + $0x3d0] sm:$0xff] }
 0x119   : > { %v9217_v3 = vpack.c.bf16 %v757_v63, %v755_v62  ;;  %v787_v62 = vld [vmem:[#allocation6 + $0x388] sm:$0xff]  ;;  %v789_v63 = vld [vmem:[#allocation6 + $0x398] sm:$0xff] }
 0x11b   : > { %9180 = vmatpush1.bf16.msra.mxu0 %v9179_v4  ;;  %v754_v4 = vld [vmem:[#allocation6 + $0x280] sm:$0xff] }
 0x11c   : > { %9182 = vmatprep.subr.bf16.mxu0 %v9181_v5  ;;  %v756_v5 = vld [vmem:[#allocation6 + $0x290] sm:$0xff] }
 0x11d   : > { %v9219_v9 = vpack.c.bf16 %v756_v5, %v754_v4  ;;  %v786_v4 = vld [vmem:[#allocation6 + $0x380] sm:$0xff]  ;;  %v788_v5 = vld [vmem:[#allocation6 + $0x390] sm:$0xff] }
 0x11f   : > { %9184 = vmatpush1.bf16.msra.mxu0 %v9183_v10  ;;  %v459_v10 = vld [vmem:[%s11591_s23 + $0x148] sm:$0xff] }
 0x120   : > { %9186 = vmatprep.subr.bf16.mxu0 %v9185_v11  ;;  %v9221_v11 = vpack.c.bf16 %v761_v7, %v759_v6  ;;  %v791_v6 = vld [vmem:[#allocation6 + $0x3a8] sm:$0xff]  ;;  %v793_v7 = vld [vmem:[#allocation6 + $0x3b8] sm:$0xff] }
 0x123   : > { %9188 = vmatpush1.bf16.msra.mxu0 %v9187_v16  ;;  %v458_v16 = vld [vmem:[%s11591_s23 + $0x140] sm:$0xff] }
 0x124   : > { %9190 = vmatprep.subr.bf16.mxu0 %v9189_v17  ;;  %v9223_v17 = vpack.c.bf16 %v760_v13, %v758_v12  ;;  %v790_v12 = vld [vmem:[#allocation6 + $0x3a0] sm:$0xff]  ;;  %v792_v13 = vld [vmem:[#allocation6 + $0x3b0] sm:$0xff] }
 0x127   : > { %9192 = vmatpush1.bf16.msra.mxu0 %v9191_v22  ;;  %v767_v22 = vld [vmem:[#allocation6 + $0x2e8] sm:$0xff] }
 0x128   : > { %9194 = vmatprep.subr.bf16.mxu0 %v9193_v23  ;;  %v769_v23 = vld [vmem:[#allocation6 + $0x2f8] sm:$0xff] }
 0x129   : > { %v9229_v27 = vpack.c.bf16 %v769_v23, %v767_v22  ;;  %v799_v22 = vld [vmem:[#allocation6 + $0x3e8] sm:$0xff]  ;;  %v801_v23 = vld [vmem:[#allocation6 + $0x3f8] sm:$0xff] }
 0x12b   : > { %9196 = vmatpush1.bf16.msra.mxu0 %v9195_v28  ;;  %v766_v28 = vld [vmem:[#allocation6 + $0x2e0] sm:$0xff] }
 0x12c   : > { %9198 = vmatprep.subr.bf16.mxu0 %v9197_v29  ;;  %v768_v29 = vld [vmem:[#allocation6 + $0x2f0] sm:$0xff] }
 0x12d   : > { %v9231_v33 = vpack.c.bf16 %v768_v29, %v766_v28  ;;  %v798_v28 = vld [vmem:[#allocation6 + $0x3e0] sm:$0xff]  ;;  %v800_v29 = vld [vmem:[#allocation6 + $0x3f0] sm:$0xff] }
 0x12f   : > { %9200 = vmatpush1.bf16.msra.mxu0 %v9199_v34  ;;  %v483_v34 = vld [vmem:[%s11591_s23 + $0x208] sm:$0xff] }
 0x130   : > { %9202 = vmatprep.subr.bf16.mxu0 %v9201_v35  ;;  %v9233_v35 = vpack.c.bf16 %v773_v31, %v771_v30  ;;  %v803_v30 = vld [vmem:[#allocation6 + $0x408] sm:$0xff]  ;;  %v805_v31 = vld [vmem:[#allocation6 + $0x418] sm:$0xff] }
 0x132   : > { %995 = vmatmul.mubr.f32.vlgmr.msra.gmra.mrb[0].mxu0 %v418_v40  ;;  %v482_v40 = vld [vmem:[%s11591_s23 + $0x200] sm:$0xff] }
 0x133   : > { %9204 = vmatpush1.bf16.msra.mxu0 %v9203_v41  ;;  %1000 = vmatprep.mubr.f32.mxu0 %v427_v42  ;;  %v9235_v41 = vpack.c.bf16 %v772_v37, %v770_v36  ;;  %v491_v42 = vld [vmem:[%s11591_s23 + $0x248] sm:$0xff]  ;;  %v546_v36 = vld [vmem:[%s11591_s23 + $0x400] sm:$0xff] }
 0x134   : > { %9206 = vmatprep.subr.bf16.mxu0 %v9205_v43  ;;  %v9237_v43 = vpack.c.bf16 %v777_v39, %v775_v38  ;;  %v555_v37 = vld [vmem:[%s11591_s23 + $0x448] sm:$0xff]  ;;  %v554_v38 = vld [vmem:[%s11591_s23 + $0x440] sm:$0xff] }
 0x135   : > { %v563_v39 = vld [vmem:[%s11591_s23 + $0x488] sm:$0xff] }
 0x136   : > { %1001 = vmatmul.mubr.f32.gmra.mrb[2].mxu0 %v426_v48  ;;  %v490_v48 = vld [vmem:[%s11591_s23 + $0x240] sm:$0xff] }
 0x137   : > { %1006 = vmatprep.mubr.f32.mxu0 %v435_v50  ;;  %9208 = vmatpush1.bf16.msra.mxu0 %v9207_v49  ;;  %v9239_v49 = vpack.c.bf16 %v776_v45, %v774_v44  ;;  %v499_v50 = vld [vmem:[%s11591_s23 + $0x288] sm:$0xff]  ;;  %v578_v44 = vld [vmem:[%s11591_s23 + $0x500] sm:$0xff] }
 0x138   : > { %9210 = vmatprep.subr.bf16.mxu0 %v9209_v51  ;;  %v9241_v51 = vpack.c.bf16 %v781_v47, %v779_v46  ;;  %v587_v45 = vld [vmem:[%s11591_s23 + $0x548] sm:$0xff]  ;;  %v586_v46 = vld [vmem:[%s11591_s23 + $0x540] sm:$0xff] }
 0x139   : > { %v595_v47 = vld [vmem:[%s11591_s23 + $0x588] sm:$0xff] }
 0x13a   : > { %1007 = vmatmul.mubr.f32.gmra.mrb[4].mxu0 %v434_v56  ;;  %v498_v56 = vld [vmem:[%s11591_s23 + $0x280] sm:$0xff] }
 0x13b   : > { %1012 = vmatprep.mubr.f32.mxu0 %v443_v58  ;;  %9212 = vmatpush1.bf16.msra.mxu0 %v9211_v57  ;;  %v9243_v57 = vpack.c.bf16 %v780_v53, %v778_v52  ;;  %v507_v58 = vld [vmem:[%s11591_s23 + $0x2c8] sm:$0xff]  ;;  %v610_v52 = vld [vmem:[%s11591_s23 + $0x600] sm:$0xff] }
 0x13c   : > { %9214 = vmatprep.subr.bf16.mxu0 %v9213_v59  ;;  %v9245_v59 = vpack.c.bf16 %v785_v55, %v783_v54  ;;  %v619_v53 = vld [vmem:[%s11591_s23 + $0x648] sm:$0xff]  ;;  %v618_v54 = vld [vmem:[%s11591_s23 + $0x640] sm:$0xff] }
 0x13d   : > { %v627_v55 = vld [vmem:[%s11591_s23 + $0x688] sm:$0xff] }
 0x13e   : > { %1013 = vmatmul.mubr.f32.gmra.mrb[6].mxu0 %v442_v0  ;;  %v506_v0 = vld [vmem:[%s11591_s23 + $0x2c0] sm:$0xff] }
 0x13f   : > { %1018 = vmatprep.mubr.f32.mxu0 %v451_v2  ;;  %9216 = vmatpush1.bf16.msra.mxu0 %v9215_v1  ;;  %v9247_v1 = vpack.c.bf16 %v784_v61, %v782_v60  ;;  %v515_v2 = vld [vmem:[%s11591_s23 + $0x308] sm:$0xff]  ;;  %v642_v60 = vld [vmem:[%s11591_s23 + $0x700] sm:$0xff] }
 0x140   : > { %9218 = vmatprep.subr.bf16.mxu0 %v9217_v3  ;;  %v9249_v3 = vpack.c.bf16 %v789_v63, %v787_v62  ;;  %v651_v61 = vld [vmem:[%s11591_s23 + $0x748] sm:$0xff]  ;;  %v650_v62 = vld [vmem:[%s11591_s23 + $0x740] sm:$0xff] }
 0x141   : > { %v659_v63 = vld [vmem:[%s11591_s23 + $0x788] sm:$0xff] }
 0x142   : > { %1019 = vmatmul.mubr.f32.gmra.mrb[8].mxu0 %v450_v8  ;;  %v514_v8 = vld [vmem:[%s11591_s23 + $0x300] sm:$0xff] }
 0x143   : > { %1024 = vmatprep.mubr.f32.mxu0 %v459_v10  ;;  %9220 = vmatpush1.bf16.msra.mxu0 %v9219_v9  ;;  %v9251_v9 = vpack.c.bf16 %v788_v5, %v786_v4  ;;  %v523_v10 = vld [vmem:[%s11591_s23 + $0x348] sm:$0xff]  ;;  %v802_v4 = vld [vmem:[#allocation6 + $0x400] sm:$0xff]  ;;  %v804_v5 = vld [vmem:[#allocation6 + $0x410] sm:$0xff] }
 0x144   : > { %9222 = vmatprep.subr.bf16.mxu0 %v9221_v11  ;;  %v9253_v11 = vpack.c.bf16 %v793_v7, %v791_v6  ;;  %v807_v6 = vld [vmem:[#allocation6 + $0x428] sm:$0xff]  ;;  %v809_v7 = vld [vmem:[#allocation6 + $0x438] sm:$0xff] }
 0x146   : > { %1025 = vmatmul.mubr.f32.gmra.mrb[10].mxu0 %v458_v16  ;;  %v522_v16 = vld [vmem:[%s11591_s23 + $0x340] sm:$0xff] }
 0x147   : > { %1030 = vmatprep.mubr.f32.mxu0 %v467_v18  ;;  %9224 = vmatpush1.bf16.msra.mxu0 %v9223_v17  ;;  %v9255_v17 = vpack.c.bf16 %v792_v13, %v790_v12  ;;  %v531_v18 = vld [vmem:[%s11591_s23 + $0x388] sm:$0xff]  ;;  %v806_v12 = vld [vmem:[#allocation6 + $0x420] sm:$0xff]  ;;  %v808_v13 = vld [vmem:[#allocation6 + $0x430] sm:$0xff] }
 0x148   : > { %9226 = vmatprep.subr.bf16.mxu0 %v9225_v19  ;;  %v9257_v19 = vpack.c.bf16 %v797_v15, %v795_v14  ;;  %v811_v14 = vld [vmem:[#allocation6 + $0x448] sm:$0xff]  ;;  %v813_v15 = vld [vmem:[#allocation6 + $0x458] sm:$0xff] }
 0x14a   : > { %1031 = vmatmul.mubr.f32.gmra.mrb[12].mxu0 %v466_v24  ;;  %v530_v24 = vld [vmem:[%s11591_s23 + $0x380] sm:$0xff] }
 0x14b   : > { %1036 = vmatprep.mubr.f32.mxu0 %v475_v26  ;;  %9228 = vmatpush1.bf16.msra.mxu0 %v9227_v25  ;;  %v9259_v25 = vpack.c.bf16 %v796_v21, %v794_v20  ;;  %v539_v26 = vld [vmem:[%s11591_s23 + $0x3c8] sm:$0xff]  ;;  %v810_v20 = vld [vmem:[#allocation6 + $0x440] sm:$0xff]  ;;  %v812_v21 = vld [vmem:[#allocation6 + $0x450] sm:$0xff] }
 0x14c   : > { %9230 = vmatprep.subr.bf16.mxu0 %v9229_v27  ;;  %v9261_v27 = vpack.c.bf16 %v801_v23, %v799_v22  ;;  %v815_v22 = vld [vmem:[#allocation6 + $0x468] sm:$0xff]  ;;  %v817_v23 = vld [vmem:[#allocation6 + $0x478] sm:$0xff] }
 0x14e   : > { %1037 = vmatmul.mubr.f32.gmra.mrb[14].mxu0 %v474_v32  ;;  %v538_v32 = vld [vmem:[%s11591_s23 + $0x3c0] sm:$0xff] }
 0x14f   : > { %1042 = vmatprep.mubr.f32.mxu0 %v483_v34  ;;  %9232 = vmatpush1.bf16.msra.mxu0 %v9231_v33  ;;  %v9263_v33 = vpack.c.bf16 %v800_v29, %v798_v28  ;;  %v547_v34 = vld [vmem:[%s11591_s23 + $0x408] sm:$0xff]  ;;  %v814_v28 = vld [vmem:[#allocation6 + $0x460] sm:$0xff]  ;;  %v816_v29 = vld [vmem:[#allocation6 + $0x470] sm:$0xff] }
 0x150   : > { %9234 = vmatprep.subr.bf16.mxu0 %v9233_v35  ;;  %v9265_v35 = vpack.c.bf16 %v805_v31, %v803_v30  ;;  %v819_v30 = vld [vmem:[#allocation6 + $0x488] sm:$0xff]  ;;  %v821_v31 = vld [vmem:[#allocation6 + $0x498] sm:$0xff] }
 0x152   : > { %1043 = vmatmul.mubr.f32.gmra.mrb[16].mxu0 %v482_v40  ;;  %v562_v40 = vld [vmem:[%s11591_s23 + $0x480] sm:$0xff] }
 0x153   : > { %1048 = vmatprep.mubr.f32.mxu0 %v491_v42  ;;  %9236 = vmatpush1.bf16.msra.mxu0 %v9235_v41  ;;  %v571_v41 = vld [vmem:[%s11591_s23 + $0x4c8] sm:$0xff]  ;;  %v570_v42 = vld [vmem:[%s11591_s23 + $0x4c0] sm:$0xff] }
 0x154   : > { %9238 = vmatprep.subr.bf16.mxu0 %v9237_v43  ;;  %v579_v43 = vld [vmem:[%s11591_s23 + $0x508] sm:$0xff] }
 0x156   : > { %1049 = vmatmul.mubr.f32.gmra.mrb[18].mxu0 %v490_v48  ;;  %v594_v48 = vld [vmem:[%s11591_s23 + $0x580] sm:$0xff] }
 0x157   : > { %1054 = vmatprep.mubr.f32.mxu0 %v499_v50  ;;  %9240 = vmatpush1.bf16.msra.mxu0 %v9239_v49  ;;  %v603_v49 = vld [vmem:[%s11591_s23 + $0x5c8] sm:$0xff]  ;;  %v602_v50 = vld [vmem:[%s11591_s23 + $0x5c0] sm:$0xff] }
 0x158   : > { %9242 = vmatprep.subr.bf16.mxu0 %v9241_v51  ;;  %v611_v51 = vld [vmem:[%s11591_s23 + $0x608] sm:$0xff] }
 0x15a   : > { %1055 = vmatmul.mubr.f32.gmra.mrb[20].mxu0 %v498_v56  ;;  %v626_v56 = vld [vmem:[%s11591_s23 + $0x680] sm:$0xff] }
 0x15b   : > { %1060 = vmatprep.mubr.f32.mxu0 %v507_v58  ;;  %9244 = vmatpush1.bf16.msra.mxu0 %v9243_v57  ;;  %v635_v57 = vld [vmem:[%s11591_s23 + $0x6c8] sm:$0xff]  ;;  %v634_v58 = vld [vmem:[%s11591_s23 + $0x6c0] sm:$0xff] }
 0x15c   : > { %9246 = vmatprep.subr.bf16.mxu0 %v9245_v59  ;;  %v643_v59 = vld [vmem:[%s11591_s23 + $0x708] sm:$0xff] }
 0x15e   : > { %1061 = vmatmul.mubr.f32.gmra.mrb[22].mxu0 %v506_v0  ;;  %v658_v0 = vld [vmem:[%s11591_s23 + $0x780] sm:$0xff] }
 0x15f   : > { %1066 = vmatprep.mubr.f32.mxu0 %v515_v2  ;;  %9248 = vmatpush1.bf16.msra.mxu0 %v9247_v1  ;;  %v667_v1 = vld [vmem:[%s11591_s23 + $0x7c8] sm:$0xff]  ;;  %v666_v2 = vld [vmem:[%s11591_s23 + $0x7c0] sm:$0xff] }
 0x160   : > { %9250 = vmatprep.subr.bf16.mxu0 %v9249_v3  ;;  %v421_v3 = vld [vmem:[%s11591_s23 + $0x18] sm:$0xff] }
 0x162   : > { %1067 = vmatmul.mubr.f32.gmra.mrb[24].mxu0 %v514_v8  ;;  %v420_v8 = vld [vmem:[%s11591_s23 + $0x10] sm:$0xff] }
 0x163   : > { %1072 = vmatprep.mubr.f32.mxu0 %v523_v10  ;;  %9252 = vmatpush1.bf16.msra.mxu0 %v9251_v9  ;;  %v9267_v9 = vpack.c.bf16 %v804_v5, %v802_v4  ;;  %v429_v10 = vld [vmem:[%s11591_s23 + $0x58] sm:$0xff]  ;;  %v834_v4 = vld [vmem:[#allocation6 + $0x500] sm:$0xff]  ;;  %v836_v5 = vld [vmem:[#allocation6 + $0x510] sm:$0xff] }
 0x164   : > { %9254 = vmatprep.subr.bf16.mxu0 %v9253_v11  ;;  %v9269_v11 = vpack.c.bf16 %v809_v7, %v807_v6  ;;  %v839_v6 = vld [vmem:[#allocation6 + $0x528] sm:$0xff]  ;;  %v841_v7 = vld [vmem:[#allocation6 + $0x538] sm:$0xff] }
 0x166   : > { %1073 = vmatmul.mubr.f32.gmra.mrb[26].mxu0 %v522_v16  ;;  %v428_v16 = vld [vmem:[%s11591_s23 + $0x50] sm:$0xff] }
 0x167   : > { %1078 = vmatprep.mubr.f32.mxu0 %v531_v18  ;;  %9256 = vmatpush1.bf16.msra.mxu0 %v9255_v17  ;;  %v9271_v17 = vpack.c.bf16 %v808_v13, %v806_v12  ;;  %v437_v18 = vld [vmem:[%s11591_s23 + $0x98] sm:$0xff]  ;;  %v838_v12 = vld [vmem:[#allocation6 + $0x520] sm:$0xff]  ;;  %v840_v13 = vld [vmem:[#allocation6 + $0x530] sm:$0xff] }
 0x168   : > { %9258 = vmatprep.subr.bf16.mxu0 %v9257_v19  ;;  %v9273_v19 = vpack.c.bf16 %v813_v15, %v811_v14  ;;  %v843_v14 = vld [vmem:[#allocation6 + $0x548] sm:$0xff]  ;;  %v845_v15 = vld [vmem:[#allocation6 + $0x558] sm:$0xff] }
 0x16a   : > { %1079 = vmatmul.mubr.f32.gmra.mrb[28].mxu0 %v530_v24  ;;  %v436_v24 = vld [vmem:[%s11591_s23 + $0x90] sm:$0xff] }
 0x16b   : > { %1084 = vmatprep.mubr.f32.mxu0 %v539_v26  ;;  %9260 = vmatpush1.bf16.msra.mxu0 %v9259_v25  ;;  %v9275_v25 = vpack.c.bf16 %v812_v21, %v810_v20  ;;  %v445_v26 = vld [vmem:[%s11591_s23 + $0xd8] sm:$0xff]  ;;  %v842_v20 = vld [vmem:[#allocation6 + $0x540] sm:$0xff]  ;;  %v844_v21 = vld [vmem:[#allocation6 + $0x550] sm:$0xff] }
 0x16c   : > { %9262 = vmatprep.subr.bf16.mxu0 %v9261_v27  ;;  %v9277_v27 = vpack.c.bf16 %v817_v23, %v815_v22  ;;  %v847_v22 = vld [vmem:[#allocation6 + $0x568] sm:$0xff]  ;;  %v849_v23 = vld [vmem:[#allocation6 + $0x578] sm:$0xff] }
 0x16e   : > { %1085 = vmatmul.mubr.f32.gmra.mrb[30].mxu0 %v538_v32  ;;  %v444_v32 = vld [vmem:[%s11591_s23 + $0xd0] sm:$0xff] }
 0x16f   : > { %1090 = vmatprep.mubr.f32.mxu0 %v547_v34  ;;  %9264 = vmatpush1.bf16.msra.mxu0 %v9263_v33  ;;  %v9279_v33 = vpack.c.bf16 %v816_v29, %v814_v28  ;;  %v453_v34 = vld [vmem:[%s11591_s23 + $0x118] sm:$0xff]  ;;  %v846_v28 = vld [vmem:[#allocation6 + $0x560] sm:$0xff]  ;;  %v848_v29 = vld [vmem:[#allocation6 + $0x570] sm:$0xff] }
 0x170   : > { %9266 = vmatprep.subr.bf16.mxu0 %v9265_v35  ;;  %v9281_v35 = vpack.c.bf16 %v821_v31, %v819_v30  ;;  %v851_v30 = vld [vmem:[#allocation6 + $0x588] sm:$0xff]  ;;  %v853_v31 = vld [vmem:[#allocation6 + $0x598] sm:$0xff] }
 0x172   : > { %1091 = vmatmul.mubr.f32.gmra.mrb[32].mxu0 %v546_v36  ;;  %v818_v36 = vld [vmem:[#allocation6 + $0x480] sm:$0xff] }
 0x173   : > { %1096 = vmatprep.mubr.f32.mxu0 %v555_v37  ;;  %v820_v37 = vld [vmem:[#allocation6 + $0x490] sm:$0xff] }
 0x176   : > { %1097 = vmatmul.mubr.f32.gmra.mrb[34].mxu0 %v554_v38  ;;  %v823_v38 = vld [vmem:[#allocation6 + $0x4a8] sm:$0xff] }
 0x177   : > { %1102 = vmatprep.mubr.f32.mxu0 %v563_v39  ;;  %v825_v39 = vld [vmem:[#allocation6 + $0x4b8] sm:$0xff] }
 0x17a   : > { %1103 = vmatmul.mubr.f32.gmra.mrb[36].mxu0 %v562_v40  ;;  %v452_v40 = vld [vmem:[%s11591_s23 + $0x110] sm:$0xff] }
 0x17b   : > { %1108 = vmatprep.mubr.f32.mxu0 %v571_v41  ;;  %v9283_v41 = vpack.c.bf16 %v820_v37, %v818_v36  ;;  %v850_v36 = vld [vmem:[#allocation6 + $0x580] sm:$0xff]  ;;  %v852_v37 = vld [vmem:[#allocation6 + $0x590] sm:$0xff] }
 0x17e   : > { %1109 = vmatmul.mubr.f32.gmra.mrb[38].mxu0 %v570_v42  ;;  %v461_v42 = vld [vmem:[%s11591_s23 + $0x158] sm:$0xff] }
 0x17f   : > { %1114 = vmatprep.mubr.f32.mxu0 %v579_v43  ;;  %v9285_v43 = vpack.c.bf16 %v825_v39, %v823_v38  ;;  %v855_v38 = vld [vmem:[#allocation6 + $0x5a8] sm:$0xff]  ;;  %v857_v39 = vld [vmem:[#allocation6 + $0x5b8] sm:$0xff] }
 0x182   : > { %1115 = vmatmul.mubr.f32.gmra.mrb[40].mxu0 %v578_v44  ;;  %v822_v44 = vld [vmem:[#allocation6 + $0x4a0] sm:$0xff] }
 0x183   : > { %1120 = vmatprep.mubr.f32.mxu0 %v587_v45  ;;  %v824_v45 = vld [vmem:[#allocation6 + $0x4b0] sm:$0xff] }
 0x186   : > { %1121 = vmatmul.mubr.f32.gmra.mrb[42].mxu0 %v586_v46  ;;  %v827_v46 = vld [vmem:[#allocation6 + $0x4c8] sm:$0xff] }
 0x187   : > { %1126 = vmatprep.mubr.f32.mxu0 %v595_v47  ;;  %v829_v47 = vld [vmem:[#allocation6 + $0x4d8] sm:$0xff] }
 0x18a   : > { %1127 = vmatmul.mubr.f32.gmra.mrb[44].mxu0 %v594_v48  ;;  %v460_v48 = vld [vmem:[%s11591_s23 + $0x150] sm:$0xff] }
 0x18b   : > { %1132 = vmatprep.mubr.f32.mxu0 %v603_v49  ;;  %v9287_v49 = vpack.c.bf16 %v824_v45, %v822_v44  ;;  %v854_v44 = vld [vmem:[#allocation6 + $0x5a0] sm:$0xff]  ;;  %v856_v45 = vld [vmem:[#allocation6 + $0x5b0] sm:$0xff] }
 0x18e   : > { %1133 = vmatmul.mubr.f32.gmra.mrb[46].mxu0 %v602_v50  ;;  %v469_v50 = vld [vmem:[%s11591_s23 + $0x198] sm:$0xff] }
 0x18f   : > { %1138 = vmatprep.mubr.f32.mxu0 %v611_v51  ;;  %v9289_v51 = vpack.c.bf16 %v829_v47, %v827_v46  ;;  %v859_v46 = vld [vmem:[#allocation6 + $0x5c8] sm:$0xff]  ;;  %v861_v47 = vld [vmem:[#allocation6 + $0x5d8] sm:$0xff] }
 0x192   : > { %1139 = vmatmul.mubr.f32.gmra.mrb[48].mxu0 %v610_v52  ;;  %v826_v52 = vld [vmem:[#allocation6 + $0x4c0] sm:$0xff] }
 0x193   : > { %1144 = vmatprep.mubr.f32.mxu0 %v619_v53  ;;  %v828_v53 = vld [vmem:[#allocation6 + $0x4d0] sm:$0xff] }
 0x196   : > { %1145 = vmatmul.mubr.f32.gmra.mrb[50].mxu0 %v618_v54  ;;  %v831_v54 = vld [vmem:[#allocation6 + $0x4e8] sm:$0xff] }
 0x197   : > { %1150 = vmatprep.mubr.f32.mxu0 %v627_v55  ;;  %v833_v55 = vld [vmem:[#allocation6 + $0x4f8] sm:$0xff] }
 0x19a   : > { %1151 = vmatmul.mubr.f32.gmra.mrb[52].mxu0 %v626_v56  ;;  %v468_v56 = vld [vmem:[%s11591_s23 + $0x190] sm:$0xff] }
 0x19b   : > { %1156 = vmatprep.mubr.f32.mxu0 %v635_v57  ;;  %v9291_v57 = vpack.c.bf16 %v828_v53, %v826_v52  ;;  %v858_v52 = vld [vmem:[#allocation6 + $0x5c0] sm:$0xff]  ;;  %v860_v53 = vld [vmem:[#allocation6 + $0x5d0] sm:$0xff] }
 0x19e   : > { %1157 = vmatmul.mubr.f32.gmra.mrb[54].mxu0 %v634_v58  ;;  %v477_v58 = vld [vmem:[%s11591_s23 + $0x1d8] sm:$0xff] }
 0x19f   : > { %1162 = vmatprep.mubr.f32.mxu0 %v643_v59  ;;  %v9293_v59 = vpack.c.bf16 %v833_v55, %v831_v54  ;;  %v863_v54 = vld [vmem:[#allocation6 + $0x5e8] sm:$0xff]  ;;  %v865_v55 = vld [vmem:[#allocation6 + $0x5f8] sm:$0xff] }
 0x1a2   : > { %1163 = vmatmul.mubr.f32.gmra.mrb[56].mxu0 %v642_v60  ;;  %v830_v60 = vld [vmem:[#allocation6 + $0x4e0] sm:$0xff] }
 0x1a3   : > { %1168 = vmatprep.mubr.f32.mxu0 %v651_v61  ;;  %v832_v61 = vld [vmem:[#allocation6 + $0x4f0] sm:$0xff] }
 0x1a6   : > { %1169 = vmatmul.mubr.f32.gmra.mrb[58].mxu0 %v650_v62  ;;  %v835_v62 = vld [vmem:[#allocation6 + $0x508] sm:$0xff] }
 0x1a7   : > { %1174 = vmatprep.mubr.f32.mxu0 %v659_v63  ;;  %v837_v63 = vld [vmem:[#allocation6 + $0x518] sm:$0xff] }
 0x1aa   : > { %1175 = vmatmul.mubr.f32.gmra.mrb[60].mxu0 %v658_v0  ;;  %v476_v0 = vld [vmem:[%s11591_s23 + $0x1d0] sm:$0xff] }
 0x1ab   : > { %1180 = vmatprep.mubr.f32.mxu0 %v667_v1  ;;  %v9295_v1 = vpack.c.bf16 %v832_v61, %v830_v60  ;;  %v862_v60 = vld [vmem:[#allocation6 + $0x5e0] sm:$0xff]  ;;  %v864_v61 = vld [vmem:[#allocation6 + $0x5f0] sm:$0xff] }
 0x1ae   : > { %1181 = vmatmul.mubr.f32.gmra.mrb[62].mxu0 %v666_v2  ;;  %v485_v2 = vld [vmem:[%s11591_s23 + $0x218] sm:$0xff] }
 0x1af   : > { %1251 = vmatprep.mubr.f32.mxu0 %v421_v3  ;;  %v9297_v3 = vpack.c.bf16 %v837_v63, %v835_v62  ;;  %v867_v62 = vld [vmem:[#allocation6 + $0x608] sm:$0xff]  ;;  %v869_v63 = vld [vmem:[#allocation6 + $0x618] sm:$0xff] }
 0x1b2   : > { %1252 = vmatmul.mubr.f32.vlgmr.msra.gmra.mrb[0].mxu0 %v420_v8  ;;  %v484_v8 = vld [vmem:[%s11591_s23 + $0x210] sm:$0xff] }
 0x1b3   : > { %9268 = vmatpush1.bf16.msra.mxu0 %v9267_v9  ;;  %1257 = vmatprep.mubr.f32.mxu0 %v429_v10  ;;  %v9299_v9 = vpack.c.bf16 %v836_v5, %v834_v4  ;;  %v493_v10 = vld [vmem:[%s11591_s23 + $0x258] sm:$0xff]  ;;  %v548_v4 = vld [vmem:[%s11591_s23 + $0x410] sm:$0xff] }
 0x1b4   : > { %9270 = vmatprep.subr.bf16.mxu0 %v9269_v11  ;;  %v9301_v11 = vpack.c.bf16 %v841_v7, %v839_v6  ;;  %v557_v5 = vld [vmem:[%s11591_s23 + $0x458] sm:$0xff]  ;;  %v556_v6 = vld [vmem:[%s11591_s23 + $0x450] sm:$0xff] }
 0x1b5   : > { %v565_v7 = vld [vmem:[%s11591_s23 + $0x498] sm:$0xff] }
 0x1b6   : > { %1258 = vmatmul.mubr.f32.gmra.mrb[2].mxu0 %v428_v16  ;;  %v492_v16 = vld [vmem:[%s11591_s23 + $0x250] sm:$0xff] }
 0x1b7   : > { %1263 = vmatprep.mubr.f32.mxu0 %v437_v18  ;;  %9272 = vmatpush1.bf16.msra.mxu0 %v9271_v17  ;;  %v9303_v17 = vpack.c.bf16 %v840_v13, %v838_v12  ;;  %v501_v18 = vld [vmem:[%s11591_s23 + $0x298] sm:$0xff]  ;;  %v580_v12 = vld [vmem:[%s11591_s23 + $0x510] sm:$0xff] }
 0x1b8   : > { %9274 = vmatprep.subr.bf16.mxu0 %v9273_v19  ;;  %v9305_v19 = vpack.c.bf16 %v845_v15, %v843_v14  ;;  %v589_v13 = vld [vmem:[%s11591_s23 + $0x558] sm:$0xff]  ;;  %v588_v14 = vld [vmem:[%s11591_s23 + $0x550] sm:$0xff] }
 0x1b9   : > { %v597_v15 = vld [vmem:[%s11591_s23 + $0x598] sm:$0xff] }
 0x1ba   : > { %1264 = vmatmul.mubr.f32.gmra.mrb[4].mxu0 %v436_v24  ;;  %v500_v24 = vld [vmem:[%s11591_s23 + $0x290] sm:$0xff] }
 0x1bb   : > { %1269 = vmatprep.mubr.f32.mxu0 %v445_v26  ;;  %9276 = vmatpush1.bf16.msra.mxu0 %v9275_v25  ;;  %v9307_v25 = vpack.c.bf16 %v844_v21, %v842_v20  ;;  %v509_v26 = vld [vmem:[%s11591_s23 + $0x2d8] sm:$0xff]  ;;  %v612_v20 = vld [vmem:[%s11591_s23 + $0x610] sm:$0xff] }
 0x1bc   : > { %9278 = vmatprep.subr.bf16.mxu0 %v9277_v27  ;;  %v9309_v27 = vpack.c.bf16 %v849_v23, %v847_v22  ;;  %v621_v21 = vld [vmem:[%s11591_s23 + $0x658] sm:$0xff]  ;;  %v620_v22 = vld [vmem:[%s11591_s23 + $0x650] sm:$0xff] }
 0x1bd   : > { %v629_v23 = vld [vmem:[%s11591_s23 + $0x698] sm:$0xff] }
 0x1be   : > { %1270 = vmatmul.mubr.f32.gmra.mrb[6].mxu0 %v444_v32  ;;  %v508_v32 = vld [vmem:[%s11591_s23 + $0x2d0] sm:$0xff] }
 0x1bf   : > { %1275 = vmatprep.mubr.f32.mxu0 %v453_v34  ;;  %9280 = vmatpush1.bf16.msra.mxu0 %v9279_v33  ;;  %v9311_v33 = vpack.c.bf16 %v848_v29, %v846_v28  ;;  %v517_v34 = vld [vmem:[%s11591_s23 + $0x318] sm:$0xff]  ;;  %v644_v28 = vld [vmem:[%s11591_s23 + $0x710] sm:$0xff] }
 0x1c0   : > { %9282 = vmatprep.subr.bf16.mxu0 %v9281_v35  ;;  %v9313_v35 = vpack.c.bf16 %v853_v31, %v851_v30  ;;  %v653_v29 = vld [vmem:[%s11591_s23 + $0x758] sm:$0xff]  ;;  %v652_v30 = vld [vmem:[%s11591_s23 + $0x750] sm:$0xff] }
 0x1c1   : > { %v661_v31 = vld [vmem:[%s11591_s23 + $0x798] sm:$0xff] }
 0x1c2   : > { %1276 = vmatmul.mubr.f32.gmra.mrb[8].mxu0 %v452_v40  ;;  %v516_v40 = vld [vmem:[%s11591_s23 + $0x310] sm:$0xff] }
 0x1c3   : > { %1281 = vmatprep.mubr.f32.mxu0 %v461_v42  ;;  %9284 = vmatpush1.bf16.msra.mxu0 %v9283_v41  ;;  %v9315_v41 = vpack.c.bf16 %v852_v37, %v850_v36  ;;  %v525_v42 = vld [vmem:[%s11591_s23 + $0x358] sm:$0xff]  ;;  %v866_v36 = vld [vmem:[#allocation6 + $0x600] sm:$0xff]  ;;  %v868_v37 = vld [vmem:[#allocation6 + $0x610] sm:$0xff] }
 0x1c4   : > { %9286 = vmatprep.subr.bf16.mxu0 %v9285_v43  ;;  %v9317_v43 = vpack.c.bf16 %v857_v39, %v855_v38  ;;  %v871_v38 = vld [vmem:[#allocation6 + $0x628] sm:$0xff]  ;;  %v873_v39 = vld [vmem:[#allocation6 + $0x638] sm:$0xff] }
 0x1c6   : > { %1282 = vmatmul.mubr.f32.gmra.mrb[10].mxu0 %v460_v48  ;;  %v524_v48 = vld [vmem:[%s11591_s23 + $0x350] sm:$0xff] }
 0x1c7   : > { %1287 = vmatprep.mubr.f32.mxu0 %v469_v50  ;;  %9288 = vmatpush1.bf16.msra.mxu0 %v9287_v49  ;;  %v9319_v49 = vpack.c.bf16 %v856_v45, %v854_v44  ;;  %v533_v50 = vld [vmem:[%s11591_s23 + $0x398] sm:$0xff]  ;;  %v870_v44 = vld [vmem:[#allocation6 + $0x620] sm:$0xff]  ;;  %v872_v45 = vld [vmem:[#allocation6 + $0x630] sm:$0xff] }
 0x1c8   : > { %9290 = vmatprep.subr.bf16.mxu0 %v9289_v51  ;;  %v9321_v51 = vpack.c.bf16 %v861_v47, %v859_v46  ;;  %v875_v46 = vld [vmem:[#allocation6 + $0x648] sm:$0xff]  ;;  %v877_v47 = vld [vmem:[#allocation6 + $0x658] sm:$0xff] }
 0x1ca   : > { %1288 = vmatmul.mubr.f32.gmra.mrb[12].mxu0 %v468_v56  ;;  %v532_v56 = vld [vmem:[%s11591_s23 + $0x390] sm:$0xff] }
 0x1cb   : > { %1293 = vmatprep.mubr.f32.mxu0 %v477_v58  ;;  %9292 = vmatpush1.bf16.msra.mxu0 %v9291_v57  ;;  %v9323_v57 = vpack.c.bf16 %v860_v53, %v858_v52  ;;  %v541_v58 = vld [vmem:[%s11591_s23 + $0x3d8] sm:$0xff]  ;;  %v874_v52 = vld [vmem:[#allocation6 + $0x640] sm:$0xff]  ;;  %v876_v53 = vld [vmem:[#allocation6 + $0x650] sm:$0xff] }
 0x1cc   : > { %9294 = vmatprep.subr.bf16.mxu0 %v9293_v59  ;;  %v9325_v59 = vpack.c.bf16 %v865_v55, %v863_v54  ;;  %v879_v54 = vld [vmem:[#allocation6 + $0x668] sm:$0xff]  ;;  %v881_v55 = vld [vmem:[#allocation6 + $0x678] sm:$0xff] }
 0x1ce   : > { %1294 = vmatmul.mubr.f32.gmra.mrb[14].mxu0 %v476_v0  ;;  %v540_v0 = vld [vmem:[%s11591_s23 + $0x3d0] sm:$0xff] }
 0x1cf   : > { %1299 = vmatprep.mubr.f32.mxu0 %v485_v2  ;;  %9296 = vmatpush1.bf16.msra.mxu0 %v9295_v1  ;;  %v9327_v1 = vpack.c.bf16 %v864_v61, %v862_v60  ;;  %v549_v2 = vld [vmem:[%s11591_s23 + $0x418] sm:$0xff]  ;;  %v878_v60 = vld [vmem:[#allocation6 + $0x660] sm:$0xff]  ;;  %v880_v61 = vld [vmem:[#allocation6 + $0x670] sm:$0xff] }
 0x1d0   : > { %9298 = vmatprep.subr.bf16.mxu0 %v9297_v3  ;;  %v9329_v3 = vpack.c.bf16 %v869_v63, %v867_v62  ;;  %v883_v62 = vld [vmem:[#allocation6 + $0x688] sm:$0xff]  ;;  %v885_v63 = vld [vmem:[#allocation6 + $0x698] sm:$0xff] }
 0x1d2   : > { %1300 = vmatmul.mubr.f32.gmra.mrb[16].mxu0 %v484_v8  ;;  %v564_v8 = vld [vmem:[%s11591_s23 + $0x490] sm:$0xff] }
 0x1d3   : > { %1305 = vmatprep.mubr.f32.mxu0 %v493_v10  ;;  %9300 = vmatpush1.bf16.msra.mxu0 %v9299_v9  ;;  %v573_v9 = vld [vmem:[%s11591_s23 + $0x4d8] sm:$0xff]  ;;  %v572_v10 = vld [vmem:[%s11591_s23 + $0x4d0] sm:$0xff] }
 0x1d4   : > { %9302 = vmatprep.subr.bf16.mxu0 %v9301_v11  ;;  %v581_v11 = vld [vmem:[%s11591_s23 + $0x518] sm:$0xff] }
 0x1d6   : > { %1306 = vmatmul.mubr.f32.gmra.mrb[18].mxu0 %v492_v16  ;;  %v596_v16 = vld [vmem:[%s11591_s23 + $0x590] sm:$0xff] }
 0x1d7   : > { %1311 = vmatprep.mubr.f32.mxu0 %v501_v18  ;;  %9304 = vmatpush1.bf16.msra.mxu0 %v9303_v17  ;;  %v605_v17 = vld [vmem:[%s11591_s23 + $0x5d8] sm:$0xff]  ;;  %v604_v18 = vld [vmem:[%s11591_s23 + $0x5d0] sm:$0xff] }
 0x1d8   : > { %9306 = vmatprep.subr.bf16.mxu0 %v9305_v19  ;;  %v613_v19 = vld [vmem:[%s11591_s23 + $0x618] sm:$0xff] }
 0x1da   : > { %1312 = vmatmul.mubr.f32.gmra.mrb[20].mxu0 %v500_v24  ;;  %v628_v24 = vld [vmem:[%s11591_s23 + $0x690] sm:$0xff] }
 0x1db   : > { %1317 = vmatprep.mubr.f32.mxu0 %v509_v26  ;;  %9308 = vmatpush1.bf16.msra.mxu0 %v9307_v25  ;;  %v637_v25 = vld [vmem:[%s11591_s23 + $0x6d8] sm:$0xff]  ;;  %v636_v26 = vld [vmem:[%s11591_s23 + $0x6d0] sm:$0xff] }
 0x1dc   : > { %9310 = vmatprep.subr.bf16.mxu0 %v9309_v27  ;;  %v645_v27 = vld [vmem:[%s11591_s23 + $0x718] sm:$0xff] }
 0x1de   : > { %1318 = vmatmul.mubr.f32.gmra.mrb[22].mxu0 %v508_v32  ;;  %v660_v32 = vld [vmem:[%s11591_s23 + $0x790] sm:$0xff] }
 0x1df   : > { %1323 = vmatprep.mubr.f32.mxu0 %v517_v34  ;;  %9312 = vmatpush1.bf16.msra.mxu0 %v9311_v33  ;;  %v669_v33 = vld [vmem:[%s11591_s23 + $0x7d8] sm:$0xff]  ;;  %v668_v34 = vld [vmem:[%s11591_s23 + $0x7d0] sm:$0xff] }
 0x1e0   : > { %9314 = vmatprep.subr.bf16.mxu0 %v9313_v35  ;;  %v423_v35 = vld [vmem:[%s11591_s23 + $0x28] sm:$0xff] }
 0x1e2   : > { %1324 = vmatmul.mubr.f32.gmra.mrb[24].mxu0 %v516_v40  ;;  %v422_v40 = vld [vmem:[%s11591_s23 + $0x20] sm:$0xff] }
 0x1e3   : > { %1329 = vmatprep.mubr.f32.mxu0 %v525_v42  ;;  %9316 = vmatpush1.bf16.msra.mxu0 %v9315_v41  ;;  %v9331_v41 = vpack.c.bf16 %v868_v37, %v866_v36  ;;  %v431_v42 = vld [vmem:[%s11591_s23 + $0x68] sm:$0xff]  ;;  %v898_v36 = vld [vmem:[#allocation6 + $0x700] sm:$0xff]  ;;  %v900_v37 = vld [vmem:[#allocation6 + $0x710] sm:$0xff] }
 0x1e4   : > { %9318 = vmatprep.subr.bf16.mxu0 %v9317_v43  ;;  %v9333_v43 = vpack.c.bf16 %v873_v39, %v871_v38  ;;  %v903_v38 = vld [vmem:[#allocation6 + $0x728] sm:$0xff]  ;;  %v905_v39 = vld [vmem:[#allocation6 + $0x738] sm:$0xff] }
 0x1e6   : > { %1330 = vmatmul.mubr.f32.gmra.mrb[26].mxu0 %v524_v48  ;;  %v430_v48 = vld [vmem:[%s11591_s23 + $0x60] sm:$0xff] }
 0x1e7   : > { %1335 = vmatprep.mubr.f32.mxu0 %v533_v50  ;;  %9320 = vmatpush1.bf16.msra.mxu0 %v9319_v49  ;;  %v9335_v49 = vpack.c.bf16 %v872_v45, %v870_v44  ;;  %v439_v50 = vld [vmem:[%s11591_s23 + $0xa8] sm:$0xff]  ;;  %v902_v44 = vld [vmem:[#allocation6 + $0x720] sm:$0xff]  ;;  %v904_v45 = vld [vmem:[#allocation6 + $0x730] sm:$0xff] }
 0x1e8   : > { %9322 = vmatprep.subr.bf16.mxu0 %v9321_v51  ;;  %v9337_v51 = vpack.c.bf16 %v877_v47, %v875_v46  ;;  %v907_v46 = vld [vmem:[#allocation6 + $0x748] sm:$0xff]  ;;  %v909_v47 = vld [vmem:[#allocation6 + $0x758] sm:$0xff] }
 0x1ea   : > { %1336 = vmatmul.mubr.f32.gmra.mrb[28].mxu0 %v532_v56  ;;  %v438_v56 = vld [vmem:[%s11591_s23 + $0xa0] sm:$0xff] }
 0x1eb   : > { %1341 = vmatprep.mubr.f32.mxu0 %v541_v58  ;;  %9324 = vmatpush1.bf16.msra.mxu0 %v9323_v57  ;;  %v9339_v57 = vpack.c.bf16 %v876_v53, %v874_v52  ;;  %v447_v58 = vld [vmem:[%s11591_s23 + $0xe8] sm:$0xff]  ;;  %v906_v52 = vld [vmem:[#allocation6 + $0x740] sm:$0xff]  ;;  %v908_v53 = vld [vmem:[#allocation6 + $0x750] sm:$0xff] }
 0x1ec   : > { %9326 = vmatprep.subr.bf16.mxu0 %v9325_v59  ;;  %v9341_v59 = vpack.c.bf16 %v881_v55, %v879_v54  ;;  %v911_v54 = vld [vmem:[#allocation6 + $0x768] sm:$0xff]  ;;  %v913_v55 = vld [vmem:[#allocation6 + $0x778] sm:$0xff] }
 0x1ee   : > { %1342 = vmatmul.mubr.f32.gmra.mrb[30].mxu0 %v540_v0  ;;  %v446_v0 = vld [vmem:[%s11591_s23 + $0xe0] sm:$0xff] }
 0x1ef   : > { %1347 = vmatprep.mubr.f32.mxu0 %v549_v2  ;;  %9328 = vmatpush1.bf16.msra.mxu0 %v9327_v1  ;;  %v9343_v1 = vpack.c.bf16 %v880_v61, %v878_v60  ;;  %v455_v2 = vld [vmem:[%s11591_s23 + $0x128] sm:$0xff]  ;;  %v910_v60 = vld [vmem:[#allocation6 + $0x760] sm:$0xff]  ;;  %v912_v61 = vld [vmem:[#allocation6 + $0x770] sm:$0xff] }
 0x1f0   : > { %9330 = vmatprep.subr.bf16.mxu0 %v9329_v3  ;;  %v9345_v3 = vpack.c.bf16 %v885_v63, %v883_v62  ;;  %v915_v62 = vld [vmem:[#allocation6 + $0x788] sm:$0xff]  ;;  %v917_v63 = vld [vmem:[#allocation6 + $0x798] sm:$0xff] }
 0x1f2   : > { %1348 = vmatmul.mubr.f32.gmra.mrb[32].mxu0 %v548_v4  ;;  %v882_v4 = vld [vmem:[#allocation6 + $0x680] sm:$0xff] }
 0x1f3   : > { %1353 = vmatprep.mubr.f32.mxu0 %v557_v5  ;;  %v884_v5 = vld [vmem:[#allocation6 + $0x690] sm:$0xff] }
 0x1f6   : > { %1354 = vmatmul.mubr.f32.gmra.mrb[34].mxu0 %v556_v6  ;;  %v887_v6 = vld [vmem:[#allocation6 + $0x6a8] sm:$0xff] }
 0x1f7   : > { %1359 = vmatprep.mubr.f32.mxu0 %v565_v7  ;;  %v889_v7 = vld [vmem:[#allocation6 + $0x6b8] sm:$0xff] }
 0x1fa   : > { %1360 = vmatmul.mubr.f32.gmra.mrb[36].mxu0 %v564_v8  ;;  %v454_v8 = vld [vmem:[%s11591_s23 + $0x120] sm:$0xff] }
 0x1fb   : > { %1365 = vmatprep.mubr.f32.mxu0 %v573_v9  ;;  %v9347_v9 = vpack.c.bf16 %v884_v5, %v882_v4  ;;  %v914_v4 = vld [vmem:[#allocation6 + $0x780] sm:$0xff]  ;;  %v916_v5 = vld [vmem:[#allocation6 + $0x790] sm:$0xff] }
 0x1fe   : > { %1366 = vmatmul.mubr.f32.gmra.mrb[38].mxu0 %v572_v10  ;;  %v463_v10 = vld [vmem:[%s11591_s23 + $0x168] sm:$0xff] }
 0x1ff   : > { %1371 = vmatprep.mubr.f32.mxu0 %v581_v11  ;;  %v9349_v11 = vpack.c.bf16 %v889_v7, %v887_v6  ;;  %v919_v6 = vld [vmem:[#allocation6 + $0x7a8] sm:$0xff]  ;;  %v921_v7 = vld [vmem:[#allocation6 + $0x7b8] sm:$0xff] }
 0x202   : > { %1372 = vmatmul.mubr.f32.gmra.mrb[40].mxu0 %v580_v12  ;;  %v886_v12 = vld [vmem:[#allocation6 + $0x6a0] sm:$0xff] }
 0x203   : > { %1377 = vmatprep.mubr.f32.mxu0 %v589_v13  ;;  %v888_v13 = vld [vmem:[#allocation6 + $0x6b0] sm:$0xff] }
 0x206   : > { %1378 = vmatmul.mubr.f32.gmra.mrb[42].mxu0 %v588_v14  ;;  %v891_v14 = vld [vmem:[#allocation6 + $0x6c8] sm:$0xff] }
 0x207   : > { %1383 = vmatprep.mubr.f32.mxu0 %v597_v15  ;;  %v893_v15 = vld [vmem:[#allocation6 + $0x6d8] sm:$0xff] }
 0x20a   : > { %1384 = vmatmul.mubr.f32.gmra.mrb[44].mxu0 %v596_v16  ;;  %v462_v16 = vld [vmem:[%s11591_s23 + $0x160] sm:$0xff] }
 0x20b   : > { %1389 = vmatprep.mubr.f32.mxu0 %v605_v17  ;;  %v9351_v17 = vpack.c.bf16 %v888_v13, %v886_v12  ;;  %v918_v12 = vld [vmem:[#allocation6 + $0x7a0] sm:$0xff]  ;;  %v920_v13 = vld [vmem:[#allocation6 + $0x7b0] sm:$0xff] }
 0x20e   : > { %1390 = vmatmul.mubr.f32.gmra.mrb[46].mxu0 %v604_v18  ;;  %v471_v18 = vld [vmem:[%s11591_s23 + $0x1a8] sm:$0xff] }
 0x20f   : > { %1395 = vmatprep.mubr.f32.mxu0 %v613_v19  ;;  %v9353_v19 = vpack.c.bf16 %v893_v15, %v891_v14  ;;  %v923_v14 = vld [vmem:[#allocation6 + $0x7c8] sm:$0xff]  ;;  %v925_v15 = vld [vmem:[#allocation6 + $0x7d8] sm:$0xff] }
 0x212   : > { %1396 = vmatmul.mubr.f32.gmra.mrb[48].mxu0 %v612_v20  ;;  %v890_v20 = vld [vmem:[#allocation6 + $0x6c0] sm:$0xff] }
 0x213   : > { %1401 = vmatprep.mubr.f32.mxu0 %v621_v21  ;;  %v892_v21 = vld [vmem:[#allocation6 + $0x6d0] sm:$0xff] }
 0x216   : > { %1402 = vmatmul.mubr.f32.gmra.mrb[50].mxu0 %v620_v22  ;;  %v895_v22 = vld [vmem:[#allocation6 + $0x6e8] sm:$0xff] }
 0x217   : > { %1407 = vmatprep.mubr.f32.mxu0 %v629_v23  ;;  %v897_v23 = vld [vmem:[#allocation6 + $0x6f8] sm:$0xff] }
 0x21a   : > { %1408 = vmatmul.mubr.f32.gmra.mrb[52].mxu0 %v628_v24  ;;  %v470_v24 = vld [vmem:[%s11591_s23 + $0x1a0] sm:$0xff] }
 0x21b   : > { %1413 = vmatprep.mubr.f32.mxu0 %v637_v25  ;;  %v9355_v25 = vpack.c.bf16 %v892_v21, %v890_v20  ;;  %v922_v20 = vld [vmem:[#allocation6 + $0x7c0] sm:$0xff]  ;;  %v924_v21 = vld [vmem:[#allocation6 + $0x7d0] sm:$0xff] }
 0x21e   : > { %1414 = vmatmul.mubr.f32.gmra.mrb[54].mxu0 %v636_v26  ;;  %v479_v26 = vld [vmem:[%s11591_s23 + $0x1e8] sm:$0xff] }
 0x21f   : > { %1419 = vmatprep.mubr.f32.mxu0 %v645_v27  ;;  %v9357_v27 = vpack.c.bf16 %v897_v23, %v895_v22  ;;  %v927_v22 = vld [vmem:[#allocation6 + $0x7e8] sm:$0xff]  ;;  %v929_v23 = vld [vmem:[#allocation6 + $0x7f8] sm:$0xff] }
 0x222   : > { %1420 = vmatmul.mubr.f32.gmra.mrb[56].mxu0 %v644_v28  ;;  %v894_v28 = vld [vmem:[#allocation6 + $0x6e0] sm:$0xff] }
 0x223   : > { %1425 = vmatprep.mubr.f32.mxu0 %v653_v29  ;;  %v896_v29 = vld [vmem:[#allocation6 + $0x6f0] sm:$0xff] }
 0x226   : > { %1426 = vmatmul.mubr.f32.gmra.mrb[58].mxu0 %v652_v30  ;;  %v899_v30 = vld [vmem:[#allocation6 + $0x708] sm:$0xff] }
 0x227   : > { %1431 = vmatprep.mubr.f32.mxu0 %v661_v31  ;;  %v901_v31 = vld [vmem:[#allocation6 + $0x718] sm:$0xff] }
 0x22a   : > { %1432 = vmatmul.mubr.f32.gmra.mrb[60].mxu0 %v660_v32  ;;  %v478_v32 = vld [vmem:[%s11591_s23 + $0x1e0] sm:$0xff] }
 0x22b   : > { %1437 = vmatprep.mubr.f32.mxu0 %v669_v33  ;;  %v9359_v33 = vpack.c.bf16 %v896_v29, %v894_v28  ;;  %v926_v28 = vld [vmem:[#allocation6 + $0x7e0] sm:$0xff]  ;;  %v928_v29 = vld [vmem:[#allocation6 + $0x7f0] sm:$0xff] }
 0x22e   : > { %1438 = vmatmul.mubr.f32.gmra.mrb[62].mxu0 %v668_v34  ;;  %v487_v34 = vld [vmem:[%s11591_s23 + $0x228] sm:$0xff] }
 0x22f   : > { %1508 = vmatprep.mubr.f32.mxu0 %v423_v35  ;;  %v9361_v35 = vpack.c.bf16 %v901_v31, %v899_v30  ;;  %v542_v30 = vld [vmem:[%s11591_s23 + $0x3e0] sm:$0xff]  ;;  %v9391_v31 = vpack.c.bf16 %v928_v29, %v926_v28  ;;  %v3159_v28 = vld [vmem:[#allocation11 + $0x248] sm:$0xff] }
 0x230   : > { %v3161_v29 = vld [vmem:[#allocation11 + $0x258] sm:$0xff] }
 0x232   : > { %1509 = vmatmul.mubr.f32.vlgmr.msra.gmra.mrb[0].mxu0 %v422_v40  ;;  %v486_v40 = vld [vmem:[%s11591_s23 + $0x220] sm:$0xff] }
 0x233   : > { %9332 = vmatpush1.bf16.msra.mxu0 %v9331_v41  ;;  %1514 = vmatprep.mubr.f32.mxu0 %v431_v42  ;;  %v9363_v41 = vpack.c.bf16 %v900_v37, %v898_v36  ;;  %v495_v42 = vld [vmem:[%s11591_s23 + $0x268] sm:$0xff]  ;;  %v566_v37 = vld [vmem:[%s11591_s23 + $0x4a0] sm:$0xff] }
 0x234   : > { %9334 = vmatprep.subr.bf16.mxu0 %v9333_v43  ;;  %v9365_v43 = vpack.c.bf16 %v905_v39, %v903_v38  ;;  %v567_v36 = vld [vmem:[%s11591_s23 + $0x4a8] sm:$0xff]  ;;  %v574_v39 = vld [vmem:[%s11591_s23 + $0x4e0] sm:$0xff] }
 0x235   : > { %v575_v38 = vld [vmem:[%s11591_s23 + $0x4e8] sm:$0xff] }
 0x236   : > { %1515 = vmatmul.mubr.f32.gmra.mrb[2].mxu0 %v430_v48  ;;  %v494_v48 = vld [vmem:[%s11591_s23 + $0x260] sm:$0xff] }
 0x237   : > { %1520 = vmatprep.mubr.f32.mxu0 %v439_v50  ;;  %9336 = vmatpush1.bf16.msra.mxu0 %v9335_v49  ;;  %v9367_v49 = vpack.c.bf16 %v904_v45, %v902_v44  ;;  %v503_v50 = vld [vmem:[%s11591_s23 + $0x2a8] sm:$0xff]  ;;  %v598_v45 = vld [vmem:[%s11591_s23 + $0x5a0] sm:$0xff] }
 0x238   : > { %9338 = vmatprep.subr.bf16.mxu0 %v9337_v51  ;;  %v9369_v51 = vpack.c.bf16 %v909_v47, %v907_v46  ;;  %v599_v44 = vld [vmem:[%s11591_s23 + $0x5a8] sm:$0xff]  ;;  %v606_v47 = vld [vmem:[%s11591_s23 + $0x5e0] sm:$0xff] }
 0x239   : > { %v607_v46 = vld [vmem:[%s11591_s23 + $0x5e8] sm:$0xff] }
 0x23a   : > { %1521 = vmatmul.mubr.f32.gmra.mrb[4].mxu0 %v438_v56  ;;  %v502_v56 = vld [vmem:[%s11591_s23 + $0x2a0] sm:$0xff] }
 0x23b   : > { %1526 = vmatprep.mubr.f32.mxu0 %v447_v58  ;;  %9340 = vmatpush1.bf16.msra.mxu0 %v9339_v57  ;;  %v9371_v57 = vpack.c.bf16 %v908_v53, %v906_v52  ;;  %v511_v58 = vld [vmem:[%s11591_s23 + $0x2e8] sm:$0xff]  ;;  %v630_v53 = vld [vmem:[%s11591_s23 + $0x6a0] sm:$0xff] }
 0x23c   : > { %9342 = vmatprep.subr.bf16.mxu0 %v9341_v59  ;;  %v9373_v59 = vpack.c.bf16 %v913_v55, %v911_v54  ;;  %v631_v52 = vld [vmem:[%s11591_s23 + $0x6a8] sm:$0xff]  ;;  %v638_v55 = vld [vmem:[%s11591_s23 + $0x6e0] sm:$0xff] }
 0x23d   : > { %v639_v54 = vld [vmem:[%s11591_s23 + $0x6e8] sm:$0xff] }
 0x23e   : > { %1527 = vmatmul.mubr.f32.gmra.mrb[6].mxu0 %v446_v0  ;;  %v510_v0 = vld [vmem:[%s11591_s23 + $0x2e0] sm:$0xff] }
 0x23f   : > { %1532 = vmatprep.mubr.f32.mxu0 %v455_v2  ;;  %9344 = vmatpush1.bf16.msra.mxu0 %v9343_v1  ;;  %v9375_v1 = vpack.c.bf16 %v912_v61, %v910_v60  ;;  %v519_v2 = vld [vmem:[%s11591_s23 + $0x328] sm:$0xff]  ;;  %v662_v61 = vld [vmem:[%s11591_s23 + $0x7a0] sm:$0xff] }
 0x240   : > { %9346 = vmatprep.subr.bf16.mxu0 %v9345_v3  ;;  %v9377_v3 = vpack.c.bf16 %v917_v63, %v915_v62  ;;  %v663_v60 = vld [vmem:[%s11591_s23 + $0x7a8] sm:$0xff]  ;;  %v670_v63 = vld [vmem:[%s11591_s23 + $0x7e0] sm:$0xff] }
 0x241   : > { %v671_v62 = vld [vmem:[%s11591_s23 + $0x7e8] sm:$0xff] }
 0x242   : > { %1533 = vmatmul.mubr.f32.gmra.mrb[8].mxu0 %v454_v8  ;;  %v518_v8 = vld [vmem:[%s11591_s23 + $0x320] sm:$0xff] }
 0x243   : > { %1538 = vmatprep.mubr.f32.mxu0 %v463_v10  ;;  %9348 = vmatpush1.bf16.msra.mxu0 %v9347_v9  ;;  %v9379_v9 = vpack.c.bf16 %v916_v5, %v914_v4  ;;  %v527_v10 = vld [vmem:[%s11591_s23 + $0x368] sm:$0xff]  ;;  %v3153_v4 = vld [vmem:[#allocation11 + $0x218] sm:$0xff] }
 0x244   : > { %9350 = vmatprep.subr.bf16.mxu0 %v9349_v11  ;;  %v9381_v11 = vpack.c.bf16 %v921_v7, %v919_v6  ;;  %v4083_v5 = vld [vmem:[#allocation11 + $0x408] sm:$0xff]  ;;  %v4085_v7 = vld [vmem:[#allocation11 + $0x418] sm:$0xff] }
 0x246   : > { %1539 = vmatmul.mubr.f32.gmra.mrb[10].mxu0 %v462_v16  ;;  %v526_v16 = vld [vmem:[%s11591_s23 + $0x360] sm:$0xff] }
 0x247   : > { %1544 = vmatprep.mubr.f32.mxu0 %v471_v18  ;;  %9352 = vmatpush1.bf16.msra.mxu0 %v9351_v17  ;;  %v9383_v17 = vpack.c.bf16 %v920_v13, %v918_v12  ;;  %v535_v18 = vld [vmem:[%s11591_s23 + $0x3a8] sm:$0xff]  ;;  %v4084_v13 = vld [vmem:[#allocation11 + $0x410] sm:$0xff] }
 0x248   : > { %9354 = vmatprep.subr.bf16.mxu0 %v9353_v19  ;;  %v9385_v19 = vpack.c.bf16 %v925_v15, %v923_v14  ;;  %v4082_v12 = vld [vmem:[#allocation11 + $0x400] sm:$0xff]  ;;  %v3155_v14 = vld [vmem:[#allocation11 + $0x228] sm:$0xff] }
 0x249   : > { %v432_v15 = vld [vmem:[%s11591_s23 + $0x70] sm:$0xff] }
 0x24a   : > { %1545 = vmatmul.mubr.f32.gmra.mrb[12].mxu0 %v470_v24  ;;  %v534_v24 = vld [vmem:[%s11591_s23 + $0x3a0] sm:$0xff] }
 0x24b   : > { %1550 = vmatprep.mubr.f32.mxu0 %v479_v26  ;;  %9356 = vmatpush1.bf16.msra.mxu0 %v9355_v25  ;;  %v9387_v25 = vpack.c.bf16 %v924_v21, %v922_v20  ;;  %v543_v26 = vld [vmem:[%s11591_s23 + $0x3e8] sm:$0xff]  ;;  %v441_v20 = vld [vmem:[%s11591_s23 + $0xb8] sm:$0xff] }
 0x24c   : > { %9358 = vmatprep.subr.bf16.mxu0 %v9357_v27  ;;  %v9389_v27 = vpack.c.bf16 %v929_v23, %v927_v22  ;;  %v3154_v23 = vld [vmem:[#allocation11 + $0x220] sm:$0xff] }
 0x24e   : > { %1551 = vmatmul.mubr.f32.gmra.mrb[14].mxu0 %v478_v32  ;;  %v551_v32 = vld [vmem:[%s11591_s23 + $0x428] sm:$0xff] }
 0x24f   : > { %1556 = vmatprep.mubr.f32.mxu0 %v487_v34  ;;  %9360 = vmatpush1.bf16.msra.mxu0 %v9359_v33  ;;  %v550_v33 = vld [vmem:[%s11591_s23 + $0x420] sm:$0xff]  ;;  %v559_v34 = vld [vmem:[%s11591_s23 + $0x468] sm:$0xff] }
 0x250   : > { %9362 = vmatprep.subr.bf16.mxu0 %v9361_v35  ;;  %v558_v35 = vld [vmem:[%s11591_s23 + $0x460] sm:$0xff] }
 0x252   : > { %1557 = vmatmul.mubr.f32.gmra.mrb[16].mxu0 %v486_v40  ;;  %v583_v40 = vld [vmem:[%s11591_s23 + $0x528] sm:$0xff] }
 0x253   : > { %1562 = vmatprep.mubr.f32.mxu0 %v495_v42  ;;  %9364 = vmatpush1.bf16.msra.mxu0 %v9363_v41  ;;  %v582_v41 = vld [vmem:[%s11591_s23 + $0x520] sm:$0xff]  ;;  %v591_v42 = vld [vmem:[%s11591_s23 + $0x568] sm:$0xff] }
 0x254   : > { %9366 = vmatprep.subr.bf16.mxu0 %v9365_v43  ;;  %v590_v43 = vld [vmem:[%s11591_s23 + $0x560] sm:$0xff] }
 0x256   : > { %1563 = vmatmul.mubr.f32.gmra.mrb[18].mxu0 %v494_v48  ;;  %v615_v48 = vld [vmem:[%s11591_s23 + $0x628] sm:$0xff] }
 0x257   : > { %1568 = vmatprep.mubr.f32.mxu0 %v503_v50  ;;  %9368 = vmatpush1.bf16.msra.mxu0 %v9367_v49  ;;  %v614_v49 = vld [vmem:[%s11591_s23 + $0x620] sm:$0xff]  ;;  %v623_v50 = vld [vmem:[%s11591_s23 + $0x668] sm:$0xff] }
 0x258   : > { %9370 = vmatprep.subr.bf16.mxu0 %v9369_v51  ;;  %v622_v51 = vld [vmem:[%s11591_s23 + $0x660] sm:$0xff] }
 0x25a   : > { %1569 = vmatmul.mubr.f32.gmra.mrb[20].mxu0 %v502_v56  ;;  %v647_v56 = vld [vmem:[%s11591_s23 + $0x728] sm:$0xff] }
 0x25b   : > { %1574 = vmatprep.mubr.f32.mxu0 %v511_v58  ;;  %9372 = vmatpush1.bf16.msra.mxu0 %v9371_v57  ;;  %v646_v57 = vld [vmem:[%s11591_s23 + $0x720] sm:$0xff]  ;;  %v655_v58 = vld [vmem:[%s11591_s23 + $0x768] sm:$0xff] }
 0x25c   : > { %9374 = vmatprep.subr.bf16.mxu0 %v9373_v59  ;;  %v654_v59 = vld [vmem:[%s11591_s23 + $0x760] sm:$0xff] }
 0x25e   : > { %1575 = vmatmul.mubr.f32.gmra.mrb[22].mxu0 %v510_v0  ;;  %v425_v0 = vld [vmem:[%s11591_s23 + $0x38] sm:$0xff] }
 0x25f   : > { %1580 = vmatprep.mubr.f32.mxu0 %v519_v2  ;;  %9376 = vmatpush1.bf16.msra.mxu0 %v9375_v1  ;;  %v424_v1 = vld [vmem:[%s11591_s23 + $0x30] sm:$0xff]  ;;  %v433_v2 = vld [vmem:[%s11591_s23 + $0x78] sm:$0xff] }
 0x260   : > { %9378 = vmatprep.subr.bf16.mxu0 %v9377_v3  ;;  %v3151_v3 = vld [vmem:[#allocation11 + $0x208] sm:$0xff] }
 0x261   : > { %v9393_v6 = vpack.c.bf16 %v3153_v4, %v3151_v3  ;;  %v3171_v3 = vld [vmem:[#allocation11 + $0x2a8] sm:$0xff]  ;;  %v3173_v4 = vld [vmem:[#allocation11 + $0x2b8] sm:$0xff] }
 0x262   : > { %1581 = vmatmul.mubr.f32.gmra.mrb[24].mxu0 %v518_v8  ;;  %v3150_v8 = vld [vmem:[#allocation11 + $0x200] sm:$0xff] }
 0x263   : > { %1586 = vmatprep.mubr.f32.mxu0 %v527_v10  ;;  %9380 = vmatpush1.bf16.msra.mxu0 %v9379_v9  ;;  %v3152_v9 = vld [vmem:[#allocation11 + $0x210] sm:$0xff]  ;;  %v9521_v10 = vpack.c.bf16 %v4085_v7, %v4083_v5  ;;  %v4103_v5 = vld [vmem:[#allocation11 + $0x4a8] sm:$0xff] }
 0x264   : > { %9382 = vmatprep.subr.bf16.mxu0 %v9381_v11  ;;  %v9395_v11 = vpack.c.bf16 %v3152_v9, %v3150_v8  ;;  %v456_v7 = vld [vmem:[%s11591_s23 + $0x130] sm:$0xff]  ;;  %v465_v8 = vld [vmem:[%s11591_s23 + $0x178] sm:$0xff] }
 0x265   : > { %9522 = vmatprep.subr.bf16.mxu1 %v9521_v10 }
 0x266   : > { %1587 = vmatmul.mubr.f32.gmra.mrb[26].mxu0 %v526_v16  ;;  %v9523_v16 = vpack.c.bf16 %v4084_v13, %v4082_v12  ;;  %v3170_v12 = vld [vmem:[#allocation11 + $0x2a0] sm:$0xff]  ;;  %v3172_v13 = vld [vmem:[#allocation11 + $0x2b0] sm:$0xff] }
 0x267   : > { %1592 = vmatprep.mubr.f32.mxu0 %v535_v18  ;;  %9384 = vmatpush1.bf16.msra.mxu0 %v9383_v17  ;;  %v3157_v17 = vld [vmem:[#allocation11 + $0x238] sm:$0xff]  ;;  %v4087_v18 = vld [vmem:[#allocation11 + $0x428] sm:$0xff] }
 0x268   : > { %9386 = vmatprep.subr.bf16.mxu0 %v9385_v19  ;;  %v4089_v19 = vld [vmem:[#allocation11 + $0x438] sm:$0xff]  ;;  %v9397_v21 = vpack.c.bf16 %v3157_v17, %v3155_v14  ;;  %9524 = vmatpush1.bf16.msra.mxu1 %v9523_v16  ;;  %v4102_v14 = vld [vmem:[#allocation11 + $0x4a0] sm:$0xff]  ;;  %v4104_v16 = vld [vmem:[#allocation11 + $0x4b0] sm:$0xff] }
 0x269   : > { %v9525_v22 = vpack.c.bf16 %v4089_v19, %v4087_v18  ;;  %v3175_v17 = vld [vmem:[#allocation11 + $0x2c8] sm:$0xff]  ;;  %v3177_v18 = vld [vmem:[#allocation11 + $0x2d8] sm:$0xff] }
 0x26a   : > { %1593 = vmatmul.mubr.f32.gmra.mrb[28].mxu0 %v534_v24  ;;  %v3156_v24 = vld [vmem:[#allocation11 + $0x230] sm:$0xff]  ;;  %v4107_v19 = vld [vmem:[#allocation11 + $0x4c8] sm:$0xff] }
 0x26b   : > { %1598 = vmatprep.mubr.f32.mxu0 %v543_v26  ;;  %9388 = vmatpush1.bf16.msra.mxu0 %v9387_v25  ;;  %v4086_v25 = vld [vmem:[#allocation11 + $0x420] sm:$0xff]  ;;  %v9399_v26 = vpack.c.bf16 %v3156_v24, %v3154_v23  ;;  %v9415_v23 = vpack.c.bf16 %v3172_v13, %v3170_v12  ;;  %v9543_v24 = vpack.c.bf16 %v4104_v16, %v4102_v14  ;;  %v4125_v12 = vld [vmem:[#allocation11 + $0x558] sm:$0xff]  ;;  %v496_v13 = vld [vmem:[%s11591_s23 + $0x270] sm:$0xff] }
 0x26c   : > { %9390 = vmatprep.subr.bf16.mxu0 %v9389_v27  ;;  %v4088_v27 = vld [vmem:[#allocation11 + $0x430] sm:$0xff]  ;;  %9526 = vmatprep.subr.bf16.mxu1 %v9525_v22 }
 0x26d   : > { %v473_v22 = vld [vmem:[%s11591_s23 + $0x1b8] sm:$0xff] }
 0x26e   : > { %1599 = vmatmul.mubr.f32.gmra.mrb[30].mxu0 %v542_v30  ;;  %v9527_v30 = vpack.c.bf16 %v4088_v27, %v4086_v25  ;;  %v9417_v25 = vpack.c.bf16 %v3177_v18, %v3175_v17  ;;  %v3176_v27 = vld [vmem:[#allocation11 + $0x2d0] sm:$0xff]  ;;  %v3190_v18 = vld [vmem:[#allocation11 + $0x340] sm:$0xff] }
 0x26f   : > { %1604 = vmatprep.mubr.f32.mxu0 %v551_v32  ;;  %9392 = vmatpush1.bf16.msra.mxu0 %v9391_v31  ;;  %v9401_v31 = vpack.c.bf16 %v3161_v29, %v3159_v28  ;;  %v4091_v32 = vld [vmem:[#allocation11 + $0x448] sm:$0xff]  ;;  %v4106_v28 = vld [vmem:[#allocation11 + $0x4c0] sm:$0xff]  ;;  %v505_v14 = vld [vmem:[%s11591_s23 + $0x2b8] sm:$0xff] }
 0x270   : > { %9394 = vmatprep.subr.bf16.mxu0 %v9393_v6  ;;  %9528 = vmatpush1.bf16.msra.mxu1 %v9527_v30  ;;  %v4105_v6 = vld [vmem:[#allocation11 + $0x4b8] sm:$0xff]  ;;  %v4108_v30 = vld [vmem:[#allocation11 + $0x4d0] sm:$0xff] }
 0x272   : > { %1605 = vmatmul.mubr.f32.gmra.mrb[32].mxu0 %v550_v33  ;;  %v4093_v33 = vld [vmem:[#allocation11 + $0x458] sm:$0xff] }
 0x273   : > { %1610 = vmatprep.mubr.f32.mxu0 %v559_v34  ;;  %v3158_v34 = vld [vmem:[#allocation11 + $0x240] sm:$0xff] }
 0x276   : > { %1611 = vmatmul.mubr.f32.gmra.mrb[34].mxu0 %v558_v35  ;;  %v9529_v35 = vpack.c.bf16 %v4093_v33, %v4091_v32  ;;  %v3181_v32 = vld [vmem:[#allocation11 + $0x2f8] sm:$0xff]  ;;  %v4111_v33 = vld [vmem:[#allocation11 + $0x4e8] sm:$0xff] }
 0x277   : > { %1616 = vmatprep.mubr.f32.mxu0 %v567_v36  ;;  %v3160_v36 = vld [vmem:[#allocation11 + $0x250] sm:$0xff] }
 0x278   : > { %9530 = vmatprep.subr.bf16.mxu1 %v9529_v35  ;;  %v472_v35 = vld [vmem:[%s11591_s23 + $0x1b0] sm:$0xff] }
 0x27a   : > { %1617 = vmatmul.mubr.f32.gmra.mrb[36].mxu0 %v566_v37  ;;  %v4090_v37 = vld [vmem:[#allocation11 + $0x440] sm:$0xff] }
 0x27b   : > { %1622 = vmatprep.mubr.f32.mxu0 %v575_v38  ;;  %v4092_v38 = vld [vmem:[#allocation11 + $0x450] sm:$0xff] }
 0x27e   : > { %1623 = vmatmul.mubr.f32.gmra.mrb[38].mxu0 %v574_v39  ;;  %v3163_v39 = vld [vmem:[#allocation11 + $0x268] sm:$0xff] }
 0x27f   : > { %1628 = vmatprep.mubr.f32.mxu0 %v583_v40  ;;  %v3165_v40 = vld [vmem:[#allocation11 + $0x278] sm:$0xff] }
 0x282   : > { %1629 = vmatmul.mubr.f32.gmra.mrb[40].mxu0 %v582_v41  ;;  %v4095_v41 = vld [vmem:[#allocation11 + $0x468] sm:$0xff] }
 0x283   : > { %1634 = vmatprep.mubr.f32.mxu0 %v591_v42  ;;  %v440_v42 = vld [vmem:[%s11591_s23 + $0xb0] sm:$0xff] }
 0x286   : > { %1635 = vmatmul.mubr.f32.gmra.mrb[42].mxu0 %v590_v43  ;;  %v449_v43 = vld [vmem:[%s11591_s23 + $0xf8] sm:$0xff] }
 0x287   : > { %1640 = vmatprep.mubr.f32.mxu0 %v599_v44  ;;  %v9403_v44 = vpack.c.bf16 %v3160_v36, %v3158_v34  ;;  %v4113_v34 = vld [vmem:[#allocation11 + $0x4f8] sm:$0xff] }
 0x288   : > { %v481_v36 = vld [vmem:[%s11591_s23 + $0x1f8] sm:$0xff] }
 0x28a   : > { %1641 = vmatmul.mubr.f32.gmra.mrb[44].mxu0 %v598_v45  ;;  %v4097_v45 = vld [vmem:[#allocation11 + $0x478] sm:$0xff] }
 0x28b   : > { %1646 = vmatprep.mubr.f32.mxu0 %v607_v46  ;;  %v9531_v46 = vpack.c.bf16 %v4092_v38, %v4090_v37  ;;  %v9547_v38 = vpack.c.bf16 %v4108_v30, %v4106_v28 }
 0x28d   : > { %9532 = vmatpush1.bf16.msra.mxu1 %v9531_v46  ;;  %v3185_v46 = vld [vmem:[#allocation11 + $0x318] sm:$0xff] }
 0x28e   : > { %1647 = vmatmul.mubr.f32.gmra.mrb[46].mxu0 %v606_v47  ;;  %v9405_v47 = vpack.c.bf16 %v3165_v40, %v3163_v39  ;;  %v3178_v40 = vld [vmem:[#allocation11 + $0x2e0] sm:$0xff] }
 0x28f   : > { %1652 = vmatprep.mubr.f32.mxu0 %v615_v48  ;;  %v3162_v48 = vld [vmem:[#allocation11 + $0x260] sm:$0xff] }
 0x292   : > { %1653 = vmatmul.mubr.f32.gmra.mrb[48].mxu0 %v614_v49  ;;  %v3164_v49 = vld [vmem:[#allocation11 + $0x270] sm:$0xff] }
 0x293   : > { %1658 = vmatprep.mubr.f32.mxu0 %v623_v50  ;;  %v4094_v50 = vld [vmem:[#allocation11 + $0x460] sm:$0xff] }
 0x296   : > { %1659 = vmatmul.mubr.f32.gmra.mrb[50].mxu0 %v622_v51  ;;  %v9533_v51 = vpack.c.bf16 %v4097_v45, %v4095_v41  ;;  %v3180_v41 = vld [vmem:[#allocation11 + $0x2f0] sm:$0xff]  ;;  %v3183_v45 = vld [vmem:[#allocation11 + $0x308] sm:$0xff] }
 0x297   : > { %1664 = vmatprep.mubr.f32.mxu0 %v631_v52  ;;  %v4096_v52 = vld [vmem:[#allocation11 + $0x470] sm:$0xff] }
 0x298   : > { %9534 = vmatprep.subr.bf16.mxu1 %v9533_v51  ;;  %v9423_v51 = vpack.c.bf16 %v3180_v41, %v3178_v40  ;;  %v545_v40 = vld [vmem:[%s11591_s23 + $0x3f8] sm:$0xff]  ;;  %v544_v41 = vld [vmem:[%s11591_s23 + $0x3f0] sm:$0xff] }
 0x29a   : > { %1665 = vmatmul.mubr.f32.gmra.mrb[52].mxu0 %v630_v53  ;;  %v3167_v53 = vld [vmem:[#allocation11 + $0x288] sm:$0xff] }
 0x29b   : > { %1670 = vmatprep.mubr.f32.mxu0 %v639_v54  ;;  %v3169_v54 = vld [vmem:[#allocation11 + $0x298] sm:$0xff] }
 0x29e   : > { %1671 = vmatmul.mubr.f32.gmra.mrb[54].mxu0 %v638_v55  ;;  %v4099_v55 = vld [vmem:[#allocation11 + $0x488] sm:$0xff] }
 0x29f   : > { %1676 = vmatprep.mubr.f32.mxu0 %v647_v56  ;;  %v4101_v56 = vld [vmem:[#allocation11 + $0x498] sm:$0xff] }
 0x2a2   : > { %1677 = vmatmul.mubr.f32.gmra.mrb[56].mxu0 %v646_v57  ;;  %v448_v57 = vld [vmem:[%s11591_s23 + $0xf0] sm:$0xff] }
 0x2a3   : > { %1682 = vmatprep.mubr.f32.mxu0 %v655_v58  ;;  %v457_v58 = vld [vmem:[%s11591_s23 + $0x138] sm:$0xff] }
 0x2a6   : > { %1683 = vmatmul.mubr.f32.gmra.mrb[58].mxu0 %v654_v59  ;;  %v9407_v59 = vpack.c.bf16 %v3164_v49, %v3162_v48  ;;  %v4117_v48 = vld [vmem:[#allocation11 + $0x518] sm:$0xff]  ;;  %v480_v49 = vld [vmem:[%s11591_s23 + $0x1f0] sm:$0xff] }
 0x2a7   : > { %1688 = vmatprep.mubr.f32.mxu0 %v663_v60  ;;  %v9535_v60 = vpack.c.bf16 %v4096_v52, %v4094_v50  ;;  %v489_v50 = vld [vmem:[%s11591_s23 + $0x238] sm:$0xff] }
 0x2a9   : > { %9536 = vmatpush1.bf16.msra.mxu1 %v9535_v60  ;;  %v3189_v60 = vld [vmem:[#allocation11 + $0x338] sm:$0xff] }
 0x2aa   : > { %1689 = vmatmul.mubr.f32.gmra.mrb[60].mxu0 %v662_v61  ;;  %v9409_v61 = vpack.c.bf16 %v3169_v54, %v3167_v53  ;;  %v9425_v53 = vpack.c.bf16 %v3185_v46, %v3183_v45  ;;  %v3182_v54 = vld [vmem:[#allocation11 + $0x300] sm:$0xff]  ;;  %v560_v45 = vld [vmem:[%s11591_s23 + $0x470] sm:$0xff]  ;;  %v569_v46 = vld [vmem:[%s11591_s23 + $0x4b8] sm:$0xff] }
 0x2ab   : > { %1694 = vmatprep.mubr.f32.mxu0 %v671_v62  ;;  %v3166_v62 = vld [vmem:[#allocation11 + $0x280] sm:$0xff] }
 0x2ae   : > { %1695 = vmatmul.mubr.f32.gmra.mrb[62].mxu0 %v670_v63  ;;  %v3168_v63 = vld [vmem:[#allocation11 + $0x290] sm:$0xff] }
 0x2af   : > { %1765 = vmatprep.mubr.f32.mxu0 %v425_v0  ;;  %v4098_v0 = vld [vmem:[#allocation11 + $0x480] sm:$0xff]  ;;  %v9411_v9 = vpack.c.bf16 %v3168_v63, %v3166_v62  ;;  %v4121_v62 = vld [vmem:[#allocation11 + $0x538] sm:$0xff]  ;;  %v488_v63 = vld [vmem:[%s11591_s23 + $0x230] sm:$0xff] }
 0x2b2   : > { %1766 = vmatmul.mubr.f32.vlgmr.msra.gmra.mrb[0].mxu0 %v424_v1  ;;  %v9537_v1 = vpack.c.bf16 %v4101_v56, %v4099_v55  ;;  %v3184_v55 = vld [vmem:[#allocation11 + $0x310] sm:$0xff]  ;;  %v4114_v56 = vld [vmem:[#allocation11 + $0x500] sm:$0xff] }
 0x2b3   : > { %1771 = vmatprep.mubr.f32.mxu0 %v433_v2  ;;  %9396 = vmatpush1.bf16.msra.mxu0 %v9395_v11  ;;  %v4100_v2 = vld [vmem:[#allocation11 + $0x490] sm:$0xff]  ;;  %v9413_v11 = vpack.c.bf16 %v3173_v4, %v3171_v3  ;;  %v3186_v4 = vld [vmem:[#allocation11 + $0x320] sm:$0xff] }
 0x2b4   : > { %9398 = vmatprep.subr.bf16.mxu0 %v9397_v21  ;;  %v9539_v10 = vpack.c.bf16 %v4100_v2, %v4098_v0  ;;  %9538 = vmatprep.subr.bf16.mxu1 %v9537_v1  ;;  %v464_v21 = vld [vmem:[%s11591_s23 + $0x170] sm:$0xff]  ;;  %v497_v0 = vld [vmem:[%s11591_s23 + $0x278] sm:$0xff]  ;;  %v9427_v1 = vpack.c.bf16 %v3184_v55, %v3182_v54 }
 0x2b5   : > { %v4128_v55 = vld [vmem:[#allocation11 + $0x570] sm:$0xff] }
 0x2b6   : > { %1772 = vmatmul.mubr.f32.gmra.mrb[2].mxu0 %v432_v15  ;;  %v9541_v15 = vpack.c.bf16 %v4105_v6, %v4103_v5  ;;  %9540 = vmatpush1.bf16.msra.mxu1 %v9539_v10  ;;  %v3188_v5 = vld [vmem:[#allocation11 + $0x330] sm:$0xff]  ;;  %v4118_v6 = vld [vmem:[#allocation11 + $0x520] sm:$0xff]  ;;  %v3193_v10 = vld [vmem:[#allocation11 + $0x358] sm:$0xff] }
 0x2b7   : > { %1777 = vmatprep.mubr.f32.mxu0 %v441_v20  ;;  %9400 = vmatpush1.bf16.msra.mxu0 %v9399_v26  ;;  %v4109_v20 = vld [vmem:[#allocation11 + $0x4d8] sm:$0xff]  ;;  %v3174_v26 = vld [vmem:[#allocation11 + $0x2c0] sm:$0xff] }
 0x2b8   : > { %9402 = vmatprep.subr.bf16.mxu0 %v9401_v31  ;;  %9542 = vmatprep.subr.bf16.mxu1 %v9541_v15  ;;  %v9545_v29 = vpack.c.bf16 %v4109_v20, %v4107_v19  ;;  %v3179_v31 = vld [vmem:[#allocation11 + $0x2e8] sm:$0xff]  ;;  %v9419_v37 = vpack.c.bf16 %v3176_v27, %v3174_v26  ;;  %v9431_v15 = vpack.c.bf16 %v3188_v5, %v3186_v4  ;;  %v3192_v19 = vld [vmem:[#allocation11 + $0x350] sm:$0xff]  ;;  %v4122_v20 = vld [vmem:[#allocation11 + $0x540] sm:$0xff] }
 0x2b9   : > { %v9421_v39 = vpack.c.bf16 %v3181_v32, %v3179_v31  ;;  %v4129_v26 = vld [vmem:[#allocation11 + $0x578] sm:$0xff]  ;;  %v504_v27 = vld [vmem:[%s11591_s23 + $0x2b0] sm:$0xff]  ;;  %v9435_v28 = vpack.c.bf16 %v3192_v19, %v3190_v18  ;;  %v4130_v4 = vld [vmem:[#allocation11 + $0x580] sm:$0xff] }
 0x2ba   : > { %1778 = vmatmul.mubr.f32.gmra.mrb[4].mxu0 %v440_v42  ;;  %9544 = vmatpush1.bf16.msra.mxu1 %v9543_v24  ;;  %v4110_v42 = vld [vmem:[#allocation11 + $0x4e0] sm:$0xff]  ;;  %v3197_v24 = vld [vmem:[#allocation11 + $0x378] sm:$0xff]  ;;  %v4132_v5 = vld [vmem:[#allocation11 + $0x590] sm:$0xff] }
 0x2bb   : > { %1783 = vmatprep.mubr.f32.mxu0 %v449_v43  ;;  %9404 = vmatpush1.bf16.msra.mxu0 %v9403_v44  ;;  %v9549_v43 = vpack.c.bf16 %v4113_v34, %v4111_v33  ;;  %v4112_v44 = vld [vmem:[#allocation11 + $0x4f0] sm:$0xff] }
 0x2bc   : > { %9406 = vmatprep.subr.bf16.mxu0 %v9405_v47  ;;  %9546 = vmatprep.subr.bf16.mxu1 %v9545_v29  ;;  %v4115_v47 = vld [vmem:[#allocation11 + $0x508] sm:$0xff]  ;;  %v9551_v52 = vpack.c.bf16 %v4112_v44, %v4110_v42  ;;  %v513_v29 = vld [vmem:[%s11591_s23 + $0x2f8] sm:$0xff] }
 0x2bd   : > { %v512_v33 = vld [vmem:[%s11591_s23 + $0x2f0] sm:$0xff]  ;;  %v521_v34 = vld [vmem:[%s11591_s23 + $0x338] sm:$0xff] }
 0x2be   : > { %1784 = vmatmul.mubr.f32.gmra.mrb[6].mxu0 %v448_v57  ;;  %9548 = vmatpush1.bf16.msra.mxu1 %v9547_v38  ;;  %v9553_v57 = vpack.c.bf16 %v4117_v48, %v4115_v47  ;;  %v537_v38 = vld [vmem:[%s11591_s23 + $0x3b8] sm:$0xff]  ;;  %v568_v47 = vld [vmem:[%s11591_s23 + $0x4b0] sm:$0xff] }
 0x2bf   : > { %1789 = vmatprep.mubr.f32.mxu0 %v457_v58  ;;  %9408 = vmatpush1.bf16.msra.mxu0 %v9407_v59  ;;  %v4116_v58 = vld [vmem:[#allocation11 + $0x510] sm:$0xff]  ;;  %v3187_v59 = vld [vmem:[#allocation11 + $0x328] sm:$0xff] }
 0x2c0   : > { %9410 = vmatprep.subr.bf16.mxu0 %v9409_v61  ;;  %9550 = vmatprep.subr.bf16.mxu1 %v9549_v43  ;;  %v4119_v61 = vld [vmem:[#allocation11 + $0x528] sm:$0xff]  ;;  %v9555_v2 = vpack.c.bf16 %v4116_v58, %v4114_v56  ;;  %v9429_v3 = vpack.c.bf16 %v3189_v60, %v3187_v59  ;;  %v553_v42 = vld [vmem:[%s11591_s23 + $0x438] sm:$0xff] }
 0x2c1   : > { %v552_v43 = vld [vmem:[%s11591_s23 + $0x430] sm:$0xff]  ;;  %v561_v44 = vld [vmem:[%s11591_s23 + $0x478] sm:$0xff] }
 0x2c2   : > { %1790 = vmatmul.mubr.f32.gmra.mrb[8].mxu0 %v456_v7  ;;  %9552 = vmatpush1.bf16.msra.mxu1 %v9551_v52  ;;  %v9557_v7 = vpack.c.bf16 %v4121_v62, %v4119_v61  ;;  %v577_v48 = vld [vmem:[%s11591_s23 + $0x4f8] sm:$0xff]  ;;  %v584_v56 = vld [vmem:[%s11591_s23 + $0x530] sm:$0xff] }
 0x2c3   : > { %1795 = vmatprep.mubr.f32.mxu0 %v465_v8  ;;  %9412 = vmatpush1.bf16.msra.mxu0 %v9411_v9  ;;  %v4120_v8 = vld [vmem:[#allocation11 + $0x530] sm:$0xff]  ;;  %v3191_v9 = vld [vmem:[#allocation11 + $0x348] sm:$0xff]  ;;  %v3201_v60 = vld [vmem:[#allocation11 + $0x398] sm:$0xff] }
 0x2c4   : > { %9414 = vmatprep.subr.bf16.mxu0 %v9413_v11  ;;  %9554 = vmatprep.subr.bf16.mxu1 %v9553_v57  ;;  %v4123_v11 = vld [vmem:[#allocation11 + $0x548] sm:$0xff]  ;;  %v9559_v16 = vpack.c.bf16 %v4120_v8, %v4118_v6  ;;  %v9433_v17 = vpack.c.bf16 %v3193_v10, %v3191_v9  ;;  %v3196_v52 = vld [vmem:[#allocation11 + $0x370] sm:$0xff]  ;;  %v9571_v8 = vpack.c.bf16 %v4132_v5, %v4130_v4  ;;  %v11852_v10 = vld [vmem:[#allocation11 + $0x3b8] sm:$0xff] }
 0x2c5   : > { %v593_v57 = vld [vmem:[%s11591_s23 + $0x578] sm:$0xff]  ;;  %v3199_v59 = vld [vmem:[#allocation11 + $0x388] sm:$0xff] }
 0x2c6   : > { %1796 = vmatmul.mubr.f32.gmra.mrb[10].mxu0 %v464_v21  ;;  %9556 = vmatpush1.bf16.msra.mxu1 %v9555_v2  ;;  %v9561_v21 = vpack.c.bf16 %v4125_v12, %v4123_v11  ;;  %v4131_v61 = vld [vmem:[#allocation11 + $0x588] sm:$0xff]  ;;  %v9441_v62 = vpack.c.bf16 %v3201_v60, %v3199_v59  ;;  %v11868_v18 = vld [vmem:[#allocation11 + $0x5b0] sm:$0xff] }
 0x2c7   : > { %1801 = vmatprep.mubr.f32.mxu0 %v473_v22  ;;  %9416 = vmatpush1.bf16.msra.mxu0 %v9415_v23  ;;  %v4124_v22 = vld [vmem:[#allocation11 + $0x550] sm:$0xff]  ;;  %v3195_v23 = vld [vmem:[#allocation11 + $0x368] sm:$0xff] }
 0x2c8   : > { %9418 = vmatprep.subr.bf16.mxu0 %v9417_v25  ;;  %9558 = vmatprep.subr.bf16.mxu1 %v9557_v7  ;;  %v4127_v25 = vld [vmem:[#allocation11 + $0x568] sm:$0xff]  ;;  %v9563_v30 = vpack.c.bf16 %v4124_v22, %v4122_v20  ;;  %v9437_v31 = vpack.c.bf16 %v3197_v24, %v3195_v23  ;;  %v601_v7 = vld [vmem:[%s11591_s23 + $0x5b8] sm:$0xff] }
 0x2c9   : > { %v9565_v32 = vpack.c.bf16 %v4129_v26, %v4127_v25  ;;  %v592_v6 = vld [vmem:[%s11591_s23 + $0x570] sm:$0xff]  ;;  %v11874_v20 = vld [vmem:[%s11591_s23 + $0x5f8] sm:$0xff] }
 0x2ca   : > { %1802 = vmatmul.mubr.f32.gmra.mrb[12].mxu0 %v472_v35  ;;  %9560 = vmatpush1.bf16.msra.mxu1 %v9559_v16  ;;  %v520_v35 = vld [vmem:[%s11591_s23 + $0x330] sm:$0xff]  ;;  %v3209_v25 = vld [vmem:[#allocation11 + $0x3d8] sm:$0xff] }
 0x2cb   : > { %1807 = vmatprep.mubr.f32.mxu0 %v481_v36  ;;  %9420 = vmatpush1.bf16.msra.mxu0 %v9419_v37  ;;  %v529_v36 = vld [vmem:[%s11591_s23 + $0x378] sm:$0xff]  ;;  %v528_v37 = vld [vmem:[%s11591_s23 + $0x370] sm:$0xff] }
 0x2cc   : > { %9422 = vmatprep.subr.bf16.mxu0 %v9421_v39  ;;  %9562 = vmatprep.subr.bf16.mxu1 %v9561_v21  ;;  %v536_v39 = vld [vmem:[%s11591_s23 + $0x3b0] sm:$0xff]  ;;  %v11264_v21 = vmov 0.0   ;;  %v641_v4 = vld [vmem:[%s11591_s23 + $0x6f8] sm:$0xff] }
 0x2cd   : > { %v11850_v9 = vld [vmem:[#allocation11 + $0x3a8] sm:$0xff]  ;;  %v11864_v16 = vld [vmem:[#allocation11 + $0x3b0] sm:$0xff]  ;;  %2180 = vst [vmem:[#allocation2 + $0x30] sm:$0xff] %v11264_v21  ;;  %2174 = vst [vmem:[#allocation2] sm:$0xff] %v11264_v21 }
 0x2ce   : > { %1808 = vmatmul.mubr.f32.gmra.mrb[14].mxu0 %v480_v49  ;;  %9564 = vmatpush1.bf16.msra.mxu1 %v9563_v30  ;;  %v576_v49 = vld [vmem:[%s11591_s23 + $0x4f0] sm:$0xff]  ;;  %v9445_v12 = vpack.c.bf16 %v11852_v10, %v11850_v9  ;;  %2175 = vst [vmem:[#allocation2 + $0x8] sm:$0xff] %v11264_v21  ;;  %2178 = vst [vmem:[#allocation2 + $0x20] sm:$0x3] %v11264_v21  ;;  %v4535_v9 = vld [vmem:[#allocation11 + $0x618] sm:$0xff] }
 0x2cf   : > { %1813 = vmatprep.mubr.f32.mxu0 %v489_v50  ;;  %9424 = vmatpush1.bf16.msra.mxu0 %v9423_v51  ;;  %v585_v50 = vld [vmem:[%s11591_s23 + $0x538] sm:$0xff]  ;;  %v3194_v51 = vld [vmem:[#allocation11 + $0x360] sm:$0xff]  ;;  %v11854_v11 = vld [vmem:[#allocation11 + $0x5a8] sm:$0xff]  ;;  %2179 = vst [vmem:[#allocation2 + $0x28] sm:$0x3] %v11264_v21 }
 0x2d0   : > { %9426 = vmatprep.subr.bf16.mxu0 %v9425_v53  ;;  %9566 = vmatprep.subr.bf16.mxu1 %v9565_v32  ;;  %v4126_v53 = vld [vmem:[#allocation11 + $0x560] sm:$0xff]  ;;  %v9439_v54 = vpack.c.bf16 %v3196_v52, %v3194_v51  ;;  %v11871_v19 = vld [vmem:[%s11591_s23 + $0x5b0] sm:$0xff]  ;;  %2181 = vst [vmem:[#allocation2 + $0x38] sm:$0xff] %v11264_v21  ;;  %2184 = vst [vmem:[#allocation2 + $0x50] sm:$0x3] %v11264_v21 }
 0x2d1   : > { %v9567_v58 = vpack.c.bf16 %v4128_v55, %v4126_v53  ;;  %2185 = vst [vmem:[#allocation2 + $0x58] sm:$0x3] %v11264_v21  ;;  %2186 = vst [vmem:[#allocation2 + $0x60] sm:$0xff] %v11264_v21  ;;  %v3207_v24 = vld [vmem:[#allocation11 + $0x3c8] sm:$0xff]  ;;  %v3208_v30 = vld [vmem:[#allocation11 + $0x3d0] sm:$0xff] }
 0x2d2   : > { %1814 = vmatmul.mubr.f32.gmra.mrb[16].mxu0 %v488_v63  ;;  %v4133_v63 = vld [vmem:[#allocation11 + $0x598] sm:$0xff]  ;;  %2187 = vst [vmem:[#allocation2 + $0x68] sm:$0xff] %v11264_v21  ;;  %2190 = vst [vmem:[#allocation2 + $0x80] sm:$0x3] %v11264_v21  ;;  %v4139_v26 = vld [vmem:[#allocation11 + $0x5c8] sm:$0xff] }
 0x2d3   : > { %1819 = vmatprep.mubr.f32.mxu0 %v497_v0  ;;  %9428 = vmatpush1.bf16.msra.mxu0 %v9427_v1  ;;  %v3198_v0 = vld [vmem:[#allocation11 + $0x380] sm:$0xff]  ;;  %v3200_v1 = vld [vmem:[#allocation11 + $0x390] sm:$0xff]  ;;  %v9569_v2 = vpack.c.bf16 %v4133_v63, %v4131_v61  ;;  %2191 = vst [vmem:[#allocation2 + $0x88] sm:$0x3] %v11264_v21  ;;  %2192 = vst [vmem:[#allocation2 + $0x90] sm:$0xff] %v11264_v21 }
 0x2d4   : > { %9430 = vmatprep.subr.bf16.mxu0 %v9429_v3  ;;  %9568 = vmatpush1.bf16.msra.mxu1 %v9567_v58  ;;  %v9443_v3 = vpack.c.bf16 %v3200_v1, %v3198_v0  ;;  %2193 = vst [vmem:[#allocation2 + $0x98] sm:$0xff] %v11264_v21  ;;  %2196 = vst [vmem:[#allocation2 + $0xb0] sm:$0x3] %v11264_v21  ;;  %v625_v52 = vld [vmem:[%s11591_s23 + $0x678] sm:$0xff]  ;;  %v3728_v55 = vld [vmem:[#allocation2] sm:$0xfc] }
 0x2d5   : > { %9570 = vmatprep.subr.bf16.mxu1 %v9569_v2  ;;  %2197 = vst [vmem:[#allocation2 + $0xb8] sm:$0x3] %v11264_v21  ;;  %2198 = vst [vmem:[#allocation2 + $0xc0] sm:$0xff] %v11264_v21  ;;  %v3729_v51 = vld [vmem:[#allocation2 + $0x8] sm:$0xfc]  ;;  %v624_v59 = vld [vmem:[%s11591_s23 + $0x670] sm:$0xff] }
 0x2d6   : > { %1820 = vmatmul.mubr.f32.gmra.mrb[18].mxu0 %v496_v13  ;;  %v11858_v13 = vld [vmem:[#allocation11 + $0x5b8] sm:$0xff]  ;;  %2199 = vst [vmem:[#allocation2 + $0xc8] sm:$0xff] %v11264_v21  ;;  %2202 = vst [vmem:[#allocation2 + $0xe0] sm:$0x3] %v11264_v21  ;;  %v3860_v53 = vrot.slane %v3729_v51, 2  ;;  %v640_v5 = vld [vmem:[%s11591_s23 + $0x6f0] sm:$0xff] }
 0x2d7   : > { %1825 = vmatprep.mubr.f32.mxu0 %v505_v14  ;;  %9432 = vmatpush1.bf16.msra.mxu0 %v9431_v15  ;;  %v11860_v14 = vld [vmem:[#allocation11 + $0x3a0] sm:$0xff]  ;;  %v9573_v15 = vpack.c.bf16 %v11858_v13, %v11854_v11  ;;  %2203 = vst [vmem:[#allocation2 + $0xe8] sm:$0x3] %v11264_v21  ;;  %2204 = vst [vmem:[#allocation2 + $0xf0] sm:$0xff] %v11264_v21  ;;  %v3730_v61 = vld [vmem:[#allocation2 + $0x20] sm:$0x3] }
 0x2d8   : > { %9434 = vmatprep.subr.bf16.mxu0 %v9433_v17  ;;  %9572 = vmatpush1.bf16.msra.mxu1 %v9571_v8  ;;  %v11866_v17 = vld [vmem:[#allocation11 + $0x5a0] sm:$0xff]  ;;  %2205 = vst [vmem:[#allocation2 + $0xf8] sm:$0xff] %v11264_v21  ;;  %2208 = vst [vmem:[#allocation2 + $0x110] sm:$0x3] %v11264_v21  ;;  %v9447_v22 = vpack.c.bf16 %v11864_v16, %v11860_v14  ;;  %v3863_v0 = vrot.slane %v3730_v61, 2  ;;  %v4533_v8 = vld [vmem:[#allocation11 + $0x608] sm:$0xff] }
 0x2d9   : > { %2209 = vst [vmem:[#allocation2 + $0x118] sm:$0x3] %v11264_v21  ;;  %2210 = vst [vmem:[#allocation2 + $0x120] sm:$0xff] %v11264_v21  ;;  %v9575_v23 = vpack.c.bf16 %v11868_v18, %v11866_v17  ;;  %9574 = vmatprep.subr.bf16.mxu1 %v9573_v15  ;;  %v3731_v58 = vld [vmem:[#allocation2 + $0x28] sm:$0x3]  ;;  %v657_v10 = vld [vmem:[%s11591_s23 + $0x778] sm:$0xff]  ;;  %v9585_v11 = vpack.c.bf16 %v4535_v9, %v4533_v8 }
 0x2da   : > { %1826 = vmatmul.mubr.f32.gmra.mrb[20].mxu0 %v504_v27  ;;  %2211 = vst [vmem:[#allocation2 + $0x128] sm:$0xff] %v11264_v21  ;;  %2214 = vst [vmem:[#allocation2 + $0x140] sm:$0x3] %v11264_v21  ;;  %v9449_v27 = vpack.c.bf16 %v3209_v25, %v3207_v24  ;;  %v3865_v60 = vrot.slane %v3731_v58, 2  ;;  %v4532_v13 = vld [vmem:[#allocation11 + $0x600] sm:$0xff]  ;;  %v4534_v14 = vld [vmem:[#allocation11 + $0x610] sm:$0xff] }
 0x2db   : > { %1831 = vmatprep.mubr.f32.mxu0 %v513_v29  ;;  %9436 = vmatpush1.bf16.msra.mxu0 %v9435_v28  ;;  %2215 = vst [vmem:[#allocation2 + $0x148] sm:$0x3] %v11264_v21  ;;  %2216 = vst [vmem:[#allocation2 + $0x150] sm:$0xff] %v11264_v21  ;;  %v4141_v28 = vld [vmem:[#allocation11 + $0x5d8] sm:$0xff]  ;;  %v3206_v29 = vld [vmem:[#allocation11 + $0x3c0] sm:$0xff]  ;;  %v9587_v16 = vpack.c.bf16 %v4534_v14, %v4532_v13  ;;  %v2929_v24 = vrot.slane %v11264_v21, 1 }
 0x2dc   : > { %9438 = vmatprep.subr.bf16.mxu0 %v9437_v31  ;;  %2217 = vst [vmem:[#allocation2 + $0x158] sm:$0xff] %v11264_v21  ;;  %2220 = vst [vmem:[#allocation2 + $0x170] sm:$0x3] %v11264_v21  ;;  %9576 = vmatpush1.bf16.msra.mxu1 %v9575_v23  ;;  %v9577_v31 = vpack.c.bf16 %v4141_v28, %v4139_v26  ;;  %v9451_v32 = vpack.c.bf16 %v3208_v30, %v3206_v29  ;;  %v665_v15 = vld [vmem:[%s11591_s23 + $0x7b8] sm:$0xff]  ;;  %v2765_v17 = vld [vmem:[#allocation2 + $0x8] sm:$0xfe] }
 0x2dd   : > { %2221 = vst [vmem:[#allocation2 + $0x178] sm:$0x3] %v11264_v21  ;;  %2222 = vst [vmem:[#allocation2 + $0x180] sm:$0xff] %v11264_v21  ;;  %v664_v18 = vld [vmem:[%s11591_s23 + $0x7b0] sm:$0xff]  ;;  %v2928_v23 = vrot.slane %v2765_v17, 1  ;;  %v4536_v30 = vld [vmem:[#allocation11 + $0x620] sm:$0xff] }
 0x2de   : > { %1832 = vmatmul.mubr.f32.gmra.mrb[22].mxu0 %v512_v33  ;;  %2223 = vst [vmem:[#allocation2 + $0x188] sm:$0xff] %v11264_v21  ;;  %2226 = vst [vmem:[#allocation2 + $0x1a0] sm:$0x3] %v11264_v21  ;;  %v4138_v33 = vld [vmem:[#allocation11 + $0x5c0] sm:$0xff]  ;;  %9578 = vmatprep.subr.bf16.mxu1 %v9577_v31  ;;  %v672_v28 = vld [vmem:[%s11591_s23 + $0x7f0] sm:$0xff] }
 0x2df   : > { %1837 = vmatprep.mubr.f32.mxu0 %v521_v34  ;;  %9440 = vmatpush1.bf16.msra.mxu0 %v9439_v54  ;;  %2227 = vst [vmem:[#allocation2 + $0x1a8] sm:$0x3] %v11264_v21  ;;  %2228 = vst [vmem:[#allocation2 + $0x1b0] sm:$0xff] %v11264_v21  ;;  %v4140_v34 = vld [vmem:[#allocation11 + $0x5d0] sm:$0xff]  ;;  %v3861_v54 = vrot.slane %v11264_v21, 2  ;;  %v4549_v51 = vld [vmem:[#allocation11 + $0x688] sm:$0xff] }
 0x2e0   : > { %9442 = vmatprep.subr.bf16.mxu0 %v9441_v62  ;;  %2229 = vst [vmem:[#allocation2 + $0x1b8] sm:$0xff] %v11264_v21  ;;  %2232 = vst [vmem:[#allocation2 + $0x1d0] sm:$0x3] %v11264_v21  ;;  %v633_v62 = vld [vmem:[%s11591_s23 + $0x6b8] sm:$0xff]  ;;  %v2764_v25 = vld [vmem:[#allocation2] sm:$0xfe] }
 0x2e1   : > { %2233 = vst [vmem:[#allocation2 + $0x1d8] sm:$0x3] %v11264_v21  ;;  %2234 = vst [vmem:[#allocation2 + $0x1e0] sm:$0xff] %v11264_v21  ;;  %v3866_v1 = vsel %vm3856_vm0, %v3861_v54, %v3865_v60  ;;  %v3864_v2 = vsel %vm3856_vm0, %v3861_v54, %v3863_v0  ;;  %v2925_v29 = vrot.slane %v2764_v25, 1  ;;  %v4538_v31 = vld [vmem:[#allocation11 + $0x630] sm:$0xff]  ;;  %v4555_v58 = vld [vmem:[#allocation11 + $0x6b8] sm:$0xff] }
 0x2e2   : > { %1838 = vmatmul.mubr.f32.gmra.mrb[24].mxu0 %v520_v35  ;;  %2235 = vst [vmem:[#allocation2 + $0x1e8] sm:$0xff] %v11264_v21  ;;  %2238 = vst [vmem:[#allocation2 + $0x200] sm:$0x3] %v11264_v21  ;;  %v608_v35 = vld [vmem:[%s11591_s23 + $0x5f0] sm:$0xff]  ;;  %v4552_v60 = vld [vmem:[#allocation11 + $0x6a0] sm:$0xff] }
 0x2e3   : > { %1843 = vmatprep.mubr.f32.mxu0 %v529_v36  ;;  %9444 = vmatpush1.bf16.msra.mxu0 %v9443_v3  ;;  %2239 = vst [vmem:[#allocation2 + $0x208] sm:$0x3] %v11264_v21  ;;  %2240 = vst [vmem:[#allocation2 + $0x210] sm:$0xff] %v11264_v21  ;;  %v617_v36 = vld [vmem:[%s11591_s23 + $0x638] sm:$0xff]  ;;  %v632_v3 = vld [vmem:[%s11591_s23 + $0x6b0] sm:$0xff] }
 0x2e4   : > { %2241 = vst [vmem:[#allocation2 + $0x218] sm:$0xff] %v11264_v21  ;;  %2244 = vst [vmem:[#allocation2 + $0x230] sm:$0x3] %v11264_v21  ;;  %9446 = vmatprep.subr.bf16.mxu0 %v9445_v12  ;;  %v656_v12 = vld [vmem:[%s11591_s23 + $0x770] sm:$0xff]  ;;  %v4559_v0 = vld [vmem:[#allocation11 + $0x6d8] sm:$0xff] }
 0x2e5   : > { %2245 = vst [vmem:[#allocation2 + $0x238] sm:$0x3] %v11264_v21  ;;  %2246 = vst [vmem:[#allocation2 + $0x240] sm:$0xff] %v11264_v21  ;;  %v4554_v61 = vld [vmem:[#allocation11 + $0x6b0] sm:$0xff]  ;;  %v4560_v8 = vld [vmem:[#allocation11 + $0x6e0] sm:$0xff] }
 0x2e6   : > { %1844 = vmatmul.mubr.f32.gmra.mrb[26].mxu0 %v528_v37  ;;  %2247 = vst [vmem:[#allocation2 + $0x248] sm:$0xff] %v11264_v21  ;;  %2250 = vst [vmem:[#allocation2 + $0x260] sm:$0x3] %v11264_v21  ;;  %v9579_v37 = vpack.c.bf16 %v4140_v34, %v4138_v33  ;;  %v2766_v34 = vld [vmem:[#allocation2 + $0x20] sm:$0x1]  ;;  %v4562_v9 = vld [vmem:[#allocation11 + $0x6f0] sm:$0xff] }
 0x2e7   : > { %1849 = vmatprep.mubr.f32.mxu0 %v537_v38  ;;  %2251 = vst [vmem:[#allocation2 + $0x268] sm:$0x3] %v11264_v21  ;;  %2252 = vst [vmem:[#allocation2 + $0x270] sm:$0xff] %v11264_v21  ;;  %9448 = vmatpush1.bf16.msra.mxu0 %v9447_v22  ;;  %v3211_v38 = vld [vmem:[#allocation11 + $0x3e8] sm:$0xff]  ;;  %v673_v22 = vld [vmem:[%s11591_s23 + $0x7f8] sm:$0xff] }
 0x2e8   : > { %2253 = vst [vmem:[#allocation2 + $0x278] sm:$0xff] %v11264_v21  ;;  %2256 = vst [vmem:[#allocation2 + $0x290] sm:$0x3] %v11264_v21  ;;  %9450 = vmatprep.subr.bf16.mxu0 %v9449_v27  ;;  %9580 = vmatpush1.bf16.msra.mxu1 %v9579_v37  ;;  %v2767_v27 = vld [vmem:[#allocation2 + $0x28] sm:$0x1]  ;;  %v4541_v37 = vld [vmem:[#allocation11 + $0x648] sm:$0xff] }
 0x2e9   : > { %2257 = vst [vmem:[#allocation2 + $0x298] sm:$0x3] %v11264_v21  ;;  %2258 = vst [vmem:[#allocation2 + $0x2a0] sm:$0xff] %v11264_v21  ;;  %v2933_v33 = vrot.slane %v2767_v27, 1  ;;  %v4565_v13 = vld [vmem:[#allocation11 + $0x708] sm:$0xff]  ;;  %v2700_v17 = vld [vmem:[#allocation11] sm:$0xff] }
 0x2ea   : > { %1850 = vmatmul.mubr.f32.gmra.mrb[28].mxu0 %v536_v39  ;;  %2259 = vst [vmem:[#allocation2 + $0x2a8] sm:$0xff] %v11264_v21  ;;  %2262 = vst [vmem:[#allocation2 + $0x2c0] sm:$0x3] %v11264_v21  ;;  %v3213_v39 = vld [vmem:[#allocation11 + $0x3f8] sm:$0xff] }
 0x2eb   : > { %1855 = vmatprep.mubr.f32.mxu0 %v545_v40  ;;  %2263 = vst [vmem:[#allocation2 + $0x2c8] sm:$0x3] %v11264_v21  ;;  %2264 = vst [vmem:[#allocation2 + $0x2d0] sm:$0xff] %v11264_v21  ;;  %v4143_v40 = vld [vmem:[#allocation11 + $0x5e8] sm:$0xff]  ;;  %9452 = vmatpush1.bf16.msra.mxu0 %v9451_v32  ;;  %v2930_v32 = vsel %vm2924_vm1, %v2928_v23, %v2929_v24  ;;  %v4564_v23 = vld [vmem:[#allocation11 + $0x700] sm:$0xff] }
 0x2ec   : > { %2265 = vst [vmem:[#allocation2 + $0x2d8] sm:$0xff] %v11264_v21  ;;  %2268 = vst [vmem:[#allocation2 + $0x2f0] sm:$0x3] %v11264_v21 }
 0x2ed   : > { %2269 = vst [vmem:[#allocation2 + $0x2f8] sm:$0x3] %v11264_v21  ;;  %2270 = vst [vmem:[#allocation2 + $0x300] sm:$0xff] %v11264_v21 }
 0x2ee   : > { %1856 = vmatmul.mubr.f32.gmra.mrb[30].mxu0 %v544_v41  ;;  %2271 = vst [vmem:[#allocation2 + $0x308] sm:$0xff] %v11264_v21  ;;  %2274 = vst [vmem:[#allocation2 + $0x320] sm:$0x3] %v11264_v21  ;;  %v9453_v41 = vpack.c.bf16 %v3213_v39, %v3211_v38  ;;  %v4543_v38 = vld [vmem:[#allocation11 + $0x658] sm:$0xff]  ;;  %v2934_v39 = vsel %vm2924_vm1, %v2929_v24, %v2933_v33  ;;  %v4569_v33 = vld [vmem:[#allocation11 + $0x728] sm:$0xff] }
 0x2ef   : > { %1861 = vmatprep.mubr.f32.mxu0 %v553_v42  ;;  %2275 = vst [vmem:[#allocation2 + $0x328] sm:$0x3] %v11264_v21  ;;  %2276 = vst [vmem:[#allocation2 + $0x330] sm:$0xff] %v11264_v21  ;;  %v4145_v42 = vld [vmem:[#allocation11 + $0x5f8] sm:$0xff] }
 0x2f0   : > { %2277 = vst [vmem:[#allocation2 + $0x338] sm:$0xff] %v11264_v21  ;;  %2280 = vst [vmem:[#allocation2 + $0x350] sm:$0x3] %v11264_v21  ;;  %9454 = vmatprep.subr.bf16.mxu0 %v9453_v41 }
 0x2f1   : > { %2281 = vst [vmem:[#allocation2 + $0x358] sm:$0x3] %v11264_v21  ;;  %v2927_v21 = vsel %vm2924_vm1, %v2925_v29, %v2929_v24 }
 0x2f2   : > { %1862 = vmatmul.mubr.f32.gmra.mrb[32].mxu0 %v552_v43  ;;  %v3210_v43 = vld [vmem:[#allocation11 + $0x3e0] sm:$0xff] }
 0x2f3   : > { %1867 = vmatprep.mubr.f32.mxu0 %v561_v44  ;;  %v3212_v44 = vld [vmem:[#allocation11 + $0x3f0] sm:$0xff] }
 0x2f6   : > { %1868 = vmatmul.mubr.f32.gmra.mrb[34].mxu0 %v560_v45  ;;  %v9581_v45 = vpack.c.bf16 %v4145_v42, %v4143_v40  ;;  %v9593_v40 = vpack.c.bf16 %v4543_v38, %v4541_v37  ;;  %v4540_v42 = vld [vmem:[#allocation11 + $0x640] sm:$0xff]  ;;  %v2713_v38 = vld [vmem:[#allocation11 + $0x68] sm:$0xff] }
 0x2f7   : > { %1873 = vmatprep.mubr.f32.mxu0 %v569_v46  ;;  %v9455_v46 = vpack.c.bf16 %v3212_v44, %v3210_v43  ;;  %v4542_v43 = vld [vmem:[#allocation11 + $0x650] sm:$0xff] }
 0x2f8   : > { %9582 = vmatprep.subr.bf16.mxu1 %v9581_v45  ;;  %v9595_v44 = vpack.c.bf16 %v4542_v43, %v4540_v42  ;;  %v4545_v45 = vld [vmem:[#allocation11 + $0x668] sm:$0xff]  ;;  %v2712_v43 = vld [vmem:[#allocation11 + $0x60] sm:$0xff] }
 0x2f9   : > { %9456 = vmatpush1.bf16.msra.mxu0 %v9455_v46  ;;  %v4547_v46 = vld [vmem:[#allocation11 + $0x678] sm:$0xff] }
 0x2fa   : > { %1874 = vmatmul.mubr.f32.gmra.mrb[36].mxu0 %v568_v47  ;;  %v4142_v47 = vld [vmem:[#allocation11 + $0x5e0] sm:$0xff] }
 0x2fb   : > { %1879 = vmatprep.mubr.f32.mxu0 %v577_v48  ;;  %v4144_v48 = vld [vmem:[#allocation11 + $0x5f0] sm:$0xff] }
 0x2fe   : > { %1880 = vmatmul.mubr.f32.gmra.mrb[38].mxu0 %v576_v49  ;;  %v616_v49 = vld [vmem:[%s11591_s23 + $0x630] sm:$0xff] }
 0x2ff   : > { %1885 = vmatprep.mubr.f32.mxu0 %v585_v50  ;;  %v9583_v50 = vpack.c.bf16 %v4144_v48, %v4142_v47  ;;  %v9597_v47 = vpack.c.bf16 %v4547_v46, %v4545_v45  ;;  %v4544_v48 = vld [vmem:[#allocation11 + $0x660] sm:$0xff]  ;;  %v2714_v46 = vld [vmem:[#allocation11 + $0x70] sm:$0xff] }
 0x301   : > { %9584 = vmatpush1.bf16.msra.mxu1 %v9583_v50 }
 0x302   : > { %1886 = vmatmul.mubr.f32.gmra.mrb[40].mxu0 %v584_v56  ;;  %v3862_v56 = vsel %vm3856_vm0, %v3860_v53, %v3861_v54  ;;  %9586 = vmatprep.subr.bf16.mxu1 %v9585_v11  ;;  %v2701_v11 = vld [vmem:[#allocation11 + $0x8] sm:$0xff] }
 0x303   : > { %1891 = vmatprep.mubr.f32.mxu0 %v593_v57  ;;  %v3857_v57 = vrot.slane %v3728_v55, 2  ;;  %4210 = vmatprep.mubr.f32.mxu1 %v3862_v56  ;;  %v4550_v55 = vld [vmem:[#allocation11 + $0x690] sm:$0xff] }
 0x305   : > { %v3859_v63 = vsel %vm3856_vm0, %v3857_v57, %v3861_v54  ;;  %v4548_v54 = vld [vmem:[#allocation11 + $0x680] sm:$0xff]  ;;  %v4553_v57 = vld [vmem:[#allocation11 + $0x6a8] sm:$0xff] }
 0x306   : > { %1892 = vmatmul.mubr.f32.gmra.mrb[42].mxu0 %v592_v6  ;;  %4211 = vmatmul.mubr.f32.vlgmr.msra.gmra.mrb[0].mxu1 %v3859_v63  ;;  %v649_v6 = vld [vmem:[%s11591_s23 + $0x738] sm:$0xff]  ;;  %v9603_v56 = vpack.c.bf16 %v4550_v55, %v4548_v54  ;;  %v4557_v63 = vld [vmem:[#allocation11 + $0x6c8] sm:$0xff]  ;;  %v2716_v55 = vld [vmem:[#allocation11 + $0x80] sm:$0xff] }
 0x307   : > { %1897 = vmatprep.mubr.f32.mxu0 %v601_v7  ;;  %4216 = vmatprep.mubr.f32.mxu1 %v3866_v1  ;;  %v648_v7 = vld [vmem:[%s11591_s23 + $0x730] sm:$0xff]  ;;  %v9609_v1 = vpack.c.bf16 %v4559_v0, %v4557_v63  ;;  %v4572_v63 = vld [vmem:[#allocation11 + $0x740] sm:$0xff] }
 0x308   : > { %9588 = vmatpush1.bf16.msra.mxu1 %v9587_v16  ;;  %v4574_v0 = vld [vmem:[#allocation11 + $0x750] sm:$0xff] }
 0x30a   : > { %1898 = vmatmul.mubr.f32.gmra.mrb[44].mxu0 %v11871_v19  ;;  %4217 = vmatmul.mubr.f32.gmra.mrb[2].mxu1 %v3864_v2  ;;  %v4537_v19 = vld [vmem:[#allocation11 + $0x628] sm:$0xff]  ;;  %v4556_v2 = vld [vmem:[#allocation11 + $0x6c0] sm:$0xff] }
 0x30b   : > { %1903 = vmatprep.mubr.f32.mxu0 %v11874_v20  ;;  %v4539_v20 = vld [vmem:[#allocation11 + $0x638] sm:$0xff] }
 0x30c   : > { %v9589_v26 = vpack.c.bf16 %v4539_v20, %v4537_v19  ;;  %v2705_v20 = vld [vmem:[#allocation11 + $0x28] sm:$0xff] }
 0x30e   : > { %1904 = vmatmul.mubr.f32.gmra.mrb[46].mxu0 %v608_v35  ;;  %9590 = vmatprep.subr.bf16.mxu1 %v9589_v26  ;;  %v9591_v35 = vpack.c.bf16 %v4538_v31, %v4536_v30  ;;  %v2704_v26 = vld [vmem:[#allocation11 + $0x20] sm:$0xff]  ;;  %v2709_v30 = vld [vmem:[#allocation11 + $0x48] sm:$0xff]  ;;  %v2711_v31 = vld [vmem:[#allocation11 + $0x58] sm:$0xff] }
 0x30f   : > { %1909 = vmatprep.mubr.f32.mxu0 %v617_v36  ;;  %v2931_v36 = vrot.slane %v2766_v34, 1  ;;  %v4571_v34 = vld [vmem:[#allocation11 + $0x738] sm:$0xff] }
 0x310   : > { %9592 = vmatpush1.bf16.msra.mxu1 %v9591_v35  ;;  %v9621_v35 = vpack.c.bf16 %v4571_v34, %v4569_v33 }
 0x311   : > { %9594 = vmatprep.subr.bf16.mxu1 %v9593_v40  ;;  %v2932_v41 = vsel %vm2924_vm1, %v2929_v24, %v2931_v36  ;;  %v4566_v24 = vld [vmem:[#allocation11 + $0x710] sm:$0xff]  ;;  %v4568_v40 = vld [vmem:[#allocation11 + $0x720] sm:$0xff] }
 0x312   : > { %1910 = vmatmul.mubr.f32.gmra.mrb[48].mxu0 %v616_v49  ;;  %v4546_v49 = vld [vmem:[#allocation11 + $0x670] sm:$0xff]  ;;  %v9619_v27 = vpack.c.bf16 %v4566_v24, %v4564_v23 }
 0x313   : > { %1915 = vmatprep.mubr.f32.mxu0 %v625_v52  ;;  %v9599_v50 = vpack.c.bf16 %v4546_v49, %v4544_v48  ;;  %v4551_v52 = vld [vmem:[#allocation11 + $0x698] sm:$0xff]  ;;  %v2710_v36 = vld [vmem:[#allocation11 + $0x50] sm:$0xff]  ;;  %v2717_v48 = vld [vmem:[#allocation11 + $0x88] sm:$0xff] }
 0x314   : > { %9596 = vmatpush1.bf16.msra.mxu1 %v9595_v44  ;;  %v9601_v53 = vpack.c.bf16 %v4551_v52, %v4549_v51  ;;  %v1960_v44 = vlaneseq  ;;  %v2719_v49 = vld [vmem:[#allocation11 + $0x98] sm:$0xff]  ;;  %v4573_v51 = vld [vmem:[#allocation11 + $0x748] sm:$0xff] }
 0x315   : > { %9598 = vmatprep.subr.bf16.mxu1 %v9597_v47  ;;  %v9471_v47 = vpack.c.bf16 %v2714_v46, %v2712_v43  ;;  %v4575_v52 = vld [vmem:[#allocation11 + $0x758] sm:$0xff]  ;;  %v4581_v43 = vld [vmem:[#allocation11 + $0x788] sm:$0xff] }
 0x316   : > { %1916 = vmatmul.mubr.f32.gmra.mrb[50].mxu0 %v624_v59  ;;  %v9605_v59 = vpack.c.bf16 %v4555_v58, %v4553_v57  ;;  %v1961_v54 = vshrl.u32 %v1960_v44, 7  ;;  %v1958_v58 = vld [vmem:[#allocation8] sm:$0x3] }
 0x317   : > { %1921 = vmatprep.mubr.f32.mxu0 %v633_v62  ;;  %v9607_v62 = vpack.c.bf16 %v4554_v61, %v4552_v60  ;;  %v2721_v60 = vld [vmem:[#allocation11 + $0xa8] sm:$0xff]  ;;  %v2723_v61 = vld [vmem:[#allocation11 + $0xb8] sm:$0xff] }
 0x318   : > { %9600 = vmatpush1.bf16.msra.mxu1 %v9599_v50  ;;  %v9473_v50 = vpack.c.bf16 %v2719_v49, %v2717_v48 }
 0x319   : > { %9602 = vmatprep.subr.bf16.mxu1 %v9601_v53  ;;  %v9625_v53 = vpack.c.bf16 %v4575_v52, %v4573_v51  ;;  %v2732_v52 = vld [vmem:[#allocation11 + $0x100] sm:$0xff] }
 0x31a   : > { %1922 = vmatmul.mubr.f32.gmra.mrb[52].mxu0 %v632_v3  ;;  %v4558_v3 = vld [vmem:[#allocation11 + $0x6d0] sm:$0xff] }
 0x31b   : > { %1927 = vmatprep.mubr.f32.mxu0 %v641_v4  ;;  %v9611_v4 = vpack.c.bf16 %v4558_v3, %v4556_v2  ;;  %v2720_v2 = vld [vmem:[#allocation11 + $0xa0] sm:$0xff]  ;;  %v9627_v3 = vpack.c.bf16 %v4574_v0, %v4572_v63  ;;  %v2737_v0 = vld [vmem:[#allocation11 + $0x128] sm:$0xff] }
 0x31c   : > { %9604 = vmatpush1.bf16.msra.mxu1 %v9603_v56  ;;  %v2718_v56 = vld [vmem:[#allocation11 + $0x90] sm:$0xff] }
 0x31d   : > { %9606 = vmatprep.subr.bf16.mxu1 %v9605_v59  ;;  %v9475_v57 = vpack.c.bf16 %v2718_v56, %v2716_v55  ;;  %v11987_v59 = vsub.s32 0, %v1961_v54 }
 0x31e   : > { %1928 = vmatmul.mubr.f32.gmra.mrb[54].mxu0 %v640_v5  ;;  %v4561_v5 = vld [vmem:[#allocation11 + $0x6e8] sm:$0xff] }
 0x31f   : > { %1933 = vmatprep.mubr.f32.mxu0 %v649_v6  ;;  %v4563_v6 = vld [vmem:[#allocation11 + $0x6f8] sm:$0xff] }
 0x320   : > { %9608 = vmatpush1.bf16.msra.mxu1 %v9607_v62  ;;  %v11989_v62 = vsub.s32 1, %v1961_v54 }
 0x321   : > { %9610 = vmatprep.subr.bf16.mxu1 %v9609_v1  ;;  %v9477_v1 = vpack.c.bf16 %v2723_v61, %v2721_v60 }
 0x322   : > { %1934 = vmatmul.mubr.f32.gmra.mrb[56].mxu0 %v648_v7  ;;  %v9613_v7 = vpack.c.bf16 %v4563_v6, %v4561_v5  ;;  %v2034_v5 = vld [vmem:[#allocation9] sm:$0x3] }
 0x323   : > { %1939 = vmatprep.mubr.f32.mxu0 %v657_v10  ;;  %v9615_v10 = vpack.c.bf16 %v4562_v9, %v4560_v8  ;;  %v2725_v8 = vld [vmem:[#allocation11 + $0xc8] sm:$0xff]  ;;  %v2727_v9 = vld [vmem:[#allocation11 + $0xd8] sm:$0xff] }
 0x324   : > { %9612 = vmatpush1.bf16.msra.mxu1 %v9611_v4  ;;  %v2722_v4 = vld [vmem:[#allocation11 + $0xb0] sm:$0xff] }
 0x325   : > { %9614 = vmatprep.subr.bf16.mxu1 %v9613_v7  ;;  %v9479_v6 = vpack.c.bf16 %v2722_v4, %v2720_v2  ;;  %v11992_v7 = vrot.slane %v1958_v58, %v11987_v59 }
 0x326   : > { %1940 = vmatmul.mubr.f32.gmra.mrb[58].mxu0 %v656_v12  ;;  %v2703_v12 = vld [vmem:[#allocation11 + $0x18] sm:$0xff] }
 0x327   : > { %1945 = vmatprep.mubr.f32.mxu0 %v665_v15  ;;  %v9457_v14 = vpack.c.bf16 %v2703_v12, %v2701_v11  ;;  %v4567_v15 = vld [vmem:[#allocation11 + $0x718] sm:$0xff]  ;;  %v11995_v11 = vrot.slane %v1958_v58, %v11989_v62  ;;  %v9481_v12 = vpack.c.bf16 %v2727_v9, %v2725_v8 }
 0x328   : > { %9616 = vmatpush1.bf16.msra.mxu1 %v9615_v10  ;;  %v9617_v16 = vpack.c.bf16 %v4567_v15, %v4565_v13  ;;  %v4577_v10 = vld [vmem:[#allocation11 + $0x768] sm:$0xff]  ;;  %v4579_v13 = vld [vmem:[#allocation11 + $0x778] sm:$0xff] }
 0x329   : > { %9458 = vmatprep.subr.bf16.mxu0 %v9457_v14  ;;  %v11998_v14 = vrot.slane %v2034_v5, %v11987_v59  ;;  %v9629_v15 = vpack.c.bf16 %v4579_v13, %v4577_v10 }
 0x32a   : > { %1946 = vmatmul.mubr.f32.gmra.mrb[60].mxu0 %v664_v18  ;;  %v2702_v18 = vld [vmem:[#allocation11 + $0x10] sm:$0xff]  ;;  %9618 = vmatprep.subr.bf16.mxu1 %v9617_v16  ;;  %v2724_v16 = vld [vmem:[#allocation11 + $0xc0] sm:$0xff] }
 0x32b   : > { %1951 = vmatprep.mubr.f32.mxu0 %v673_v22  ;;  %v9459_v19 = vpack.c.bf16 %v2702_v18, %v2700_v17  ;;  %v2707_v22 = vld [vmem:[#allocation11 + $0x38] sm:$0xff]  ;;  %v2726_v17 = vld [vmem:[#allocation11 + $0xd0] sm:$0xff] }
 0x32c   : > { %v9461_v25 = vpack.c.bf16 %v2707_v22, %v2705_v20  ;;  %9620 = vmatpush1.bf16.msra.mxu1 %v9619_v27  ;;  %v9483_v20 = vpack.c.bf16 %v2726_v17, %v2724_v16  ;;  %v2736_v16 = vld [vmem:[#allocation11 + $0x120] sm:$0xff]  ;;  %v2738_v17 = vld [vmem:[#allocation11 + $0x130] sm:$0xff] }
 0x32d   : > { %9622 = vmatprep.subr.bf16.mxu1 %v9621_v35  ;;  %v2730_v35 = vld [vmem:[#allocation11 + $0xf0] sm:$0xff] }
 0x32e   : > { %1952 = vmatmul.mubr.f32.gmra.mrb[62].mxu0 %v672_v28  ;;  %v2706_v28 = vld [vmem:[#allocation11 + $0x30] sm:$0xff] }
 0x32f   : > { %3278 = vmatprep.mubr.f32.mxu0 %v2930_v32  ;;  %v9463_v29 = vpack.c.bf16 %v2706_v28, %v2704_v26  ;;  %v9465_v32 = vpack.c.bf16 %v2711_v31, %v2709_v30  ;;  %v2731_v26 = vld [vmem:[#allocation11 + $0xf8] sm:$0xff]  ;;  %v4576_v28 = vld [vmem:[#allocation11 + $0x760] sm:$0xff] }
 0x330   : > { %v2728_v31 = vld [vmem:[#allocation11 + $0xe0] sm:$0xff] }
 0x332   : > { %3279 = vmatmul.mubr.f32.vlgmr.msra.gmra.mrb[64].mxu0 %v2927_v21  ;;  %v2708_v21 = vld [vmem:[#allocation11 + $0x40] sm:$0xff] }
 0x333   : > { %3284 = vmatprep.mubr.f32.mxu0 %v2934_v39  ;;  %9460 = vmatpush1.bf16.msra.mxu0 %v9459_v19  ;;  %v9467_v37 = vpack.c.bf16 %v2710_v36, %v2708_v21  ;;  %v2715_v39 = vld [vmem:[#allocation11 + $0x78] sm:$0xff]  ;;  %v12001_v19 = vrot.slane %v2034_v5, %v11989_v62  ;;  %v4580_v5 = vld [vmem:[#allocation11 + $0x780] sm:$0xff] }
 0x334   : > { %9462 = vmatprep.subr.bf16.mxu0 %v9461_v25  ;;  %v9469_v42 = vpack.c.bf16 %v2715_v39, %v2713_v38  ;;  %v2729_v25 = vld [vmem:[#allocation11 + $0xe8] sm:$0xff]  ;;  %v9487_v38 = vpack.c.bf16 %v2730_v35, %v2728_v31  ;;  %v4587_v31 = vld [vmem:[#allocation11 + $0x7b8] sm:$0xff] }
 0x335   : > { %v9485_v30 = vpack.c.bf16 %v2731_v26, %v2729_v25  ;;  %v2743_v25 = vld [vmem:[#allocation11 + $0x158] sm:$0xff] }
 0x336   : > { %3285 = vmatmul.mubr.f32.gmra.mrb[66].mxu0 %v2932_v41  ;;  %v4570_v41 = vld [vmem:[#allocation11 + $0x730] sm:$0xff] }
 0x337   : > { %9464 = vmatpush1.bf16.msra.mxu0 %v9463_v29  ;;  %v9623_v45 = vpack.c.bf16 %v4570_v41, %v4568_v40  ;;  %v4578_v29 = vld [vmem:[#allocation11 + $0x770] sm:$0xff]  ;;  %v2733_v41 = vld [vmem:[#allocation11 + $0x108] sm:$0xff] }
 0x338   : > { %9466 = vmatprep.subr.bf16.mxu0 %v9465_v32  ;;  %v9631_v34 = vpack.c.bf16 %v4578_v29, %v4576_v28 }
 0x339   : > { %9624 = vmatpush1.bf16.msra.mxu1 %v9623_v45 }
 0x33a   : > { %9626 = vmatprep.subr.bf16.mxu1 %v9625_v53  ;;  %v2734_v53 = vld [vmem:[#allocation11 + $0x110] sm:$0xff] }
 0x33b   : > { %9468 = vmatpush1.bf16.msra.mxu0 %v9467_v37 }
 0x33c   : > { %9470 = vmatprep.subr.bf16.mxu0 %v9469_v42  ;;  %v2735_v42 = vld [vmem:[#allocation11 + $0x118] sm:$0xff] }
 0x33d   : > { %9628 = vmatpush1.bf16.msra.mxu1 %v9627_v3  ;;  %v9489_v46 = vpack.c.bf16 %v2735_v42, %v2733_v41 }
 0x33e   : > { %9630 = vmatprep.subr.bf16.mxu1 %v9629_v15 }
 0x33f   : > { %9472 = vmatpush1.bf16.msra.mxu0 %v9471_v47  ;;  %v4583_v47 = vld [vmem:[#allocation11 + $0x798] sm:$0xff] }
 0x340   : > { %9474 = vmatprep.subr.bf16.mxu0 %v9473_v50  ;;  %v9633_v51 = vpack.c.bf16 %v4583_v47, %v4581_v43 }
 0x341   : > { %9632 = vmatpush1.bf16.msra.mxu1 %v9631_v34 }
 0x342   : > { %9634 = vmatprep.subr.bf16.mxu1 %v9633_v51 }
 0x343   : > { %9476 = vmatpush1.bf16.msra.mxu0 %v9475_v57  ;;  %v9491_v57 = vpack.c.bf16 %v2734_v53, %v2732_v52 }
 0x344   : > { %9478 = vmatprep.subr.bf16.mxu0 %v9477_v1  ;;  %v2739_v1 = vld [vmem:[#allocation11 + $0x138] sm:$0xff] }
 0x345   : > { %v9493_v8 = vpack.c.bf16 %v2739_v1, %v2737_v0 }
 0x347   : > { %9480 = vmatpush1.bf16.msra.mxu0 %v9479_v6  ;;  %v4582_v6 = vld [vmem:[#allocation11 + $0x790] sm:$0xff] }
 0x348   : > { %9482 = vmatprep.subr.bf16.mxu0 %v9481_v12  ;;  %v9635_v15 = vpack.c.bf16 %v4582_v6, %v4580_v5 }
 0x34a   : > { %9636 = vmatpush1.bf16.msra.mxu1 %v9635_v15 }
 0x34b   : > { %9484 = vmatpush1.bf16.msra.mxu0 %v9483_v20 }
 0x34c   : > { %9486 = vmatprep.subr.bf16.mxu0 %v9485_v30  ;;  %v4585_v30 = vld [vmem:[#allocation11 + $0x7a8] sm:$0xff] }
 0x34d   : > { %v9637_v43 = vpack.c.bf16 %v4587_v31, %v4585_v30 }
 0x34f   : > { %9488 = vmatpush1.bf16.msra.mxu0 %v9487_v38  ;;  %9638 = vmatprep.subr.bf16.mxu1 %v9637_v43 }
 0x350   : > { %9490 = vmatprep.subr.bf16.mxu0 %v9489_v46 }
 0x353   : > { %9492 = vmatpush1.bf16.msra.mxu0 %v9491_v57 }
 0x354   : > { %9494 = vmatprep.subr.bf16.mxu0 %v9493_v8 }
 0x385   : > { %v1767_v18 = vpop.f32.mrb[0].mxu0 }
 0x386   : > { %v1970_v22 = vmul.f32 %v11992_v7, %v1767_v18  ;;  %v1769_v23 = vpop.f32.mrb[1].mxu0 }
 0x387   : > { %v1971_v24 = vmul.f32 %v11995_v11, %v1769_v23 }
 0x388   : > { %v2046_v27 = vadd.f32 %v11998_v14, %v1970_v22 }
 0x389   : > { %v2047_v32 = vadd.f32 %v12001_v19, %v1971_v24  ;;  %v1773_v33 = vpop.f32.mrb[2].mxu0  ;;  %v2741_v24 = vld [vmem:[#allocation11 + $0x148] sm:$0xff] }
 0x38a   : > { %v2110_v21 = vmax.f32 %v2046_v27, 0.0  ;;  %v1972_v36 = vmul.f32 %v11992_v7, %v1773_v33  ;;  %v1775_v37 = vpop.f32.mrb[3].mxu0 }
 0x38b   : > { %v2111_v39 = vmax.f32 %v2047_v32, 0.0  ;;  %v1973_v40 = vmul.f32 %v11995_v11, %v1775_v37  ;;  %v9497_v37 = vpack.c.bf16 %v2743_v25, %v2741_v24 }
 0x38c   : > { %v2347_v44 = vrot.slane %v2110_v21, 7  ;;  %v2048_v45 = vadd.f32 %v11998_v14, %v1972_v36  ;;  %v9495_v36 = vpack.c.bf16 %v2738_v17, %v2736_v16 }
 0x38d   : > { %v2348_v48 = vrot.slane %v2111_v39, 7  ;;  %v2049_v49 = vadd.f32 %v12001_v19, %v1973_v40  ;;  %v1779_v50 = vpop.f32.mrb[4].mxu0 }
 0x38e   : > { %2540 = vst [vmem:[#allocation2 + $0x30] sm:$0xfe] %v2347_v44  ;;  %v2112_v54 = vmax.f32 %v2048_v45, 0.0  ;;  %v1974_v55 = vmul.f32 %v11992_v7, %v1779_v50  ;;  %v1781_v56 = vpop.f32.mrb[5].mxu0  ;;  %9496 = vmatpush1.bf16.msra.mxu0 %v9495_v36 }
 0x38f   : > { %2541 = vst [vmem:[#allocation2 + $0x38] sm:$0xfe] %v2348_v48  ;;  %v2113_v58 = vmax.f32 %v2049_v49, 0.0  ;;  %v1975_v60 = vmul.f32 %v11995_v11, %v1781_v56  ;;  %9498 = vmatprep.subr.bf16.mxu0 %v9497_v37 }
 0x390   : > { %v2349_v61 = vrot.slane %v2112_v54, 7  ;;  %v2050_v63 = vadd.f32 %v11998_v14, %v1974_v55 }
 0x391   : > { %v2351_v2 = vrot.slane %v2113_v58, 7  ;;  %v2051_v3 = vadd.f32 %v12001_v19, %v1975_v60  ;;  %v1785_v4 = vpop.f32.mrb[6].mxu0 }
 0x392   : > { %v12016_v9 = vsel %vm2346_vm2, %v2347_v44, %v2349_v61  ;;  %2544 = vst [vmem:[#allocation2 + $0x50] sm:$0x1] %v2349_v61  ;;  %v2114_v10 = vmax.f32 %v2050_v63, 0.0  ;;  %v1976_v12 = vmul.f32 %v11992_v7, %v1785_v4  ;;  %v1787_v13 = vpop.f32.mrb[7].mxu0 }
 0x393   : > { %2542 = vst [vmem:[#allocation2 + $0x40] sm:$0xff] %v12016_v9  ;;  %v12021_v18 = vsel %vm2346_vm2, %v2348_v48, %v2351_v2  ;;  %2545 = vst [vmem:[#allocation2 + $0x58] sm:$0x1] %v2351_v2  ;;  %v2115_v20 = vmax.f32 %v2051_v3, 0.0  ;;  %v1977_v22 = vmul.f32 %v11995_v11, %v1787_v13  ;;  %v2936_v23 = vrot.slane %v12016_v9, 1 }
 0x394   : > { %2543 = vst [vmem:[#allocation2 + $0x48] sm:$0xff] %v12021_v18  ;;  %v2353_v26 = vrot.slane %v2114_v10, 7  ;;  %v2052_v27 = vadd.f32 %v11998_v14, %v1976_v12  ;;  %v2939_v28 = vrot.slane %v12021_v18, 1  ;;  %v3871_v29 = vrot.slane %v12021_v18, 2 }
 0x395   : > { %v2354_v32 = vrot.slane %v2115_v20, 7  ;;  %v2053_v33 = vadd.f32 %v12001_v19, %v1977_v22  ;;  %v1791_v34 = vpop.f32.mrb[8].mxu0  ;;  %v2768_v35 = vld [vmem:[#allocation2 + $0x30] sm:$0xfe]  ;;  %v3868_v6 = vrot.slane %v12016_v9, 2 }
 0x396   : > { %v3732_v21 = vld [vmem:[#allocation2 + $0x30] sm:$0xfc]  ;;  %2546 = vst [vmem:[#allocation2 + $0x60] sm:$0xfe] %v2353_v26  ;;  %v2116_v38 = vmax.f32 %v2052_v27, 0.0  ;;  %v1978_v39 = vmul.f32 %v11992_v7, %v1791_v34  ;;  %v1793_v40 = vpop.f32.mrb[9].mxu0 }
 0x397   : > { %v2769_v41 = vld [vmem:[#allocation2 + $0x38] sm:$0xfe]  ;;  %2547 = vst [vmem:[#allocation2 + $0x68] sm:$0xfe] %v2354_v32  ;;  %v2117_v44 = vmax.f32 %v2053_v33, 0.0  ;;  %v1979_v45 = vmul.f32 %v11995_v11, %v1793_v40  ;;  %v2935_v50 = vrot.slane %v2768_v35, 1 }
 0x398   : > { %v3733_v42 = vld [vmem:[#allocation2 + $0x38] sm:$0xfc]  ;;  %v2938_v46 = vrot.slane %v2769_v41, 1  ;;  %v2355_v48 = vrot.slane %v2116_v38, 7  ;;  %v2054_v49 = vadd.f32 %v11998_v14, %v1978_v39  ;;  %v3867_v51 = vrot.slane %v3732_v21, 2 }
 0x399   : > { %v3870_v47 = vrot.slane %v3733_v42, 2  ;;  %v2357_v52 = vrot.slane %v2117_v44, 7  ;;  %v2055_v53 = vadd.f32 %v12001_v19, %v1979_v45  ;;  %v1797_v54 = vpop.f32.mrb[10].mxu0  ;;  %v2770_v57 = vld [vmem:[#allocation2 + $0x50] sm:$0x1]  ;;  %v2937_v0 = vsel %vm2924_vm1, %v2935_v50, %v2936_v23 }
 0x39a   : > { %v2940_v55 = vsel %vm2924_vm1, %v2938_v46, %v2939_v28  ;;  %v12041_v58 = vsel %vm2346_vm2, %v2353_v26, %v2355_v48  ;;  %2550 = vst [vmem:[#allocation2 + $0x80] sm:$0x1] %v2355_v48  ;;  %v2118_v60 = vmax.f32 %v2054_v49, 0.0  ;;  %v1980_v61 = vmul.f32 %v11992_v7, %v1797_v54  ;;  %v1799_v63 = vpop.f32.mrb[11].mxu0  ;;  %v2771_v1 = vld [vmem:[#allocation2 + $0x58] sm:$0x1] }
 0x39b   : > { %v3872_v56 = vsel %vm3856_vm0, %v3870_v47, %v3871_v29  ;;  %3290 = vmatprep.mubr.f32.mxu0 %v2940_v55  ;;  %v3735_v2 = vld [vmem:[#allocation2 + $0x58] sm:$0x3]  ;;  %2548 = vst [vmem:[#allocation2 + $0x70] sm:$0xff] %v12041_v58  ;;  %v12049_v3 = vsel %vm2346_vm2, %v2354_v32, %v2357_v52  ;;  %2551 = vst [vmem:[#allocation2 + $0x88] sm:$0x1] %v2357_v52  ;;  %v2119_v4 = vmax.f32 %v2055_v53, 0.0 }
 0x39c   : > { %4222 = vmatprep.mubr.f32.mxu1 %v3872_v56  ;;  %v1981_v5 = vmul.f32 %v11995_v11, %v1799_v63  ;;  %3291 = vmatmul.mubr.f32.gmra.mrb[68].mxu0 %v2937_v0  ;;  %2549 = vst [vmem:[#allocation2 + $0x78] sm:$0xff] %v12049_v3  ;;  %v2359_v8 = vrot.slane %v2118_v60, 7  ;;  %v2056_v10 = vadd.f32 %v11998_v14, %v1980_v61  ;;  %v2943_v12 = vrot.slane %v2771_v1, 1  ;;  %v3734_v15 = vld [vmem:[#allocation2 + $0x50] sm:$0x3] }
 0x39d   : > { %v3875_v13 = vrot.slane %v3735_v2, 2  ;;  %v2360_v16 = vrot.slane %v2119_v4, 7  ;;  %v1803_v20 = vpop.f32.mrb[12].mxu0  ;;  %v3869_v22 = vsel %vm3856_vm0, %v3867_v51, %v3868_v6  ;;  %v2941_v24 = vrot.slane %v2770_v57, 1  ;;  %v2772_v43 = vld [vmem:[#allocation2 + $0x60] sm:$0xfe] }
 0x39e   : > { %v2057_v17 = vadd.f32 %v12001_v19, %v1981_v5  ;;  %2552 = vst [vmem:[#allocation2 + $0x90] sm:$0xfe] %v2359_v8  ;;  %v2120_v25 = vmax.f32 %v2056_v10, 0.0  ;;  %v1982_v26 = vmul.f32 %v11992_v7, %v1803_v20  ;;  %v1805_v27 = vpop.f32.mrb[13].mxu0  ;;  %4223 = vmatmul.mubr.f32.gmra.mrb[4].mxu1 %v3869_v22  ;;  %v2944_v30 = vsel %vm2924_vm1, %v2939_v28, %v2943_v12  ;;  %v2773_v32 = vld [vmem:[#allocation2 + $0x68] sm:$0xfe] }
 0x39f   : > { %v3876_v31 = vsel %vm3856_vm0, %v3871_v29, %v3875_v13  ;;  %v3737_v33 = vld [vmem:[#allocation2 + $0x68] sm:$0xfc]  ;;  %2553 = vst [vmem:[#allocation2 + $0x98] sm:$0xfe] %v2360_v16  ;;  %v1983_v35 = vmul.f32 %v11995_v11, %v1805_v27  ;;  %3296 = vmatprep.mubr.f32.mxu0 %v2944_v30  ;;  %v2942_v21 = vsel %vm2924_vm1, %v2936_v23, %v2941_v24  ;;  %v3873_v36 = vrot.slane %v3734_v15, 2 }
 0x3a0   : > { %v2121_v34 = vmax.f32 %v2057_v17, 0.0  ;;  %4228 = vmatprep.mubr.f32.mxu1 %v3876_v31  ;;  %v2361_v37 = vrot.slane %v2120_v25, 7  ;;  %v2058_v28 = vadd.f32 %v11998_v14, %v1982_v26  ;;  %3297 = vmatmul.mubr.f32.gmra.mrb[70].mxu0 %v2942_v21  ;;  %v2948_v18 = vrot.slane %v2773_v32, 1  ;;  %v3736_v47 = vld [vmem:[#allocation2 + $0x60] sm:$0xfc] }
 0x3a1   : > { %v2949_v29 = vrot.slane %v12049_v3, 1  ;;  %v2059_v39 = vadd.f32 %v12001_v19, %v1983_v35  ;;  %v1809_v40 = vpop.f32.mrb[14].mxu0  ;;  %v3874_v41 = vsel %vm3856_vm0, %v3868_v6, %v3873_v36  ;;  %v3880_v42 = vrot.slane %v3737_v33, 2  ;;  %v2774_v2 = vld [vmem:[#allocation2 + $0x80] sm:$0x1] }
 0x3a2   : > { %v2363_v38 = vrot.slane %v2121_v34, 7  ;;  %v12073_v9 = vsel %vm2346_vm2, %v2359_v8, %v2361_v37  ;;  %2556 = vst [vmem:[#allocation2 + $0xb0] sm:$0x1] %v2361_v37  ;;  %v2122_v23 = vmax.f32 %v2058_v28, 0.0  ;;  %v1984_v44 = vmul.f32 %v11992_v7, %v1809_v40  ;;  %v1811_v45 = vpop.f32.mrb[15].mxu0  ;;  %4229 = vmatmul.mubr.f32.gmra.mrb[6].mxu1 %v3874_v41 }
 0x3a3   : > { %v2950_v46 = vsel %vm2924_vm1, %v2948_v18, %v2949_v29  ;;  %2554 = vst [vmem:[#allocation2 + $0xa0] sm:$0xff] %v12073_v9  ;;  %v2123_v49 = vmax.f32 %v2059_v39, 0.0  ;;  %v1985_v50 = vmul.f32 %v11995_v11, %v1811_v45  ;;  %v3881_v51 = vrot.slane %v12049_v3, 2  ;;  %v2775_v52 = vld [vmem:[#allocation2 + $0x88] sm:$0x1] }
 0x3a4   : > { %v12079_v48 = vsel %vm2346_vm2, %v2360_v16, %v2363_v38  ;;  %2557 = vst [vmem:[#allocation2 + $0xb8] sm:$0x1] %v2363_v38  ;;  %3302 = vmatprep.mubr.f32.mxu0 %v2950_v46  ;;  %v2365_v53 = vrot.slane %v2122_v23, 7  ;;  %v2060_v54 = vadd.f32 %v11998_v14, %v1984_v44  ;;  %v2945_v55 = vrot.slane %v2772_v43, 1  ;;  %v3739_v57 = vld [vmem:[#allocation2 + $0x88] sm:$0x3] }
 0x3a5   : > { %2555 = vst [vmem:[#allocation2 + $0xa8] sm:$0xff] %v12079_v48  ;;  %v2946_v56 = vrot.slane %v12041_v58, 1  ;;  %v2366_v60 = vrot.slane %v2123_v49, 7  ;;  %v2061_v61 = vadd.f32 %v12001_v19, %v1985_v50  ;;  %v1815_v63 = vpop.f32.mrb[16].mxu0  ;;  %v3882_v0 = vsel %vm3856_vm0, %v3880_v42, %v3881_v51  ;;  %v3738_v24 = vld [vmem:[#allocation2 + $0x80] sm:$0x3] }
 0x3a6   : > { %v3877_v1 = vrot.slane %v3736_v47, 2  ;;  %2558 = vst [vmem:[#allocation2 + $0xc0] sm:$0xfe] %v2365_v53  ;;  %v2124_v3 = vmax.f32 %v2060_v54, 0.0  ;;  %v1986_v4 = vmul.f32 %v11992_v7, %v1815_v63  ;;  %v1817_v5 = vpop.f32.mrb[17].mxu0  ;;  %4234 = vmatprep.mubr.f32.mxu1 %v3882_v0  ;;  %v3878_v8 = vrot.slane %v12041_v58, 2 }
 0x3a7   : > { %v2947_v6 = vsel %vm2924_vm1, %v2945_v55, %v2946_v56  ;;  %2559 = vst [vmem:[#allocation2 + $0xc8] sm:$0xfe] %v2366_v60  ;;  %v2125_v10 = vmax.f32 %v2061_v61, 0.0  ;;  %v1987_v12 = vmul.f32 %v11995_v11, %v1817_v5  ;;  %v2953_v13 = vrot.slane %v2775_v52, 1  ;;  %v2777_v31 = vld [vmem:[#allocation2 + $0x98] sm:$0xfe] }
 0x3a8   : > { %3303 = vmatmul.mubr.f32.gmra.mrb[72].mxu0 %v2947_v6  ;;  %v3885_v15 = vrot.slane %v3739_v57, 2  ;;  %v2367_v16 = vrot.slane %v2124_v3, 7  ;;  %v2062_v17 = vadd.f32 %v11998_v14, %v1986_v4  ;;  %v3879_v20 = vsel %vm3856_vm0, %v3877_v1, %v3878_v8  ;;  %v3741_v36 = vld [vmem:[#allocation2 + $0x98] sm:$0xfc]  ;;  %v2776_v42 = vld [vmem:[#allocation2 + $0x90] sm:$0xfe] }
 0x3a9   : > { %v2951_v22 = vrot.slane %v2774_v2, 1  ;;  %v2369_v25 = vrot.slane %v2125_v10, 7  ;;  %v2063_v26 = vadd.f32 %v12001_v19, %v1987_v12  ;;  %4235 = vmatmul.mubr.f32.gmra.mrb[8].mxu1 %v3879_v20  ;;  %v1821_v27 = vpop.f32.mrb[18].mxu0  ;;  %v2954_v58 = vsel %vm2924_vm1, %v2949_v29, %v2953_v13  ;;  %v3740_v47 = vld [vmem:[#allocation2 + $0x90] sm:$0xfc] }
 0x3aa   : > { %v3886_v30 = vsel %vm3856_vm0, %v3881_v51, %v3885_v15  ;;  %v12098_v32 = vsel %vm2346_vm2, %v2365_v53, %v2367_v16  ;;  %2562 = vst [vmem:[#allocation2 + $0xe0] sm:$0x1] %v2367_v16  ;;  %v2126_v33 = vmax.f32 %v2062_v17, 0.0  ;;  %v1988_v34 = vmul.f32 %v11992_v7, %v1821_v27  ;;  %3308 = vmatprep.mubr.f32.mxu0 %v2954_v58  ;;  %v1823_v35 = vpop.f32.mrb[19].mxu0  ;;  %v3742_v17 = vld [vmem:[#allocation2 + $0xb0] sm:$0x3] }
 0x3ab   : > { %4240 = vmatprep.mubr.f32.mxu1 %v3886_v30  ;;  %v2952_v21 = vsel %vm2924_vm1, %v2946_v56, %v2951_v22  ;;  %2560 = vst [vmem:[#allocation2 + $0xd0] sm:$0xff] %v12098_v32  ;;  %v12104_v37 = vsel %vm2346_vm2, %v2366_v60, %v2369_v25  ;;  %2563 = vst [vmem:[#allocation2 + $0xe8] sm:$0x1] %v2369_v25  ;;  %v2127_v28 = vmax.f32 %v2063_v26, 0.0  ;;  %v3883_v29 = vrot.slane %v3738_v24, 2 }
 0x3ac   : > { %v1989_v18 = vmul.f32 %v11995_v11, %v1823_v35  ;;  %3309 = vmatmul.mubr.f32.gmra.mrb[74].mxu0 %v2952_v21  ;;  %2561 = vst [vmem:[#allocation2 + $0xd8] sm:$0xff] %v12104_v37  ;;  %v2371_v38 = vrot.slane %v2126_v33, 7  ;;  %v2064_v39 = vadd.f32 %v11998_v14, %v1988_v34  ;;  %v2958_v40 = vrot.slane %v2777_v31, 1  ;;  %v2779_v60 = vld [vmem:[#allocation2 + $0xb8] sm:$0x1] }
 0x3ad   : > { %v2959_v41 = vrot.slane %v12079_v48, 1  ;;  %v2372_v43 = vrot.slane %v2127_v28, 7  ;;  %v3884_v44 = vsel %vm3856_vm0, %v3878_v8, %v3883_v29  ;;  %v1827_v45 = vpop.f32.mrb[20].mxu0  ;;  %v3890_v46 = vrot.slane %v3741_v36, 2  ;;  %v3743_v2 = vld [vmem:[#allocation2 + $0xb8] sm:$0x3] }
 0x3ae   : > { %v2065_v23 = vadd.f32 %v12001_v19, %v1989_v18  ;;  %2564 = vst [vmem:[#allocation2 + $0xf0] sm:$0xfe] %v2371_v38  ;;  %v2128_v49 = vmax.f32 %v2064_v39, 0.0  ;;  %4241 = vmatmul.mubr.f32.gmra.mrb[10].mxu1 %v3884_v44  ;;  %v1990_v50 = vmul.f32 %v11992_v7, %v1827_v45  ;;  %v1829_v51 = vpop.f32.mrb[21].mxu0  ;;  %v3891_v53 = vrot.slane %v12079_v48, 2 }
 0x3af   : > { %v2960_v52 = vsel %vm2924_vm1, %v2958_v40, %v2959_v41  ;;  %2565 = vst [vmem:[#allocation2 + $0xf8] sm:$0xfe] %v2372_v43  ;;  %v1991_v55 = vmul.f32 %v11995_v11, %v1829_v51  ;;  %v2955_v56 = vrot.slane %v2776_v42, 1  ;;  %v2956_v57 = vrot.slane %v12073_v9, 1  ;;  %v2778_v8 = vld [vmem:[#allocation2 + $0xb0] sm:$0x1] }
 0x3b0   : > { %v2129_v54 = vmax.f32 %v2065_v23, 0.0  ;;  %3314 = vmatprep.mubr.f32.mxu0 %v2960_v52  ;;  %v2373_v61 = vrot.slane %v2128_v49, 7  ;;  %v2066_v63 = vadd.f32 %v11998_v14, %v1990_v50  ;;  %v3892_v0 = vsel %vm3856_vm0, %v3890_v46, %v3891_v53  ;;  %v2781_v25 = vld [vmem:[#allocation2 + $0xc8] sm:$0xfe]  ;;  %v2780_v40 = vld [vmem:[#allocation2 + $0xc0] sm:$0xfe] }
 0x3b1   : > { %v3887_v1 = vrot.slane %v3740_v47, 2  ;;  %v2067_v4 = vadd.f32 %v12001_v19, %v1991_v55  ;;  %4246 = vmatprep.mubr.f32.mxu1 %v3892_v0  ;;  %v2957_v48 = vsel %vm2924_vm1, %v2955_v56, %v2956_v57  ;;  %v3888_v5 = vrot.slane %v12073_v9, 2  ;;  %v1833_v6 = vpop.f32.mrb[22].mxu0  ;;  %v3745_v36 = vld [vmem:[#allocation2 + $0xc8] sm:$0xfc] }
 0x3b2   : > { %v2375_v3 = vrot.slane %v2129_v54, 7  ;;  %v12123_v10 = vsel %vm2346_vm2, %v2371_v38, %v2373_v61  ;;  %2568 = vst [vmem:[#allocation2 + $0x110] sm:$0x1] %v2373_v61  ;;  %v2130_v12 = vmax.f32 %v2066_v63, 0.0  ;;  %3315 = vmatmul.mubr.f32.gmra.mrb[76].mxu0 %v2957_v48  ;;  %v1992_v13 = vmul.f32 %v11992_v7, %v1833_v6  ;;  %v1835_v16 = vpop.f32.mrb[23].mxu0 }
 0x3b3   : > { %v2963_v15 = vrot.slane %v2779_v60, 1  ;;  %2566 = vst [vmem:[#allocation2 + $0x100] sm:$0xff] %v12123_v10  ;;  %v2131_v9 = vmax.f32 %v2067_v4, 0.0  ;;  %v3889_v22 = vsel %vm3856_vm0, %v3887_v1, %v3888_v5  ;;  %v3895_v24 = vrot.slane %v3743_v2, 2  ;;  %v3744_v49 = vld [vmem:[#allocation2 + $0xc0] sm:$0xfc] }
 0x3b4   : > { %v12128_v20 = vsel %vm2346_vm2, %v2372_v43, %v2375_v3  ;;  %2569 = vst [vmem:[#allocation2 + $0x118] sm:$0x1] %v2375_v3  ;;  %v2377_v26 = vrot.slane %v2130_v12, 7  ;;  %4247 = vmatmul.mubr.f32.gmra.mrb[12].mxu1 %v3889_v22  ;;  %v2068_v27 = vadd.f32 %v11998_v14, %v1992_v13  ;;  %v1993_v30 = vmul.f32 %v11995_v11, %v1835_v16  ;;  %v2783_v55 = vld [vmem:[#allocation2 + $0xe8] sm:$0x1] }
 0x3b5   : > { %2567 = vst [vmem:[#allocation2 + $0x108] sm:$0xff] %v12128_v20  ;;  %v2964_v58 = vsel %vm2924_vm1, %v2959_v41, %v2963_v15  ;;  %v2378_v31 = vrot.slane %v2131_v9, 7  ;;  %v3896_v33 = vsel %vm3856_vm0, %v3891_v53, %v3895_v24  ;;  %v2961_v34 = vrot.slane %v2778_v8, 1  ;;  %v1839_v21 = vpop.f32.mrb[24].mxu0  ;;  %v2782_v56 = vld [vmem:[#allocation2 + $0xe0] sm:$0x1] }
 0x3b6   : > { %3320 = vmatprep.mubr.f32.mxu0 %v2964_v58  ;;  %v3893_v35 = vrot.slane %v3742_v17, 2  ;;  %2570 = vst [vmem:[#allocation2 + $0x120] sm:$0xfe] %v2377_v26  ;;  %v2132_v28 = vmax.f32 %v2068_v27, 0.0  ;;  %4252 = vmatprep.mubr.f32.mxu1 %v3896_v33  ;;  %v2069_v18 = vadd.f32 %v12001_v19, %v1993_v30  ;;  %v1994_v29 = vmul.f32 %v11992_v7, %v1839_v21  ;;  %v1841_v38 = vpop.f32.mrb[25].mxu0 }
 0x3b7   : > { %v2968_v39 = vrot.slane %v2781_v25, 1  ;;  %2571 = vst [vmem:[#allocation2 + $0x128] sm:$0xfe] %v2378_v31  ;;  %v2962_v41 = vsel %vm2924_vm1, %v2956_v57, %v2961_v34  ;;  %v1995_v43 = vmul.f32 %v11995_v11, %v1841_v38  ;;  %v2969_v23 = vrot.slane %v12104_v37, 1  ;;  %v3747_v0 = vld [vmem:[#allocation2 + $0xe8] sm:$0x3] }
 0x3b8   : > { %v3894_v42 = vsel %vm3856_vm0, %v3888_v5, %v3893_v35  ;;  %v2379_v44 = vrot.slane %v2132_v28, 7  ;;  %v2133_v45 = vmax.f32 %v2069_v18, 0.0  ;;  %3321 = vmatmul.mubr.f32.gmra.mrb[78].mxu0 %v2962_v41  ;;  %v2070_v46 = vadd.f32 %v11998_v14, %v1994_v29  ;;  %v3746_v48 = vld [vmem:[#allocation2 + $0xe0] sm:$0x3]  ;;  %v2785_v27 = vld [vmem:[#allocation2 + $0xf8] sm:$0xfe] }
 0x3b9   : > { %4253 = vmatmul.mubr.f32.gmra.mrb[14].mxu1 %v3894_v42  ;;  %v3900_v47 = vrot.slane %v3745_v36, 2  ;;  %v2071_v50 = vadd.f32 %v12001_v19, %v1995_v43  ;;  %v2970_v51 = vsel %vm2924_vm1, %v2968_v39, %v2969_v23  ;;  %v3901_v52 = vrot.slane %v12104_v37, 2  ;;  %v1845_v54 = vpop.f32.mrb[26].mxu0  ;;  %v3749_v34 = vld [vmem:[#allocation2 + $0xf8] sm:$0xfc] }
 0x3ba   : > { %v2965_v53 = vrot.slane %v2780_v40, 1  ;;  %v12147_v57 = vsel %vm2346_vm2, %v2377_v26, %v2379_v44  ;;  %2574 = vst [vmem:[#allocation2 + $0x140] sm:$0x1] %v2379_v44  ;;  %v2381_v60 = vrot.slane %v2133_v45, 7  ;;  %v2134_v61 = vmax.f32 %v2070_v46, 0.0  ;;  %3326 = vmatprep.mubr.f32.mxu0 %v2970_v51  ;;  %v1847_v1 = vpop.f32.mrb[27].mxu0 }
 0x3bb   : > { %v2966_v63 = vrot.slane %v12098_v32, 1  ;;  %2572 = vst [vmem:[#allocation2 + $0x130] sm:$0xff] %v12147_v57  ;;  %v2135_v2 = vmax.f32 %v2071_v50, 0.0  ;;  %v3902_v37 = vsel %vm3856_vm0, %v3900_v47, %v3901_v52  ;;  %v3897_v3 = vrot.slane %v3744_v49, 2  ;;  %v2784_v18 = vld [vmem:[#allocation2 + $0xf0] sm:$0xfe] }
 0x3bc   : > { %v3898_v4 = vrot.slane %v12098_v32, 2  ;;  %v12154_v5 = vsel %vm2346_vm2, %v2378_v31, %v2381_v60  ;;  %2575 = vst [vmem:[#allocation2 + $0x148] sm:$0x1] %v2381_v60  ;;  %v2383_v6 = vrot.slane %v2134_v61, 7  ;;  %4258 = vmatprep.mubr.f32.mxu1 %v3902_v37  ;;  %v1996_v12 = vmul.f32 %v11992_v7, %v1845_v54  ;;  %v3748_v41 = vld [vmem:[#allocation2 + $0xf0] sm:$0xfc] }
 0x3bd   : > { %v2967_v8 = vsel %vm2924_vm1, %v2965_v53, %v2966_v63  ;;  %2573 = vst [vmem:[#allocation2 + $0x138] sm:$0xff] %v12154_v5  ;;  %v2384_v13 = vrot.slane %v2135_v2, 7  ;;  %v2973_v16 = vrot.slane %v2783_v55, 1  ;;  %v3905_v17 = vrot.slane %v3747_v0, 2  ;;  %v1851_v32 = vpop.f32.mrb[28].mxu0 }
 0x3be   : > { %3327 = vmatmul.mubr.f32.gmra.mrb[80].mxu0 %v2967_v8  ;;  %v3899_v15 = vsel %vm3856_vm0, %v3897_v3, %v3898_v4  ;;  %2576 = vst [vmem:[#allocation2 + $0x150] sm:$0xfe] %v2383_v6  ;;  %v2072_v9 = vadd.f32 %v11998_v14, %v1996_v12  ;;  %v1997_v22 = vmul.f32 %v11995_v11, %v1847_v1  ;;  %v2971_v24 = vrot.slane %v2782_v56, 1  ;;  %v1853_v26 = vpop.f32.mrb[29].mxu0  ;;  %v2786_v47 = vld [vmem:[#allocation2 + $0x110] sm:$0x1] }
 0x3bf   : > { %4259 = vmatmul.mubr.f32.gmra.mrb[16].mxu1 %v3899_v15  ;;  %v3903_v25 = vrot.slane %v3746_v48, 2  ;;  %2577 = vst [vmem:[#allocation2 + $0x158] sm:$0xfe] %v2384_v13  ;;  %v2974_v58 = vsel %vm2924_vm1, %v2969_v23, %v2973_v16  ;;  %v3906_v30 = vsel %vm3856_vm0, %v3901_v52, %v3905_v17  ;;  %v1998_v31 = vmul.f32 %v11992_v7, %v1851_v32  ;;  %v2787_v53 = vld [vmem:[#allocation2 + $0x118] sm:$0x1] }
 0x3c0   : > { %v1999_v33 = vmul.f32 %v11995_v11, %v1853_v26  ;;  %v2136_v35 = vmax.f32 %v2072_v9, 0.0  ;;  %3332 = vmatprep.mubr.f32.mxu0 %v2974_v58  ;;  %4264 = vmatprep.mubr.f32.mxu1 %v3906_v30  ;;  %v2073_v21 = vadd.f32 %v12001_v19, %v1997_v22  ;;  %v2972_v36 = vsel %vm2924_vm1, %v2966_v63, %v2971_v24  ;;  %v3751_v61 = vld [vmem:[#allocation2 + $0x118] sm:$0x3]  ;;  %v2789_v16 = vld [vmem:[#allocation2 + $0x128] sm:$0xfe] }
 0x3c1   : > { %v3904_v28 = vsel %vm3856_vm0, %v3898_v4, %v3903_v25  ;;  %v2074_v29 = vadd.f32 %v11998_v14, %v1998_v31  ;;  %v2978_v39 = vrot.slane %v2785_v27, 1  ;;  %v2979_v40 = vrot.slane %v12128_v20, 1  ;;  %v1857_v42 = vpop.f32.mrb[30].mxu0  ;;  %v3753_v24 = vld [vmem:[#allocation2 + $0x128] sm:$0xfc] }
 0x3c2   : > { %3333 = vmatmul.mubr.f32.gmra.mrb[82].mxu0 %v2972_v36  ;;  %v2075_v38 = vadd.f32 %v12001_v19, %v1999_v33  ;;  %v2385_v43 = vrot.slane %v2136_v35, 7  ;;  %v2137_v23 = vmax.f32 %v2073_v21, 0.0  ;;  %v3910_v44 = vrot.slane %v3749_v34, 2  ;;  %v1859_v46 = vpop.f32.mrb[31].mxu0  ;;  %v2788_v30 = vld [vmem:[#allocation2 + $0x120] sm:$0xfe] }
 0x3c3   : > { %4265 = vmatmul.mubr.f32.gmra.mrb[18].mxu1 %v3904_v28  ;;  %v3911_v45 = vrot.slane %v12128_v20, 2  ;;  %v2138_v49 = vmax.f32 %v2074_v29, 0.0  ;;  %v2980_v51 = vsel %vm2924_vm1, %v2978_v39, %v2979_v40  ;;  %v2975_v52 = vrot.slane %v2784_v18, 1  ;;  %v3750_v20 = vld [vmem:[#allocation2 + $0x110] sm:$0x3] }
 0x3c4   : > { %v2139_v50 = vmax.f32 %v2075_v38, 0.0  ;;  %v12175_v54 = vsel %vm2346_vm2, %v2383_v6, %v2385_v43  ;;  %2580 = vst [vmem:[#allocation2 + $0x170] sm:$0x1] %v2385_v43  ;;  %v2387_v55 = vrot.slane %v2137_v23, 7  ;;  %3338 = vmatprep.mubr.f32.mxu0 %v2980_v51  ;;  %v2976_v60 = vrot.slane %v12123_v10, 1 }
 0x3c5   : > { %v3912_v56 = vsel %vm3856_vm0, %v3910_v44, %v3911_v45  ;;  %2578 = vst [vmem:[#allocation2 + $0x160] sm:$0xff] %v12175_v54  ;;  %v2389_v63 = vrot.slane %v2138_v49, 7  ;;  %v3907_v1 = vrot.slane %v3748_v41, 2  ;;  %v3908_v2 = vrot.slane %v12123_v10, 2  ;;  %v1863_v37 = vpop.f32.mrb[32].mxu0 }
 0x3c6   : > { %v12180_v0 = vrot.slane %v2139_v50, 7  ;;  %4270 = vmatprep.mubr.f32.mxu1 %v3912_v56  ;;  %v12184_v3 = vsel %vm2346_vm2, %v2384_v13, %v2387_v55  ;;  %2581 = vst [vmem:[#allocation2 + $0x178] sm:$0x1] %v2387_v55  ;;  %v2977_v4 = vsel %vm2924_vm1, %v2975_v52, %v2976_v60  ;;  %v2000_v48 = vmul.f32 %v11992_v7, %v1857_v42  ;;  %v1865_v8 = vpop.f32.mrb[33].mxu0  ;;  %v3752_v39 = vld [vmem:[#allocation2 + $0x120] sm:$0xfc] }
 0x3c7   : > { %v2983_v6 = vrot.slane %v2787_v53, 1  ;;  %2579 = vst [vmem:[#allocation2 + $0x168] sm:$0xff] %v12184_v3  ;;  %2582 = vst [vmem:[#allocation2 + $0x180] sm:$0xfe] %v2389_v63  ;;  %3339 = vmatmul.mubr.f32.gmra.mrb[84].mxu0 %v2977_v4  ;;  %v3909_v12 = vsel %vm3856_vm0, %v3907_v1, %v3908_v2  ;;  %v3915_v10 = vrot.slane %v3751_v61, 2  ;;  %v2001_v15 = vmul.f32 %v11995_v11, %v1859_v46 }
 0x3c8   : > { %2583 = vst [vmem:[#allocation2 + $0x188] sm:$0xfe] %v12180_v0  ;;  %v2981_v13 = vrot.slane %v2786_v47, 1  ;;  %4271 = vmatmul.mubr.f32.gmra.mrb[20].mxu1 %v3909_v12  ;;  %v2076_v17 = vadd.f32 %v11998_v14, %v2000_v48  ;;  %v3913_v9 = vrot.slane %v3750_v20, 2  ;;  %v2002_v22 = vmul.f32 %v11992_v7, %v1863_v37  ;;  %v2791_v23 = vld [vmem:[#allocation2 + $0x148] sm:$0x1] }
 0x3c9   : > { %v2984_v32 = vsel %vm2924_vm1, %v2979_v40, %v2983_v6  ;;  %v3916_v25 = vsel %vm3856_vm0, %v3911_v45, %v3915_v10  ;;  %v2077_v26 = vadd.f32 %v12001_v19, %v2001_v15  ;;  %v2003_v58 = vmul.f32 %v11995_v11, %v1865_v8  ;;  %v1869_v31 = vpop.f32.mrb[34].mxu0  ;;  %v2790_v44 = vld [vmem:[#allocation2 + $0x140] sm:$0x1]  ;;  %v3755_v50 = vld [vmem:[#allocation2 + $0x148] sm:$0x3] }
 0x3ca   : > { %3344 = vmatprep.mubr.f32.mxu0 %v2984_v32  ;;  %v2982_v27 = vsel %vm2924_vm1, %v2976_v60, %v2981_v13  ;;  %v2140_v33 = vmax.f32 %v2076_v17, 0.0  ;;  %4276 = vmatprep.mubr.f32.mxu1 %v3916_v25  ;;  %v3914_v34 = vsel %vm3856_vm0, %v3908_v2, %v3913_v9  ;;  %v2078_v35 = vadd.f32 %v11998_v14, %v2002_v22  ;;  %v1871_v36 = vpop.f32.mrb[35].mxu0  ;;  %v3754_v56 = vld [vmem:[#allocation2 + $0x140] sm:$0x3]  ;;  %v3757_v32 = vld [vmem:[#allocation2 + $0x158] sm:$0xfc] }
 0x3cb   : > { %v2988_v21 = vrot.slane %v2789_v16, 1  ;;  %v2141_v28 = vmax.f32 %v2077_v26, 0.0  ;;  %3345 = vmatmul.mubr.f32.gmra.mrb[86].mxu0 %v2982_v27  ;;  %v2079_v18 = vadd.f32 %v12001_v19, %v2003_v58  ;;  %v2989_v29 = vrot.slane %v12154_v5, 1  ;;  %v2792_v9 = vld [vmem:[#allocation2 + $0x150] sm:$0xfe] }
 0x3cc   : > { %v3920_v38 = vrot.slane %v3753_v24, 2  ;;  %v2391_v40 = vrot.slane %v2140_v33, 7  ;;  %4277 = vmatmul.mubr.f32.gmra.mrb[22].mxu1 %v3914_v34  ;;  %v2142_v41 = vmax.f32 %v2078_v35, 0.0  ;;  %v3921_v42 = vrot.slane %v12154_v5, 2  ;;  %v3756_v58 = vld [vmem:[#allocation2 + $0x150] sm:$0xfc] }
 0x3cd   : > { %v2985_v43 = vrot.slane %v2788_v30, 1  ;;  %v2393_v45 = vrot.slane %v2141_v28, 7  ;;  %v2143_v46 = vmax.f32 %v2079_v18, 0.0  ;;  %v2990_v47 = vsel %vm2924_vm1, %v2988_v21, %v2989_v29  ;;  %v1875_v51 = vpop.f32.mrb[36].mxu0  ;;  %v2795_v35 = vld [vmem:[#allocation2 + $0x178] sm:$0x1] }
 0x3ce   : > { %v2986_v49 = vrot.slane %v12147_v57, 1  ;;  %v12207_v52 = vsel %vm2346_vm2, %v2389_v63, %v2391_v40  ;;  %2586 = vst [vmem:[#allocation2 + $0x1a0] sm:$0x1] %v2391_v40  ;;  %v12209_v53 = vrot.slane %v2142_v41, 7  ;;  %3350 = vmatprep.mubr.f32.mxu0 %v2990_v47  ;;  %v3922_v5 = vsel %vm3856_vm0, %v3920_v38, %v3921_v42  ;;  %v1877_v60 = vpop.f32.mrb[37].mxu0 }
 0x3cf   : > { %v3917_v55 = vrot.slane %v3752_v39, 2  ;;  %2584 = vst [vmem:[#allocation2 + $0x190] sm:$0xff] %v12207_v52  ;;  %v12215_v61 = vsel %vm2346_vm2, %v12180_v0, %v2393_v45  ;;  %2587 = vst [vmem:[#allocation2 + $0x1a8] sm:$0x1] %v2393_v45  ;;  %v2396_v20 = vrot.slane %v2143_v46, 7  ;;  %4282 = vmatprep.mubr.f32.mxu1 %v3922_v5  ;;  %v3918_v1 = vrot.slane %v12147_v57, 2 }
 0x3d0   : > { %v2987_v63 = vsel %vm2924_vm1, %v2985_v43, %v2986_v49  ;;  %2585 = vst [vmem:[#allocation2 + $0x198] sm:$0xff] %v12215_v61  ;;  %2588 = vst [vmem:[#allocation2 + $0x1b0] sm:$0xfe] %v12209_v53  ;;  %v2004_v2 = vmul.f32 %v11992_v7, %v1869_v31  ;;  %v2993_v37 = vrot.slane %v2791_v23, 1  ;;  %v3925_v4 = vrot.slane %v3755_v50, 2 }
 0x3d1   : > { %3351 = vmatmul.mubr.f32.gmra.mrb[88].mxu0 %v2987_v63  ;;  %v2005_v48 = vmul.f32 %v11995_v11, %v1871_v36  ;;  %v2793_v0 = vld [vmem:[#allocation2 + $0x158] sm:$0xfe]  ;;  %2589 = vst [vmem:[#allocation2 + $0x1b8] sm:$0xfe] %v2396_v20  ;;  %v3919_v6 = vsel %vm3856_vm0, %v3917_v55, %v3918_v1  ;;  %v2991_v8 = vrot.slane %v2790_v44, 1  ;;  %v3923_v12 = vrot.slane %v3754_v56, 2 }
 0x3d2   : > { %v2006_v10 = vmul.f32 %v11992_v7, %v1875_v51  ;;  %v1881_v57 = vpop.f32.mrb[38].mxu0  ;;  %4283 = vmatmul.mubr.f32.gmra.mrb[24].mxu1 %v3919_v6  ;;  %v2080_v15 = vadd.f32 %v11998_v14, %v2004_v2  ;;  %v2994_v13 = vsel %vm2924_vm1, %v2989_v29, %v2993_v37  ;;  %v3926_v16 = vsel %vm3856_vm0, %v3921_v42, %v3925_v4  ;;  %v3759_v42 = vld [vmem:[#allocation2 + $0x178] sm:$0x3]  ;;  %v3758_v5 = vld [vmem:[#allocation2 + $0x170] sm:$0x3] }
 0x3d3   : > { %v2081_v17 = vadd.f32 %v12001_v19, %v2005_v48  ;;  %v1883_v22 = vpop.f32.mrb[39].mxu0  ;;  %3356 = vmatprep.mubr.f32.mxu0 %v2994_v13  ;;  %4288 = vmatprep.mubr.f32.mxu1 %v3926_v16  ;;  %v2992_v24 = vsel %vm2924_vm1, %v2986_v49, %v2991_v8  ;;  %v3924_v25 = vsel %vm3856_vm0, %v3918_v1, %v3923_v12  ;;  %v2998_v27 = vrot.slane %v2793_v0, 1  ;;  %v3761_v12 = vld [vmem:[#allocation2 + $0x188] sm:$0xfc]  ;;  %v2796_v16 = vld [vmem:[#allocation2 + $0x180] sm:$0xfe] }
 0x3d4   : > { %v2082_v26 = vadd.f32 %v11998_v14, %v2006_v10  ;;  %v2144_v30 = vmax.f32 %v2080_v15, 0.0  ;;  %v2007_v33 = vmul.f32 %v11995_v11, %v1877_v60  ;;  %v2999_v34 = vrot.slane %v12184_v3, 1 }
 0x3d5   : > { %v2145_v31 = vmax.f32 %v2081_v17, 0.0  ;;  %3357 = vmatmul.mubr.f32.gmra.mrb[90].mxu0 %v2992_v24  ;;  %v3930_v36 = vrot.slane %v3757_v32, 2  ;;  %v3931_v28 = vrot.slane %v12184_v3, 2  ;;  %v2995_v18 = vrot.slane %v2792_v9, 1  ;;  %v1887_v29 = vpop.f32.mrb[40].mxu0 }
 0x3d6   : > { %v2146_v21 = vmax.f32 %v2082_v26, 0.0  ;;  %v2397_v38 = vrot.slane %v2144_v30, 7  ;;  %4289 = vmatmul.mubr.f32.gmra.mrb[26].mxu1 %v3924_v25  ;;  %v2083_v40 = vadd.f32 %v12001_v19, %v2007_v33  ;;  %v3000_v41 = vsel %vm2924_vm1, %v2998_v27, %v2999_v34  ;;  %v1889_v43 = vpop.f32.mrb[41].mxu0  ;;  %v2794_v3 = vld [vmem:[#allocation2 + $0x170] sm:$0x1] }
 0x3d7   : > { %v2399_v39 = vrot.slane %v2145_v31, 7  ;;  %3362 = vmatprep.mubr.f32.mxu0 %v3000_v41  ;;  %v3932_v44 = vsel %vm3856_vm0, %v3930_v36, %v3931_v28  ;;  %v2996_v45 = vrot.slane %v12175_v54, 1  ;;  %v3927_v46 = vrot.slane %v3756_v58, 2  ;;  %v3760_v30 = vld [vmem:[#allocation2 + $0x180] sm:$0xfc] }
 0x3d8   : > { %v12237_v23 = vrot.slane %v2146_v21, 7  ;;  %v12243_v47 = vsel %vm2346_vm2, %v12209_v53, %v2397_v38  ;;  %2592 = vst [vmem:[#allocation2 + $0x1d0] sm:$0x1] %v2397_v38  ;;  %v2147_v50 = vmax.f32 %v2083_v40, 0.0  ;;  %4294 = vmatprep.mubr.f32.mxu1 %v3932_v44  ;;  %v3928_v51 = vrot.slane %v12175_v54, 2 }
 0x3d9   : > { %v12246_v49 = vsel %vm2346_vm2, %v2396_v20, %v2399_v39  ;;  %2593 = vst [vmem:[#allocation2 + $0x1d8] sm:$0x1] %v2399_v39  ;;  %2590 = vst [vmem:[#allocation2 + $0x1c0] sm:$0xff] %v12243_v47  ;;  %v2997_v55 = vsel %vm2924_vm1, %v2995_v18, %v2996_v45  ;;  %v2008_v53 = vmul.f32 %v11992_v7, %v1881_v57  ;;  %v3003_v56 = vrot.slane %v2795_v35, 1  ;;  %v2797_v20 = vld [vmem:[#allocation2 + $0x188] sm:$0xfe] }
 0x3da   : > { %2591 = vst [vmem:[#allocation2 + $0x1c8] sm:$0xff] %v12246_v49  ;;  %2594 = vst [vmem:[#allocation2 + $0x1e0] sm:$0xfe] %v12237_v23  ;;  %v3935_v60 = vrot.slane %v3759_v42, 2  ;;  %v1893_v63 = vpop.f32.mrb[42].mxu0  ;;  %v2402_v1 = vrot.slane %v2147_v50, 7  ;;  %3363 = vmatmul.mubr.f32.gmra.mrb[92].mxu0 %v2997_v55  ;;  %v3929_v2 = vsel %vm3856_vm0, %v3927_v46, %v3928_v51  ;;  %v2009_v54 = vmul.f32 %v11995_v11, %v1883_v22 }
 0x3db   : > { %v3001_v37 = vrot.slane %v2794_v3, 1  ;;  %v12256_v4 = vpop.f32.mrb[43].mxu0  ;;  %4295 = vmatmul.mubr.f32.gmra.mrb[28].mxu1 %v3929_v2  ;;  %v2084_v48 = vadd.f32 %v11998_v14, %v2008_v53  ;;  %v3004_v0 = vsel %vm2924_vm1, %v2999_v34, %v3003_v56  ;;  %v3933_v8 = vrot.slane %v3758_v5, 2  ;;  %v2799_v36 = vld [vmem:[#allocation2 + $0x1a8] sm:$0x1] }
 0x3dc   : > { %v3936_v6 = vsel %vm3856_vm0, %v3931_v28, %v3935_v60  ;;  %2595 = vst [vmem:[#allocation2 + $0x1e8] sm:$0xfe] %v2402_v1  ;;  %3368 = vmatprep.mubr.f32.mxu0 %v3004_v0  ;;  %v2085_v10 = vadd.f32 %v12001_v19, %v2009_v54  ;;  %v2010_v15 = vmul.f32 %v11992_v7, %v1887_v29  ;;  %v3008_v13 = vrot.slane %v2797_v20, 1  ;;  %v3763_v28 = vld [vmem:[#allocation2 + $0x1a8] sm:$0x3] }
 0x3dd   : > { %4300 = vmatprep.mubr.f32.mxu1 %v3936_v6  ;;  %v3002_v57 = vsel %vm2924_vm1, %v2996_v45, %v3001_v37  ;;  %v2148_v17 = vmax.f32 %v2084_v48, 0.0  ;;  %v3934_v32 = vsel %vm3856_vm0, %v3928_v51, %v3933_v8  ;;  %v2011_v9 = vmul.f32 %v11995_v11, %v1889_v43  ;;  %v1899_v24 = vpop.f32.mrb[44].mxu0  ;;  %v2798_v40 = vld [vmem:[#allocation2 + $0x1a0] sm:$0x1]  ;;  %v3765_v0 = vld [vmem:[#allocation2 + $0x1b8] sm:$0xfc] }
 0x3de   : > { %v3009_v22 = vrot.slane %v12215_v61, 1  ;;  %v2149_v25 = vmax.f32 %v2085_v10, 0.0  ;;  %3369 = vmatmul.mubr.f32.gmra.mrb[94].mxu0 %v3002_v57  ;;  %v2086_v26 = vadd.f32 %v11998_v14, %v2010_v15  ;;  %v3940_v27 = vrot.slane %v3761_v12, 2  ;;  %v1901_v31 = vpop.f32.mrb[45].mxu0  ;;  %v3762_v44 = vld [vmem:[#allocation2 + $0x1a0] sm:$0x3] }
 0x3df   : > { %v3941_v58 = vrot.slane %v12215_v61, 2  ;;  %v2403_v33 = vrot.slane %v2148_v17, 7  ;;  %4301 = vmatmul.mubr.f32.gmra.mrb[30].mxu1 %v3934_v32  ;;  %v2087_v34 = vadd.f32 %v12001_v19, %v2011_v9  ;;  %v3005_v21 = vrot.slane %v2796_v16, 1  ;;  %v2800_v57 = vld [vmem:[#allocation2 + $0x1b0] sm:$0xfe] }
 0x3e0   : > { %v3010_v35 = vsel %vm2924_vm1, %v3008_v13, %v3009_v22  ;;  %v2405_v18 = vrot.slane %v2149_v25, 7  ;;  %v2150_v29 = vmax.f32 %v2086_v26, 0.0  ;;  %v3006_v39 = vrot.slane %v12207_v52, 1  ;;  %v3764_v9 = vld [vmem:[#allocation2 + $0x1b0] sm:$0xfc] }
 0x3e1   : > { %3374 = vmatprep.mubr.f32.mxu0 %v3010_v35  ;;  %v3942_v38 = vsel %vm3856_vm0, %v3940_v27, %v3941_v58  ;;  %v12275_v61 = vsel %vm2346_vm2, %v12237_v23, %v2403_v33  ;;  %2598 = vst [vmem:[#allocation2 + $0x200] sm:$0x1] %v2403_v33  ;;  %v2151_v41 = vmax.f32 %v2087_v34, 0.0  ;;  %v3937_v42 = vrot.slane %v3760_v30, 2  ;;  %v12278_v45 = vpop.f32.mrb[46].mxu0 }
 0x3e2   : > { %4306 = vmatprep.mubr.f32.mxu1 %v3942_v38  ;;  %v3938_v43 = vrot.slane %v12207_v52, 2  ;;  %2596 = vst [vmem:[#allocation2 + $0x1f0] sm:$0xff] %v12275_v61  ;;  %v12282_v46 = vsel %vm2346_vm2, %v2402_v1, %v2405_v18  ;;  %2599 = vst [vmem:[#allocation2 + $0x208] sm:$0x1] %v2405_v18  ;;  %v2407_v3 = vrot.slane %v2150_v29, 7  ;;  %v3007_v50 = vsel %vm2924_vm1, %v3005_v21, %v3006_v39  ;;  %v12286_v51 = vpop.f32.mrb[47].mxu0 }
 0x3e3   : > { %v2012_v23 = vmul.f32 %v11992_v7, %v1893_v63  ;;  %2597 = vst [vmem:[#allocation2 + $0x1f8] sm:$0xff] %v12282_v46  ;;  %v2408_v5 = vrot.slane %v2151_v41, 7  ;;  %3375 = vmatmul.mubr.f32.gmra.mrb[96].mxu0 %v3007_v50  ;;  %v3013_v55 = vrot.slane %v2799_v36, 1  ;;  %v3945_v53 = vrot.slane %v3763_v28, 2  ;;  %v2801_v63 = vld [vmem:[#allocation2 + $0x1b8] sm:$0xfe] }
 0x3e4   : > { %v3939_v52 = vsel %vm3856_vm0, %v3937_v42, %v3938_v43  ;;  %2600 = vst [vmem:[#allocation2 + $0x210] sm:$0xfe] %v2407_v3  ;;  %v2013_v60 = vmul.f32 %v11995_v11, %v12256_v4  ;;  %v3011_v20 = vrot.slane %v2798_v40, 1  ;;  %v3943_v1 = vrot.slane %v3762_v44, 2  ;;  %v2803_v27 = vld [vmem:[#allocation2 + $0x1d8] sm:$0x1] }
 0x3e5   : > { %4307 = vmatmul.mubr.f32.gmra.mrb[32].mxu1 %v3939_v52  ;;  %v2088_v56 = vadd.f32 %v11998_v14, %v2012_v23  ;;  %2601 = vst [vmem:[#allocation2 + $0x218] sm:$0xfe] %v2408_v5  ;;  %v3014_v2 = vsel %vm2924_vm1, %v3009_v22, %v3013_v55  ;;  %v3946_v54 = vsel %vm3856_vm0, %v3941_v58, %v3945_v53  ;;  %v1911_v6 = vpop.f32.mrb[48].mxu0  ;;  %v3018_v17 = vrot.slane %v2801_v63, 1  ;;  %v3767_v34 = vld [vmem:[#allocation2 + $0x1d8] sm:$0x3] }
 0x3e6   : > { %v2014_v37 = vmul.f32 %v11992_v7, %v1899_v24  ;;  %v2015_v48 = vmul.f32 %v11995_v11, %v1901_v31  ;;  %3380 = vmatprep.mubr.f32.mxu0 %v3014_v2  ;;  %4312 = vmatprep.mubr.f32.mxu1 %v3946_v54  ;;  %v2089_v12 = vadd.f32 %v12001_v19, %v2013_v60  ;;  %v1913_v15 = vpop.f32.mrb[49].mxu0  ;;  %v3019_v32 = vrot.slane %v12246_v49, 1  ;;  %v3766_v42 = vld [vmem:[#allocation2 + $0x1d0] sm:$0x3]  ;;  %v2805_v55 = vld [vmem:[#allocation2 + $0x1e8] sm:$0xfe] }
 0x3e7   : > { %v2152_v8 = vmax.f32 %v2088_v56, 0.0  ;;  %v3012_v4 = vsel %vm2924_vm1, %v3006_v39, %v3011_v20  ;;  %v3944_v10 = vsel %vm3856_vm0, %v3938_v43, %v3943_v1  ;;  %v3950_v25 = vrot.slane %v3765_v0, 2  ;;  %v3769_v1 = vld [vmem:[#allocation2 + $0x1e8] sm:$0xfc] }
 0x3e8   : > { %3381 = vmatmul.mubr.f32.gmra.mrb[98].mxu0 %v3012_v4  ;;  %v2090_v13 = vadd.f32 %v11998_v14, %v2014_v37  ;;  %v2091_v16 = vadd.f32 %v12001_v19, %v2015_v48  ;;  %v2153_v24 = vmax.f32 %v2089_v12, 0.0  ;;  %v3951_v26 = vrot.slane %v12246_v49, 2  ;;  %v2802_v49 = vld [vmem:[#allocation2 + $0x1d0] sm:$0x1]  ;;  %v2804_v48 = vld [vmem:[#allocation2 + $0x1e0] sm:$0xfe] }
 0x3e9   : > { %v2409_v22 = vrot.slane %v2152_v8, 7  ;;  %4313 = vmatmul.mubr.f32.gmra.mrb[34].mxu1 %v3944_v10  ;;  %v3020_v31 = vsel %vm2924_vm1, %v3018_v17, %v3019_v32  ;;  %v3015_v33 = vrot.slane %v2800_v57, 1  ;;  %v12305_v35 = vpop.f32.mrb[50].mxu0  ;;  %v3016_v18 = vrot.slane %v12243_v47, 1  ;;  %v3768_v4 = vld [vmem:[#allocation2 + $0x1e0] sm:$0xfc] }
 0x3ea   : > { %v2154_v58 = vmax.f32 %v2090_v13, 0.0  ;;  %v2155_v30 = vmax.f32 %v2091_v16, 0.0  ;;  %v2411_v36 = vrot.slane %v2153_v24, 7  ;;  %3386 = vmatprep.mubr.f32.mxu0 %v3020_v31  ;;  %v3952_v28 = vsel %vm3856_vm0, %v3950_v25, %v3951_v26  ;;  %v12312_v29 = vpop.f32.mrb[51].mxu0  ;;  %v2807_v17 = vld [vmem:[#allocation2 + $0x208] sm:$0x1] }
 0x3eb   : > { %v12308_v21 = vsel %vm2346_vm2, %v2407_v3, %v2409_v22  ;;  %2604 = vst [vmem:[#allocation2 + $0x230] sm:$0x1] %v2409_v22  ;;  %4318 = vmatprep.mubr.f32.mxu1 %v3952_v28  ;;  %v3947_v40 = vrot.slane %v3764_v9, 2  ;;  %v3948_v41 = vrot.slane %v12243_v47, 2  ;;  %v3017_v44 = vsel %vm2924_vm1, %v3015_v33, %v3016_v18  ;;  %v3771_v31 = vld [vmem:[#allocation2 + $0x208] sm:$0x3] }
 0x3ec   : > { %2602 = vst [vmem:[#allocation2 + $0x220] sm:$0xff] %v12308_v21  ;;  %v2413_v38 = vrot.slane %v2154_v58, 7  ;;  %v12315_v39 = vrot.slane %v2155_v30, 7  ;;  %v12319_v43 = vsel %vm2346_vm2, %v2408_v5, %v2411_v36  ;;  %2605 = vst [vmem:[#allocation2 + $0x238] sm:$0x1] %v2411_v36  ;;  %v2016_v3 = vmul.f32 %v11992_v7, %v12278_v45  ;;  %3387 = vmatmul.mubr.f32.gmra.mrb[100].mxu0 %v3017_v44 }
 0x3ed   : > { %v3023_v50 = vrot.slane %v2803_v27, 1  ;;  %2603 = vst [vmem:[#allocation2 + $0x228] sm:$0xff] %v12319_v43  ;;  %v3949_v23 = vsel %vm3856_vm0, %v3947_v40, %v3948_v41  ;;  %v3955_v47 = vrot.slane %v3767_v34, 2  ;;  %v2017_v5 = vmul.f32 %v11995_v11, %v12286_v51  ;;  %v12329_v53 = vpop.f32.mrb[52].mxu0  ;;  %v2806_v28 = vld [vmem:[#allocation2 + $0x200] sm:$0x1] }
 0x3ee   : > { %2606 = vst [vmem:[#allocation2 + $0x240] sm:$0xfe] %v2413_v38  ;;  %2607 = vst [vmem:[#allocation2 + $0x248] sm:$0xfe] %v12315_v39  ;;  %v3021_v52 = vrot.slane %v2802_v49, 1  ;;  %4319 = vmatmul.mubr.f32.gmra.mrb[36].mxu1 %v3949_v23  ;;  %v2092_v45 = vadd.f32 %v11998_v14, %v2016_v3  ;;  %v3953_v60 = vrot.slane %v3766_v42, 2  ;;  %v2018_v20 = vmul.f32 %v11992_v7, %v1911_v6 }
 0x3ef   : > { %v3024_v56 = vsel %vm2924_vm1, %v3019_v32, %v3023_v50  ;;  %v12334_v63 = vpop.f32.mrb[53].mxu0  ;;  %v3956_v2 = vsel %vm3856_vm0, %v3951_v26, %v3955_v47  ;;  %v2093_v51 = vadd.f32 %v12001_v19, %v2017_v5  ;;  %v2019_v37 = vmul.f32 %v11995_v11, %v1913_v15  ;;  %v2809_v23 = vld [vmem:[#allocation2 + $0x218] sm:$0xfe] }
 0x3f0   : > { %3392 = vmatprep.mubr.f32.mxu0 %v3024_v56  ;;  %v3022_v54 = vsel %vm2924_vm1, %v3016_v18, %v3021_v52  ;;  %v2156_v0 = vmax.f32 %v2092_v45, 0.0  ;;  %4324 = vmatprep.mubr.f32.mxu1 %v3956_v2  ;;  %v3954_v8 = vsel %vm3856_vm0, %v3948_v41, %v3953_v60  ;;  %v2094_v12 = vadd.f32 %v11998_v14, %v2018_v20  ;;  %v3770_v18 = vld [vmem:[#allocation2 + $0x200] sm:$0x3]  ;;  %v3773_v60 = vld [vmem:[#allocation2 + $0x218] sm:$0xfc] }
 0x3f1   : > { %v3028_v6 = vrot.slane %v2805_v55, 1  ;;  %v2157_v10 = vmax.f32 %v2093_v51, 0.0  ;;  %3393 = vmatmul.mubr.f32.gmra.mrb[102].mxu0 %v3022_v54  ;;  %v2095_v57 = vadd.f32 %v12001_v19, %v2019_v37  ;;  %v3029_v13 = vrot.slane %v12282_v46, 1  ;;  %v12344_v32 = vpop.f32.mrb[54].mxu0  ;;  %v2808_v20 = vld [vmem:[#allocation2 + $0x210] sm:$0xfe] }
 0x3f2   : > { %v3960_v16 = vrot.slane %v3769_v1, 2  ;;  %v2415_v15 = vrot.slane %v2156_v0, 7  ;;  %4325 = vmatmul.mubr.f32.gmra.mrb[38].mxu1 %v3954_v8  ;;  %v2158_v9 = vmax.f32 %v2094_v12, 0.0  ;;  %v3961_v22 = vrot.slane %v12282_v46, 2  ;;  %v12347_v25 = vpop.f32.mrb[55].mxu0 }
 0x3f3   : > { %v3025_v24 = vrot.slane %v2804_v48, 1  ;;  %v2417_v26 = vrot.slane %v2157_v10, 7  ;;  %v2159_v27 = vmax.f32 %v2095_v57, 0.0  ;;  %v3030_v58 = vsel %vm2924_vm1, %v3028_v6, %v3029_v13  ;;  %v3772_v12 = vld [vmem:[#allocation2 + $0x210] sm:$0xfc] }
 0x3f4   : > { %v3026_v30 = vrot.slane %v12275_v61, 1  ;;  %v12352_v33 = vsel %vm2346_vm2, %v2413_v38, %v2415_v15  ;;  %2610 = vst [vmem:[#allocation2 + $0x260] sm:$0x1] %v2415_v15  ;;  %v12354_v34 = vrot.slane %v2158_v9, 7  ;;  %3398 = vmatprep.mubr.f32.mxu0 %v3030_v58  ;;  %v3962_v36 = vsel %vm3856_vm0, %v3960_v16, %v3961_v22 }
 0x3f5   : > { %v3957_v46 = vrot.slane %v3768_v4, 2  ;;  %2608 = vst [vmem:[#allocation2 + $0x250] sm:$0xff] %v12352_v33  ;;  %v12360_v49 = vsel %vm2346_vm2, %v12315_v39, %v2417_v26  ;;  %2611 = vst [vmem:[#allocation2 + $0x268] sm:$0x1] %v2417_v26  ;;  %v2420_v40 = vrot.slane %v2159_v27, 7  ;;  %4330 = vmatprep.mubr.f32.mxu1 %v3962_v36  ;;  %v3958_v41 = vrot.slane %v12275_v61, 2 }
 0x3f6   : > { %v3027_v38 = vsel %vm2924_vm1, %v3025_v24, %v3026_v30  ;;  %v12364_v42 = vpop.f32.mrb[56].mxu0  ;;  %2609 = vst [vmem:[#allocation2 + $0x258] sm:$0xff] %v12360_v49  ;;  %2612 = vst [vmem:[#allocation2 + $0x270] sm:$0xfe] %v12354_v34  ;;  %v2020_v44 = vmul.f32 %v11992_v7, %v12305_v35  ;;  %v3033_v3 = vrot.slane %v2807_v17, 1  ;;  %v3965_v39 = vrot.slane %v3771_v31, 2 }
 0x3f7   : > { %3399 = vmatmul.mubr.f32.gmra.mrb[104].mxu0 %v3027_v38  ;;  %v2021_v50 = vmul.f32 %v11995_v11, %v12312_v29  ;;  %v12372_v47 = vpop.f32.mrb[57].mxu0  ;;  %2613 = vst [vmem:[#allocation2 + $0x278] sm:$0xfe] %v2420_v40  ;;  %v3959_v61 = vsel %vm3856_vm0, %v3957_v46, %v3958_v41  ;;  %v3031_v5 = vrot.slane %v2806_v28, 1  ;;  %v3963_v52 = vrot.slane %v3770_v18, 2 }
 0x3f8   : > { %v2022_v55 = vmul.f32 %v11992_v7, %v12329_v53  ;;  %4331 = vmatmul.mubr.f32.gmra.mrb[40].mxu1 %v3959_v61  ;;  %v2096_v45 = vadd.f32 %v11998_v14, %v2020_v44  ;;  %v3034_v35 = vsel %vm2924_vm1, %v3029_v13, %v3033_v3  ;;  %v3966_v56 = vsel %vm3856_vm0, %v3961_v22, %v3965_v39  ;;  %v2811_v22 = vld [vmem:[#allocation2 + $0x238] sm:$0x1]  ;;  %v3774_v18 = vld [vmem:[#allocation2 + $0x230] sm:$0x3]  ;;  %v2813_v3 = vld [vmem:[#allocation2 + $0x248] sm:$0xfe] }
 0x3f9   : > { %v2097_v29 = vadd.f32 %v12001_v19, %v2021_v50  ;;  %3404 = vmatprep.mubr.f32.mxu0 %v3034_v35  ;;  %4336 = vmatprep.mubr.f32.mxu1 %v3966_v56  ;;  %v3032_v1 = vsel %vm2924_vm1, %v3026_v30, %v3031_v5  ;;  %v3964_v2 = vsel %vm3856_vm0, %v3958_v41, %v3963_v52  ;;  %v3038_v53 = vrot.slane %v2809_v23, 1  ;;  %v12384_v54 = vpop.f32.mrb[58].mxu0  ;;  %v3775_v24 = vld [vmem:[#allocation2 + $0x238] sm:$0x3]  ;;  %v2810_v30 = vld [vmem:[#allocation2 + $0x230] sm:$0x1] }
 0x3fa   : > { %v2098_v51 = vadd.f32 %v11998_v14, %v2022_v55  ;;  %v2160_v37 = vmax.f32 %v2096_v45, 0.0  ;;  %v2023_v0 = vmul.f32 %v11995_v11, %v12334_v63  ;;  %v3039_v8 = vrot.slane %v12319_v43, 1  ;;  %v12389_v6 = vpop.f32.mrb[59].mxu0 }
 0x3fb   : > { %v2161_v48 = vmax.f32 %v2097_v29, 0.0  ;;  %3405 = vmatmul.mubr.f32.gmra.mrb[106].mxu0 %v3032_v1  ;;  %v3970_v10 = vrot.slane %v3773_v60, 2  ;;  %v3971_v57 = vrot.slane %v12319_v43, 2  ;;  %v3035_v13 = vrot.slane %v2808_v20, 1  ;;  %v2812_v60 = vld [vmem:[#allocation2 + $0x240] sm:$0xfe] }
 0x3fc   : > { %v2162_v4 = vmax.f32 %v2098_v51, 0.0  ;;  %v2421_v16 = vrot.slane %v2160_v37, 7  ;;  %4337 = vmatmul.mubr.f32.gmra.mrb[42].mxu1 %v3964_v2  ;;  %v2099_v15 = vadd.f32 %v12001_v19, %v2023_v0  ;;  %v3040_v9 = vsel %vm2924_vm1, %v3038_v53, %v3039_v8 }
 0x3fd   : > { %v2423_v17 = vrot.slane %v2161_v48, 7  ;;  %3410 = vmatprep.mubr.f32.mxu0 %v3040_v9  ;;  %v3972_v26 = vsel %vm3856_vm0, %v3970_v10, %v3971_v57  ;;  %v3036_v27 = vrot.slane %v12308_v21, 1  ;;  %v3967_v58 = vrot.slane %v3772_v12, 2  ;;  %v12398_v43 = vpop.f32.mrb[60].mxu0 }
 0x3fe   : > { %v12394_v63 = vrot.slane %v2162_v4, 7  ;;  %v12402_v31 = vsel %vm2346_vm2, %v12354_v34, %v2421_v16  ;;  %2616 = vst [vmem:[#allocation2 + $0x290] sm:$0x1] %v2421_v16  ;;  %v2163_v46 = vmax.f32 %v2099_v15, 0.0  ;;  %4342 = vmatprep.mubr.f32.mxu1 %v3972_v26  ;;  %v3968_v28 = vrot.slane %v12308_v21, 2  ;;  %v12408_v38 = vpop.f32.mrb[61].mxu0 }
 0x3ff   : > { %v12405_v36 = vsel %vm2346_vm2, %v2420_v40, %v2423_v17  ;;  %2617 = vst [vmem:[#allocation2 + $0x298] sm:$0x1] %v2423_v17  ;;  %2614 = vst [vmem:[#allocation2 + $0x280] sm:$0xff] %v12402_v31  ;;  %v3037_v34 = vsel %vm2924_vm1, %v3035_v13, %v3036_v27  ;;  %v2024_v40 = vmul.f32 %v11992_v7, %v12344_v32  ;;  %v3043_v41 = vrot.slane %v2811_v22, 1  ;;  %v3777_v32 = vld [vmem:[#allocation2 + $0x248] sm:$0xfc] }
 0x400   : > { %2615 = vst [vmem:[#allocation2 + $0x288] sm:$0xff] %v12405_v36  ;;  %2618 = vst [vmem:[#allocation2 + $0x2a0] sm:$0xfe] %v12394_v63  ;;  %v3975_v44 = vrot.slane %v3775_v24, 2  ;;  %v2426_v39 = vrot.slane %v2163_v46, 7  ;;  %3411 = vmatmul.mubr.f32.gmra.mrb[108].mxu0 %v3037_v34  ;;  %v3969_v21 = vsel %vm3856_vm0, %v3967_v58, %v3968_v28  ;;  %v2025_v50 = vmul.f32 %v11995_v11, %v12347_v25 }
 0x401   : > { %v3041_v23 = vrot.slane %v2810_v30, 1  ;;  %4343 = vmatmul.mubr.f32.gmra.mrb[44].mxu1 %v3969_v21  ;;  %v2100_v61 = vadd.f32 %v11998_v14, %v2024_v40  ;;  %v3044_v5 = vsel %vm2924_vm1, %v3039_v8, %v3043_v41  ;;  %v3973_v55 = vrot.slane %v3774_v18, 2  ;;  %v12422_v45 = vpop.f32.mrb[62].mxu0  ;;  %v2815_v13 = vld [vmem:[#allocation2 + $0x268] sm:$0x1] }
 0x402   : > { %v3976_v52 = vsel %vm3856_vm0, %v3971_v57, %v3975_v44  ;;  %2619 = vst [vmem:[#allocation2 + $0x2a8] sm:$0xfe] %v2426_v39  ;;  %3416 = vmatprep.mubr.f32.mxu0 %v3044_v5  ;;  %v2101_v35 = vadd.f32 %v12001_v19, %v2025_v50  ;;  %v2026_v25 = vmul.f32 %v11992_v7, %v12364_v42  ;;  %v3048_v29 = vrot.slane %v2813_v3, 1  ;;  %v12428_v20 = vpop.f32.mrb[63].mxu0  ;;  %v3776_v42 = vld [vmem:[#allocation2 + $0x240] sm:$0xfc] }
 0x403   : > { %4348 = vmatprep.mubr.f32.mxu1 %v3976_v52  ;;  %v3042_v56 = vsel %vm2924_vm1, %v3036_v27, %v3041_v23  ;;  %v2164_v1 = vmax.f32 %v2100_v61, 0.0  ;;  %v3974_v2 = vsel %vm3856_vm0, %v3968_v28, %v3973_v55  ;;  %v2027_v51 = vmul.f32 %v11995_v11, %v12372_v47  ;;  %v2814_v16 = vld [vmem:[#allocation2 + $0x260] sm:$0x1]  ;;  %v3779_v22 = vld [vmem:[#allocation2 + $0x268] sm:$0x3] }
 0x404   : > { %v3049_v53 = vrot.slane %v12360_v49, 1  ;;  %v2165_v37 = vmax.f32 %v2101_v35, 0.0  ;;  %3417 = vmatmul.mubr.f32.gmra.mrb[110].mxu0 %v3042_v56  ;;  %v2102_v48 = vadd.f32 %v11998_v14, %v2026_v25  ;;  %v3980_v0 = vrot.slane %v3777_v32, 2  ;;  %v3778_v58 = vld [vmem:[#allocation2 + $0x260] sm:$0x3] }
 0x405   : > { %v3981_v8 = vrot.slane %v12360_v49, 2  ;;  %v2427_v12 = vrot.slane %v2164_v1, 7  ;;  %4349 = vmatmul.mubr.f32.gmra.mrb[46].mxu1 %v3974_v2  ;;  %v2103_v4 = vadd.f32 %v12001_v19, %v2027_v51  ;;  %v3045_v57 = vrot.slane %v2812_v60, 1  ;;  %v2817_v21 = vld [vmem:[#allocation2 + $0x278] sm:$0xfe] }
 0x406   : > { %v3050_v10 = vsel %vm2924_vm1, %v3048_v29, %v3049_v53  ;;  %v2429_v47 = vrot.slane %v2165_v37, 7  ;;  %v2166_v17 = vmax.f32 %v2102_v48, 0.0  ;;  %v3046_v9 = vrot.slane %v12352_v33, 1  ;;  %v3781_v5 = vld [vmem:[#allocation2 + $0x278] sm:$0xfc]  ;;  %v4584_v48 = vld [vmem:[#allocation11 + $0x7a0] sm:$0xff] }
 0x407   : > { %3422 = vmatprep.mubr.f32.mxu0 %v3050_v10  ;;  %v3982_v15 = vsel %vm3856_vm0, %v3980_v0, %v3981_v8  ;;  %v12442_v49 = vsel %vm2346_vm2, %v12394_v63, %v2427_v12  ;;  %2622 = vst [vmem:[#allocation2 + $0x2c0] sm:$0x1] %v2427_v12  ;;  %v2167_v24 = vmax.f32 %v2103_v4, 0.0  ;;  %v3977_v26 = vrot.slane %v3776_v42, 2  ;;  %v2816_v35 = vld [vmem:[#allocation2 + $0x270] sm:$0xfe] }
 0x408   : > { %4354 = vmatprep.mubr.f32.mxu1 %v3982_v15  ;;  %v3978_v27 = vrot.slane %v12352_v33, 2  ;;  %2620 = vst [vmem:[#allocation2 + $0x2b0] sm:$0xff] %v12442_v49  ;;  %v12447_v30 = vsel %vm2346_vm2, %v2426_v39, %v2429_v47  ;;  %2623 = vst [vmem:[#allocation2 + $0x2c8] sm:$0x1] %v2429_v47  ;;  %v2431_v46 = vrot.slane %v2166_v17, 7  ;;  %v3047_v28 = vsel %vm2924_vm1, %v3045_v57, %v3046_v9  ;;  %v2742_v37 = vld [vmem:[#allocation11 + $0x150] sm:$0xff] }
 0x409   : > { %v2028_v63 = vmul.f32 %v11992_v7, %v12384_v54  ;;  %2621 = vst [vmem:[#allocation2 + $0x2b8] sm:$0xff] %v12447_v30  ;;  %v2432_v18 = vrot.slane %v2167_v24, 7  ;;  %3423 = vmatmul.mubr.f32.gmra.mrb[112].mxu0 %v3047_v28  ;;  %v3053_v33 = vrot.slane %v2815_v13, 1  ;;  %v3985_v40 = vrot.slane %v3779_v22, 2  ;;  %v3780_v51 = vld [vmem:[#allocation2 + $0x270] sm:$0xfc] }
 0x40a   : > { %v3979_v34 = vsel %vm3856_vm0, %v3977_v26, %v3978_v27  ;;  %2624 = vst [vmem:[#allocation2 + $0x2d0] sm:$0xfe] %v2431_v46  ;;  %v2029_v44 = vmul.f32 %v11995_v11, %v12389_v6  ;;  %v3051_v3 = vrot.slane %v2814_v16, 1  ;;  %v3983_v39 = vrot.slane %v3778_v58, 2  ;;  %v2819_v4 = vld [vmem:[#allocation2 + $0x298] sm:$0x1] }
 0x40b   : > { %4355 = vmatmul.mubr.f32.gmra.mrb[48].mxu1 %v3979_v34  ;;  %v2104_v41 = vadd.f32 %v11998_v14, %v2028_v63  ;;  %2625 = vst [vmem:[#allocation2 + $0x2d8] sm:$0xfe] %v2432_v18  ;;  %v3054_v54 = vsel %vm2924_vm1, %v3049_v53, %v3053_v33  ;;  %v3986_v50 = vsel %vm3856_vm0, %v3981_v8, %v3985_v40  ;;  %v3059_v29 = vrot.slane %v12405_v36, 1  ;;  %v2740_v53 = vld [vmem:[#allocation11 + $0x140] sm:$0xff]  ;;  %v4586_v10 = vld [vmem:[#allocation11 + $0x7b0] sm:$0xff]  ;;  %v2745_v17 = vld [vmem:[#allocation11 + $0x168] sm:$0xff] }
 0x40c   : > { %v2030_v23 = vmul.f32 %v11992_v7, %v12398_v43  ;;  %v2031_v61 = vmul.f32 %v11995_v11, %v12408_v38  ;;  %3428 = vmatprep.mubr.f32.mxu0 %v3054_v54  ;;  %4360 = vmatprep.mubr.f32.mxu1 %v3986_v50  ;;  %v2105_v6 = vadd.f32 %v12001_v19, %v2029_v44  ;;  %v3058_v43 = vrot.slane %v2817_v21, 1  ;;  %v3783_v47 = vld [vmem:[#allocation2 + $0x298] sm:$0x3]  ;;  %v2747_v15 = vld [vmem:[#allocation11 + $0x178] sm:$0xff]  ;;  %v3782_v34 = vld [vmem:[#allocation2 + $0x290] sm:$0x3] }
 0x40d   : > { %v2168_v52 = vmax.f32 %v2104_v41, 0.0  ;;  %v3052_v55 = vsel %vm2924_vm1, %v3046_v9, %v3051_v3  ;;  %v3984_v32 = vsel %vm3856_vm0, %v3978_v27, %v3983_v39  ;;  %v3990_v1 = vrot.slane %v3781_v5, 2  ;;  %v2818_v27 = vld [vmem:[#allocation2 + $0x290] sm:$0x1]  ;;  %v2744_v33 = vld [vmem:[#allocation11 + $0x160] sm:$0xff]  ;;  %v2746_v40 = vld [vmem:[#allocation11 + $0x170] sm:$0xff] }
 0x40e   : > { %3429 = vmatmul.mubr.f32.gmra.mrb[114].mxu0 %v3052_v55  ;;  %v2106_v56 = vadd.f32 %v11998_v14, %v2030_v23  ;;  %v2107_v25 = vadd.f32 %v12001_v19, %v2031_v61  ;;  %v2169_v60 = vmax.f32 %v2105_v6, 0.0  ;;  %v3991_v2 = vrot.slane %v12405_v36, 2  ;;  %v2821_v3 = vld [vmem:[#allocation2 + $0x2a8] sm:$0xfe]  ;;  %v2751_v55 = vld [vmem:[#allocation11 + $0x198] sm:$0xff] }
 0x40f   : > { %v2433_v38 = vrot.slane %v2168_v52, 7  ;;  %4361 = vmatmul.mubr.f32.gmra.mrb[50].mxu1 %v3984_v32  ;;  %v3060_v42 = vsel %vm2924_vm1, %v3058_v43, %v3059_v29  ;;  %v3055_v12 = vrot.slane %v2816_v35, 1  ;;  %v3056_v36 = vrot.slane %v12402_v31, 1  ;;  %v3785_v54 = vld [vmem:[#allocation2 + $0x2a8] sm:$0xfc] }
 0x410   : > { %v2170_v0 = vmax.f32 %v2106_v56, 0.0  ;;  %v2171_v8 = vmax.f32 %v2107_v25, 0.0  ;;  %v2435_v13 = vrot.slane %v2169_v60, 7  ;;  %3434 = vmatprep.mubr.f32.mxu0 %v3060_v42  ;;  %v3992_v16 = vsel %vm3856_vm0, %v3990_v1, %v3991_v2  ;;  %v2820_v52 = vld [vmem:[#allocation2 + $0x2a0] sm:$0xfe]  ;;  %v2749_v6 = vld [vmem:[#allocation11 + $0x188] sm:$0xff] }
 0x411   : > { %v12472_v57 = vsel %vm2346_vm2, %v2431_v46, %v2433_v38  ;;  %2628 = vst [vmem:[#allocation2 + $0x2f0] sm:$0x1] %v2433_v38  ;;  %4366 = vmatprep.mubr.f32.mxu1 %v3992_v16  ;;  %v3987_v24 = vrot.slane %v3780_v51, 2  ;;  %v3988_v26 = vrot.slane %v12402_v31, 2  ;;  %v3057_v46 = vsel %vm2924_vm1, %v3055_v12, %v3056_v36  ;;  %v4589_v56 = vld [vmem:[#allocation11 + $0x7c8] sm:$0xff]  ;;  %v4591_v25 = vld [vmem:[#allocation11 + $0x7d8] sm:$0xff] }
 0x412   : > { %2626 = vst [vmem:[#allocation2 + $0x2e0] sm:$0xff] %v12472_v57  ;;  %v12477_v9 = vrot.slane %v2170_v0, 7  ;;  %v12479_v22 = vrot.slane %v2171_v8, 7  ;;  %v12483_v58 = vsel %vm2346_vm2, %v2432_v18, %v2435_v13  ;;  %2629 = vst [vmem:[#allocation2 + $0x2f8] sm:$0x1] %v2435_v13  ;;  %v2032_v28 = vmul.f32 %v11992_v7, %v12422_v45  ;;  %3435 = vmatmul.mubr.f32.gmra.mrb[116].mxu0 %v3057_v46  ;;  %v12499_v43 = vld [vmem:[#allocation11 + $0x180] sm:$0xff] }
 0x413   : > { %v3063_v63 = vrot.slane %v2819_v4, 1  ;;  %2627 = vst [vmem:[#allocation2 + $0x2e8] sm:$0xff] %v12483_v58  ;;  %v3989_v31 = vsel %vm3856_vm0, %v3987_v24, %v3988_v26  ;;  %v9499_v18 = vpack.c.bf16 %v2742_v37, %v2740_v53  ;;  %v3995_v41 = vrot.slane %v3783_v47, 2  ;;  %v12506_v51 = vld [vmem:[#allocation11 + $0x7c0] sm:$0xff]  ;;  %v4590_v53 = vld [vmem:[#allocation11 + $0x7d0] sm:$0xff] }
 0x414   : > { %2630 = vst [vmem:[#allocation2 + $0x300] sm:$0xfe] %v12477_v9  ;;  %2631 = vst [vmem:[#allocation2 + $0x308] sm:$0xfe] %v12479_v22  ;;  %v9639_v44 = vpack.c.bf16 %v4586_v10, %v4584_v48  ;;  %4367 = vmatmul.mubr.f32.gmra.mrb[52].mxu1 %v3989_v31  ;;  %v2108_v7 = vadd.f32 %v11998_v14, %v2032_v28  ;;  %v2033_v39 = vmul.f32 %v11995_v11, %v12428_v20  ;;  %v3784_v20 = vld [vmem:[#allocation2 + $0x2a0] sm:$0xfc] }
 0x415   : > { %v3064_v45 = vsel %vm2924_vm1, %v3059_v29, %v3063_v63  ;;  %v3061_v21 = vrot.slane %v2818_v27, 1  ;;  %9500 = vmatpush1.bf16.msra.mxu0 %v9499_v18  ;;  %v3996_v50 = vsel %vm3856_vm0, %v3991_v2, %v3995_v41  ;;  %v9501_v23 = vpack.c.bf16 %v2747_v15, %v2745_v17  ;;  %v12501_v29 = vld [vmem:[#allocation11 + $0x190] sm:$0xff]  ;;  %v3787_v42 = vld [vmem:[#allocation2 + $0x2c8] sm:$0x3]  ;;  %v2822_v16 = vld [vmem:[#allocation2 + $0x2c0] sm:$0x1] }
 0x416   : > { %3440 = vmatprep.mubr.f32.mxu0 %v3064_v45  ;;  %v3993_v61 = vrot.slane %v3782_v34, 2  ;;  %v9503_v5 = vpack.c.bf16 %v2746_v40, %v2744_v33  ;;  %v2172_v32 = vmax.f32 %v2108_v7, 0.0  ;;  %4372 = vmatprep.mubr.f32.mxu1 %v3996_v50  ;;  %v2109_v14 = vadd.f32 %v12001_v19, %v2033_v39  ;;  %v2823_v19 = vld [vmem:[#allocation2 + $0x2c8] sm:$0x1]  ;;  %v12517_v46 = vld [vmem:[#allocation11 + $0x1b0] sm:$0xff]  ;;  %v2757_v40 = vld [vmem:[#allocation11 + $0x1c8] sm:$0xff] }
 0x417   : > { %9640 = vmatpush1.bf16.msra.mxu1 %v9639_v44  ;;  %v3062_v35 = vsel %vm2924_vm1, %v3056_v36, %v3061_v21  ;;  %v3068_v11 = vrot.slane %v2821_v3, 1  ;;  %9502 = vmatprep.subr.bf16.mxu0 %v9501_v23  ;;  %v3069_v60 = vrot.slane %v12447_v30, 1  ;;  %v4000_v1 = vrot.slane %v3785_v54, 2  ;;  %v2755_v36 = vld [vmem:[#allocation11 + $0x1b8] sm:$0xff]  ;;  %v12515_v27 = vld [vmem:[#allocation11 + $0x1a0] sm:$0xff]  ;;  %v4593_v45 = vld [vmem:[#allocation11 + $0x7e8] sm:$0xff] }
 0x418   : > { %3441 = vmatmul.mubr.f32.gmra.mrb[118].mxu0 %v3062_v35  ;;  %v3994_v38 = vsel %vm3856_vm0, %v3988_v26, %v3993_v61  ;;  %v4001_v2 = vrot.slane %v12447_v30, 2  ;;  %v2439_v37 = vrot.slane %v2172_v32, 7  ;;  %v2173_v48 = vmax.f32 %v2109_v14, 0.0  ;;  %v2753_v30 = vld [vmem:[#allocation11 + $0x1a8] sm:$0xff]  ;;  %v3786_v26 = vld [vmem:[#allocation2 + $0x2c0] sm:$0x3] }
 0x419   : > { %4373 = vmatmul.mubr.f32.gmra.mrb[54].mxu1 %v3994_v38  ;;  %v3065_v0 = vrot.slane %v2820_v52, 1  ;;  %v3066_v8 = vrot.slane %v12442_v49, 1  ;;  %9504 = vmatpush1.bf16.msra.mxu0 %v9503_v5  ;;  %v3070_v12 = vsel %vm2924_vm1, %v3068_v11, %v3069_v60  ;;  %v9505_v10 = vpack.c.bf16 %v2751_v55, %v2749_v6  ;;  %v2825_v33 = vld [vmem:[#allocation2 + $0x2d8] sm:$0xfe]  ;;  %v2824_v7 = vld [vmem:[#allocation2 + $0x2d0] sm:$0xfe] }
 0x41a   : > { %v4002_v4 = vsel %vm3856_vm0, %v4000_v1, %v4001_v2  ;;  %v3997_v13 = vrot.slane %v3784_v20, 2  ;;  %v2440_v47 = vsel %vm2346_vm2, %v12477_v9, %v2439_v37  ;;  %2634 = vst [vmem:[#allocation2 + $0x320] sm:$0x1] %v2439_v37  ;;  %v2441_v17 = vrot.slane %v2173_v48, 7  ;;  %3446 = vmatprep.mubr.f32.mxu0 %v3070_v12  ;;  %v2759_v31 = vld [vmem:[#allocation11 + $0x1d8] sm:$0xff]  ;;  %v2756_v61 = vld [vmem:[#allocation11 + $0x1c0] sm:$0xff] }
 0x41b   : > { %4378 = vmatprep.mubr.f32.mxu1 %v4002_v4  ;;  %v3067_v15 = vsel %vm2924_vm1, %v3065_v0, %v3066_v8  ;;  %v3998_v24 = vrot.slane %v12442_v49, 2  ;;  %2632 = vst [vmem:[#allocation2 + $0x310] sm:$0xff] %v2440_v47  ;;  %9506 = vmatprep.subr.bf16.mxu0 %v9505_v10  ;;  %v9641_v28 = vpack.c.bf16 %v4591_v25, %v4589_v56  ;;  %v3073_v63 = vrot.slane %v2823_v19, 1  ;;  %v3789_v3 = vld [vmem:[#allocation2 + $0x2d8] sm:$0xfc]  ;;  %v4592_v14 = vld [vmem:[#allocation11 + $0x7e0] sm:$0xff] }
 0x41c   : > { %3447 = vmatmul.mubr.f32.gmra.mrb[120].mxu0 %v3067_v15  ;;  %v9507_v9 = vpack.c.bf16 %v12501_v29, %v12499_v43  ;;  %v4005_v34 = vrot.slane %v3787_v42, 2  ;;  %v12523_v49 = vsel %vm2346_vm2, %v12479_v22, %v2441_v17  ;;  %2635 = vst [vmem:[#allocation2 + $0x328] sm:$0x1] %v2441_v17  ;;  %v9643_v41 = vpack.c.bf16 %v4590_v53, %v12506_v51  ;;  %v3788_v50 = vld [vmem:[#allocation2 + $0x2d0] sm:$0xfc]  ;;  %v4595_v23 = vld [vmem:[#allocation11 + $0x7f8] sm:$0xff] }
 0x41d   : > { %v3999_v18 = vsel %vm3856_vm0, %v3997_v13, %v3998_v24  ;;  %v3071_v44 = vrot.slane %v2822_v16, 1  ;;  %2633 = vst [vmem:[#allocation2 + $0x318] sm:$0xff] %v12523_v49  ;;  %9642 = vmatprep.subr.bf16.mxu1 %v9641_v28  ;;  %v3074_v39 = vsel %vm2924_vm1, %v3069_v60, %v3073_v63  ;;  %v9509_v54 = vpack.c.bf16 %v2755_v36, %v2753_v30  ;;  %v2827_v55 = vld [vmem:[#allocation2 + $0x2f8] sm:$0x1]  ;;  %v2761_v19 = vld [vmem:[#allocation11 + $0x1e8] sm:$0xff]  ;;  %v2763_v51 = vld [vmem:[#allocation11 + $0x1f8] sm:$0xff] }
 0x41e   : > { %4379 = vmatmul.mubr.f32.gmra.mrb[56].mxu1 %v3999_v18  ;;  %v4006_v21 = vsel %vm3856_vm0, %v4001_v2, %v4005_v34  ;;  %v4003_v22 = vrot.slane %v3786_v26, 2  ;;  %3452 = vmatprep.mubr.f32.mxu0 %v3074_v39  ;;  %v9511_v5 = vpack.c.bf16 %v12517_v46, %v12515_v27  ;;  %v3078_v52 = vrot.slane %v2825_v33, 1  ;;  %v2758_v32 = vld [vmem:[#allocation11 + $0x1d0] sm:$0xff]  ;;  %v2826_v2 = vld [vmem:[#allocation2 + $0x2f0] sm:$0x1]  ;;  %v5337_v12 = vld [vmem:[#allocation11 + $0x818] sm:$0xff] }
 0x41f   : > { %9508 = vmatpush1.bf16.msra.mxu0 %v9507_v9  ;;  %v3079_v6 = vrot.slane %v12483_v58, 1  ;;  %4384 = vmatprep.mubr.f32.mxu1 %v4006_v21  ;;  %v3072_v35 = vsel %vm2924_vm1, %v3066_v8, %v3071_v44  ;;  %v4010_v11 = vrot.slane %v3789_v3, 2  ;;  %v4011_v20 = vrot.slane %v12483_v58, 2  ;;  %v3791_v25 = vld [vmem:[#allocation2 + $0x2f8] sm:$0x3]  ;;  %v5335_v42 = vld [vmem:[#allocation11 + $0x808] sm:$0xff] }
 0x420   : > { %9644 = vmatpush1.bf16.msra.mxu1 %v9643_v41  ;;  %v3075_v56 = vrot.slane %v2824_v7, 1  ;;  %v4594_v43 = vld [vmem:[#allocation11 + $0x7f0] sm:$0xff]  ;;  %3453 = vmatmul.mubr.f32.gmra.mrb[122].mxu0 %v3072_v35  ;;  %v4004_v29 = vsel %vm3856_vm0, %v3998_v24, %v4003_v22  ;;  %v9513_v60 = vpack.c.bf16 %v2759_v31, %v2757_v40  ;;  %v4007_v1 = vrot.slane %v3788_v50, 2  ;;  %v3790_v8 = vld [vmem:[#allocation2 + $0x2f0] sm:$0x3]  ;;  %v2760_v15 = vld [vmem:[#allocation11 + $0x1e0] sm:$0xff] }
 0x421   : > { %9510 = vmatprep.subr.bf16.mxu0 %v9509_v54  ;;  %v3080_v38 = vsel %vm2924_vm1, %v3078_v52, %v3079_v6  ;;  %v4012_v53 = vsel %vm3856_vm0, %v4010_v11, %v4011_v20  ;;  %v3076_v37 = vrot.slane %v12472_v57, 1  ;;  %v9645_v48 = vpack.c.bf16 %v4595_v23, %v4593_v45  ;;  %v2762_v24 = vld [vmem:[#allocation11 + $0x1f0] sm:$0xff]  ;;  %v5334_v34 = vld [vmem:[#allocation11 + $0x800] sm:$0xff]  ;;  %v5339_v31 = vld [vmem:[#allocation11 + $0x828] sm:$0xff] }
 0x422   : > { %4385 = vmatmul.mubr.f32.gmra.mrb[58].mxu1 %v4004_v29  ;;  %3458 = vmatprep.mubr.f32.mxu0 %v3080_v38  ;;  %v3083_v0 = vrot.slane %v2827_v55, 1  ;;  %v4008_v4 = vrot.slane %v12472_v57, 2  ;;  %v9515_v10 = vpack.c.bf16 %v2758_v32, %v2756_v61  ;;  %v4015_v13 = vrot.slane %v3791_v25, 2  ;;  %v5336_v33 = vld [vmem:[#allocation11 + $0x810] sm:$0xff]  ;;  %v5341_v18 = vld [vmem:[#allocation11 + $0x838] sm:$0xff]  ;;  %v5338_v39 = vld [vmem:[#allocation11 + $0x820] sm:$0xff] }
 0x423   : > { %9512 = vmatpush1.bf16.msra.mxu0 %v9511_v5  ;;  %4390 = vmatprep.mubr.f32.mxu1 %v4012_v53  ;;  %v9647_v16 = vpack.c.bf16 %v4594_v43, %v4592_v14  ;;  %v3077_v30 = vsel %vm2924_vm1, %v3075_v56, %v3076_v37  ;;  %v3081_v47 = vrot.slane %v2826_v2, 1  ;;  %v9517_v17 = vpack.c.bf16 %v2763_v51, %v2761_v19  ;;  %v4468_v41 = vld [vmem:[#allocation2 + $0x38] sm:$0xff]  ;;  %v10848_v44 = vld [vmem:[#allocation2] sm:$0xff]  ;;  %v4467_v45 = vld [vmem:[#allocation2 + $0x30] sm:$0xff] }
 0x424   : > { %9514 = vmatprep.subr.bf16.mxu0 %v9513_v60  ;;  %9646 = vmatprep.subr.bf16.mxu1 %v9645_v48  ;;  %v3084_v36 = vsel %vm2924_vm1, %v3079_v6, %v3083_v0  ;;  %v4009_v26 = vsel %vm3856_vm0, %v4007_v1, %v4008_v4  ;;  %v4016_v27 = vsel %vm3856_vm0, %v4011_v20, %v4015_v13  ;;  %v4013_v46 = vrot.slane %v3790_v8, 2  ;;  %v5340_v21 = vld [vmem:[#allocation11 + $0x830] sm:$0xff]  ;;  %v12546_v54 = vld [vmem:[#allocation2 + $0x48] sm:$0xff]  ;;  %v5345_v50 = vld [vmem:[#allocation11 + $0x858] sm:$0xff] }
 0x425   : > { %3459 = vmatmul.mubr.f32.gmra.mrb[124].mxu0 %v3077_v30  ;;  %9648 = vmatpush1.bf16.msra.mxu1 %v9647_v16  ;;  %v9649_v28 = vpack.c.bf16 %v5337_v12, %v5335_v42  ;;  %v9519_v63 = vpack.c.bf16 %v2762_v24, %v2760_v15  ;;  %v3082_v9 = vsel %vm2924_vm1, %v3076_v37, %v3081_v47  ;;  %v5343_v22 = vld [vmem:[#allocation11 + $0x848] sm:$0xff]  ;;  %v12549_v61 = vld [vmem:[#allocation2 + $0x40] sm:$0xff]  ;;  %v5344_v6 = vld [vmem:[#allocation11 + $0x850] sm:$0xff] }
 0x426   : > { %4391 = vmatmul.mubr.f32.gmra.mrb[60].mxu1 %v4009_v26  ;;  %3464 = vmatprep.mubr.f32.mxu0 %v3084_v36  ;;  %v4014_v40 = vsel %vm3856_vm0, %v4008_v4, %v4013_v46  ;;  %v9651_v3 = vpack.c.bf16 %v5336_v33, %v5334_v34  ;;  %v9653_v7 = vpack.c.bf16 %v5341_v18, %v5339_v31  ;;  %v5342_v52 = vld [vmem:[#allocation11 + $0x840] sm:$0xff]  ;;  %v5347_v32 = vld [vmem:[#allocation11 + $0x868] sm:$0xff]  ;;  %v5349_v14 = vld [vmem:[#allocation11 + $0x878] sm:$0xff] }
 0x427   : > { %9516 = vmatpush1.bf16.msra.mxu0 %v9515_v10  ;;  %4396 = vmatprep.mubr.f32.mxu1 %v4016_v27  ;;  %v9655_v23 = vpack.c.bf16 %v5340_v21, %v5338_v39  ;;  %v9657_v5 = vpack.c.bf16 %v5345_v50, %v5343_v22  ;;  %v4472_v55 = vld [vmem:[#allocation2 + $0x68] sm:$0xff]  ;;  %v9659_v35 = vpack.c.bf16 %v5344_v6, %v5342_v52  ;;  %v4471_v11 = vld [vmem:[#allocation2 + $0x60] sm:$0xff]  ;;  %v5348_v25 = vld [vmem:[#allocation11 + $0x870] sm:$0xff] }
 0x428   : > { %9518 = vmatprep.subr.bf16.mxu0 %v9517_v17  ;;  %9650 = vmatprep.subr.bf16.mxu1 %v9649_v28  ;;  %v9661_v20 = vpack.c.bf16 %v5349_v14, %v5347_v32  ;;  %v5346_v56 = vld [vmem:[#allocation11 + $0x860] sm:$0xff]  ;;  %v12552_v43 = vld [vmem:[#allocation2 + $0x78] sm:$0xff]  ;;  %v5351_v29 = vld [vmem:[#allocation11 + $0x888] sm:$0xff] }
 0x429   : > { %3465 = vmatmul.mubr.f32.gmra.mrb[126].mxu0 %v3082_v9  ;;  %v5353_v38 = vld [vmem:[#allocation11 + $0x898] sm:$0xff]  ;;  %v10849_v60 = vld [vmem:[#allocation2 + $0x48] sm:$0xff]  ;;  %v9663_v1 = vpack.c.bf16 %v5348_v25, %v5346_v56  ;;  %v12555_v2 = vld [vmem:[#allocation2 + $0x70] sm:$0xff] }
 0x42a   : > { %4397 = vmatmul.mubr.f32.gmra.mrb[62].mxu1 %v4014_v40  ;;  %3535 = vmatprep.mubr.f32.mxu0 %v10848_v44  ;;  %v9665_v19 = vpack.c.bf16 %v5353_v38, %v5351_v29  ;;  %v5350_v51 = vld [vmem:[#allocation11 + $0x880] sm:$0xff]  ;;  %v5352_v53 = vld [vmem:[#allocation11 + $0x890] sm:$0xff]  ;;  %v5355_v0 = vld [vmem:[#allocation11 + $0x8a8] sm:$0xff] }
 0x42b   : > { %9520 = vmatpush1.bf16.msra.mxu0 %v9519_v63  ;;  %4660 = vmatprep.mubr.f32.mxu1 %v4468_v41  ;;  %v10850_v37 = vld [vmem:[#allocation2 + $0x40] sm:$0xff]  ;;  %v4476_v48 = vld [vmem:[#allocation2 + $0x98] sm:$0xff]  ;;  %v9667_v42 = vpack.c.bf16 %v5352_v53, %v5350_v51  ;;  %v4475_v12 = vld [vmem:[#allocation2 + $0x90] sm:$0xff] }
 0x42c   : > { %v5357_v8 = vld [vmem:[#allocation11 + $0x8b8] sm:$0xff]  ;;  %v5354_v10 = vld [vmem:[#allocation11 + $0x8a0] sm:$0xff]  ;;  %v5356_v13 = vld [vmem:[#allocation11 + $0x8b0] sm:$0xff] }
 0x42d   : > { %v9669_v4 = vpack.c.bf16 %v5357_v8, %v5355_v0  ;;  %v12558_v16 = vld [vmem:[#allocation2 + $0xa8] sm:$0xff]  ;;  %v5361_v36 = vld [vmem:[#allocation11 + $0x8d8] sm:$0xff]  ;;  %v9671_v17 = vpack.c.bf16 %v5356_v13, %v5354_v10  ;;  %v5360_v27 = vld [vmem:[#allocation11 + $0x8d0] sm:$0xff] }
 0x42e   : > { %3536 = vmatmul.mubr.f32.vlgmr.msra.gmra.mrb[64].mxu0 %v10848_v44  ;;  %4661 = vmatmul.mubr.f32.vlgmr.msra.gmra.mrb[0].mxu1 %v4467_v45  ;;  %v5359_v30 = vld [vmem:[#allocation11 + $0x8c8] sm:$0xff]  ;;  %v10851_v47 = vld [vmem:[#allocation2 + $0x78] sm:$0xff]  ;;  %v12561_v15 = vld [vmem:[#allocation2 + $0xa0] sm:$0xff] }
 0x42f   : > { %4666 = vmatprep.mubr.f32.mxu1 %v12546_v54  ;;  %9652 = vmatpush1.bf16.msra.mxu1 %v9651_v3  ;;  %v9673_v24 = vpack.c.bf16 %v5361_v36, %v5359_v30  ;;  %v5358_v26 = vld [vmem:[#allocation11 + $0x8c0] sm:$0xff]  ;;  %v10852_v46 = vld [vmem:[#allocation2 + $0x70] sm:$0xff]  ;;  %v5365_v9 = vld [vmem:[#allocation11 + $0x8f8] sm:$0xff] }
 0x430   : > { %3541 = vmatprep.mubr.f32.mxu0 %v10848_v44  ;;  %9654 = vmatprep.subr.bf16.mxu1 %v9653_v7  ;;  %v4480_v28 = vld [vmem:[#allocation2 + $0xc8] sm:$0xff]  ;;  %v9675_v34 = vpack.c.bf16 %v5360_v27, %v5358_v26  ;;  %v4479_v33 = vld [vmem:[#allocation2 + $0xc0] sm:$0xff]  ;;  %v5364_v18 = vld [vmem:[#allocation11 + $0x8f0] sm:$0xff] }
 0x431   : > { %v5363_v63 = vld [vmem:[#allocation11 + $0x8e8] sm:$0xff]  ;;  %v5362_v31 = vld [vmem:[#allocation11 + $0x8e0] sm:$0xff]  ;;  %v5369_v3 = vld [vmem:[#allocation11 + $0x918] sm:$0xff] }
 0x432   : > { %3542 = vmatmul.mubr.f32.gmra.mrb[66].mxu0 %v10848_v44  ;;  %4667 = vmatmul.mubr.f32.gmra.mrb[2].mxu1 %v12549_v61  ;;  %v9677_v40 = vpack.c.bf16 %v5365_v9, %v5363_v63  ;;  %v5367_v44 = vld [vmem:[#allocation11 + $0x908] sm:$0xff]  ;;  %v5366_v22 = vld [vmem:[#allocation11 + $0x900] sm:$0xff]  ;;  %v5368_v50 = vld [vmem:[#allocation11 + $0x910] sm:$0xff] }
 0x433   : > { %3547 = vmatprep.mubr.f32.mxu0 %v4468_v41  ;;  %4672 = vmatprep.mubr.f32.mxu1 %v4472_v55  ;;  %v12564_v41 = vld [vmem:[#allocation2 + $0xd8] sm:$0xff]  ;;  %v10853_v7 = vld [vmem:[#allocation2 + $0xa8] sm:$0xff]  ;;  %v12567_v39 = vld [vmem:[#allocation2 + $0xd0] sm:$0xff]  ;;  %v9681_v21 = vpack.c.bf16 %v5369_v3, %v5367_v44 }
 0x434   : > { %9656 = vmatpush1.bf16.msra.mxu1 %v9655_v23  ;;  %v10854_v23 = vld [vmem:[#allocation2 + $0xa0] sm:$0xff]  ;;  %v5371_v52 = vld [vmem:[#allocation11 + $0x928] sm:$0xff]  ;;  %v10855_v29 = vld [vmem:[#allocation2 + $0xd8] sm:$0xff] }
 0x435   : > { %9658 = vmatprep.subr.bf16.mxu1 %v9657_v5  ;;  %v4484_v5 = vld [vmem:[#allocation2 + $0xf8] sm:$0xff]  ;;  %v4483_v32 = vld [vmem:[#allocation2 + $0xf0] sm:$0xff]  ;;  %v5382_v27 = vld [vmem:[#allocation11 + $0x980] sm:$0xff] }
 0x436   : > { %3548 = vmatmul.mubr.f32.gmra.mrb[68].mxu0 %v4467_v45  ;;  %4673 = vmatmul.mubr.f32.gmra.mrb[4].mxu1 %v4471_v11  ;;  %v9679_v45 = vpack.c.bf16 %v5364_v18, %v5362_v31  ;;  %v5373_v6 = vld [vmem:[#allocation11 + $0x938] sm:$0xff]  ;;  %v5375_v56 = vld [vmem:[#allocation11 + $0x948] sm:$0xff]  ;;  %v5376_v51 = vld [vmem:[#allocation11 + $0x950] sm:$0xff] }
 0x437   : > { %3553 = vmatprep.mubr.f32.mxu0 %v10849_v60  ;;  %4678 = vmatprep.mubr.f32.mxu1 %v12552_v43  ;;  %v9685_v14 = vpack.c.bf16 %v5373_v6, %v5371_v52  ;;  %v5377_v25 = vld [vmem:[#allocation11 + $0x958] sm:$0xff]  ;;  %v10856_v53 = vld [vmem:[#allocation2 + $0xd0] sm:$0xff]  ;;  %v5386_v18 = vld [vmem:[#allocation11 + $0x9a0] sm:$0xff] }
 0x438   : > { %9660 = vmatpush1.bf16.msra.mxu1 %v9659_v35  ;;  %v5370_v35 = vld [vmem:[#allocation11 + $0x920] sm:$0xff]  ;;  %v5381_v0 = vld [vmem:[#allocation11 + $0x978] sm:$0xff]  ;;  %v5380_v10 = vld [vmem:[#allocation11 + $0x970] sm:$0xff] }
 0x439   : > { %9662 = vmatprep.subr.bf16.mxu1 %v9661_v20  ;;  %v12570_v20 = vld [vmem:[#allocation2 + $0x108] sm:$0xff]  ;;  %v12573_v60 = vld [vmem:[#allocation2 + $0x100] sm:$0xff]  ;;  %v12576_v13 = vld [vmem:[#allocation2 + $0x138] sm:$0xff] }
 0x43a   : > { %3554 = vmatmul.mubr.f32.gmra.mrb[70].mxu0 %v10850_v37  ;;  %4679 = vmatmul.mubr.f32.gmra.mrb[6].mxu1 %v12555_v2  ;;  %v4488_v37 = vld [vmem:[#allocation2 + $0x128] sm:$0xff]  ;;  %v5385_v36 = vld [vmem:[#allocation11 + $0x998] sm:$0xff]  ;;  %v5388_v44 = vld [vmem:[#allocation11 + $0x9b0] sm:$0xff] }
 0x43b   : > { %3559 = vmatprep.mubr.f32.mxu0 %v4472_v55  ;;  %4684 = vmatprep.mubr.f32.mxu1 %v4476_v48  ;;  %v9683_v55 = vpack.c.bf16 %v5368_v50, %v5366_v22  ;;  %v5383_v30 = vld [vmem:[#allocation11 + $0x988] sm:$0xff]  ;;  %v4492_v63 = vld [vmem:[#allocation2 + $0x158] sm:$0xff]  ;;  %v9703_v22 = vpack.c.bf16 %v5388_v44, %v5386_v18  ;;  %v12585_v50 = vld [vmem:[#allocation2 + $0x160] sm:$0xff] }
 0x43c   : > { %9664 = vmatpush1.bf16.msra.mxu1 %v9663_v1  ;;  %v9689_v1 = vpack.c.bf16 %v5377_v25, %v5375_v56  ;;  %v9697_v26 = vpack.c.bf16 %v5385_v36, %v5383_v30  ;;  %v5387_v9 = vld [vmem:[#allocation11 + $0x9a8] sm:$0xff]  ;;  %v5392_v52 = vld [vmem:[#allocation11 + $0x9d0] sm:$0xff]  ;;  %v5394_v25 = vld [vmem:[#allocation11 + $0x9e0] sm:$0xff] }
 0x43d   : > { %9666 = vmatprep.subr.bf16.mxu1 %v9665_v19  ;;  %v5374_v19 = vld [vmem:[#allocation11 + $0x940] sm:$0xff]  ;;  %v10860_v6 = vld [vmem:[#allocation2 + $0x130] sm:$0xff]  ;;  %v12612_v44 = vld [vmem:[#allocation2 + $0x258] sm:$0xff] }
 0x43e   : > { %3560 = vmatmul.mubr.f32.gmra.mrb[72].mxu0 %v4471_v11  ;;  %4685 = vmatmul.mubr.f32.gmra.mrb[8].mxu1 %v4475_v12  ;;  %v5372_v11 = vld [vmem:[#allocation11 + $0x930] sm:$0xff]  ;;  %v9691_v8 = vpack.c.bf16 %v5376_v51, %v5374_v19  ;;  %v12582_v3 = vld [vmem:[#allocation2 + $0x168] sm:$0xff]  ;;  %v6075_v19 = vld [vmem:[#allocation11 + $0xa18] sm:$0xff] }
 0x43f   : > { %3565 = vmatprep.mubr.f32.mxu0 %v10851_v47  ;;  %4690 = vmatprep.mubr.f32.mxu1 %v12558_v16  ;;  %v9687_v38 = vpack.c.bf16 %v5372_v11, %v5370_v35  ;;  %v10857_v47 = vld [vmem:[#allocation2 + $0x108] sm:$0xff]  ;;  %v4495_v11 = vld [vmem:[#allocation2 + $0x180] sm:$0xff]  ;;  %v10864_v30 = vld [vmem:[#allocation2 + $0x190] sm:$0xff] }
 0x440   : > { %9668 = vmatpush1.bf16.msra.mxu1 %v9667_v42  ;;  %v4487_v42 = vld [vmem:[#allocation2 + $0x120] sm:$0xff]  ;;  %v10861_v51 = vld [vmem:[#allocation2 + $0x168] sm:$0xff] }
 0x441   : > { %9670 = vmatprep.subr.bf16.mxu1 %v9669_v4  ;;  %v5378_v4 = vld [vmem:[#allocation11 + $0x960] sm:$0xff] }
 0x442   : > { %3566 = vmatmul.mubr.f32.gmra.mrb[74].mxu0 %v10852_v46  ;;  %4691 = vmatmul.mubr.f32.gmra.mrb[10].mxu1 %v12561_v15  ;;  %v5384_v46 = vld [vmem:[#allocation11 + $0x990] sm:$0xff]  ;;  %v4504_v36 = vld [vmem:[#allocation2 + $0x1e8] sm:$0xff]  ;;  %v4511_v18 = vld [vmem:[#allocation2 + $0x240] sm:$0xff] }
 0x443   : > { %3571 = vmatprep.mubr.f32.mxu0 %v4476_v48  ;;  %4696 = vmatprep.mubr.f32.mxu1 %v4480_v28  ;;  %v5379_v48 = vld [vmem:[#allocation11 + $0x968] sm:$0xff] }
 0x444   : > { %9672 = vmatpush1.bf16.msra.mxu1 %v9671_v17  ;;  %v9695_v17 = vpack.c.bf16 %v5380_v10, %v5378_v4  ;;  %v10863_v4 = vld [vmem:[#allocation2 + $0x198] sm:$0xff]  ;;  %v12597_v10 = vld [vmem:[#allocation2 + $0x1c0] sm:$0xff] }
 0x445   : > { %9674 = vmatprep.subr.bf16.mxu1 %v9673_v24  ;;  %v12579_v24 = vld [vmem:[#allocation2 + $0x130] sm:$0xff] }
 0x446   : > { %3572 = vmatmul.mubr.f32.gmra.mrb[76].mxu0 %v4475_v12  ;;  %4697 = vmatmul.mubr.f32.gmra.mrb[12].mxu1 %v4479_v33  ;;  %v9693_v12 = vpack.c.bf16 %v5381_v0, %v5379_v48  ;;  %v10862_v0 = vld [vmem:[#allocation2 + $0x160] sm:$0xff] }
 0x447   : > { %3577 = vmatprep.mubr.f32.mxu0 %v10853_v7  ;;  %4702 = vmatprep.mubr.f32.mxu1 %v12564_v41  ;;  %v5391_v7 = vld [vmem:[#allocation11 + $0x9c8] sm:$0xff] }
 0x448   : > { %9676 = vmatpush1.bf16.msra.mxu1 %v9675_v34  ;;  %v5389_v34 = vld [vmem:[#allocation11 + $0x9b8] sm:$0xff] }
 0x449   : > { %9678 = vmatprep.subr.bf16.mxu1 %v9677_v40  ;;  %v4491_v40 = vld [vmem:[#allocation2 + $0x150] sm:$0xff]  ;;  %v9701_v31 = vpack.c.bf16 %v5389_v34, %v5387_v9  ;;  %v12606_v9 = vld [vmem:[#allocation2 + $0x228] sm:$0xff]  ;;  %v10867_v34 = vld [vmem:[#allocation2 + $0x1f8] sm:$0xff] }
 0x44a   : > { %3578 = vmatmul.mubr.f32.gmra.mrb[78].mxu0 %v10854_v23  ;;  %4703 = vmatmul.mubr.f32.gmra.mrb[14].mxu1 %v12567_v39 }
 0x44b   : > { %3583 = vmatprep.mubr.f32.mxu0 %v4480_v28  ;;  %4708 = vmatprep.mubr.f32.mxu1 %v4484_v5  ;;  %v10858_v28 = vld [vmem:[#allocation2 + $0x100] sm:$0xff] }
 0x44c   : > { %9680 = vmatpush1.bf16.msra.mxu1 %v9679_v45  ;;  %v5393_v45 = vld [vmem:[#allocation11 + $0x9d8] sm:$0xff] }
 0x44d   : > { %9682 = vmatprep.subr.bf16.mxu1 %v9681_v21  ;;  %v10859_v21 = vld [vmem:[#allocation2 + $0x138] sm:$0xff]  ;;  %v9705_v23 = vpack.c.bf16 %v5393_v45, %v5391_v7  ;;  %v10869_v7 = vld [vmem:[#allocation2 + $0x228] sm:$0xff]  ;;  %v12615_v45 = vld [vmem:[#allocation2 + $0x250] sm:$0xff] }
 0x44e   : > { %3584 = vmatmul.mubr.f32.gmra.mrb[80].mxu0 %v4479_v33  ;;  %4709 = vmatmul.mubr.f32.gmra.mrb[16].mxu1 %v4483_v32  ;;  %v9699_v33 = vpack.c.bf16 %v5384_v46, %v5382_v27  ;;  %v12603_v27 = vld [vmem:[#allocation2 + $0x1f0] sm:$0xff]  ;;  %v10866_v46 = vld [vmem:[#allocation2 + $0x1c0] sm:$0xff] }
 0x44f   : > { %3589 = vmatprep.mubr.f32.mxu0 %v10855_v29  ;;  %4714 = vmatprep.mubr.f32.mxu1 %v12570_v20  ;;  %v5396_v29 = vld [vmem:[#allocation11 + $0x9f0] sm:$0xff] }
 0x450   : > { %9684 = vmatpush1.bf16.msra.mxu1 %v9683_v55  ;;  %v4496_v55 = vld [vmem:[#allocation2 + $0x188] sm:$0xff] }
 0x451   : > { %9686 = vmatprep.subr.bf16.mxu1 %v9685_v14  ;;  %v5397_v14 = vld [vmem:[#allocation11 + $0x9f8] sm:$0xff] }
 0x452   : > { %3590 = vmatmul.mubr.f32.gmra.mrb[82].mxu0 %v10856_v53  ;;  %4715 = vmatmul.mubr.f32.gmra.mrb[18].mxu1 %v12573_v60  ;;  %v9711_v53 = vpack.c.bf16 %v5396_v29, %v5394_v25  ;;  %v10874_v25 = vld [vmem:[#allocation2 + $0x280] sm:$0xff]  ;;  %v4524_v29 = vld [vmem:[#allocation2 + $0x2d8] sm:$0xff] }
 0x453   : > { %3595 = vmatprep.mubr.f32.mxu0 %v4484_v5  ;;  %4720 = vmatprep.mubr.f32.mxu1 %v4488_v37  ;;  %v5390_v5 = vld [vmem:[#allocation11 + $0x9c0] sm:$0xff] }
 0x454   : > { %9688 = vmatpush1.bf16.msra.mxu1 %v9687_v38  ;;  %v9707_v35 = vpack.c.bf16 %v5392_v52, %v5390_v5  ;;  %v12588_v38 = vld [vmem:[#allocation2 + $0x198] sm:$0xff]  ;;  %v12618_v5 = vld [vmem:[#allocation2 + $0x288] sm:$0xff] }
 0x455   : > { %9690 = vmatprep.subr.bf16.mxu1 %v9689_v1  ;;  %v6073_v1 = vld [vmem:[#allocation11 + $0xa08] sm:$0xff]  ;;  %v10871_v52 = vld [vmem:[#allocation2 + $0x258] sm:$0xff] }
 0x456   : > { %3596 = vmatmul.mubr.f32.gmra.mrb[84].mxu0 %v4483_v32  ;;  %4721 = vmatmul.mubr.f32.gmra.mrb[20].mxu1 %v4487_v42  ;;  %v5395_v32 = vld [vmem:[#allocation11 + $0x9e8] sm:$0xff]  ;;  %v9713_v48 = vpack.c.bf16 %v6075_v19, %v6073_v1 }
 0x457   : > { %3601 = vmatprep.mubr.f32.mxu0 %v10857_v47  ;;  %4726 = vmatprep.mubr.f32.mxu1 %v12576_v13  ;;  %v9709_v56 = vpack.c.bf16 %v5397_v14, %v5395_v32  ;;  %v4503_v47 = vld [vmem:[#allocation2 + $0x1e0] sm:$0xff]  ;;  %v4520_v32 = vld [vmem:[#allocation2 + $0x2a8] sm:$0xff]  ;;  %v4523_v1 = vld [vmem:[#allocation2 + $0x2d0] sm:$0xff] }
 0x458   : > { %9692 = vmatpush1.bf16.msra.mxu1 %v9691_v8  ;;  %v4500_v8 = vld [vmem:[#allocation2 + $0x1b8] sm:$0xff]  ;;  %v4519_v14 = vld [vmem:[#allocation2 + $0x2a0] sm:$0xff]  ;;  %v12630_v19 = vld [vmem:[#allocation2 + $0x2e8] sm:$0xff] }
 0x459   : > { %9694 = vmatprep.subr.bf16.mxu1 %v9693_v12  ;;  %v12594_v12 = vld [vmem:[#allocation2 + $0x1c8] sm:$0xff] }
 0x45a   : > { %3602 = vmatmul.mubr.f32.gmra.mrb[86].mxu0 %v10858_v28  ;;  %4727 = vmatmul.mubr.f32.gmra.mrb[22].mxu1 %v12579_v24  ;;  %v4508_v28 = vld [vmem:[#allocation2 + $0x218] sm:$0xff] }
 0x45b   : > { %3607 = vmatprep.mubr.f32.mxu0 %v4488_v37  ;;  %4732 = vmatprep.mubr.f32.mxu1 %v4492_v63  ;;  %v12591_v37 = vld [vmem:[#allocation2 + $0x190] sm:$0xff] }
 0x45c   : > { %9696 = vmatpush1.bf16.msra.mxu1 %v9695_v17  ;;  %v12600_v17 = vld [vmem:[#allocation2 + $0x1f8] sm:$0xff] }
 0x45d   : > { %9698 = vmatprep.subr.bf16.mxu1 %v9697_v26  ;;  %v10865_v26 = vld [vmem:[#allocation2 + $0x1c8] sm:$0xff] }
 0x45e   : > { %3608 = vmatmul.mubr.f32.gmra.mrb[88].mxu0 %v4487_v42  ;;  %4733 = vmatmul.mubr.f32.gmra.mrb[24].mxu1 %v4491_v40  ;;  %v4499_v42 = vld [vmem:[#allocation2 + $0x1b0] sm:$0xff] }
 0x45f   : > { %3613 = vmatprep.mubr.f32.mxu0 %v10859_v21  ;;  %4738 = vmatprep.mubr.f32.mxu1 %v12582_v3  ;;  %v10870_v21 = vld [vmem:[#allocation2 + $0x220] sm:$0xff] }
 0x460   : > { %9700 = vmatpush1.bf16.msra.mxu1 %v9699_v33  ;;  %v12609_v33 = vld [vmem:[#allocation2 + $0x220] sm:$0xff] }
 0x461   : > { %9702 = vmatprep.subr.bf16.mxu1 %v9701_v31  ;;  %v4512_v31 = vld [vmem:[#allocation2 + $0x248] sm:$0xff] }
 0x462   : > { %3614 = vmatmul.mubr.f32.gmra.mrb[90].mxu0 %v10860_v6  ;;  %4739 = vmatmul.mubr.f32.gmra.mrb[26].mxu1 %v12585_v50  ;;  %v12621_v6 = vld [vmem:[#allocation2 + $0x280] sm:$0xff] }
 0x463   : > { %3619 = vmatprep.mubr.f32.mxu0 %v4492_v63  ;;  %4744 = vmatprep.mubr.f32.mxu1 %v4496_v55  ;;  %v4507_v63 = vld [vmem:[#allocation2 + $0x210] sm:$0xff] }
 0x464   : > { %9704 = vmatpush1.bf16.msra.mxu1 %v9703_v22  ;;  %v4516_v22 = vld [vmem:[#allocation2 + $0x278] sm:$0xff] }
 0x465   : > { %9706 = vmatprep.subr.bf16.mxu1 %v9705_v23  ;;  %v4515_v23 = vld [vmem:[#allocation2 + $0x270] sm:$0xff] }
 0x466   : > { %3620 = vmatmul.mubr.f32.gmra.mrb[92].mxu0 %v4491_v40  ;;  %4745 = vmatmul.mubr.f32.gmra.mrb[28].mxu1 %v4495_v11  ;;  %v10868_v40 = vld [vmem:[#allocation2 + $0x1f0] sm:$0xff] }
 0x467   : > { %3625 = vmatprep.mubr.f32.mxu0 %v10861_v51  ;;  %4750 = vmatprep.mubr.f32.mxu1 %v12588_v38  ;;  %v10875_v51 = vld [vmem:[#allocation2 + $0x2b8] sm:$0xff] }
 0x468   : > { %9708 = vmatpush1.bf16.msra.mxu1 %v9707_v35  ;;  %v12624_v35 = vld [vmem:[#allocation2 + $0x2b8] sm:$0xff] }
 0x469   : > { %9710 = vmatprep.subr.bf16.mxu1 %v9709_v56  ;;  %v12627_v56 = vld [vmem:[#allocation2 + $0x2b0] sm:$0xff] }
 0x46a   : > { %3626 = vmatmul.mubr.f32.gmra.mrb[94].mxu0 %v10862_v0  ;;  %4751 = vmatmul.mubr.f32.gmra.mrb[30].mxu1 %v12591_v37  ;;  %v4528_v0 = vld [vmem:[#allocation2 + $0x308] sm:$0xff] }
 0x46b   : > { %3631 = vmatprep.mubr.f32.mxu0 %v4496_v55  ;;  %4756 = vmatprep.mubr.f32.mxu1 %v4500_v8  ;;  %v10872_v55 = vld [vmem:[#allocation2 + $0x250] sm:$0xff] }
 0x46c   : > { %9712 = vmatpush1.bf16.msra.mxu1 %v9711_v53  ;;  %v12633_v53 = vld [vmem:[#allocation2 + $0x2e0] sm:$0xff] }
 0x46d   : > { %9714 = vmatprep.subr.bf16.mxu1 %v9713_v48  ;;  %v10876_v48 = vld [vmem:[#allocation2 + $0x2b0] sm:$0xff] }
 0x46e   : > { %3632 = vmatmul.mubr.f32.gmra.mrb[96].mxu0 %v4495_v11  ;;  %4757 = vmatmul.mubr.f32.gmra.mrb[32].mxu1 %v4499_v42  ;;  %v10873_v11 = vld [vmem:[#allocation2 + $0x288] sm:$0xff] }
 0x46f   : > { %3637 = vmatprep.mubr.f32.mxu0 %v10863_v4  ;;  %4762 = vmatprep.mubr.f32.mxu1 %v12594_v12  ;;  %v5113_v4 = vrot.slane %v12546_v54, 1 }
 0x472   : > { %3638 = vmatmul.mubr.f32.gmra.mrb[98].mxu0 %v10864_v30  ;;  %4763 = vmatmul.mubr.f32.gmra.mrb[34].mxu1 %v12597_v10  ;;  %v4922_v30 = vld [vmem:[#allocation2 + $0x58] sm:$0x1] }
 0x473   : > { %3643 = vmatprep.mubr.f32.mxu0 %v4500_v8  ;;  %4768 = vmatprep.mubr.f32.mxu1 %v4504_v36  ;;  %v4527_v8 = vld [vmem:[#allocation2 + $0x300] sm:$0xff] }
 0x476   : > { %3644 = vmatmul.mubr.f32.gmra.mrb[100].mxu0 %v4499_v42  ;;  %4769 = vmatmul.mubr.f32.gmra.mrb[36].mxu1 %v4503_v47  ;;  %v4918_v42 = vld [vmem:[#allocation2 + $0x38] sm:$0xfe] }
 0x477   : > { %3649 = vmatprep.mubr.f32.mxu0 %v10865_v26  ;;  %4774 = vmatprep.mubr.f32.mxu1 %v12600_v17  ;;  %v6072_v26 = vld [vmem:[#allocation11 + $0xa00] sm:$0xff] }
 0x47a   : > { %3650 = vmatmul.mubr.f32.gmra.mrb[102].mxu0 %v10866_v46  ;;  %4775 = vmatmul.mubr.f32.gmra.mrb[38].mxu1 %v12603_v27  ;;  %v6074_v46 = vld [vmem:[#allocation11 + $0xa10] sm:$0xff] }
 0x47b   : > { %3655 = vmatprep.mubr.f32.mxu0 %v4504_v36  ;;  %4780 = vmatprep.mubr.f32.mxu1 %v4508_v28  ;;  %v5112_v36 = vrot.slane %v4918_v42, 1  ;;  %v5120_v42 = vrot.slane %v12555_v2, 1  ;;  %v6089_v2 = vld [vmem:[#allocation11 + $0xa88] sm:$0xff] }
 0x47d   : > { %v5114_v54 = vsel %vm2924_vm1, %v5112_v36, %v5113_v4  ;;  %v6087_v36 = vld [vmem:[#allocation11 + $0xa78] sm:$0xff] }
 0x47e   : > { %3656 = vmatmul.mubr.f32.gmra.mrb[104].mxu0 %v4503_v47  ;;  %4781 = vmatmul.mubr.f32.gmra.mrb[40].mxu1 %v4507_v63  ;;  %v4917_v47 = vld [vmem:[#allocation2 + $0x30] sm:$0xfe] }
 0x47f   : > { %3661 = vmatprep.mubr.f32.mxu0 %v10867_v34  ;;  %4786 = vmatprep.mubr.f32.mxu1 %v12606_v9  ;;  %v6077_v34 = vld [vmem:[#allocation11 + $0xa28] sm:$0xff] }
 0x482   : > { %3662 = vmatmul.mubr.f32.gmra.mrb[106].mxu0 %v10868_v40  ;;  %4787 = vmatmul.mubr.f32.gmra.mrb[42].mxu1 %v12609_v33  ;;  %v6079_v40 = vld [vmem:[#allocation11 + $0xa38] sm:$0xff] }
 0x483   : > { %3667 = vmatprep.mubr.f32.mxu0 %v4508_v28  ;;  %4792 = vmatprep.mubr.f32.mxu1 %v4512_v31  ;;  %v12639_v28 = vld [vmem:[#allocation2 + $0x310] sm:$0xff] }
 0x486   : > { %3668 = vmatmul.mubr.f32.gmra.mrb[108].mxu0 %v4507_v63  ;;  %4793 = vmatmul.mubr.f32.gmra.mrb[44].mxu1 %v4511_v18  ;;  %v5110_v63 = vrot.slane %v12549_v61, 1  ;;  %v4924_v61 = vld [vmem:[#allocation2 + $0x68] sm:$0xfe] }
 0x487   : > { %3673 = vmatprep.mubr.f32.mxu0 %v10869_v7  ;;  %4798 = vmatprep.mubr.f32.mxu1 %v12612_v44  ;;  %v9717_v7 = vpack.c.bf16 %v6079_v40, %v6077_v34  ;;  %v6084_v40 = vld [vmem:[#allocation11 + $0xa60] sm:$0xff] }
 0x48a   : > { %3674 = vmatmul.mubr.f32.gmra.mrb[110].mxu0 %v10870_v21  ;;  %4799 = vmatmul.mubr.f32.gmra.mrb[46].mxu1 %v12615_v45  ;;  %v6076_v21 = vld [vmem:[#allocation11 + $0xa20] sm:$0xff] }
 0x48b   : > { %3679 = vmatprep.mubr.f32.mxu0 %v4512_v31  ;;  %4804 = vmatprep.mubr.f32.mxu1 %v4516_v22  ;;  %v4921_v31 = vld [vmem:[#allocation2 + $0x50] sm:$0x1] }
 0x48e   : > { %3680 = vmatmul.mubr.f32.gmra.mrb[112].mxu0 %v4511_v18  ;;  %4805 = vmatmul.mubr.f32.gmra.mrb[48].mxu1 %v4515_v23  ;;  %v9715_v18 = vpack.c.bf16 %v6074_v46, %v6072_v26 }
 0x48f   : > { %3685 = vmatprep.mubr.f32.mxu0 %v10871_v52  ;;  %4810 = vmatprep.mubr.f32.mxu1 %v12618_v5  ;;  %v5115_v52 = vrot.slane %v4921_v31, 1  ;;  %v4930_v31 = vld [vmem:[#allocation2 + $0x98] sm:$0xfe] }
 0x492   : > { %3686 = vmatmul.mubr.f32.gmra.mrb[114].mxu0 %v10872_v55  ;;  %4811 = vmatmul.mubr.f32.gmra.mrb[50].mxu1 %v12621_v6  ;;  %v6081_v55 = vld [vmem:[#allocation11 + $0xa48] sm:$0xff] }
 0x493   : > { %3691 = vmatprep.mubr.f32.mxu0 %v4516_v22  ;;  %4816 = vmatprep.mubr.f32.mxu1 %v4520_v32  ;;  %v6078_v22 = vld [vmem:[#allocation11 + $0xa30] sm:$0xff] }
 0x496   : > { %3692 = vmatmul.mubr.f32.gmra.mrb[116].mxu0 %v4515_v23  ;;  %4817 = vmatmul.mubr.f32.gmra.mrb[52].mxu1 %v4519_v14 }
 0x497   : > { %3697 = vmatprep.mubr.f32.mxu0 %v10873_v11  ;;  %4822 = vmatprep.mubr.f32.mxu1 %v12624_v35  ;;  %v4928_v11 = vld [vmem:[#allocation2 + $0x88] sm:$0x1] }
 0x49a   : > { %3698 = vmatmul.mubr.f32.gmra.mrb[118].mxu0 %v10874_v25  ;;  %4823 = vmatmul.mubr.f32.gmra.mrb[54].mxu1 %v12627_v56  ;;  %v9719_v25 = vpack.c.bf16 %v6078_v22, %v6076_v21  ;;  %v4934_v21 = vld [vmem:[#allocation2 + $0xb8] sm:$0x1] }
 0x49b   : > { %3703 = vmatprep.mubr.f32.mxu0 %v4520_v32  ;;  %4828 = vmatprep.mubr.f32.mxu1 %v4524_v29  ;;  %v6083_v32 = vld [vmem:[#allocation11 + $0xa58] sm:$0xff] }
 0x49e   : > { %3704 = vmatmul.mubr.f32.gmra.mrb[120].mxu0 %v4519_v14  ;;  %4829 = vmatmul.mubr.f32.gmra.mrb[56].mxu1 %v4523_v1  ;;  %v5123_v14 = vrot.slane %v12552_v43, 1  ;;  %v5127_v43 = vrot.slane %v4928_v11, 1  ;;  %v5130_v11 = vrot.slane %v12561_v15, 1  ;;  %v6097_v15 = vld [vmem:[#allocation11 + $0xac8] sm:$0xff] }
 0x49f   : > { %3709 = vmatprep.mubr.f32.mxu0 %v10875_v51  ;;  %4834 = vmatprep.mubr.f32.mxu1 %v12630_v19  ;;  %v9721_v51 = vpack.c.bf16 %v6083_v32, %v6081_v55  ;;  %v6088_v55 = vld [vmem:[#allocation11 + $0xa80] sm:$0xff]  ;;  %v6090_v32 = vld [vmem:[#allocation11 + $0xa90] sm:$0xff] }
 0x4a2   : > { %3710 = vmatmul.mubr.f32.gmra.mrb[122].mxu0 %v10876_v48  ;;  %4835 = vmatmul.mubr.f32.gmra.mrb[58].mxu1 %v12633_v53  ;;  %v6080_v48 = vld [vmem:[#allocation11 + $0xa40] sm:$0xff] }
 0x4a3   : > { %3715 = vmatprep.mubr.f32.mxu0 %v4524_v29  ;;  %4840 = vmatprep.mubr.f32.mxu1 %v4528_v0  ;;  %v5122_v29 = vrot.slane %v4924_v61, 1  ;;  %v6082_v0 = vld [vmem:[#allocation11 + $0xa50] sm:$0xff] }
 0x4a4   : > { %v9723_v46 = vpack.c.bf16 %v6082_v0, %v6080_v48  ;;  %v9731_v48 = vpack.c.bf16 %v6090_v32, %v6088_v55  ;;  %v6100_v55 = vld [vmem:[#allocation11 + $0xae0] sm:$0xff]  ;;  %v6102_v32 = vld [vmem:[#allocation11 + $0xaf0] sm:$0xff] }
 0x4a6   : > { %3716 = vmatmul.mubr.f32.gmra.mrb[124].mxu0 %v4523_v1  ;;  %4841 = vmatmul.mubr.f32.gmra.mrb[60].mxu1 %v4527_v8  ;;  %v4923_v1 = vld [vmem:[#allocation2 + $0x60] sm:$0xfe]  ;;  %v5116_v8 = vsel %vm2924_vm1, %v5110_v63, %v5115_v52  ;;  %v4929_v52 = vld [vmem:[#allocation2 + $0x90] sm:$0xfe] }
 0x4a7   : > { %3721 = vmatprep.mubr.f32.mxu0 %v12483_v58  ;;  %4846 = vmatprep.mubr.f32.mxu1 %v12523_v49  ;;  %v5117_v58 = vrot.slane %v4922_v30, 1  ;;  %v5109_v49 = vrot.slane %v4917_v47, 1  ;;  %v6085_v30 = vld [vmem:[#allocation11 + $0xa68] sm:$0xff]  ;;  %v4927_v47 = vld [vmem:[#allocation2 + $0x80] sm:$0x1]  ;;  %v5119_v26 = vrot.slane %v4923_v1, 1 }
 0x4a8   : > { %v9725_v34 = vpack.c.bf16 %v6087_v36, %v6085_v30  ;;  %v4933_v1 = vld [vmem:[#allocation2 + $0xb0] sm:$0x1]  ;;  %v6094_v30 = vld [vmem:[#allocation11 + $0xab0] sm:$0xff] }
 0x4a9   : > { %v5111_v23 = vsel %vm2924_vm1, %v5109_v49, %v5110_v63  ;;  %v5125_v63 = vrot.slane %v4927_v47, 1  ;;  %v6091_v49 = vld [vmem:[#allocation11 + $0xa98] sm:$0xff] }
 0x4aa   : > { %3722 = vmatmul.mubr.f32.gmra.mrb[126].mxu0 %v12472_v57  ;;  %4847 = vmatmul.mubr.f32.gmra.mrb[62].mxu1 %v12639_v28  ;;  %v5118_v57 = vsel %vm2924_vm1, %v5113_v4, %v5117_v58  ;;  %v5124_v4 = vsel %vm2924_vm1, %v5122_v29, %v5123_v14  ;;  %v5121_v58 = vsel %vm2924_vm1, %v5119_v26, %v5120_v42  ;;  %v6095_v29 = vld [vmem:[#allocation11 + $0xab8] sm:$0xff]  ;;  %v5143_v26 = vrot.slane %v12564_v41, 1 }
 0x4ab   : > { %5462 = vmatprep.mubr.f32.mxu1 %v5114_v54  ;;  %v6086_v54 = vld [vmem:[#allocation11 + $0xa70] sm:$0xff]  ;;  %v9729_v61 = vpack.c.bf16 %v6091_v49, %v6089_v2  ;;  %v5140_v49 = vrot.slane %v12567_v39, 1  ;;  %v6105_v39 = vld [vmem:[#allocation11 + $0xb08] sm:$0xff] }
 0x4ac   : > { %v9727_v22 = vpack.c.bf16 %v6086_v54, %v6084_v40  ;;  %v4935_v54 = vld [vmem:[#allocation2 + $0xc0] sm:$0xfe] }
 0x4ae   : > { %5463 = vmatmul.mubr.f32.vlgmr.msra.gmra.mrb[0].mxu1 %v5111_v23  ;;  %v5132_v23 = vrot.slane %v4930_v31, 1  ;;  %v6098_v31 = vld [vmem:[#allocation11 + $0xad0] sm:$0xff] }
 0x4af   : > { %5468 = vmatprep.mubr.f32.mxu1 %v5118_v57  ;;  %9716 = vmatpush1.bf16.msra.mxu1 %v9715_v18  ;;  %v5128_v18 = vsel %vm2924_vm1, %v5123_v14, %v5127_v43  ;;  %v5126_v57 = vsel %vm2924_vm1, %v5120_v42, %v5125_v63  ;;  %v5135_v42 = vrot.slane %v4933_v1, 1  ;;  %v6099_v43 = vld [vmem:[#allocation11 + $0xad8] sm:$0xff]  ;;  %v6096_v63 = vld [vmem:[#allocation11 + $0xac0] sm:$0xff]  ;;  %v4946_v1 = vld [vmem:[#allocation2 + $0x118] sm:$0x1] }
 0x4b0   : > { %9718 = vmatprep.subr.bf16.mxu1 %v9717_v7  ;;  %v5133_v7 = vrot.slane %v12558_v16, 1  ;;  %v5137_v16 = vrot.slane %v4934_v21, 1  ;;  %v6103_v21 = vld [vmem:[#allocation11 + $0xaf8] sm:$0xff] }
 0x4b1   : > { %v5136_v2 = vsel %vm2924_vm1, %v5130_v11, %v5135_v42 }
 0x4b2   : > { %5469 = vmatmul.mubr.f32.gmra.mrb[2].mxu1 %v5116_v8  ;;  %v5134_v14 = vsel %vm2924_vm1, %v5132_v23, %v5133_v7  ;;  %v6092_v8 = vld [vmem:[#allocation11 + $0xaa0] sm:$0xff]  ;;  %v5138_v47 = vsel %vm2924_vm1, %v5133_v7, %v5137_v16  ;;  %v5139_v23 = vrot.slane %v4935_v54, 1  ;;  %v5153_v16 = vrot.slane %v12570_v20, 1 }
 0x4b3   : > { %5474 = vmatprep.mubr.f32.mxu1 %v5124_v4  ;;  %9720 = vmatpush1.bf16.msra.mxu1 %v9719_v25  ;;  %v6093_v25 = vld [vmem:[#allocation11 + $0xaa8] sm:$0xff]  ;;  %v5157_v20 = vrot.slane %v4946_v1, 1  ;;  %v6108_v54 = vld [vmem:[#allocation11 + $0xb20] sm:$0xff] }
 0x4b4   : > { %9722 = vmatprep.subr.bf16.mxu1 %v9721_v51  ;;  %v5129_v51 = vrot.slane %v4929_v52, 1  ;;  %v9733_v0 = vpack.c.bf16 %v6095_v29, %v6093_v25  ;;  %v4936_v4 = vld [vmem:[#allocation2 + $0xc8] sm:$0xfe]  ;;  %v9739_v52 = vpack.c.bf16 %v6098_v31, %v6096_v63  ;;  %v4942_v25 = vld [vmem:[#allocation2 + $0xf8] sm:$0xfe] }
 0x4b5   : > { %v5142_v40 = vrot.slane %v4936_v4, 1  ;;  %v6107_v29 = vld [vmem:[#allocation11 + $0xb18] sm:$0xff]  ;;  %v5150_v4 = vrot.slane %v12573_v60, 1  ;;  %v6113_v60 = vld [vmem:[#allocation11 + $0xb48] sm:$0xff] }
 0x4b6   : > { %5475 = vmatmul.mubr.f32.gmra.mrb[4].mxu1 %v5121_v58  ;;  %v5131_v36 = vsel %vm2924_vm1, %v5129_v51, %v5130_v11  ;;  %v9737_v58 = vpack.c.bf16 %v6099_v43, %v6097_v15  ;;  %v9743_v51 = vpack.c.bf16 %v6102_v32, %v6100_v55  ;;  %v6109_v15 = vld [vmem:[#allocation11 + $0xb28] sm:$0xff]  ;;  %v6111_v43 = vld [vmem:[#allocation11 + $0xb38] sm:$0xff]  ;;  %v6114_v55 = vld [vmem:[#allocation11 + $0xb50] sm:$0xff] }
 0x4b7   : > { %5480 = vmatprep.mubr.f32.mxu1 %v5128_v18  ;;  %9724 = vmatpush1.bf16.msra.mxu1 %v9723_v46  ;;  %v4940_v46 = vld [vmem:[#allocation2 + $0xe8] sm:$0x1]  ;;  %v6101_v18 = vld [vmem:[#allocation11 + $0xae8] sm:$0xff]  ;;  %v5144_v7 = vsel %vm2924_vm1, %v5142_v40, %v5143_v26  ;;  %v9749_v40 = vpack.c.bf16 %v6111_v43, %v6109_v15  ;;  %v4958_v15 = vld [vmem:[#allocation2 + $0x178] sm:$0x1] }
 0x4b8   : > { %9726 = vmatprep.subr.bf16.mxu1 %v9725_v34  ;;  %v9735_v34 = vpack.c.bf16 %v6094_v30, %v6092_v8  ;;  %v5147_v41 = vrot.slane %v4940_v46, 1  ;;  %v9745_v8 = vpack.c.bf16 %v6107_v29, %v6105_v39  ;;  %v6104_v30 = vld [vmem:[#allocation11 + $0xb00] sm:$0xff]  ;;  %v4951_v29 = vld [vmem:[#allocation2 + $0x140] sm:$0x1] }
 0x4ba   : > { %5481 = vmatmul.mubr.f32.gmra.mrb[6].mxu1 %v5126_v57  ;;  %v5141_v57 = vsel %vm2924_vm1, %v5139_v23, %v5140_v49  ;;  %v4947_v23 = vld [vmem:[#allocation2 + $0x120] sm:$0xfe] }
 0x4bb   : > { %5486 = vmatprep.mubr.f32.mxu1 %v5134_v14  ;;  %9728 = vmatpush1.bf16.msra.mxu1 %v9727_v22  ;;  %v4939_v22 = vld [vmem:[#allocation2 + $0xe0] sm:$0x1]  ;;  %v5148_v14 = vsel %vm2924_vm1, %v5143_v26, %v5147_v41  ;;  %v4945_v26 = vld [vmem:[#allocation2 + $0x110] sm:$0x1] }
 0x4bc   : > { %9730 = vmatprep.subr.bf16.mxu1 %v9729_v61  ;;  %v9741_v61 = vpack.c.bf16 %v6103_v21, %v6101_v18  ;;  %v5145_v11 = vrot.slane %v4939_v22, 1  ;;  %v5155_v31 = vrot.slane %v4945_v26, 1  ;;  %v5158_v18 = vsel %vm2924_vm1, %v5153_v16, %v5157_v20  ;;  %v4953_v20 = vld [vmem:[#allocation2 + $0x150] sm:$0xfe] }
 0x4bd   : > { %v5163_v21 = vrot.slane %v12576_v13, 1 }
 0x4be   : > { %5487 = vmatmul.mubr.f32.gmra.mrb[8].mxu1 %v5131_v36  ;;  %v6106_v36 = vld [vmem:[#allocation11 + $0xb10] sm:$0xff]  ;;  %v5146_v42 = vsel %vm2924_vm1, %v5140_v49, %v5145_v11  ;;  %v6115_v49 = vld [vmem:[#allocation11 + $0xb58] sm:$0xff]  ;;  %v5156_v32 = vsel %vm2924_vm1, %v5150_v4, %v5155_v31  ;;  %v6117_v11 = vld [vmem:[#allocation11 + $0xb68] sm:$0xff] }
 0x4bf   : > { %5492 = vmatprep.mubr.f32.mxu1 %v5138_v47  ;;  %9732 = vmatpush1.bf16.msra.mxu1 %v9731_v48  ;;  %v5152_v48 = vrot.slane %v4942_v25, 1  ;;  %v6119_v25 = vld [vmem:[#allocation11 + $0xb78] sm:$0xff] }
 0x4c0   : > { %9734 = vmatprep.subr.bf16.mxu1 %v9733_v0  ;;  %v4941_v0 = vld [vmem:[#allocation2 + $0xf0] sm:$0xfe]  ;;  %v9757_v1 = vpack.c.bf16 %v6119_v25, %v6117_v11  ;;  %v4959_v25 = vld [vmem:[#allocation2 + $0x180] sm:$0xfe] }
 0x4c1   : > { %v5154_v47 = vsel %vm2924_vm1, %v5152_v48, %v5153_v16  ;;  %v5149_v46 = vrot.slane %v4941_v0, 1  ;;  %v6118_v48 = vld [vmem:[#allocation11 + $0xb70] sm:$0xff] }
 0x4c2   : > { %5493 = vmatmul.mubr.f32.gmra.mrb[10].mxu1 %v5136_v2  ;;  %v4948_v2 = vld [vmem:[#allocation2 + $0x128] sm:$0xfe] }
 0x4c3   : > { %5498 = vmatprep.mubr.f32.mxu1 %v5144_v7  ;;  %9736 = vmatpush1.bf16.msra.mxu1 %v9735_v34  ;;  %v9747_v34 = vpack.c.bf16 %v6106_v36, %v6104_v30  ;;  %v5151_v63 = vsel %vm2924_vm1, %v5149_v46, %v5150_v4  ;;  %v4952_v7 = vld [vmem:[#allocation2 + $0x148] sm:$0x1]  ;;  %v5162_v22 = vrot.slane %v4948_v2, 1  ;;  %v4954_v30 = vld [vmem:[#allocation2 + $0x158] sm:$0xfe]  ;;  %v5173_v4 = vrot.slane %v12582_v3, 1 }
 0x4c4   : > { %9738 = vmatprep.subr.bf16.mxu1 %v9737_v58  ;;  %v6110_v58 = vld [vmem:[#allocation11 + $0xb30] sm:$0xff]  ;;  %v5167_v13 = vrot.slane %v4952_v7, 1  ;;  %v6123_v36 = vld [vmem:[#allocation11 + $0xb98] sm:$0xff]  ;;  %v6120_v46 = vld [vmem:[#allocation11 + $0xb80] sm:$0xff]  ;;  %v5177_v3 = vrot.slane %v4958_v15, 1 }
 0x4c5   : > { %v9751_v41 = vpack.c.bf16 %v6110_v58, %v6108_v54  ;;  %v5164_v39 = vsel %vm2924_vm1, %v5162_v22, %v5163_v21  ;;  %v5170_v54 = vrot.slane %v12585_v50, 1  ;;  %v6125_v58 = vld [vmem:[#allocation11 + $0xba8] sm:$0xff]  ;;  %v6126_v7 = vld [vmem:[#allocation11 + $0xbb0] sm:$0xff] }
 0x4c6   : > { %5499 = vmatmul.mubr.f32.gmra.mrb[12].mxu1 %v5141_v57  ;;  %v5160_v57 = vrot.slane %v12579_v24, 1  ;;  %v6121_v24 = vld [vmem:[#allocation11 + $0xb88] sm:$0xff] }
 0x4c7   : > { %5504 = vmatprep.mubr.f32.mxu1 %v5148_v14  ;;  %9740 = vmatpush1.bf16.msra.mxu1 %v9739_v52  ;;  %v9753_v52 = vpack.c.bf16 %v6115_v49, %v6113_v60  ;;  %v5159_v14 = vrot.slane %v4947_v23, 1  ;;  %v9761_v26 = vpack.c.bf16 %v6123_v36, %v6121_v24  ;;  %v4957_v2 = vld [vmem:[#allocation2 + $0x170] sm:$0x1]  ;;  %v5169_v60 = vrot.slane %v4953_v20, 1  ;;  %v4960_v23 = vld [vmem:[#allocation2 + $0x188] sm:$0xfe] }
 0x4c8   : > { %9742 = vmatprep.subr.bf16.mxu1 %v9741_v61  ;;  %v6112_v61 = vld [vmem:[#allocation11 + $0xb40] sm:$0xff]  ;;  %v5175_v22 = vrot.slane %v4957_v2, 1  ;;  %v6129_v50 = vld [vmem:[#allocation11 + $0xbc8] sm:$0xff]  ;;  %v5182_v11 = vrot.slane %v4960_v23, 1 }
 0x4c9   : > { %v9755_v16 = vpack.c.bf16 %v6114_v55, %v6112_v61  ;;  %v5161_v0 = vsel %vm2924_vm1, %v5159_v14, %v5160_v57  ;;  %v5178_v61 = vsel %vm2924_vm1, %v5173_v4, %v5177_v3  ;;  %v5183_v55 = vrot.slane %v12588_v38, 1  ;;  %v6132_v36 = vld [vmem:[#allocation11 + $0xbe0] sm:$0xff] }
 0x4ca   : > { %5505 = vmatmul.mubr.f32.gmra.mrb[14].mxu1 %v5146_v42  ;;  %v5168_v42 = vsel %vm2924_vm1, %v5163_v21, %v5167_v13  ;;  %v6124_v21 = vld [vmem:[#allocation11 + $0xba0] sm:$0xff]  ;;  %v5176_v14 = vsel %vm2924_vm1, %v5170_v54, %v5175_v22 }
 0x4cb   : > { %5510 = vmatprep.mubr.f32.mxu1 %v5154_v47  ;;  %9744 = vmatpush1.bf16.msra.mxu1 %v9743_v51  ;;  %v6116_v51 = vld [vmem:[#allocation11 + $0xb60] sm:$0xff]  ;;  %v5172_v47 = vrot.slane %v4954_v30, 1 }
 0x4cc   : > { %9746 = vmatprep.subr.bf16.mxu1 %v9745_v8  ;;  %v5165_v8 = vrot.slane %v4951_v29, 1  ;;  %v9759_v43 = vpack.c.bf16 %v6118_v48, %v6116_v51  ;;  %v6128_v13 = vld [vmem:[#allocation11 + $0xbc0] sm:$0xff]  ;;  %v6130_v29 = vld [vmem:[#allocation11 + $0xbd0] sm:$0xff]  ;;  %v6135_v51 = vld [vmem:[#allocation11 + $0xbf8] sm:$0xff]  ;;  %v5184_v48 = vsel %vm2924_vm1, %v5182_v11, %v5183_v55 }
 0x4cd   : > { %v5174_v31 = vsel %vm2924_vm1, %v5172_v47, %v5173_v4  ;;  %v9771_v30 = vpack.c.bf16 %v6130_v29, %v6128_v13  ;;  %v6526_v47 = vld [vmem:[#allocation11 + $0xc18] sm:$0xff]  ;;  %v5213_v13 = vrot.slane %v12606_v9, 1  ;;  %v4982_v29 = vld [vmem:[#allocation2 + $0x238] sm:$0x1] }
 0x4ce   : > { %5511 = vmatmul.mubr.f32.gmra.mrb[16].mxu1 %v5151_v63  ;;  %v6127_v63 = vld [vmem:[#allocation11 + $0xbb8] sm:$0xff] }
 0x4cf   : > { %5516 = vmatprep.mubr.f32.mxu1 %v5158_v18  ;;  %9748 = vmatpush1.bf16.msra.mxu1 %v9747_v34  ;;  %v6122_v34 = vld [vmem:[#allocation11 + $0xb90] sm:$0xff]  ;;  %v9765_v18 = vpack.c.bf16 %v6127_v63, %v6125_v58  ;;  %v4971_v23 = vld [vmem:[#allocation2 + $0x1e0] sm:$0xfe] }
 0x4d0   : > { %9750 = vmatprep.subr.bf16.mxu1 %v9749_v40  ;;  %v5166_v40 = vsel %vm2924_vm1, %v5160_v57, %v5165_v8  ;;  %v9763_v49 = vpack.c.bf16 %v6122_v34, %v6120_v46  ;;  %v9767_v57 = vpack.c.bf16 %v6126_v7, %v6124_v21  ;;  %v5179_v8 = vrot.slane %v4959_v25, 1  ;;  %v4970_v46 = vld [vmem:[#allocation2 + $0x1d8] sm:$0x1]  ;;  %v4972_v21 = vld [vmem:[#allocation2 + $0x1e8] sm:$0xfe] }
 0x4d1   : > { %v5197_v2 = vrot.slane %v4970_v46, 1  ;;  %v5202_v22 = vrot.slane %v4972_v21, 1  ;;  %v4987_v46 = vld [vmem:[#allocation2 + $0x260] sm:$0x1] }
 0x4d2   : > { %5517 = vmatmul.mubr.f32.gmra.mrb[18].mxu1 %v5156_v32  ;;  %v4964_v32 = vld [vmem:[#allocation2 + $0x1a8] sm:$0x1] }
 0x4d3   : > { %5522 = vmatprep.mubr.f32.mxu1 %v5164_v39  ;;  %9752 = vmatpush1.bf16.msra.mxu1 %v9751_v41  ;;  %v5171_v41 = vsel %vm2924_vm1, %v5169_v60, %v5170_v54  ;;  %v5187_v38 = vrot.slane %v4964_v32, 1  ;;  %v4965_v54 = vld [vmem:[#allocation2 + $0x1b0] sm:$0xfe]  ;;  %v4969_v60 = vld [vmem:[#allocation2 + $0x1d0] sm:$0x1] }
 0x4d4   : > { %9754 = vmatprep.subr.bf16.mxu1 %v9753_v52  ;;  %v6131_v52 = vld [vmem:[#allocation11 + $0xbd8] sm:$0xff] }
 0x4d5   : > { %v9769_v39 = vpack.c.bf16 %v6131_v52, %v6129_v50  ;;  %v5188_v20 = vsel %vm2924_vm1, %v5183_v55, %v5187_v38  ;;  %v5200_v52 = vrot.slane %v12603_v27, 1  ;;  %v4975_v32 = vld [vmem:[#allocation2 + $0x200] sm:$0x1]  ;;  %v4977_v27 = vld [vmem:[#allocation2 + $0x210] sm:$0xfe] }
 0x4d6   : > { %5523 = vmatmul.mubr.f32.gmra.mrb[20].mxu1 %v5161_v0  ;;  %v4963_v0 = vld [vmem:[#allocation2 + $0x1a0] sm:$0x1]  ;;  %v5205_v25 = vrot.slane %v4975_v32, 1  ;;  %v4981_v38 = vld [vmem:[#allocation2 + $0x230] sm:$0x1] }
 0x4d7   : > { %5528 = vmatprep.mubr.f32.mxu1 %v5168_v42  ;;  %9756 = vmatpush1.bf16.msra.mxu1 %v9755_v16  ;;  %v5180_v16 = vrot.slane %v12591_v37, 1  ;;  %v6134_v42 = vld [vmem:[#allocation11 + $0xbf0] sm:$0xff]  ;;  %v5185_v15 = vrot.slane %v4963_v0, 1  ;;  %v6524_v37 = vld [vmem:[#allocation11 + $0xc08] sm:$0xff]  ;;  %v5209_v0 = vrot.slane %v4977_v27, 1 }
 0x4d8   : > { %9758 = vmatprep.subr.bf16.mxu1 %v9757_v1  ;;  %v6133_v1 = vld [vmem:[#allocation11 + $0xbe8] sm:$0xff]  ;;  %v9775_v34 = vpack.c.bf16 %v6134_v42, %v6132_v36  ;;  %v9777_v58 = vpack.c.bf16 %v6526_v47, %v6524_v37  ;;  %v5223_v36 = vrot.slane %v12612_v44, 1  ;;  %v4988_v42 = vld [vmem:[#allocation2 + $0x268] sm:$0x1]  ;;  %v5220_v37 = vrot.slane %v12615_v45, 1 }
 0x4d9   : > { %v9773_v24 = vpack.c.bf16 %v6135_v51, %v6133_v1  ;;  %v5181_v4 = vsel %vm2924_vm1, %v5179_v8, %v5180_v16  ;;  %v5186_v63 = vsel %vm2924_vm1, %v5180_v16, %v5185_v15  ;;  %v5206_v16 = vsel %vm2924_vm1, %v5200_v52, %v5205_v25  ;;  %v5000_v32 = vld [vmem:[#allocation2 + $0x2c8] sm:$0x1]  ;;  %v4999_v27 = vld [vmem:[#allocation2 + $0x2c0] sm:$0x1] }
 0x4da   : > { %5529 = vmatmul.mubr.f32.gmra.mrb[22].mxu1 %v5166_v40  ;;  %v5210_v1 = vrot.slane %v12609_v33, 1  ;;  %v4983_v33 = vld [vmem:[#allocation2 + $0x240] sm:$0xfe]  ;;  %v5233_v45 = vrot.slane %v12618_v5, 1 }
 0x4db   : > { %5534 = vmatprep.mubr.f32.mxu1 %v5174_v31  ;;  %9760 = vmatpush1.bf16.msra.mxu1 %v9759_v43  ;;  %v4966_v43 = vld [vmem:[#allocation2 + $0x1b8] sm:$0xfe]  ;;  %v5190_v31 = vrot.slane %v12597_v10, 1  ;;  %v4976_v10 = vld [vmem:[#allocation2 + $0x208] sm:$0x1] }
 0x4dc   : > { %9762 = vmatprep.subr.bf16.mxu1 %v9761_v26  ;;  %v5193_v26 = vrot.slane %v12594_v12, 1  ;;  %v5192_v40 = vrot.slane %v4966_v43, 1  ;;  %v5207_v55 = vrot.slane %v4976_v10, 1  ;;  %v5211_v8 = vsel %vm2924_vm1, %v5209_v0, %v5210_v1  ;;  %v4993_v10 = vld [vmem:[#allocation2 + $0x290] sm:$0x1] }
 0x4dd   : > { %v5253_v0 = vrot.slane %v12630_v19, 1  ;;  %v12757_v19 = vld [vmem:[#allocation2 + $0x318] sm:$0xff] }
 0x4de   : > { %5535 = vmatmul.mubr.f32.gmra.mrb[24].mxu1 %v5171_v41  ;;  %v5194_v3 = vsel %vm2924_vm1, %v5192_v40, %v5193_v26  ;;  %v5198_v7 = vsel %vm2924_vm1, %v5193_v26, %v5197_v2  ;;  %v5203_v41 = vrot.slane %v12600_v17, 1  ;;  %v5227_v26 = vrot.slane %v4988_v42, 1 }
 0x4df   : > { %5540 = vmatprep.mubr.f32.mxu1 %v5178_v61  ;;  %9764 = vmatpush1.bf16.msra.mxu1 %v9763_v49  ;;  %v5189_v49 = vrot.slane %v4965_v54, 1  ;;  %v5225_v54 = vrot.slane %v4987_v46, 1  ;;  %v5250_v42 = vrot.slane %v12633_v53, 1 }
 0x4e0   : > { %9766 = vmatprep.subr.bf16.mxu1 %v9765_v18  ;;  %v5195_v18 = vrot.slane %v4969_v60, 1  ;;  %v5204_v61 = vsel %vm2924_vm1, %v5202_v22, %v5203_v41  ;;  %v5208_v17 = vsel %vm2924_vm1, %v5203_v41, %v5207_v55  ;;  %v4989_v60 = vld [vmem:[#allocation2 + $0x270] sm:$0xfe]  ;;  %v5243_v55 = vrot.slane %v12624_v35, 1 }
 0x4e1   : > { %v5191_v12 = vsel %vm2924_vm1, %v5189_v49, %v5190_v31  ;;  %v5229_v22 = vrot.slane %v4989_v60, 1 }
 0x4e2   : > { %5541 = vmatmul.mubr.f32.gmra.mrb[26].mxu1 %v5176_v14  ;;  %v5196_v50 = vsel %vm2924_vm1, %v5190_v31, %v5195_v18  ;;  %v5230_v18 = vrot.slane %v12621_v6, 1 }
 0x4e3   : > { %5546 = vmatprep.mubr.f32.mxu1 %v5184_v48  ;;  %9768 = vmatpush1.bf16.msra.mxu1 %v9767_v57  ;;  %v5199_v57 = vrot.slane %v4971_v23, 1  ;;  %v5217_v48 = vrot.slane %v4982_v29, 1 }
 0x4e4   : > { %9770 = vmatprep.subr.bf16.mxu1 %v9769_v39  ;;  %v4978_v39 = vld [vmem:[#allocation2 + $0x218] sm:$0xfe]  ;;  %v5231_v23 = vsel %vm2924_vm1, %v5229_v22, %v5230_v18 }
 0x4e5   : > { %v5201_v11 = vsel %vm2924_vm1, %v5199_v57, %v5200_v52  ;;  %v5212_v14 = vrot.slane %v4978_v39, 1  ;;  %v5218_v9 = vsel %vm2924_vm1, %v5213_v13, %v5217_v48  ;;  %v4996_v52 = vld [vmem:[#allocation2 + $0x2a8] sm:$0xfe]  ;;  %v5002_v48 = vld [vmem:[#allocation2 + $0x2d8] sm:$0xfe] }
 0x4e6   : > { %5547 = vmatmul.mubr.f32.gmra.mrb[28].mxu1 %v5181_v4  ;;  %v5242_v57 = vrot.slane %v4996_v52, 1 }
 0x4e7   : > { %5552 = vmatprep.mubr.f32.mxu1 %v5188_v20  ;;  %9772 = vmatpush1.bf16.msra.mxu1 %v9771_v30  ;;  %v5214_v51 = vsel %vm2924_vm1, %v5212_v14, %v5213_v13  ;;  %v5215_v30 = vrot.slane %v4981_v38, 1  ;;  %v5247_v14 = vrot.slane %v5000_v32, 1  ;;  %v10877_v32 = vld [vmem:[#allocation2 + $0x48] sm:$0xff] }
 0x4e8   : > { %9774 = vmatprep.subr.bf16.mxu1 %v9773_v24  ;;  %v4984_v24 = vld [vmem:[#allocation2 + $0x248] sm:$0xfe]  ;;  %v5244_v29 = vsel %vm2924_vm1, %v5242_v57, %v5243_v55  ;;  %v5851_v57 = vrot.slane %v10877_v32, 2  ;;  %v10880_v32 = vld [vmem:[#allocation2 + $0x70] sm:$0xff] }
 0x4e9   : > { %v5222_v4 = vrot.slane %v4984_v24, 1  ;;  %v5216_v15 = vsel %vm2924_vm1, %v5210_v1, %v5215_v30  ;;  %v5252_v30 = vrot.slane %v5002_v48, 1  ;;  %v5001_v24 = vld [vmem:[#allocation2 + $0x2d0] sm:$0xfe] }
 0x4ea   : > { %5553 = vmatmul.mubr.f32.gmra.mrb[30].mxu1 %v5186_v63  ;;  %v5228_v63 = vsel %vm2924_vm1, %v5223_v36, %v5227_v26  ;;  %v6528_v48 = vld [vmem:[#allocation11 + $0xc28] sm:$0xff] }
 0x4eb   : > { %5558 = vmatprep.mubr.f32.mxu1 %v5194_v3  ;;  %9776 = vmatpush1.bf16.msra.mxu1 %v9775_v34  ;;  %v5224_v47 = vsel %vm2924_vm1, %v5222_v4, %v5223_v36  ;;  %v5219_v34 = vrot.slane %v4983_v33, 1  ;;  %v4994_v3 = vld [vmem:[#allocation2 + $0x298] sm:$0x1]  ;;  %v5254_v33 = vsel %vm2924_vm1, %v5252_v30, %v5253_v0 }
 0x4ec   : > { %9778 = vmatprep.subr.bf16.mxu1 %v9777_v58  ;;  %v4990_v58 = vld [vmem:[#allocation2 + $0x278] sm:$0xfe]  ;;  %v5237_v41 = vrot.slane %v4994_v3, 1  ;;  %v5007_v3 = vld [vmem:[#allocation2 + $0x300] sm:$0xfe] }
 0x4ed   : > { %v5221_v44 = vsel %vm2924_vm1, %v5219_v34, %v5220_v37  ;;  %v5232_v2 = vrot.slane %v4990_v58, 1  ;;  %v5263_v58 = vrot.slane %v12757_v19, 1  ;;  %v5259_v22 = vrot.slane %v5007_v3, 1  ;;  %v10879_v3 = vld [vmem:[#allocation2 + $0x78] sm:$0xff] }
 0x4ee   : > { %5559 = vmatmul.mubr.f32.gmra.mrb[32].mxu1 %v5191_v12  ;;  %v5226_v12 = vsel %vm2924_vm1, %v5220_v37, %v5225_v54  ;;  %v5238_v6 = vsel %vm2924_vm1, %v5233_v45, %v5237_v41  ;;  %v5005_v37 = vld [vmem:[#allocation2 + $0x2f0] sm:$0x1] }
 0x4ef   : > { %5564 = vmatprep.mubr.f32.mxu1 %v5198_v7  ;;  %v5234_v7 = vsel %vm2924_vm1, %v5232_v2, %v5233_v45  ;;  %v5255_v34 = vrot.slane %v5005_v37, 1  ;;  %v6529_v37 = vld [vmem:[#allocation11 + $0xc30] sm:$0xff] }
 0x4f1   : > { %v5256_v60 = vsel %vm2924_vm1, %v5250_v42, %v5255_v34 }
 0x4f2   : > { %5565 = vmatmul.mubr.f32.gmra.mrb[34].mxu1 %v5196_v50  ;;  %v5235_v50 = vrot.slane %v4993_v10, 1  ;;  %v5011_v10 = vld [vmem:[#allocation2 + $0x320] sm:$0x1] }
 0x4f3   : > { %5570 = vmatprep.mubr.f32.mxu1 %v5204_v61  ;;  %v5265_v52 = vrot.slane %v5011_v10, 1  ;;  %v5723_v10 = vld [vmem:[#allocation2 + $0x60] sm:$0xfc] }
 0x4f4   : > { %v5236_v39 = vsel %vm2924_vm1, %v5230_v18, %v5235_v50 }
 0x4f6   : > { %5571 = vmatmul.mubr.f32.gmra.mrb[36].mxu1 %v5201_v11  ;;  %v4995_v11 = vld [vmem:[#allocation2 + $0x2a0] sm:$0xfe] }
 0x4f7   : > { %5576 = vmatprep.mubr.f32.mxu1 %v5208_v17  ;;  %v5240_v17 = vrot.slane %v12627_v56, 1  ;;  %v5248_v56 = vsel %vm2924_vm1, %v5243_v55, %v5247_v14  ;;  %v6525_v14 = vld [vmem:[#allocation11 + $0xc10] sm:$0xff] }
 0x4fa   : > { %5577 = vmatmul.mubr.f32.gmra.mrb[38].mxu1 %v5206_v16  ;;  %v5239_v16 = vrot.slane %v4995_v11, 1  ;;  %v5722_v11 = vld [vmem:[#allocation2 + $0x58] sm:$0x3] }
 0x4fb   : > { %5582 = vmatprep.mubr.f32.mxu1 %v5214_v51  ;;  %v5245_v51 = vrot.slane %v4999_v27, 1  ;;  %v5855_v30 = vrot.slane %v5722_v11, 2  ;;  %v5858_v11 = vrot.slane %v10880_v32, 2 }
 0x4fc   : > { %v5241_v1 = vsel %vm2924_vm1, %v5239_v16, %v5240_v17 }
 0x4fd   : > { %v5246_v36 = vsel %vm2924_vm1, %v5240_v17, %v5245_v51  ;;  %v5719_v17 = vld [vmem:[#allocation2 + $0x30] sm:$0xfc] }
 0x4fe   : > { %5583 = vmatmul.mubr.f32.gmra.mrb[40].mxu1 %v5211_v8  ;;  %v5006_v8 = vld [vmem:[#allocation2 + $0x2f8] sm:$0x1] }
 0x4ff   : > { %5588 = vmatprep.mubr.f32.mxu1 %v5218_v9 }
 0x501   : > { %v12709_v43 = vpop.f32.mrb[64].mxu0 }
 0x502   : > { %5589 = vmatmul.mubr.f32.gmra.mrb[42].mxu1 %v5216_v15  ;;  %v12713_v20 = vpop.f32.mrb[65].mxu0  ;;  %v5257_v15 = vrot.slane %v5006_v8, 1 }
 0x503   : > { %5594 = vmatprep.mubr.f32.mxu1 %v5224_v47  ;;  %v5249_v47 = vrot.slane %v5001_v24, 1  ;;  %v5721_v24 = vld [vmem:[#allocation2 + $0x50] sm:$0x3] }
 0x504   : > { %v5258_v53 = vsel %vm2924_vm1, %v5253_v0, %v5257_v15  ;;  %v6527_v15 = vld [vmem:[#allocation11 + $0xc20] sm:$0xff]  ;;  %v5853_v34 = vrot.slane %v5721_v24, 2 }
 0x505   : > { %v12716_v40 = vpop.f32.mrb[66].mxu0  ;;  %v5251_v46 = vsel %vm2924_vm1, %v5249_v47, %v5250_v42 }
 0x506   : > { %5595 = vmatmul.mubr.f32.gmra.mrb[44].mxu1 %v5221_v44  ;;  %v12719_v31 = vpop.f32.mrb[67].mxu0  ;;  %v5008_v44 = vld [vmem:[#allocation2 + $0x308] sm:$0xfe] }
 0x507   : > { %5600 = vmatprep.mubr.f32.mxu1 %v5228_v63  ;;  %v5012_v63 = vld [vmem:[#allocation2 + $0x328] sm:$0x1]  ;;  %v5262_v45 = vrot.slane %v5008_v44, 1  ;;  %v5724_v44 = vld [vmem:[#allocation2 + $0x68] sm:$0xfc] }
 0x508   : > { %v5267_v41 = vrot.slane %v5012_v63, 1 }
 0x509   : > { %v12722_v49 = vpop.f32.mrb[68].mxu0 }
 0x50a   : > { %v12726_v21 = vpop.f32.mrb[69].mxu0  ;;  %5601 = vmatmul.mubr.f32.gmra.mrb[46].mxu1 %v5226_v12  ;;  %v5260_v12 = vrot.slane %v12639_v28, 1  ;;  %v5268_v28 = vsel %vm2924_vm1, %v5263_v58, %v5267_v41  ;;  %v5860_v41 = vrot.slane %v5724_v44, 2 }
 0x50b   : > { %5606 = vmatprep.mubr.f32.mxu1 %v5234_v7  ;;  %v5264_v7 = vsel %vm2924_vm1, %v5262_v45, %v5263_v58  ;;  %v6534_v58 = vld [vmem:[#allocation11 + $0xc58] sm:$0xff]  ;;  %v5856_v45 = vsel %vm3856_vm0, %v5851_v57, %v5855_v30  ;;  %v6537_v30 = vld [vmem:[#allocation11 + $0xc70] sm:$0xff] }
 0x50c   : > { %v5261_v50 = vsel %vm2924_vm1, %v5259_v22, %v5260_v12  ;;  %v5266_v16 = vsel %vm2924_vm1, %v5260_v12, %v5265_v52  ;;  %v5726_v12 = vld [vmem:[#allocation2 + $0x88] sm:$0x3]  ;;  %v6533_v52 = vld [vmem:[#allocation11 + $0xc50] sm:$0xff] }
 0x50d   : > { %v12729_v5 = vpop.f32.mrb[70].mxu0 }
 0x50e   : > { %v12732_v61 = vpop.f32.mrb[71].mxu0  ;;  %5607 = vmatmul.mubr.f32.gmra.mrb[48].mxu1 %v5231_v23 }
 0x50f   : > { %5612 = vmatprep.mubr.f32.mxu1 %v5238_v6  ;;  %v5720_v6 = vld [vmem:[#allocation2 + $0x38] sm:$0xfc] }
 0x511   : > { %v12736_v25 = vpop.f32.mrb[72].mxu0 }
 0x512   : > { %v12740_v13 = vpop.f32.mrb[73].mxu0  ;;  %5613 = vmatmul.mubr.f32.gmra.mrb[50].mxu1 %v5236_v39  ;;  %v5850_v39 = vrot.slane %v5720_v6, 2 }
 0x513   : > { %13527 = vst [vmem:[#allocation24_spill] sm:$0xff] %v12740_v13  ;;  %5618 = vmatprep.mubr.f32.mxu1 %v5244_v29  ;;  %v6523_v29 = vld [vmem:[#allocation11 + $0xc00] sm:$0xff] }
 0x514   : > { %v5852_v8 = vsel %vm3856_vm0, %v5850_v39, %v5851_v57  ;;  %v9779_v42 = vpack.c.bf16 %v6525_v14, %v6523_v29  ;;  %v6536_v39 = vld [vmem:[#allocation11 + $0xc68] sm:$0xff]  ;;  %v6538_v57 = vld [vmem:[#allocation11 + $0xc78] sm:$0xff]  ;;  %v5865_v14 = vrot.slane %v5726_v12, 2 }
 0x515   : > { %v12743_v35 = vpop.f32.mrb[74].mxu0 }
 0x516   : > { %13528 = vst [vmem:[#allocation25_spill] sm:$0xff] %v12743_v35  ;;  %v12746_v38 = vpop.f32.mrb[75].mxu0  ;;  %5619 = vmatmul.mubr.f32.gmra.mrb[52].mxu1 %v5241_v1  ;;  %v10878_v1 = vld [vmem:[#allocation2 + $0x40] sm:$0xff] }
 0x517   : > { %13529 = vst [vmem:[#allocation26_spill] sm:$0xff] %v12746_v38  ;;  %5624 = vmatprep.mubr.f32.mxu1 %v5248_v56  ;;  %v5848_v51 = vrot.slane %v10878_v1, 2  ;;  %v6530_v56 = vld [vmem:[#allocation11 + $0xc38] sm:$0xff]  ;;  %v5857_v1 = vrot.slane %v5723_v10, 2  ;;  %v8072_v38 = vld [vmem:[#allocation11 + $0x1048] sm:$0xff] }
 0x519   : > { %v12750_v9 = vpop.f32.mrb[76].mxu0  ;;  %v5859_v24 = vsel %vm3856_vm0, %v5857_v1, %v5858_v11 }
 0x51a   : > { %13530 = vst [vmem:[#allocation27_spill] sm:$0xff] %v12750_v9  ;;  %v12754_v4 = vpop.f32.mrb[77].mxu0  ;;  %5625 = vmatmul.mubr.f32.gmra.mrb[54].mxu1 %v5246_v36  ;;  %v5847_v36 = vrot.slane %v5719_v17, 2  ;;  %v6915_v9 = vld [vmem:[#allocation2 + $0x98] sm:$0xfe] }
 0x51b   : > { %13531 = vst [vmem:[#allocation28_spill] sm:$0xff] %v12754_v4  ;;  %5630 = vmatprep.mubr.f32.mxu1 %v5254_v33  ;;  %v9781_v33 = vpack.c.bf16 %v6530_v56, %v6528_v48  ;;  %v9789_v56 = vpack.c.bf16 %v6538_v57, %v6536_v39 }
 0x51d   : > { %v12759_v26 = vpop.f32.mrb[78].mxu0 }
 0x51e   : > { %13532 = vst [vmem:[#allocation29_spill] sm:$0xff] %v12759_v26  ;;  %v12762_v54 = vpop.f32.mrb[79].mxu0  ;;  %5631 = vmatmul.mubr.f32.gmra.mrb[56].mxu1 %v5251_v46  ;;  %v5849_v46 = vsel %vm3856_vm0, %v5847_v36, %v5848_v51  ;;  %v8069_v26 = vld [vmem:[#allocation11 + $0x1030] sm:$0xff] }
 0x51f   : > { %13533 = vst [vmem:[#allocation30_spill] sm:$0xff] %v12762_v54  ;;  %5636 = vmatprep.mubr.f32.mxu1 %v5258_v53  ;;  %v6532_v53 = vld [vmem:[#allocation11 + $0xc48] sm:$0xff]  ;;  %v8067_v54 = vld [vmem:[#allocation11 + $0x1020] sm:$0xff] }
 0x520   : > { %v9785_v22 = vpack.c.bf16 %v6534_v58, %v6532_v53  ;;  %v5730_v53 = vld [vmem:[#allocation2 + $0xb8] sm:$0x3] }
 0x521   : > { %v12766_v2 = vpop.f32.mrb[80].mxu0  ;;  %v5875_v57 = vrot.slane %v5730_v53, 2  ;;  %v5734_v53 = vld [vmem:[#allocation2 + $0xe8] sm:$0x3] }
 0x522   : > { %13534 = vst [vmem:[#allocation31_spill] sm:$0xff] %v12766_v2  ;;  %v12770_v18 = vpop.f32.mrb[81].mxu0  ;;  %5637 = vmatmul.mubr.f32.gmra.mrb[58].mxu1 %v5256_v60  ;;  %v5861_v60 = vrot.slane %v10879_v3, 2  ;;  %v5727_v3 = vld [vmem:[#allocation2 + $0x90] sm:$0xfc] }
 0x523   : > { %13535 = vst [vmem:[#allocation32_spill] sm:$0xff] %v12770_v18  ;;  %5642 = vmatprep.mubr.f32.mxu1 %v5264_v7  ;;  %v9783_v7 = vpack.c.bf16 %v6529_v37, %v6527_v15  ;;  %v6542_v15 = vld [vmem:[#allocation11 + $0xc98] sm:$0xff] }
 0x524   : > { %v5862_v29 = vsel %vm3856_vm0, %v5860_v41, %v5861_v60  ;;  %v6541_v41 = vld [vmem:[#allocation11 + $0xc90] sm:$0xff] }
 0x525   : > { %v12773_v23 = vpop.f32.mrb[82].mxu0 }
 0x526   : > { %13536 = vst [vmem:[#allocation33_spill] sm:$0xff] %v12773_v23  ;;  %v12776_v55 = vpop.f32.mrb[83].mxu0  ;;  %5643 = vmatmul.mubr.f32.gmra.mrb[60].mxu1 %v5261_v50  ;;  %v6531_v50 = vld [vmem:[#allocation11 + $0xc40] sm:$0xff]  ;;  %v6912_v23 = vld [vmem:[#allocation2 + $0x80] sm:$0x1] }
 0x527   : > { %13537 = vst [vmem:[#allocation34_spill] sm:$0xff] %v12776_v55  ;;  %5648 = vmatprep.mubr.f32.mxu1 %v5268_v28  ;;  %v5854_v28 = vsel %vm3856_vm0, %v5848_v51, %v5853_v34  ;;  %v9787_v48 = vpack.c.bf16 %v6533_v52, %v6531_v50  ;;  %v10881_v34 = vld [vmem:[#allocation2 + $0xa8] sm:$0xff]  ;;  %v10882_v50 = vld [vmem:[#allocation2 + $0xa0] sm:$0xff]  ;;  %v7106_v4 = vrot.slane %v6912_v23, 1 }
 0x528   : > { %v5871_v44 = vrot.slane %v10881_v34, 2  ;;  %v5868_v52 = vrot.slane %v10882_v50, 2 }
 0x529   : > { %v12779_v27 = vpop.f32.mrb[84].mxu0 }
 0x52a   : > { %13538 = vst [vmem:[#allocation35_spill] sm:$0xff] %v12779_v27  ;;  %v12782_v0 = vpop.f32.mrb[85].mxu0  ;;  %5649 = vmatmul.mubr.f32.gmra.mrb[62].mxu1 %v5266_v16  ;;  %v5725_v16 = vld [vmem:[#allocation2 + $0x80] sm:$0x3] }
 0x52b   : > { %13539 = vst [vmem:[#allocation36_spill] sm:$0xff] %v12782_v0  ;;  %6200 = vmatprep.mubr.f32.mxu1 %v5852_v8  ;;  %v6535_v8 = vld [vmem:[#allocation11 + $0xc60] sm:$0xff]  ;;  %v5863_v36 = vrot.slane %v5725_v16, 2  ;;  %v8070_v0 = vld [vmem:[#allocation11 + $0x1038] sm:$0xff] }
 0x52c   : > { %v9791_v58 = vpack.c.bf16 %v6537_v30, %v6535_v8 }
 0x52d   : > { %v12785_v47 = vpop.f32.mrb[86].mxu0 }
 0x52e   : > { %13540 = vst [vmem:[#allocation37_spill] sm:$0xff] %v12785_v47  ;;  %v12788_v63 = vpop.f32.mrb[87].mxu0  ;;  %6201 = vmatmul.mubr.f32.vlgmr.msra.gmra.mrb[0].mxu1 %v5849_v46  ;;  %v5866_v46 = vsel %vm3856_vm0, %v5861_v60, %v5865_v14  ;;  %v6546_v60 = vld [vmem:[#allocation11 + $0xcb8] sm:$0xff]  ;;  %v5867_v14 = vrot.slane %v5727_v3, 2  ;;  %v8068_v47 = vld [vmem:[#allocation11 + $0x1028] sm:$0xff] }
 0x52f   : > { %13541 = vst [vmem:[#allocation38_spill] sm:$0xff] %v12788_v63  ;;  %6206 = vmatprep.mubr.f32.mxu1 %v5856_v45  ;;  %9780 = vmatpush1.bf16.msra.mxu1 %v9779_v42  ;;  %v5728_v42 = vld [vmem:[#allocation2 + $0x98] sm:$0xfc]  ;;  %v5731_v3 = vld [vmem:[#allocation2 + $0xc0] sm:$0xfc]  ;;  %v9909_v2 = vpack.c.bf16 %v8070_v0, %v8068_v47 }
 0x530   : > { %9782 = vmatprep.subr.bf16.mxu1 %v9781_v33  ;;  %v6540_v33 = vld [vmem:[#allocation11 + $0xc88] sm:$0xff]  ;;  %v5870_v45 = vrot.slane %v5728_v42, 2  ;;  %v5869_v8 = vsel %vm3856_vm0, %v5867_v14, %v5868_v52  ;;  %v6550_v42 = vld [vmem:[#allocation11 + $0xcd8] sm:$0xff]  ;;  %v5885_v14 = vrot.slane %v5734_v53, 2  ;;  %v8071_v47 = vld [vmem:[#allocation11 + $0x1040] sm:$0xff] }
 0x531   : > { %v12791_v6 = vpop.f32.mrb[88].mxu0  ;;  %v9793_v12 = vpack.c.bf16 %v6542_v15, %v6540_v33  ;;  %v5876_v15 = vsel %vm3856_vm0, %v5871_v44, %v5875_v57 }
 0x532   : > { %13542 = vst [vmem:[#allocation39_spill] sm:$0xff] %v12791_v6  ;;  %v12794_v17 = vpop.f32.mrb[89].mxu0  ;;  %6207 = vmatmul.mubr.f32.gmra.mrb[2].mxu1 %v5854_v28  ;;  %v6544_v28 = vld [vmem:[#allocation11 + $0xca8] sm:$0xff]  ;;  %v5872_v39 = vsel %vm3856_vm0, %v5870_v45, %v5871_v44  ;;  %v6554_v44 = vld [vmem:[#allocation11 + $0xcf8] sm:$0xff]  ;;  %v8065_v6 = vld [vmem:[#allocation11 + $0x1010] sm:$0xff] }
 0x533   : > { %13543 = vst [vmem:[#allocation40_spill] sm:$0xff] %v12794_v17  ;;  %6212 = vmatprep.mubr.f32.mxu1 %v5862_v29  ;;  %9784 = vmatpush1.bf16.msra.mxu1 %v9783_v7  ;;  %v6539_v7 = vld [vmem:[#allocation11 + $0xc80] sm:$0xff]  ;;  %v5729_v29 = vld [vmem:[#allocation2 + $0xb0] sm:$0x3]  ;;  %v9797_v1 = vpack.c.bf16 %v6546_v60, %v6544_v28 }
 0x534   : > { %9786 = vmatprep.subr.bf16.mxu1 %v9785_v22  ;;  %v5864_v22 = vsel %vm3856_vm0, %v5858_v11, %v5863_v36  ;;  %v9795_v16 = vpack.c.bf16 %v6541_v41, %v6539_v7  ;;  %v5873_v30 = vrot.slane %v5729_v29, 2  ;;  %v6548_v36 = vld [vmem:[#allocation11 + $0xcc8] sm:$0xff]  ;;  %v6547_v7 = vld [vmem:[#allocation11 + $0xcc0] sm:$0xff]  ;;  %v6549_v41 = vld [vmem:[#allocation11 + $0xcd0] sm:$0xff] }
 0x535   : > { %v12797_v51 = vpop.f32.mrb[90].mxu0  ;;  %v10884_v28 = vld [vmem:[#allocation2 + $0xd0] sm:$0xff]  ;;  %v8063_v17 = vld [vmem:[#allocation11 + $0x1000] sm:$0xff] }
 0x536   : > { %13544 = vst [vmem:[#allocation41_spill] sm:$0xff] %v12797_v51  ;;  %v12800_v37 = vpop.f32.mrb[91].mxu0  ;;  %6213 = vmatmul.mubr.f32.gmra.mrb[4].mxu1 %v5859_v24  ;;  %v5732_v24 = vld [vmem:[#allocation2 + $0xc8] sm:$0xfc]  ;;  %v5874_v50 = vsel %vm3856_vm0, %v5868_v52, %v5873_v30  ;;  %v5878_v60 = vrot.slane %v10884_v28, 2 }
 0x537   : > { %13545 = vst [vmem:[#allocation42_spill] sm:$0xff] %v12800_v37  ;;  %6218 = vmatprep.mubr.f32.mxu1 %v5866_v46  ;;  %9788 = vmatpush1.bf16.msra.mxu1 %v9787_v48  ;;  %v6543_v48 = vld [vmem:[#allocation11 + $0xca0] sm:$0xff]  ;;  %v10883_v46 = vld [vmem:[#allocation2 + $0xd8] sm:$0xff]  ;;  %v5880_v45 = vrot.slane %v5732_v24, 2 }
 0x538   : > { %9790 = vmatprep.subr.bf16.mxu1 %v9789_v56  ;;  %v6545_v56 = vld [vmem:[#allocation11 + $0xcb0] sm:$0xff]  ;;  %v5881_v34 = vrot.slane %v10883_v46, 2  ;;  %v6558_v46 = vld [vmem:[#allocation11 + $0xd18] sm:$0xff] }
 0x539   : > { %v12803_v10 = vpop.f32.mrb[92].mxu0  ;;  %v6553_v24 = vld [vmem:[#allocation11 + $0xcf0] sm:$0xff]  ;;  %v6908_v51 = vld [vmem:[#allocation2 + $0x60] sm:$0xfe] }
 0x53a   : > { %13546 = vst [vmem:[#allocation43_spill] sm:$0xff] %v12803_v10  ;;  %v12806_v32 = vpop.f32.mrb[93].mxu0  ;;  %6219 = vmatmul.mubr.f32.gmra.mrb[6].mxu1 %v5864_v22  ;;  %v5882_v29 = vsel %vm3856_vm0, %v5880_v45, %v5881_v34  ;;  %v5886_v53 = vsel %vm3856_vm0, %v5881_v34, %v5885_v14  ;;  %v10885_v45 = vld [vmem:[#allocation2 + $0x108] sm:$0xff]  ;;  %v6562_v34 = vld [vmem:[#allocation11 + $0xd38] sm:$0xff]  ;;  %v13020_v10 = vld [vmem:[#allocation2 + $0x310] sm:$0xff]  ;;  %v7100_v18 = vrot.slane %v6908_v51, 1 }
 0x53b   : > { %13547 = vst [vmem:[#allocation44_spill] sm:$0xff] %v12806_v32  ;;  %6224 = vmatprep.mubr.f32.mxu1 %v5872_v39  ;;  %9792 = vmatpush1.bf16.msra.mxu1 %v9791_v58  ;;  %v9799_v58 = vpack.c.bf16 %v6545_v56, %v6543_v48  ;;  %v6552_v39 = vld [vmem:[#allocation11 + $0xce8] sm:$0xff]  ;;  %v9803_v48 = vpack.c.bf16 %v6549_v41, %v6547_v7  ;;  %v13017_v32 = vld [vmem:[#allocation2 + $0x318] sm:$0xff]  ;;  %v7113_v51 = vrot.slane %v6915_v9, 1 }
 0x53c   : > { %9794 = vmatprep.subr.bf16.mxu1 %v9793_v12  ;;  %v9801_v12 = vpack.c.bf16 %v6550_v42, %v6548_v36  ;;  %v9805_v56 = vpack.c.bf16 %v6554_v44, %v6552_v39  ;;  %v5736_v42 = vld [vmem:[#allocation2 + $0xf8] sm:$0xfc]  ;;  %v5735_v41 = vld [vmem:[#allocation2 + $0xf0] sm:$0xfc]  ;;  %v6555_v39 = vld [vmem:[#allocation11 + $0xd00] sm:$0xff] }
 0x53d   : > { %v12809_v11 = vpop.f32.mrb[94].mxu0  ;;  %v5890_v7 = vrot.slane %v5736_v42, 2  ;;  %v6557_v44 = vld [vmem:[#allocation11 + $0xd10] sm:$0xff] }
 0x53e   : > { %13548 = vst [vmem:[#allocation45_spill] sm:$0xff] %v12809_v11  ;;  %v12812_v33 = vpop.f32.mrb[95].mxu0  ;;  %6225 = vmatmul.mubr.f32.gmra.mrb[8].mxu1 %v5869_v8  ;;  %v6551_v8 = vld [vmem:[#allocation11 + $0xce0] sm:$0xff]  ;;  %v9811_v42 = vpack.c.bf16 %v6557_v44, %v6555_v39 }
 0x53f   : > { %13549 = vst [vmem:[#allocation46_spill] sm:$0xff] %v12812_v33  ;;  %6230 = vmatprep.mubr.f32.mxu1 %v5876_v15  ;;  %9796 = vmatpush1.bf16.msra.mxu1 %v9795_v16  ;;  %v5733_v16 = vld [vmem:[#allocation2 + $0xe0] sm:$0x3]  ;;  %v6556_v15 = vld [vmem:[#allocation11 + $0xd08] sm:$0xff]  ;;  %v5739_v39 = vld [vmem:[#allocation2 + $0x120] sm:$0xfc] }
 0x540   : > { %9798 = vmatprep.subr.bf16.mxu1 %v9797_v1  ;;  %v5877_v1 = vrot.slane %v5731_v3, 2  ;;  %v5883_v36 = vrot.slane %v5733_v16, 2  ;;  %v5738_v3 = vld [vmem:[#allocation2 + $0x118] sm:$0x3]  ;;  %v9809_v28 = vpack.c.bf16 %v6558_v46, %v6556_v15  ;;  %v6559_v46 = vld [vmem:[#allocation11 + $0xd20] sm:$0xff] }
 0x541   : > { %v12815_v22 = vpop.f32.mrb[96].mxu0  ;;  %v7387_v33 = vld [vmem:[#allocation11 + $0xff0] sm:$0xff]  ;;  %v12978_v11 = vld [vmem:[#allocation2 + $0x1c0] sm:$0xff] }
 0x542   : > { %13550 = vst [vmem:[#allocation47_spill] sm:$0xff] %v12815_v22  ;;  %v12818_v57 = vpop.f32.mrb[97].mxu0  ;;  %6231 = vmatmul.mubr.f32.gmra.mrb[10].mxu1 %v5874_v50  ;;  %v5879_v30 = vsel %vm3856_vm0, %v5877_v1, %v5878_v60  ;;  %v5884_v16 = vsel %vm3856_vm0, %v5878_v60, %v5883_v36  ;;  %v10886_v1 = vld [vmem:[#allocation2 + $0x100] sm:$0xff] }
 0x543   : > { %13551 = vst [vmem:[#allocation48_spill] sm:$0xff] %v12818_v57  ;;  %6236 = vmatprep.mubr.f32.mxu1 %v5882_v29  ;;  %9800 = vmatpush1.bf16.msra.mxu1 %v9799_v58  ;;  %v5891_v58 = vrot.slane %v10885_v45, 2  ;;  %v7379_v57 = vld [vmem:[#allocation11 + $0xfb0] sm:$0xff]  ;;  %v7381_v22 = vld [vmem:[#allocation11 + $0xfc0] sm:$0xff] }
 0x544   : > { %9802 = vmatprep.subr.bf16.mxu1 %v9801_v12  ;;  %v9807_v12 = vpack.c.bf16 %v6553_v24, %v6551_v8  ;;  %v5895_v8 = vrot.slane %v5738_v3, 2  ;;  %v5737_v24 = vld [vmem:[#allocation2 + $0x110] sm:$0x3] }
 0x545   : > { %v12821_v52 = vpop.f32.mrb[98].mxu0  ;;  %v5893_v45 = vrot.slane %v5737_v24, 2 }
 0x546   : > { %13552 = vst [vmem:[#allocation49_spill] sm:$0xff] %v12821_v52  ;;  %v12824_v50 = vpop.f32.mrb[99].mxu0  ;;  %6237 = vmatmul.mubr.f32.gmra.mrb[12].mxu1 %v5879_v30  ;;  %v5888_v30 = vrot.slane %v10886_v1, 2  ;;  %v5740_v1 = vld [vmem:[#allocation2 + $0x128] sm:$0xfc]  ;;  %v5896_v3 = vsel %vm3856_vm0, %v5891_v58, %v5895_v8 }
 0x547   : > { %13553 = vst [vmem:[#allocation50_spill] sm:$0xff] %v12824_v50  ;;  %6242 = vmatprep.mubr.f32.mxu1 %v5886_v53  ;;  %9804 = vmatpush1.bf16.msra.mxu1 %v9803_v48  ;;  %v6560_v50 = vld [vmem:[#allocation11 + $0xd28] sm:$0xff]  ;;  %v5892_v48 = vsel %vm3856_vm0, %v5890_v7, %v5891_v58  ;;  %v6561_v53 = vld [vmem:[#allocation11 + $0xd30] sm:$0xff]  ;;  %v6570_v58 = vld [vmem:[#allocation11 + $0xd78] sm:$0xff] }
 0x548   : > { %9806 = vmatprep.subr.bf16.mxu1 %v9805_v56  ;;  %v5887_v56 = vrot.slane %v5735_v41, 2  ;;  %v9813_v15 = vpack.c.bf16 %v6562_v34, %v6560_v50  ;;  %v10887_v7 = vld [vmem:[#allocation2 + $0x138] sm:$0xff]  ;;  %v5742_v41 = vld [vmem:[#allocation2 + $0x148] sm:$0x3]  ;;  %v9815_v50 = vpack.c.bf16 %v6561_v53, %v6559_v46  ;;  %v5741_v53 = vld [vmem:[#allocation2 + $0x140] sm:$0x3] }
 0x549   : > { %v12827_v29 = vpop.f32.mrb[100].mxu0  ;;  %v6563_v34 = vld [vmem:[#allocation11 + $0xd40] sm:$0xff]  ;;  %v5905_v46 = vrot.slane %v5742_v41, 2 }
 0x54a   : > { %13554 = vst [vmem:[#allocation51_spill] sm:$0xff] %v12827_v29  ;;  %v12830_v14 = vpop.f32.mrb[101].mxu0  ;;  %6243 = vmatmul.mubr.f32.gmra.mrb[14].mxu1 %v5884_v16  ;;  %v5889_v36 = vsel %vm3856_vm0, %v5887_v56, %v5888_v30  ;;  %v6566_v16 = vld [vmem:[#allocation11 + $0xd58] sm:$0xff]  ;;  %v5894_v56 = vsel %vm3856_vm0, %v5888_v30, %v5893_v45  ;;  %v5903_v45 = vrot.slane %v5741_v53, 2  ;;  %v7373_v52 = vld [vmem:[#allocation11 + $0xf80] sm:$0xff] }
 0x54b   : > { %13555 = vst [vmem:[#allocation52_spill] sm:$0xff] %v12830_v14  ;;  %6248 = vmatprep.mubr.f32.mxu1 %v5892_v48  ;;  %9808 = vmatpush1.bf16.msra.mxu1 %v9807_v12  ;;  %v6564_v14 = vld [vmem:[#allocation11 + $0xd48] sm:$0xff]  ;;  %v5901_v12 = vrot.slane %v10887_v7, 2  ;;  %v6565_v48 = vld [vmem:[#allocation11 + $0xd50] sm:$0xff] }
 0x54c   : > { %9810 = vmatprep.subr.bf16.mxu1 %v9809_v28  ;;  %v5900_v28 = vrot.slane %v5740_v1, 2  ;;  %v9817_v44 = vpack.c.bf16 %v6566_v16, %v6564_v14  ;;  %v9819_v14 = vpack.c.bf16 %v6565_v48, %v6563_v34  ;;  %v6567_v16 = vld [vmem:[#allocation11 + $0xd60] sm:$0xff]  ;;  %v5744_v7 = vld [vmem:[#allocation2 + $0x158] sm:$0xfc]  ;;  %v5743_v34 = vld [vmem:[#allocation2 + $0x150] sm:$0xfc] }
 0x54d   : > { %v12833_v60 = vpop.f32.mrb[102].mxu0  ;;  %v5906_v41 = vsel %vm3856_vm0, %v5901_v12, %v5905_v46 }
 0x54e   : > { %13556 = vst [vmem:[#allocation53_spill] sm:$0xff] %v12833_v60  ;;  %v12836_v29 = vpop.f32.mrb[103].mxu0  ;;  %6249 = vmatmul.mubr.f32.gmra.mrb[16].mxu1 %v5889_v36  ;;  %v6568_v60 = vld [vmem:[#allocation11 + $0xd68] sm:$0xff] }
 0x54f   : > { %13557 = vst [vmem:[#allocation54_spill] sm:$0xff] %v12836_v29  ;;  %6254 = vmatprep.mubr.f32.mxu1 %v5896_v3  ;;  %9812 = vmatpush1.bf16.msra.mxu1 %v9811_v42  ;;  %v10888_v29 = vld [vmem:[#allocation2 + $0x130] sm:$0xff]  ;;  %v5902_v42 = vsel %vm3856_vm0, %v5900_v28, %v5901_v12  ;;  %v9821_v1 = vpack.c.bf16 %v6570_v58, %v6568_v60  ;;  %v10889_v28 = vld [vmem:[#allocation2 + $0x168] sm:$0xff]  ;;  %v6578_v12 = vld [vmem:[#allocation11 + $0xdb8] sm:$0xff] }
 0x550   : > { %9814 = vmatprep.subr.bf16.mxu1 %v9813_v15  ;;  %v5898_v36 = vrot.slane %v10888_v29, 2  ;;  %v5897_v15 = vrot.slane %v5739_v39, 2  ;;  %v6569_v3 = vld [vmem:[#allocation11 + $0xd70] sm:$0xff]  ;;  %v6571_v58 = vld [vmem:[#allocation11 + $0xd80] sm:$0xff] }
 0x551   : > { %v12839_v24 = vpop.f32.mrb[104].mxu0  ;;  %v5746_v39 = vld [vmem:[#allocation2 + $0x178] sm:$0x3]  ;;  %v9823_v60 = vpack.c.bf16 %v6569_v3, %v6567_v16  ;;  %v5745_v3 = vld [vmem:[#allocation2 + $0x170] sm:$0x3] }
 0x552   : > { %13558 = vst [vmem:[#allocation55_spill] sm:$0xff] %v12839_v24  ;;  %v12842_v8 = vpop.f32.mrb[105].mxu0  ;;  %6255 = vmatmul.mubr.f32.gmra.mrb[18].mxu1 %v5894_v56  ;;  %v5899_v29 = vsel %vm3856_vm0, %v5897_v15, %v5898_v36  ;;  %v6574_v56 = vld [vmem:[#allocation11 + $0xd98] sm:$0xff]  ;;  %v5904_v15 = vsel %vm3856_vm0, %v5898_v36, %v5903_v45  ;;  %v5915_v16 = vrot.slane %v5746_v39, 2  ;;  %v5913_v45 = vrot.slane %v5745_v3, 2 }
 0x553   : > { %13559 = vst [vmem:[#allocation56_spill] sm:$0xff] %v12842_v8  ;;  %6260 = vmatprep.mubr.f32.mxu1 %v5902_v42  ;;  %9816 = vmatpush1.bf16.msra.mxu1 %v9815_v50  ;;  %v6572_v8 = vld [vmem:[#allocation11 + $0xd88] sm:$0xff]  ;;  %v5911_v50 = vrot.slane %v10889_v28, 2  ;;  %v6573_v42 = vld [vmem:[#allocation11 + $0xd90] sm:$0xff] }
 0x554   : > { %9818 = vmatprep.subr.bf16.mxu1 %v9817_v44  ;;  %v5910_v44 = vrot.slane %v5744_v7, 2  ;;  %v9825_v48 = vpack.c.bf16 %v6574_v56, %v6572_v8  ;;  %v9827_v8 = vpack.c.bf16 %v6573_v42, %v6571_v58  ;;  %v6575_v56 = vld [vmem:[#allocation11 + $0xda0] sm:$0xff] }
 0x555   : > { %v12845_v30 = vpop.f32.mrb[106].mxu0  ;;  %v5748_v28 = vld [vmem:[#allocation2 + $0x188] sm:$0xfc]  ;;  %v5916_v39 = vsel %vm3856_vm0, %v5911_v50, %v5915_v16  ;;  %v5747_v58 = vld [vmem:[#allocation2 + $0x180] sm:$0xfc] }
 0x556   : > { %13560 = vst [vmem:[#allocation57_spill] sm:$0xff] %v12845_v30  ;;  %v12848_v24 = vpop.f32.mrb[107].mxu0  ;;  %6261 = vmatmul.mubr.f32.gmra.mrb[20].mxu1 %v5899_v29  ;;  %v6576_v30 = vld [vmem:[#allocation11 + $0xda8] sm:$0xff] }
 0x557   : > { %13561 = vst [vmem:[#allocation58_spill] sm:$0xff] %v12848_v24  ;;  %6266 = vmatprep.mubr.f32.mxu1 %v5906_v41  ;;  %9820 = vmatpush1.bf16.msra.mxu1 %v9819_v14  ;;  %v10890_v24 = vld [vmem:[#allocation2 + $0x160] sm:$0xff]  ;;  %v5912_v14 = vsel %vm3856_vm0, %v5910_v44, %v5911_v50  ;;  %v9829_v7 = vpack.c.bf16 %v6578_v12, %v6576_v30  ;;  %v6577_v41 = vld [vmem:[#allocation11 + $0xdb0] sm:$0xff] }
 0x558   : > { %9822 = vmatprep.subr.bf16.mxu1 %v9821_v1  ;;  %v5908_v29 = vrot.slane %v10890_v24, 2  ;;  %v5907_v1 = vrot.slane %v5743_v34, 2  ;;  %v10891_v44 = vld [vmem:[#allocation2 + $0x198] sm:$0xff]  ;;  %v5750_v34 = vld [vmem:[#allocation2 + $0x1a8] sm:$0x3]  ;;  %v9831_v30 = vpack.c.bf16 %v6577_v41, %v6575_v56 }
 0x559   : > { %v12851_v53 = vpop.f32.mrb[108].mxu0  ;;  %v6579_v12 = vld [vmem:[#allocation11 + $0xdc0] sm:$0xff]  ;;  %v6586_v50 = vld [vmem:[#allocation11 + $0xdf8] sm:$0xff]  ;;  %v5925_v56 = vrot.slane %v5750_v34, 2 }
 0x55a   : > { %13562 = vst [vmem:[#allocation59_spill] sm:$0xff] %v12851_v53  ;;  %v12854_v46 = vpop.f32.mrb[109].mxu0  ;;  %6267 = vmatmul.mubr.f32.gmra.mrb[22].mxu1 %v5904_v15  ;;  %v5909_v24 = vsel %vm3856_vm0, %v5907_v1, %v5908_v29  ;;  %v6582_v15 = vld [vmem:[#allocation11 + $0xdd8] sm:$0xff]  ;;  %v5914_v1 = vsel %vm3856_vm0, %v5908_v29, %v5913_v45 }
 0x55b   : > { %13563 = vst [vmem:[#allocation60_spill] sm:$0xff] %v12854_v46  ;;  %6272 = vmatprep.mubr.f32.mxu1 %v5912_v14  ;;  %9824 = vmatpush1.bf16.msra.mxu1 %v9823_v60  ;;  %v6580_v46 = vld [vmem:[#allocation11 + $0xdc8] sm:$0xff]  ;;  %v5921_v60 = vrot.slane %v10891_v44, 2  ;;  %v6581_v14 = vld [vmem:[#allocation11 + $0xdd0] sm:$0xff]  ;;  %v5749_v41 = vld [vmem:[#allocation2 + $0x1a0] sm:$0x3] }
 0x55c   : > { %9826 = vmatprep.subr.bf16.mxu1 %v9825_v48  ;;  %v5920_v48 = vrot.slane %v5748_v28, 2  ;;  %v9833_v42 = vpack.c.bf16 %v6582_v15, %v6580_v46  ;;  %v9835_v46 = vpack.c.bf16 %v6581_v14, %v6579_v12  ;;  %v6583_v15 = vld [vmem:[#allocation11 + $0xde0] sm:$0xff]  ;;  %v5923_v45 = vrot.slane %v5749_v41, 2  ;;  %v5752_v44 = vld [vmem:[#allocation2 + $0x1b8] sm:$0xfc] }
 0x55d   : > { %v12857_v36 = vpop.f32.mrb[110].mxu0  ;;  %v5926_v34 = vsel %vm3856_vm0, %v5921_v60, %v5925_v56  ;;  %v5751_v12 = vld [vmem:[#allocation2 + $0x1b0] sm:$0xfc]  ;;  %v10894_v41 = vld [vmem:[#allocation2 + $0x1c0] sm:$0xff] }
 0x55e   : > { %13564 = vst [vmem:[#allocation61_spill] sm:$0xff] %v12857_v36  ;;  %v12860_v53 = vpop.f32.mrb[111].mxu0  ;;  %6273 = vmatmul.mubr.f32.gmra.mrb[24].mxu1 %v5909_v24  ;;  %v6584_v36 = vld [vmem:[#allocation11 + $0xde8] sm:$0xff] }
 0x55f   : > { %13565 = vst [vmem:[#allocation62_spill] sm:$0xff] %v12860_v53  ;;  %6278 = vmatprep.mubr.f32.mxu1 %v5916_v39  ;;  %9828 = vmatpush1.bf16.msra.mxu1 %v9827_v8  ;;  %v10892_v53 = vld [vmem:[#allocation2 + $0x190] sm:$0xff]  ;;  %v5922_v8 = vsel %vm3856_vm0, %v5920_v48, %v5921_v60  ;;  %v9837_v28 = vpack.c.bf16 %v6586_v50, %v6584_v36  ;;  %v10893_v48 = vld [vmem:[#allocation2 + $0x1c8] sm:$0xff] }
 0x560   : > { %9830 = vmatprep.subr.bf16.mxu1 %v9829_v7  ;;  %v5918_v24 = vrot.slane %v10892_v53, 2  ;;  %v5917_v7 = vrot.slane %v5747_v58, 2  ;;  %v6585_v39 = vld [vmem:[#allocation11 + $0xdf0] sm:$0xff] }
 0x561   : > { %v12863_v3 = vpop.f32.mrb[112].mxu0  ;;  %v5754_v58 = vld [vmem:[#allocation2 + $0x1d8] sm:$0x3]  ;;  %v9839_v36 = vpack.c.bf16 %v6585_v39, %v6583_v15  ;;  %v5756_v39 = vld [vmem:[#allocation2 + $0x1e8] sm:$0xfc] }
 0x562   : > { %13566 = vst [vmem:[#allocation63_spill] sm:$0xff] %v12863_v3  ;;  %v12866_v16 = vpop.f32.mrb[113].mxu0  ;;  %6279 = vmatmul.mubr.f32.gmra.mrb[26].mxu1 %v5914_v1  ;;  %v5919_v53 = vsel %vm3856_vm0, %v5917_v7, %v5918_v24  ;;  %v7328_v1 = vld [vmem:[#allocation11 + $0xe18] sm:$0xff]  ;;  %v5928_v7 = vrot.slane %v10894_v41, 2  ;;  %v5935_v56 = vrot.slane %v5754_v58, 2 }
 0x563   : > { %13567 = vst [vmem:[#allocation64_spill] sm:$0xff] %v12866_v16  ;;  %6284 = vmatprep.mubr.f32.mxu1 %v5922_v8  ;;  %9832 = vmatpush1.bf16.msra.mxu1 %v9831_v30  ;;  %v7326_v16 = vld [vmem:[#allocation11 + $0xe08] sm:$0xff]  ;;  %v5931_v30 = vrot.slane %v10893_v48, 2  ;;  %v5924_v8 = vsel %vm3856_vm0, %v5918_v24, %v5923_v45  ;;  %v5940_v48 = vrot.slane %v5756_v39, 2  ;;  %v5755_v58 = vld [vmem:[#allocation2 + $0x1e0] sm:$0xfc] }
 0x564   : > { %9834 = vmatprep.subr.bf16.mxu1 %v9833_v42  ;;  %v5930_v42 = vrot.slane %v5752_v44, 2  ;;  %v9841_v14 = vpack.c.bf16 %v7328_v1, %v7326_v16  ;;  %v10895_v44 = vld [vmem:[#allocation2 + $0x1f8] sm:$0xff] }
 0x565   : > { %v12869_v29 = vpop.f32.mrb[114].mxu0  ;;  %v5936_v45 = vsel %vm3856_vm0, %v5931_v30, %v5935_v56  ;;  %v5941_v1 = vrot.slane %v10895_v44, 2  ;;  %v5760_v39 = vld [vmem:[#allocation2 + $0x218] sm:$0xfc] }
 0x566   : > { %13568 = vst [vmem:[#allocation65_spill] sm:$0xff] %v12869_v29  ;;  %v12872_v3 = vpop.f32.mrb[115].mxu0  ;;  %6285 = vmatmul.mubr.f32.gmra.mrb[28].mxu1 %v5919_v53  ;;  %v5932_v60 = vsel %vm3856_vm0, %v5930_v42, %v5931_v30  ;;  %v5753_v53 = vld [vmem:[#allocation2 + $0x1d0] sm:$0x3]  ;;  %v5937_v30 = vrot.slane %v5755_v58, 2  ;;  %v7371_v29 = vld [vmem:[#allocation11 + $0xf70] sm:$0xff] }
 0x567   : > { %13569 = vst [vmem:[#allocation66_spill] sm:$0xff] %v12872_v3  ;;  %6290 = vmatprep.mubr.f32.mxu1 %v5926_v34  ;;  %9836 = vmatpush1.bf16.msra.mxu1 %v9835_v46  ;;  %v5927_v46 = vrot.slane %v5751_v12, 2  ;;  %v5758_v34 = vld [vmem:[#allocation2 + $0x208] sm:$0x3]  ;;  %v10896_v12 = vld [vmem:[#allocation2 + $0x1f0] sm:$0xff]  ;;  %v5942_v41 = vsel %vm3856_vm0, %v5940_v48, %v5941_v1  ;;  %v5950_v48 = vrot.slane %v5760_v39, 2 }
 0x568   : > { %9838 = vmatprep.subr.bf16.mxu1 %v9837_v28  ;;  %v5933_v28 = vrot.slane %v5753_v53, 2  ;;  %v5757_v53 = vld [vmem:[#allocation2 + $0x200] sm:$0x3] }
 0x569   : > { %v12875_v50 = vpop.f32.mrb[116].mxu0  ;;  %v5929_v16 = vsel %vm3856_vm0, %v5927_v46, %v5928_v7 }
 0x56a   : > { %13570 = vst [vmem:[#allocation67_spill] sm:$0xff] %v12875_v50  ;;  %v12878_v3 = vpop.f32.mrb[117].mxu0  ;;  %6291 = vmatmul.mubr.f32.gmra.mrb[30].mxu1 %v5924_v8  ;;  %v7365_v50 = vld [vmem:[#allocation11 + $0xf40] sm:$0xff] }
 0x56b   : > { %13571 = vst [vmem:[#allocation68_spill] sm:$0xff] %v12878_v3  ;;  %6296 = vmatprep.mubr.f32.mxu1 %v5932_v60  ;;  %9840 = vmatpush1.bf16.msra.mxu1 %v9839_v36  ;;  %v5934_v36 = vsel %vm3856_vm0, %v5928_v7, %v5933_v28  ;;  %v5945_v60 = vrot.slane %v5758_v34, 2  ;;  %v10897_v28 = vld [vmem:[#allocation2 + $0x228] sm:$0xff]  ;;  %v5759_v34 = vld [vmem:[#allocation2 + $0x210] sm:$0xfc] }
 0x56c   : > { %9842 = vmatprep.subr.bf16.mxu1 %v9841_v14  ;;  %v5938_v14 = vrot.slane %v10896_v12, 2  ;;  %v5951_v44 = vrot.slane %v10897_v28, 2  ;;  %v5764_v28 = vld [vmem:[#allocation2 + $0x248] sm:$0xfc]  ;;  %v7363_v3 = vld [vmem:[#allocation11 + $0xf30] sm:$0xff] }
 0x56d   : > { %v12881_v15 = vpop.f32.mrb[118].mxu0  ;;  %v5946_v7 = vsel %vm3856_vm0, %v5941_v1, %v5945_v60  ;;  %v5947_v1 = vrot.slane %v5759_v34, 2  ;;  %v10900_v34 = vld [vmem:[#allocation2 + $0x250] sm:$0xff] }
 0x56e   : > { %13572 = vst [vmem:[#allocation69_spill] sm:$0xff] %v12881_v15  ;;  %v12884_v24 = vpop.f32.mrb[119].mxu0  ;;  %6297 = vmatmul.mubr.f32.gmra.mrb[32].mxu1 %v5929_v16  ;;  %v5939_v46 = vsel %vm3856_vm0, %v5937_v30, %v5938_v14  ;;  %v5943_v16 = vrot.slane %v5757_v53, 2  ;;  %v5952_v53 = vsel %vm3856_vm0, %v5950_v48, %v5951_v44  ;;  %v5960_v48 = vrot.slane %v5764_v28, 2  ;;  %v10901_v28 = vld [vmem:[#allocation2 + $0x288] sm:$0xff] }
 0x56f   : > { %13573 = vst [vmem:[#allocation70_spill] sm:$0xff] %v12884_v24  ;;  %6302 = vmatprep.mubr.f32.mxu1 %v5936_v45  ;;  %v7355_v24 = vld [vmem:[#allocation11 + $0xef0] sm:$0xff]  ;;  %v7357_v15 = vld [vmem:[#allocation11 + $0xf00] sm:$0xff] }
 0x570   : > { %v5944_v58 = vsel %vm3856_vm0, %v5938_v14, %v5943_v16  ;;  %v10899_v16 = vld [vmem:[#allocation2 + $0x258] sm:$0xff] }
 0x571   : > { %v12887_v42 = vpop.f32.mrb[120].mxu0 }
 0x572   : > { %13574 = vst [vmem:[#allocation71_spill] sm:$0xff] %v12887_v42  ;;  %v12890_v8 = vpop.f32.mrb[121].mxu0  ;;  %6303 = vmatmul.mubr.f32.gmra.mrb[34].mxu1 %v5934_v36  ;;  %v5762_v36 = vld [vmem:[#allocation2 + $0x238] sm:$0x3]  ;;  %v7349_v42 = vld [vmem:[#allocation11 + $0xec0] sm:$0xff] }
 0x573   : > { %13575 = vst [vmem:[#allocation72_spill] sm:$0xff] %v12890_v8  ;;  %6308 = vmatprep.mubr.f32.mxu1 %v5942_v41  ;;  %v10898_v41 = vld [vmem:[#allocation2 + $0x220] sm:$0xff]  ;;  %v7347_v8 = vld [vmem:[#allocation11 + $0xeb0] sm:$0xff] }
 0x575   : > { %v12893_v56 = vpop.f32.mrb[122].mxu0 }
 0x576   : > { %13576 = vst [vmem:[#allocation73_spill] sm:$0xff] %v12893_v56  ;;  %v12896_v45 = vpop.f32.mrb[123].mxu0  ;;  %6309 = vmatmul.mubr.f32.gmra.mrb[36].mxu1 %v5939_v46  ;;  %v5948_v56 = vrot.slane %v10898_v41, 2  ;;  %v5955_v46 = vrot.slane %v5762_v36, 2  ;;  %v5961_v41 = vrot.slane %v10899_v16, 2  ;;  %v5971_v16 = vrot.slane %v10901_v28, 2 }
 0x577   : > { %13577 = vst [vmem:[#allocation74_spill] sm:$0xff] %v12896_v45  ;;  %6314 = vmatprep.mubr.f32.mxu1 %v5946_v7  ;;  %v5761_v45 = vld [vmem:[#allocation2 + $0x230] sm:$0x3]  ;;  %v5763_v36 = vld [vmem:[#allocation2 + $0x240] sm:$0xfc] }
 0x578   : > { %v5949_v39 = vsel %vm3856_vm0, %v5947_v1, %v5948_v56  ;;  %v5953_v7 = vrot.slane %v5761_v45, 2  ;;  %v5956_v14 = vsel %vm3856_vm0, %v5951_v44, %v5955_v46  ;;  %v5962_v1 = vsel %vm3856_vm0, %v5960_v48, %v5961_v41  ;;  %v5768_v46 = vld [vmem:[#allocation2 + $0x278] sm:$0xfc]  ;;  %v10902_v48 = vld [vmem:[#allocation2 + $0x280] sm:$0xff] }
 0x579   : > { %v12899_v12 = vpop.f32.mrb[124].mxu0 }
 0x57a   : > { %13578 = vst [vmem:[#allocation75_spill] sm:$0xff] %v12899_v12  ;;  %v12902_v30 = vpop.f32.mrb[125].mxu0  ;;  %6315 = vmatmul.mubr.f32.gmra.mrb[38].mxu1 %v5944_v58  ;;  %v5766_v58 = vld [vmem:[#allocation2 + $0x268] sm:$0x3] }
 0x57b   : > { %13579 = vst [vmem:[#allocation76_spill] sm:$0xff] %v12902_v30  ;;  %6320 = vmatprep.mubr.f32.mxu1 %v5952_v53  ;;  %v5954_v53 = vsel %vm3856_vm0, %v5948_v56, %v5953_v7  ;;  %v5958_v30 = vrot.slane %v10900_v34, 2  ;;  %v5965_v45 = vrot.slane %v5766_v58, 2  ;;  %v5770_v56 = vld [vmem:[#allocation2 + $0x298] sm:$0x3]  ;;  %v5970_v7 = vrot.slane %v5768_v46, 2 }
 0x57c   : > { %v5767_v34 = vld [vmem:[#allocation2 + $0x270] sm:$0xfc]  ;;  %v5968_v58 = vrot.slane %v10902_v48, 2  ;;  %v10903_v46 = vld [vmem:[#allocation2 + $0x2b8] sm:$0xff]  ;;  %v5771_v48 = vld [vmem:[#allocation2 + $0x2a0] sm:$0xfc] }
 0x57d   : > { %v12905_v60 = vpop.f32.mrb[126].mxu0  ;;  %v5981_v28 = vrot.slane %v10903_v46, 2 }
 0x57e   : > { %13580 = vst [vmem:[#allocation77_spill] sm:$0xff] %v12905_v60  ;;  %v12908_v12 = vpop.f32.mrb[127].mxu0  ;;  %6321 = vmatmul.mubr.f32.gmra.mrb[40].mxu1 %v5949_v39  ;;  %v5765_v60 = vld [vmem:[#allocation2 + $0x260] sm:$0x3] }
 0x57f   : > { %13581 = vst [vmem:[#allocation78_spill] sm:$0xff] %v12908_v12  ;;  %6326 = vmatprep.mubr.f32.mxu1 %v5956_v14  ;;  %v5957_v12 = vrot.slane %v5763_v36, 2  ;;  %v5963_v44 = vrot.slane %v5765_v60, 2  ;;  %v5966_v14 = vsel %vm3856_vm0, %v5961_v41, %v5965_v45  ;;  %v5972_v36 = vsel %vm3856_vm0, %v5970_v7, %v5971_v16  ;;  %v5772_v45 = vld [vmem:[#allocation2 + $0x2a8] sm:$0xfc]  ;;  %v10904_v7 = vld [vmem:[#allocation2 + $0x2b0] sm:$0xff] }
 0x580   : > { %v5967_v60 = vrot.slane %v5767_v34, 2 }
 0x581   : > { %v5959_v39 = vsel %vm3856_vm0, %v5957_v12, %v5958_v30  ;;  %v5769_v12 = vld [vmem:[#allocation2 + $0x290] sm:$0x3] }
 0x582   : > { %6327 = vmatmul.mubr.f32.gmra.mrb[42].mxu1 %v5954_v53  ;;  %v5964_v53 = vsel %vm3856_vm0, %v5958_v30, %v5963_v44  ;;  %v5973_v41 = vrot.slane %v5769_v12, 2  ;;  %v5774_v30 = vld [vmem:[#allocation2 + $0x2c8] sm:$0x3]  ;;  %v5980_v44 = vrot.slane %v5772_v45, 2  ;;  %v5977_v12 = vrot.slane %v5771_v48, 2 }
 0x583   : > { %6332 = vmatprep.mubr.f32.mxu1 %v5962_v1  ;;  %v5975_v1 = vrot.slane %v5770_v56, 2  ;;  %v5978_v56 = vrot.slane %v10904_v7, 2  ;;  %v10905_v45 = vld [vmem:[#allocation2 + $0x2e8] sm:$0xff]  ;;  %v5775_v7 = vld [vmem:[#allocation2 + $0x2d0] sm:$0xfc] }
 0x584   : > { %v5982_v34 = vsel %vm3856_vm0, %v5980_v44, %v5981_v28  ;;  %v5991_v46 = vrot.slane %v10905_v45, 2  ;;  %v10906_v44 = vld [vmem:[#allocation2 + $0x2e0] sm:$0xff] }
 0x585   : > { %v5779_v45 = vld [vmem:[#allocation2 + $0x300] sm:$0xfc] }
 0x586   : > { %6333 = vmatmul.mubr.f32.gmra.mrb[44].mxu1 %v5959_v39  ;;  %v5969_v39 = vsel %vm3856_vm0, %v5967_v60, %v5968_v58  ;;  %v5773_v60 = vld [vmem:[#allocation2 + $0x2c0] sm:$0x3] }
 0x587   : > { %6338 = vmatprep.mubr.f32.mxu1 %v5966_v14  ;;  %v5976_v14 = vsel %vm3856_vm0, %v5971_v16, %v5975_v1  ;;  %v5983_v16 = vrot.slane %v5773_v60, 2  ;;  %v5776_v1 = vld [vmem:[#allocation2 + $0x2d8] sm:$0xfc]  ;;  %v5987_v60 = vrot.slane %v5775_v7, 2 }
 0x58a   : > { %6339 = vmatmul.mubr.f32.gmra.mrb[46].mxu1 %v5964_v53  ;;  %v5974_v53 = vsel %vm3856_vm0, %v5968_v58, %v5973_v41  ;;  %v5778_v58 = vld [vmem:[#allocation2 + $0x2f8] sm:$0x3]  ;;  %v5990_v41 = vrot.slane %v5776_v1, 2  ;;  %v6001_v1 = vrot.slane %v12757_v19, 2 }
 0x58b   : > { %6344 = vmatprep.mubr.f32.mxu1 %v5972_v36  ;;  %v5985_v36 = vrot.slane %v5774_v30, 2  ;;  %v5988_v30 = vrot.slane %v10906_v44, 2 }
 0x58c   : > { %v5992_v48 = vsel %vm3856_vm0, %v5990_v41, %v5991_v46  ;;  %v10907_v41 = vld [vmem:[#allocation2 + $0x310] sm:$0xff] }
 0x58e   : > { %6345 = vmatmul.mubr.f32.gmra.mrb[48].mxu1 %v5969_v39  ;;  %v5979_v39 = vsel %vm3856_vm0, %v5977_v12, %v5978_v56  ;;  %v5777_v12 = vld [vmem:[#allocation2 + $0x2f0] sm:$0x3] }
 0x58f   : > { %6350 = vmatprep.mubr.f32.mxu1 %v5976_v14  ;;  %v5986_v14 = vsel %vm3856_vm0, %v5981_v28, %v5985_v36  ;;  %v5993_v28 = vrot.slane %v5777_v12, 2  ;;  %v5780_v36 = vld [vmem:[#allocation2 + $0x308] sm:$0xfc]  ;;  %v5997_v12 = vrot.slane %v5779_v45, 2  ;;  %v7331_v45 = vld [vmem:[#allocation11 + $0xe30] sm:$0xff] }
 0x592   : > { %6351 = vmatmul.mubr.f32.gmra.mrb[50].mxu1 %v5974_v53  ;;  %v5984_v53 = vsel %vm3856_vm0, %v5978_v56, %v5983_v16  ;;  %v5782_v56 = vld [vmem:[#allocation2 + $0x328] sm:$0x3]  ;;  %v6000_v16 = vrot.slane %v5780_v36, 2  ;;  %v7332_v36 = vld [vmem:[#allocation11 + $0xe38] sm:$0xff] }
 0x593   : > { %6356 = vmatprep.mubr.f32.mxu1 %v5982_v34  ;;  %v5995_v34 = vrot.slane %v5778_v58, 2  ;;  %v5998_v58 = vrot.slane %v10907_v41, 2  ;;  %v6005_v44 = vrot.slane %v5782_v56, 2  ;;  %v6458_v41 = vld [vmem:[#allocation2 + $0x60] sm:$0xff] }
 0x594   : > { %v6002_v7 = vsel %vm3856_vm0, %v6000_v16, %v6001_v1 }
 0x595   : > { %v6006_v19 = vsel %vm3856_vm0, %v6001_v1, %v6005_v44  ;;  %v7333_v44 = vld [vmem:[#allocation11 + $0xe40] sm:$0xff] }
 0x596   : > { %6357 = vmatmul.mubr.f32.gmra.mrb[52].mxu1 %v5979_v39  ;;  %v5989_v39 = vsel %vm3856_vm0, %v5987_v60, %v5988_v30  ;;  %v5999_v60 = vsel %vm3856_vm0, %v5997_v12, %v5998_v58  ;;  %v12933_v12 = vld [vmem:[#allocation2 + $0x78] sm:$0xff] }
 0x597   : > { %6362 = vmatprep.mubr.f32.mxu1 %v5986_v14  ;;  %v5996_v14 = vsel %vm3856_vm0, %v5991_v46, %v5995_v34  ;;  %v7325_v34 = vld [vmem:[#allocation11 + $0xe00] sm:$0xff]  ;;  %v7104_v37 = vrot.slane %v12933_v12, 1 }
 0x59a   : > { %6363 = vmatmul.mubr.f32.gmra.mrb[54].mxu1 %v5984_v53  ;;  %v5994_v53 = vsel %vm3856_vm0, %v5988_v30, %v5993_v28  ;;  %v7330_v28 = vld [vmem:[#allocation11 + $0xe28] sm:$0xff] }
 0x59b   : > { %6368 = vmatprep.mubr.f32.mxu1 %v5992_v48  ;;  %v5781_v48 = vld [vmem:[#allocation2 + $0x320] sm:$0x3]  ;;  %v9845_v16 = vpack.c.bf16 %v7332_v36, %v7330_v28  ;;  %v7337_v36 = vld [vmem:[#allocation11 + $0xe60] sm:$0xff] }
 0x59c   : > { %v6003_v46 = vrot.slane %v5781_v48, 2  ;;  %v7336_v48 = vld [vmem:[#allocation11 + $0xe58] sm:$0xff] }
 0x59e   : > { %6369 = vmatmul.mubr.f32.gmra.mrb[56].mxu1 %v5989_v39  ;;  %v7327_v39 = vld [vmem:[#allocation11 + $0xe10] sm:$0xff]  ;;  %v6004_v30 = vsel %vm3856_vm0, %v5998_v58, %v6003_v46 }
 0x59f   : > { %6374 = vmatprep.mubr.f32.mxu1 %v5996_v14  ;;  %v6459_v14 = vld [vmem:[#allocation2 + $0x68] sm:$0xff]  ;;  %v9843_v56 = vpack.c.bf16 %v7327_v39, %v7325_v34  ;;  %v12936_v46 = vld [vmem:[#allocation2 + $0x70] sm:$0xff]  ;;  %v7340_v34 = vld [vmem:[#allocation11 + $0xe78] sm:$0xff] }
 0x5a0   : > { %v6463_v39 = vld [vmem:[#allocation2 + $0x98] sm:$0xff]  ;;  %v7101_v63 = vrot.slane %v12936_v46, 1 }
 0x5a2   : > { %6375 = vmatmul.mubr.f32.gmra.mrb[58].mxu1 %v5994_v53  ;;  %v7329_v53 = vld [vmem:[#allocation11 + $0xe20] sm:$0xff] }
 0x5a3   : > { %6380 = vmatprep.mubr.f32.mxu1 %v6002_v7  ;;  %v7334_v7 = vld [vmem:[#allocation11 + $0xe48] sm:$0xff]  ;;  %v9847_v1 = vpack.c.bf16 %v7331_v45, %v7329_v53 }
 0x5a4   : > { %v9849_v58 = vpack.c.bf16 %v7336_v48, %v7334_v7  ;;  %v7342_v53 = vld [vmem:[#allocation11 + $0xe88] sm:$0xff]  ;;  %v7341_v48 = vld [vmem:[#allocation11 + $0xe80] sm:$0xff] }
 0x5a5   : > { %v12939_v45 = vld [vmem:[#allocation2 + $0xa8] sm:$0xff] }
 0x5a6   : > { %6381 = vmatmul.mubr.f32.gmra.mrb[60].mxu1 %v5999_v60  ;;  %v7335_v60 = vld [vmem:[#allocation11 + $0xe50] sm:$0xff]  ;;  %v7114_v13 = vrot.slane %v12939_v45, 1 }
 0x5a7   : > { %6386 = vmatprep.mubr.f32.mxu1 %v6006_v19  ;;  %v7338_v19 = vld [vmem:[#allocation11 + $0xe68] sm:$0xff] }
 0x5a8   : > { %v9853_v28 = vpack.c.bf16 %v7340_v34, %v7338_v19 }
 0x5aa   : > { %6387 = vmatmul.mubr.f32.gmra.mrb[62].mxu1 %v6004_v30  ;;  %v9851_v30 = vpack.c.bf16 %v7335_v60, %v7333_v44  ;;  %v7348_v44 = vld [vmem:[#allocation11 + $0xeb8] sm:$0xff]  ;;  %v6467_v60 = vld [vmem:[#allocation2 + $0xc8] sm:$0xff] }
 0x5ab   : > { %6651 = vmatprep.mubr.f32.mxu1 %v6459_v14  ;;  %v7339_v14 = vld [vmem:[#allocation11 + $0xe70] sm:$0xff] }
 0x5ae   : > { %6652 = vmatmul.mubr.f32.vlgmr.msra.gmra.mrb[0].mxu1 %v6458_v41  ;;  %v9855_v41 = vpack.c.bf16 %v7339_v14, %v7337_v36  ;;  %v7350_v36 = vld [vmem:[#allocation11 + $0xec8] sm:$0xff]  ;;  %v12945_v14 = vld [vmem:[#allocation2 + $0xd8] sm:$0xff] }
 0x5af   : > { %6657 = vmatprep.mubr.f32.mxu1 %v12933_v12  ;;  %9844 = vmatpush1.bf16.msra.mxu1 %v9843_v56  ;;  %v6462_v56 = vld [vmem:[#allocation2 + $0x90] sm:$0xff]  ;;  %v9907_v12 = vpack.c.bf16 %v8065_v6, %v8063_v17 }
 0x5b0   : > { %9846 = vmatprep.subr.bf16.mxu1 %v9845_v16  ;;  %v7344_v16 = vld [vmem:[#allocation11 + $0xe98] sm:$0xff]  ;;  %v6914_v6 = vld [vmem:[#allocation2 + $0x90] sm:$0xfe] }
 0x5b1   : > { %v9857_v7 = vpack.c.bf16 %v7344_v16, %v7342_v53  ;;  %v8073_v17 = vld [vmem:[#allocation11 + $0x1050] sm:$0xff] }
 0x5b2   : > { %6658 = vmatmul.mubr.f32.gmra.mrb[2].mxu1 %v12936_v46  ;;  %v8074_v46 = vld [vmem:[#allocation11 + $0x1058] sm:$0xff]  ;;  %v9915_v9 = vpack.c.bf16 %v8073_v17, %v8071_v47  ;;  %v8079_v17 = vld [vmem:[#allocation11 + $0x1080] sm:$0xff] }
 0x5b3   : > { %6663 = vmatprep.mubr.f32.mxu1 %v6463_v39  ;;  %9848 = vmatpush1.bf16.msra.mxu1 %v9847_v1  ;;  %v7343_v39 = vld [vmem:[#allocation11 + $0xe90] sm:$0xff]  ;;  %v12942_v1 = vld [vmem:[#allocation2 + $0xa0] sm:$0xff]  ;;  %v9913_v0 = vpack.c.bf16 %v8074_v46, %v8072_v38 }
 0x5b4   : > { %9850 = vmatprep.subr.bf16.mxu1 %v9849_v58  ;;  %v7346_v58 = vld [vmem:[#allocation11 + $0xea8] sm:$0xff]  ;;  %v9859_v19 = vpack.c.bf16 %v7343_v39, %v7341_v48  ;;  %v7356_v48 = vld [vmem:[#allocation11 + $0xef8] sm:$0xff]  ;;  %v7111_v23 = vrot.slane %v12942_v1, 1  ;;  %v8075_v38 = vld [vmem:[#allocation11 + $0x1060] sm:$0xff] }
 0x5b5   : > { %v9861_v34 = vpack.c.bf16 %v7348_v44, %v7346_v58  ;;  %v6471_v39 = vld [vmem:[#allocation2 + $0xf8] sm:$0xff] }
 0x5b6   : > { %6664 = vmatmul.mubr.f32.gmra.mrb[4].mxu1 %v6462_v56  ;;  %v7345_v56 = vld [vmem:[#allocation11 + $0xea0] sm:$0xff] }
 0x5b7   : > { %6669 = vmatprep.mubr.f32.mxu1 %v12939_v45  ;;  %9852 = vmatpush1.bf16.msra.mxu1 %v9851_v30  ;;  %v6466_v30 = vld [vmem:[#allocation2 + $0xc0] sm:$0xff]  ;;  %v9863_v53 = vpack.c.bf16 %v7347_v8, %v7345_v56  ;;  %v7358_v8 = vld [vmem:[#allocation11 + $0xf08] sm:$0xff]  ;;  %v7110_v45 = vrot.slane %v6914_v6, 1 }
 0x5b8   : > { %9854 = vmatprep.subr.bf16.mxu1 %v9853_v28  ;;  %v7352_v28 = vld [vmem:[#allocation11 + $0xed8] sm:$0xff]  ;;  %v12951_v56 = vld [vmem:[#allocation2 + $0x108] sm:$0xff] }
 0x5b9   : > { %v9865_v16 = vpack.c.bf16 %v7352_v28, %v7350_v36 }
 0x5ba   : > { %6670 = vmatmul.mubr.f32.gmra.mrb[6].mxu1 %v12942_v1  ;;  %v8080_v1 = vld [vmem:[#allocation11 + $0x1088] sm:$0xff] }
 0x5bb   : > { %6675 = vmatprep.mubr.f32.mxu1 %v6467_v60  ;;  %9856 = vmatpush1.bf16.msra.mxu1 %v9855_v41  ;;  %v7351_v60 = vld [vmem:[#allocation11 + $0xed0] sm:$0xff] }
 0x5bc   : > { %9858 = vmatprep.subr.bf16.mxu1 %v9857_v7  ;;  %v12948_v41 = vld [vmem:[#allocation2 + $0xd0] sm:$0xff]  ;;  %v9867_v58 = vpack.c.bf16 %v7351_v60, %v7349_v42  ;;  %v6475_v60 = vld [vmem:[#allocation2 + $0x128] sm:$0xff] }
 0x5bd   : > { %v7354_v7 = vld [vmem:[#allocation11 + $0xee8] sm:$0xff] }
 0x5be   : > { %6676 = vmatmul.mubr.f32.gmra.mrb[8].mxu1 %v6466_v30  ;;  %v9869_v44 = vpack.c.bf16 %v7356_v48, %v7354_v7  ;;  %v7353_v30 = vld [vmem:[#allocation11 + $0xee0] sm:$0xff]  ;;  %v7362_v42 = vld [vmem:[#allocation11 + $0xf28] sm:$0xff] }
 0x5bf   : > { %6681 = vmatprep.mubr.f32.mxu1 %v12945_v14  ;;  %9860 = vmatpush1.bf16.msra.mxu1 %v9859_v19  ;;  %v6470_v19 = vld [vmem:[#allocation2 + $0xf0] sm:$0xff]  ;;  %v9871_v36 = vpack.c.bf16 %v7355_v24, %v7353_v30  ;;  %v12957_v30 = vld [vmem:[#allocation2 + $0x138] sm:$0xff] }
 0x5c0   : > { %9862 = vmatprep.subr.bf16.mxu1 %v9861_v34  ;;  %v7360_v34 = vld [vmem:[#allocation11 + $0xf18] sm:$0xff]  ;;  %v7366_v24 = vld [vmem:[#allocation11 + $0xf48] sm:$0xff] }
 0x5c1   : > { %v9873_v28 = vpack.c.bf16 %v7360_v34, %v7358_v8 }
 0x5c2   : > { %6682 = vmatmul.mubr.f32.gmra.mrb[10].mxu1 %v12948_v41 }
 0x5c3   : > { %6687 = vmatprep.mubr.f32.mxu1 %v6471_v39  ;;  %9864 = vmatpush1.bf16.msra.mxu1 %v9863_v53  ;;  %v7359_v39 = vld [vmem:[#allocation11 + $0xf10] sm:$0xff]  ;;  %v12954_v53 = vld [vmem:[#allocation2 + $0x100] sm:$0xff] }
 0x5c4   : > { %9866 = vmatprep.subr.bf16.mxu1 %v9865_v16  ;;  %v7364_v16 = vld [vmem:[#allocation11 + $0xf38] sm:$0xff]  ;;  %v9875_v7 = vpack.c.bf16 %v7359_v39, %v7357_v15  ;;  %v7370_v15 = vld [vmem:[#allocation11 + $0xf68] sm:$0xff] }
 0x5c5   : > { %v9877_v48 = vpack.c.bf16 %v7364_v16, %v7362_v42  ;;  %v6479_v39 = vld [vmem:[#allocation2 + $0x158] sm:$0xff] }
 0x5c6   : > { %6688 = vmatmul.mubr.f32.gmra.mrb[12].mxu1 %v6470_v19  ;;  %v7361_v19 = vld [vmem:[#allocation11 + $0xf20] sm:$0xff] }
 0x5c7   : > { %6693 = vmatprep.mubr.f32.mxu1 %v12951_v56  ;;  %9868 = vmatpush1.bf16.msra.mxu1 %v9867_v58  ;;  %v6474_v58 = vld [vmem:[#allocation2 + $0x120] sm:$0xff]  ;;  %v9879_v8 = vpack.c.bf16 %v7363_v3, %v7361_v19  ;;  %v7374_v3 = vld [vmem:[#allocation11 + $0xf88] sm:$0xff] }
 0x5c8   : > { %9870 = vmatprep.subr.bf16.mxu1 %v9869_v44  ;;  %v7368_v44 = vld [vmem:[#allocation11 + $0xf58] sm:$0xff]  ;;  %v12963_v19 = vld [vmem:[#allocation2 + $0x168] sm:$0xff] }
 0x5c9   : > { %v9881_v34 = vpack.c.bf16 %v7368_v44, %v7366_v24 }
 0x5ca   : > { %6694 = vmatmul.mubr.f32.gmra.mrb[14].mxu1 %v12954_v53 }
 0x5cb   : > { %6699 = vmatprep.mubr.f32.mxu1 %v6475_v60  ;;  %9872 = vmatpush1.bf16.msra.mxu1 %v9871_v36  ;;  %v7367_v60 = vld [vmem:[#allocation11 + $0xf50] sm:$0xff] }
 0x5cc   : > { %9874 = vmatprep.subr.bf16.mxu1 %v9873_v28  ;;  %v12960_v36 = vld [vmem:[#allocation2 + $0x130] sm:$0xff]  ;;  %v7372_v28 = vld [vmem:[#allocation11 + $0xf78] sm:$0xff]  ;;  %v9883_v42 = vpack.c.bf16 %v7367_v60, %v7365_v50  ;;  %v6483_v60 = vld [vmem:[#allocation2 + $0x188] sm:$0xff] }
 0x5cd   : > { %v9885_v16 = vpack.c.bf16 %v7372_v28, %v7370_v15  ;;  %v7378_v50 = vld [vmem:[#allocation11 + $0xfa8] sm:$0xff] }
 0x5ce   : > { %6700 = vmatmul.mubr.f32.gmra.mrb[16].mxu1 %v6474_v58  ;;  %v7369_v58 = vld [vmem:[#allocation11 + $0xf60] sm:$0xff] }
 0x5cf   : > { %6705 = vmatprep.mubr.f32.mxu1 %v12957_v30  ;;  %9876 = vmatpush1.bf16.msra.mxu1 %v9875_v7  ;;  %v6478_v7 = vld [vmem:[#allocation2 + $0x150] sm:$0xff]  ;;  %v9887_v24 = vpack.c.bf16 %v7371_v29, %v7369_v58  ;;  %v12969_v58 = vld [vmem:[#allocation2 + $0x198] sm:$0xff] }
 0x5d0   : > { %9878 = vmatprep.subr.bf16.mxu1 %v9877_v48  ;;  %v7376_v48 = vld [vmem:[#allocation11 + $0xf98] sm:$0xff]  ;;  %v7382_v29 = vld [vmem:[#allocation11 + $0xfc8] sm:$0xff] }
 0x5d1   : > { %v9889_v44 = vpack.c.bf16 %v7376_v48, %v7374_v3 }
 0x5d2   : > { %6706 = vmatmul.mubr.f32.gmra.mrb[18].mxu1 %v12960_v36 }
 0x5d3   : > { %6711 = vmatprep.mubr.f32.mxu1 %v6479_v39  ;;  %9880 = vmatpush1.bf16.msra.mxu1 %v9879_v8  ;;  %v7375_v39 = vld [vmem:[#allocation11 + $0xf90] sm:$0xff]  ;;  %v12966_v8 = vld [vmem:[#allocation2 + $0x160] sm:$0xff] }
 0x5d4   : > { %9882 = vmatprep.subr.bf16.mxu1 %v9881_v34  ;;  %v7380_v34 = vld [vmem:[#allocation11 + $0xfb8] sm:$0xff]  ;;  %v9891_v15 = vpack.c.bf16 %v7375_v39, %v7373_v52  ;;  %v7386_v52 = vld [vmem:[#allocation11 + $0xfe8] sm:$0xff] }
 0x5d5   : > { %v9893_v28 = vpack.c.bf16 %v7380_v34, %v7378_v50  ;;  %v6487_v39 = vld [vmem:[#allocation2 + $0x1b8] sm:$0xff] }
 0x5d6   : > { %6712 = vmatmul.mubr.f32.gmra.mrb[20].mxu1 %v6478_v7  ;;  %v7377_v7 = vld [vmem:[#allocation11 + $0xfa0] sm:$0xff] }
 0x5d7   : > { %6717 = vmatprep.mubr.f32.mxu1 %v12963_v19  ;;  %9884 = vmatpush1.bf16.msra.mxu1 %v9883_v42  ;;  %v6482_v42 = vld [vmem:[#allocation2 + $0x180] sm:$0xff]  ;;  %v9895_v3 = vpack.c.bf16 %v7379_v57, %v7377_v7  ;;  %v8064_v57 = vld [vmem:[#allocation11 + $0x1008] sm:$0xff] }
 0x5d8   : > { %9886 = vmatprep.subr.bf16.mxu1 %v9885_v16  ;;  %v7384_v16 = vld [vmem:[#allocation11 + $0xfd8] sm:$0xff]  ;;  %v12975_v7 = vld [vmem:[#allocation2 + $0x1c8] sm:$0xff] }
 0x5d9   : > { %v9897_v48 = vpack.c.bf16 %v7384_v16, %v7382_v29 }
 0x5da   : > { %6718 = vmatmul.mubr.f32.gmra.mrb[22].mxu1 %v12966_v8 }
 0x5db   : > { %6723 = vmatprep.mubr.f32.mxu1 %v6483_v60  ;;  %9888 = vmatpush1.bf16.msra.mxu1 %v9887_v24  ;;  %v7383_v60 = vld [vmem:[#allocation11 + $0xfd0] sm:$0xff] }
 0x5dc   : > { %9890 = vmatprep.subr.bf16.mxu1 %v9889_v44  ;;  %v12972_v24 = vld [vmem:[#allocation2 + $0x190] sm:$0xff]  ;;  %v7388_v44 = vld [vmem:[#allocation11 + $0xff8] sm:$0xff]  ;;  %v9899_v50 = vpack.c.bf16 %v7383_v60, %v7381_v22  ;;  %v6491_v22 = vld [vmem:[#allocation2 + $0x1e8] sm:$0xff] }
 0x5dd   : > { %v9901_v34 = vpack.c.bf16 %v7388_v44, %v7386_v52  ;;  %v12984_v60 = vld [vmem:[#allocation2 + $0x1f0] sm:$0xff]  ;;  %v12987_v44 = vld [vmem:[#allocation2 + $0x228] sm:$0xff] }
 0x5de   : > { %6724 = vmatmul.mubr.f32.gmra.mrb[24].mxu1 %v6482_v42  ;;  %v7385_v42 = vld [vmem:[#allocation11 + $0xfe0] sm:$0xff]  ;;  %v6494_v52 = vld [vmem:[#allocation2 + $0x210] sm:$0xff] }
 0x5df   : > { %6729 = vmatprep.mubr.f32.mxu1 %v12969_v58  ;;  %9892 = vmatpush1.bf16.msra.mxu1 %v9891_v15  ;;  %v6486_v15 = vld [vmem:[#allocation2 + $0x1b0] sm:$0xff]  ;;  %v9903_v29 = vpack.c.bf16 %v7387_v33, %v7385_v42  ;;  %v6495_v33 = vld [vmem:[#allocation2 + $0x218] sm:$0xff] }
 0x5e0   : > { %9894 = vmatprep.subr.bf16.mxu1 %v9893_v28  ;;  %v8066_v28 = vld [vmem:[#allocation11 + $0x1018] sm:$0xff] }
 0x5e1   : > { %v9905_v16 = vpack.c.bf16 %v8066_v28, %v8064_v57  ;;  %v12993_v42 = vld [vmem:[#allocation2 + $0x258] sm:$0xff]  ;;  %v6502_v28 = vld [vmem:[#allocation2 + $0x270] sm:$0xff] }
 0x5e2   : > { %6730 = vmatmul.mubr.f32.gmra.mrb[26].mxu1 %v12972_v24  ;;  %v6503_v57 = vld [vmem:[#allocation2 + $0x278] sm:$0xff] }
 0x5e3   : > { %6735 = vmatprep.mubr.f32.mxu1 %v6487_v39  ;;  %9896 = vmatpush1.bf16.msra.mxu1 %v9895_v3  ;;  %v6490_v3 = vld [vmem:[#allocation2 + $0x1e0] sm:$0xff] }
 0x5e4   : > { %9898 = vmatprep.subr.bf16.mxu1 %v9897_v48  ;;  %v12981_v48 = vld [vmem:[#allocation2 + $0x1f8] sm:$0xff]  ;;  %v12990_v39 = vld [vmem:[#allocation2 + $0x220] sm:$0xff] }
 0x5e6   : > { %6736 = vmatmul.mubr.f32.gmra.mrb[28].mxu1 %v6486_v15  ;;  %v12996_v15 = vld [vmem:[#allocation2 + $0x250] sm:$0xff] }
 0x5e7   : > { %6741 = vmatprep.mubr.f32.mxu1 %v12975_v7  ;;  %9900 = vmatpush1.bf16.msra.mxu1 %v9899_v50  ;;  %v6499_v50 = vld [vmem:[#allocation2 + $0x248] sm:$0xff] }
 0x5e8   : > { %9902 = vmatprep.subr.bf16.mxu1 %v9901_v34  ;;  %v6498_v34 = vld [vmem:[#allocation2 + $0x240] sm:$0xff] }
 0x5ea   : > { %6742 = vmatmul.mubr.f32.gmra.mrb[30].mxu1 %v12978_v11 }
 0x5eb   : > { %6747 = vmatprep.mubr.f32.mxu1 %v6491_v22  ;;  %9904 = vmatpush1.bf16.msra.mxu1 %v9903_v29  ;;  %v12999_v29 = vld [vmem:[#allocation2 + $0x288] sm:$0xff] }
 0x5ec   : > { %9906 = vmatprep.subr.bf16.mxu1 %v9905_v16  ;;  %v13002_v16 = vld [vmem:[#allocation2 + $0x280] sm:$0xff]  ;;  %v6507_v22 = vld [vmem:[#allocation2 + $0x2a8] sm:$0xff] }
 0x5ee   : > { %6748 = vmatmul.mubr.f32.gmra.mrb[32].mxu1 %v6490_v3  ;;  %v6506_v3 = vld [vmem:[#allocation2 + $0x2a0] sm:$0xff] }
 0x5ef   : > { %6753 = vmatprep.mubr.f32.mxu1 %v12981_v48 }
 0x5f2   : > { %6754 = vmatmul.mubr.f32.gmra.mrb[34].mxu1 %v12984_v60 }
 0x5f3   : > { %6759 = vmatprep.mubr.f32.mxu1 %v6495_v33  ;;  %v13005_v33 = vld [vmem:[#allocation2 + $0x2b8] sm:$0xff] }
 0x5f6   : > { %6760 = vmatmul.mubr.f32.gmra.mrb[36].mxu1 %v6494_v52  ;;  %v13008_v52 = vld [vmem:[#allocation2 + $0x2b0] sm:$0xff] }
 0x5f7   : > { %6765 = vmatprep.mubr.f32.mxu1 %v12987_v44 }
 0x5fa   : > { %6766 = vmatmul.mubr.f32.gmra.mrb[38].mxu1 %v12990_v39 }
 0x5fb   : > { %6771 = vmatprep.mubr.f32.mxu1 %v6499_v50  ;;  %v6511_v50 = vld [vmem:[#allocation2 + $0x2d8] sm:$0xff] }
 0x5fe   : > { %6772 = vmatmul.mubr.f32.gmra.mrb[40].mxu1 %v6498_v34  ;;  %v6510_v34 = vld [vmem:[#allocation2 + $0x2d0] sm:$0xff] }
 0x5ff   : > { %6777 = vmatprep.mubr.f32.mxu1 %v12993_v42 }
 0x602   : > { %6778 = vmatmul.mubr.f32.gmra.mrb[42].mxu1 %v12996_v15 }
 0x603   : > { %6783 = vmatprep.mubr.f32.mxu1 %v6503_v57  ;;  %v13011_v57 = vld [vmem:[#allocation2 + $0x2e8] sm:$0xff] }
 0x606   : > { %6784 = vmatmul.mubr.f32.gmra.mrb[44].mxu1 %v6502_v28  ;;  %v13014_v28 = vld [vmem:[#allocation2 + $0x2e0] sm:$0xff] }
 0x607   : > { %6789 = vmatprep.mubr.f32.mxu1 %v12999_v29 }
 0x60a   : > { %6790 = vmatmul.mubr.f32.gmra.mrb[46].mxu1 %v13002_v16 }
 0x60b   : > { %6795 = vmatprep.mubr.f32.mxu1 %v6507_v22  ;;  %v6515_v22 = vld [vmem:[#allocation2 + $0x308] sm:$0xff] }
 0x60e   : > { %6796 = vmatmul.mubr.f32.gmra.mrb[48].mxu1 %v6506_v3  ;;  %v6514_v3 = vld [vmem:[#allocation2 + $0x300] sm:$0xff] }
 0x60f   : > { %6801 = vmatprep.mubr.f32.mxu1 %v13005_v33 }
 0x612   : > { %6802 = vmatmul.mubr.f32.gmra.mrb[50].mxu1 %v13008_v52 }
 0x613   : > { %6807 = vmatprep.mubr.f32.mxu1 %v6511_v50  ;;  %v13023_v50 = vld [vmem:[#allocation2] sm:$0xff] }
 0x616   : > { %6808 = vmatmul.mubr.f32.gmra.mrb[52].mxu1 %v6510_v34  ;;  %v6909_v34 = vld [vmem:[#allocation2 + $0x68] sm:$0xfe] }
 0x617   : > { %6813 = vmatprep.mubr.f32.mxu1 %v13011_v57 }
 0x61a   : > { %6814 = vmatmul.mubr.f32.gmra.mrb[54].mxu1 %v13014_v28 }
 0x61b   : > { %6819 = vmatprep.mubr.f32.mxu1 %v6515_v22  ;;  %v6913_v22 = vld [vmem:[#allocation2 + $0x88] sm:$0x1] }
 0x61c   : > { %v7108_v55 = vrot.slane %v6913_v22, 1  ;;  %v6919_v22 = vld [vmem:[#allocation2 + $0xb8] sm:$0x1] }
 0x61e   : > { %6820 = vmatmul.mubr.f32.gmra.mrb[56].mxu1 %v6514_v3  ;;  %v7103_v3 = vrot.slane %v6909_v34, 1  ;;  %v7102_v34 = vsel %vm2924_vm1, %v7100_v18, %v7101_v63  ;;  %v7109_v35 = vsel %vm2924_vm1, %v7104_v37, %v7108_v55  ;;  %v7107_v18 = vsel %vm2924_vm1, %v7101_v63, %v7106_v4  ;;  %v6921_v63 = vld [vmem:[#allocation2 + $0xc8] sm:$0xfe] }
 0x61f   : > { %6825 = vmatprep.mubr.f32.mxu1 %v13017_v32  ;;  %v7115_v55 = vsel %vm2924_vm1, %v7113_v51, %v7114_v13  ;;  %v6925_v51 = vld [vmem:[#allocation2 + $0xe8] sm:$0x1]  ;;  %v7123_v6 = vrot.slane %v6921_v63, 1  ;;  %v8090_v63 = vld [vmem:[#allocation11 + $0x10d8] sm:$0xff] }
 0x620   : > { %v7105_v27 = vsel %vm2924_vm1, %v7103_v3, %v7104_v37  ;;  %v8076_v3 = vld [vmem:[#allocation11 + $0x1068] sm:$0xff]  ;;  %v7118_v37 = vrot.slane %v6919_v22, 1  ;;  %v7124_v22 = vrot.slane %v12945_v14, 1  ;;  %v7128_v14 = vrot.slane %v6925_v51, 1 }
 0x622   : > { %6826 = vmatmul.mubr.f32.gmra.mrb[58].mxu1 %v13020_v10  ;;  %v7119_v46 = vsel %vm2924_vm1, %v7114_v13, %v7118_v37  ;;  %v7125_v13 = vsel %vm2924_vm1, %v7123_v6, %v7124_v22  ;;  %v6924_v37 = vld [vmem:[#allocation2 + $0xe0] sm:$0x1]  ;;  %v6926_v6 = vld [vmem:[#allocation2 + $0xf0] sm:$0xfe] }
 0x623   : > { %6831 = vmatprep.mubr.f32.mxu1 %v13023_v50 }
 0x626   : > { %6832 = vmatmul.mubr.f32.gmra.mrb[60].mxu1 %v13023_v50 }
 0x627   : > { %6837 = vmatprep.mubr.f32.mxu1 %v13023_v50 }
 0x62a   : > { %6838 = vmatmul.mubr.f32.gmra.mrb[62].mxu1 %v13023_v50 }
 0x62b   : > { %7453 = vmatprep.mubr.f32.mxu1 %v7105_v27  ;;  %v9911_v27 = vpack.c.bf16 %v8069_v26, %v8067_v54  ;;  %v8077_v54 = vld [vmem:[#allocation11 + $0x1070] sm:$0xff] }
 0x62e   : > { %7454 = vmatmul.mubr.f32.vlgmr.msra.gmra.mrb[0].mxu1 %v7102_v34  ;;  %v8078_v34 = vld [vmem:[#allocation11 + $0x1078] sm:$0xff] }
 0x62f   : > { %7459 = vmatprep.mubr.f32.mxu1 %v7109_v35  ;;  %9908 = vmatpush1.bf16.msra.mxu1 %v9907_v12  ;;  %v6918_v35 = vld [vmem:[#allocation2 + $0xb0] sm:$0x1]  ;;  %v9917_v26 = vpack.c.bf16 %v8078_v34, %v8076_v3  ;;  %v8082_v12 = vld [vmem:[#allocation11 + $0x1098] sm:$0xff]  ;;  %v7121_v34 = vrot.slane %v12948_v41, 1 }
 0x630   : > { %9910 = vmatprep.subr.bf16.mxu1 %v9909_v2  ;;  %v7112_v2 = vsel %vm2924_vm1, %v7110_v45, %v7111_v23  ;;  %v7116_v4 = vrot.slane %v6918_v35, 1  ;;  %v9921_v47 = vpack.c.bf16 %v8082_v12, %v8080_v1  ;;  %v8086_v35 = vld [vmem:[#allocation11 + $0x10b8] sm:$0xff]  ;;  %v8088_v41 = vld [vmem:[#allocation11 + $0x10c8] sm:$0xff]  ;;  %v7129_v1 = vsel %vm2924_vm1, %v7124_v22, %v7128_v14 }
 0x631   : > { %v7134_v12 = vrot.slane %v12951_v56, 1  ;;  %v7130_v14 = vrot.slane %v6926_v6, 1  ;;  %v8097_v6 = vld [vmem:[#allocation11 + $0x1110] sm:$0xff] }
 0x632   : > { %7460 = vmatmul.mubr.f32.gmra.mrb[2].mxu1 %v7107_v18  ;;  %v8081_v18 = vld [vmem:[#allocation11 + $0x1090] sm:$0xff]  ;;  %v7117_v3 = vsel %vm2924_vm1, %v7111_v23, %v7116_v4  ;;  %v7126_v23 = vrot.slane %v6924_v37, 1 }
 0x633   : > { %7465 = vmatprep.mubr.f32.mxu1 %v7115_v55  ;;  %9912 = vmatpush1.bf16.msra.mxu1 %v9911_v27  ;;  %v9919_v27 = vpack.c.bf16 %v8077_v54, %v8075_v38  ;;  %v8084_v55 = vld [vmem:[#allocation11 + $0x10a8] sm:$0xff]  ;;  %v8083_v38 = vld [vmem:[#allocation11 + $0x10a0] sm:$0xff]  ;;  %v8085_v54 = vld [vmem:[#allocation11 + $0x10b0] sm:$0xff] }
 0x634   : > { %9914 = vmatprep.subr.bf16.mxu1 %v9913_v0  ;;  %v6920_v0 = vld [vmem:[#allocation2 + $0xc0] sm:$0xfe]  ;;  %v6927_v4 = vld [vmem:[#allocation2 + $0xf8] sm:$0xfe]  ;;  %v9927_v51 = vpack.c.bf16 %v8085_v54, %v8083_v38  ;;  %v6933_v54 = vld [vmem:[#allocation2 + $0x128] sm:$0xfe] }
 0x635   : > { %v7120_v45 = vrot.slane %v6920_v0, 1  ;;  %v9929_v0 = vpack.c.bf16 %v8090_v63, %v8088_v41  ;;  %v6937_v41 = vld [vmem:[#allocation2 + $0x148] sm:$0x1] }
 0x636   : > { %7466 = vmatmul.mubr.f32.gmra.mrb[4].mxu1 %v7112_v2 }
 0x637   : > { %7471 = vmatprep.mubr.f32.mxu1 %v7119_v46  ;;  %9916 = vmatpush1.bf16.msra.mxu1 %v9915_v9  ;;  %v9923_v9 = vpack.c.bf16 %v8081_v18, %v8079_v17  ;;  %v7122_v2 = vsel %vm2924_vm1, %v7120_v45, %v7121_v34  ;;  %v6931_v46 = vld [vmem:[#allocation2 + $0x118] sm:$0x1]  ;;  %v7127_v18 = vsel %vm2924_vm1, %v7121_v34, %v7126_v23 }
 0x638   : > { %9918 = vmatprep.subr.bf16.mxu1 %v9917_v26  ;;  %v9925_v26 = vpack.c.bf16 %v8086_v35, %v8084_v55  ;;  %v8089_v17 = vld [vmem:[#allocation11 + $0x10d0] sm:$0xff]  ;;  %v8092_v55 = vld [vmem:[#allocation11 + $0x10e8] sm:$0xff]  ;;  %v8094_v35 = vld [vmem:[#allocation11 + $0x10f8] sm:$0xff]  ;;  %v7138_v56 = vrot.slane %v6931_v46, 1 }
 0x639   : > { %v9933_v45 = vpack.c.bf16 %v8094_v35, %v8092_v55  ;;  %v6932_v46 = vld [vmem:[#allocation2 + $0x120] sm:$0xfe]  ;;  %v6936_v55 = vld [vmem:[#allocation2 + $0x140] sm:$0x1] }
 0x63a   : > { %7472 = vmatmul.mubr.f32.gmra.mrb[6].mxu1 %v7117_v3  ;;  %v7131_v3 = vrot.slane %v12954_v53, 1  ;;  %v8096_v53 = vld [vmem:[#allocation11 + $0x1108] sm:$0xff]  ;;  %v7139_v23 = vsel %vm2924_vm1, %v7134_v12, %v7138_v56  ;;  %v7140_v35 = vrot.slane %v6932_v46, 1  ;;  %v7151_v46 = vrot.slane %v12966_v8, 1 }
 0x63b   : > { %7477 = vmatprep.mubr.f32.mxu1 %v7125_v13  ;;  %9920 = vmatpush1.bf16.msra.mxu1 %v9919_v27  ;;  %v7133_v27 = vrot.slane %v6927_v4, 1  ;;  %v6930_v13 = vld [vmem:[#allocation2 + $0x110] sm:$0x1]  ;;  %v7144_v4 = vrot.slane %v12957_v30, 1  ;;  %v7148_v30 = vrot.slane %v6937_v41, 1  ;;  %v8103_v41 = vld [vmem:[#allocation11 + $0x1140] sm:$0xff] }
 0x63c   : > { %9922 = vmatprep.subr.bf16.mxu1 %v9921_v47  ;;  %v8087_v47 = vld [vmem:[#allocation11 + $0x10c0] sm:$0xff]  ;;  %v7132_v38 = vsel %vm2924_vm1, %v7130_v14, %v7131_v3  ;;  %v7136_v34 = vrot.slane %v6930_v13, 1  ;;  %v8101_v14 = vld [vmem:[#allocation11 + $0x1130] sm:$0xff]  ;;  %v8112_v8 = vld [vmem:[#allocation11 + $0x1188] sm:$0xff] }
 0x63d   : > { %v7135_v22 = vsel %vm2924_vm1, %v7133_v27, %v7134_v12  ;;  %v9931_v37 = vpack.c.bf16 %v8089_v17, %v8087_v47  ;;  %v8095_v27 = vld [vmem:[#allocation11 + $0x1100] sm:$0xff]  ;;  %v7141_v47 = vrot.slane %v12960_v36, 1  ;;  %v8100_v17 = vld [vmem:[#allocation11 + $0x1128] sm:$0xff] }
 0x63e   : > { %7478 = vmatmul.mubr.f32.gmra.mrb[8].mxu1 %v7122_v2  ;;  %v8098_v2 = vld [vmem:[#allocation11 + $0x1118] sm:$0xff]  ;;  %v8099_v13 = vld [vmem:[#allocation11 + $0x1120] sm:$0xff]  ;;  %v8104_v36 = vld [vmem:[#allocation11 + $0x1148] sm:$0xff] }
 0x63f   : > { %7483 = vmatprep.mubr.f32.mxu1 %v7129_v1  ;;  %9924 = vmatpush1.bf16.msra.mxu1 %v9923_v9  ;;  %v8091_v9 = vld [vmem:[#allocation11 + $0x10e0] sm:$0xff]  ;;  %v7143_v1 = vrot.slane %v6933_v54, 1  ;;  %v9943_v54 = vpack.c.bf16 %v8101_v14, %v8099_v13  ;;  %v7164_v13 = vrot.slane %v12969_v58, 1 }
 0x640   : > { %9926 = vmatprep.subr.bf16.mxu1 %v9925_v26  ;;  %v8093_v26 = vld [vmem:[#allocation11 + $0x10f0] sm:$0xff]  ;;  %v6949_v14 = vld [vmem:[#allocation2 + $0x1a8] sm:$0x1] }
 0x641   : > { %v9935_v63 = vpack.c.bf16 %v8093_v26, %v8091_v9  ;;  %v7145_v12 = vsel %vm2924_vm1, %v7143_v1, %v7144_v4  ;;  %v8106_v9 = vld [vmem:[#allocation11 + $0x1158] sm:$0xff]  ;;  %v7149_v26 = vsel %vm2924_vm1, %v7144_v4, %v7148_v30  ;;  %v8109_v30 = vld [vmem:[#allocation11 + $0x1170] sm:$0xff]  ;;  %v7168_v58 = vrot.slane %v6949_v14, 1  ;;  %v8124_v14 = vld [vmem:[#allocation11 + $0x11e8] sm:$0xff] }
 0x642   : > { %7484 = vmatmul.mubr.f32.gmra.mrb[10].mxu1 %v7127_v18  ;;  %v8102_v18 = vld [vmem:[#allocation11 + $0x1138] sm:$0xff] }
 0x643   : > { %7489 = vmatprep.mubr.f32.mxu1 %v7135_v22  ;;  %9928 = vmatpush1.bf16.msra.mxu1 %v9927_v51  ;;  %v9937_v51 = vpack.c.bf16 %v8098_v2, %v8096_v53  ;;  %v9939_v22 = vpack.c.bf16 %v8097_v6, %v8095_v27  ;;  %v9941_v56 = vpack.c.bf16 %v8102_v18, %v8100_v17  ;;  %v6938_v2 = vld [vmem:[#allocation2 + $0x150] sm:$0xfe]  ;;  %v8110_v27 = vld [vmem:[#allocation11 + $0x1178] sm:$0xff]  ;;  %v6942_v6 = vld [vmem:[#allocation2 + $0x170] sm:$0x1] }
 0x644   : > { %9930 = vmatprep.subr.bf16.mxu1 %v9929_v0  ;;  %v7137_v0 = vsel %vm2924_vm1, %v7131_v3, %v7136_v34  ;;  %v7146_v3 = vrot.slane %v6936_v55, 1  ;;  %v6943_v34 = vld [vmem:[#allocation2 + $0x178] sm:$0x1] }
 0x646   : > { %7490 = vmatmul.mubr.f32.gmra.mrb[12].mxu1 %v7132_v38  ;;  %v7154_v38 = vrot.slane %v12963_v19, 1  ;;  %v7147_v1 = vsel %vm2924_vm1, %v7141_v47, %v7146_v3  ;;  %v7158_v19 = vrot.slane %v6943_v34, 1 }
 0x647   : > { %7495 = vmatprep.mubr.f32.mxu1 %v7139_v23  ;;  %9932 = vmatpush1.bf16.msra.mxu1 %v9931_v37  ;;  %v7142_v37 = vsel %vm2924_vm1, %v7140_v35, %v7141_v47  ;;  %v9945_v23 = vpack.c.bf16 %v8106_v9, %v8104_v36  ;;  %v7156_v47 = vrot.slane %v6942_v6, 1  ;;  %v6945_v35 = vld [vmem:[#allocation2 + $0x188] sm:$0xfe]  ;;  %v8122_v6 = vld [vmem:[#allocation11 + $0x11d8] sm:$0xff] }
 0x648   : > { %9934 = vmatprep.subr.bf16.mxu1 %v9933_v45  ;;  %v6939_v45 = vld [vmem:[#allocation2 + $0x158] sm:$0xfe]  ;;  %v7163_v3 = vrot.slane %v6945_v35, 1  ;;  %v8111_v9 = vld [vmem:[#allocation11 + $0x1180] sm:$0xff] }
 0x649   : > { %v7153_v53 = vrot.slane %v6939_v45, 1  ;;  %v6944_v45 = vld [vmem:[#allocation2 + $0x180] sm:$0xfe]  ;;  %v7157_v34 = vsel %vm2924_vm1, %v7151_v46, %v7156_v47 }
 0x64a   : > { %7496 = vmatmul.mubr.f32.gmra.mrb[14].mxu1 %v7137_v0  ;;  %v7150_v0 = vrot.slane %v6938_v2, 1  ;;  %v8118_v2 = vld [vmem:[#allocation11 + $0x11b8] sm:$0xff]  ;;  %v8119_v35 = vld [vmem:[#allocation11 + $0x11c0] sm:$0xff] }
 0x64b   : > { %7501 = vmatprep.mubr.f32.mxu1 %v7145_v12  ;;  %9936 = vmatpush1.bf16.msra.mxu1 %v9935_v63  ;;  %v8105_v63 = vld [vmem:[#allocation11 + $0x1150] sm:$0xff]  ;;  %v7155_v4 = vsel %vm2924_vm1, %v7153_v53, %v7154_v38  ;;  %v8107_v12 = vld [vmem:[#allocation11 + $0x1160] sm:$0xff]  ;;  %v8116_v53 = vld [vmem:[#allocation11 + $0x11a8] sm:$0xff] }
 0x64c   : > { %9938 = vmatprep.subr.bf16.mxu1 %v9937_v51  ;;  %v8108_v51 = vld [vmem:[#allocation11 + $0x1168] sm:$0xff]  ;;  %v9947_v17 = vpack.c.bf16 %v8105_v63, %v8103_v41  ;;  %v7152_v55 = vsel %vm2924_vm1, %v7150_v0, %v7151_v46  ;;  %v7160_v41 = vrot.slane %v6944_v45, 1  ;;  %v7169_v0 = vsel %vm2924_vm1, %v7164_v13, %v7168_v58  ;;  %v6961_v58 = vld [vmem:[#allocation2 + $0x208] sm:$0x1] }
 0x64d   : > { %v9949_v18 = vpack.c.bf16 %v8110_v27, %v8108_v51  ;;  %v8115_v51 = vld [vmem:[#allocation11 + $0x11a0] sm:$0xff]  ;;  %v8117_v27 = vld [vmem:[#allocation11 + $0x11b0] sm:$0xff] }
 0x64e   : > { %7502 = vmatmul.mubr.f32.gmra.mrb[16].mxu1 %v7142_v37  ;;  %v9951_v37 = vpack.c.bf16 %v8109_v30, %v8107_v12  ;;  %v9959_v12 = vpack.c.bf16 %v8117_v27, %v8115_v51  ;;  %v7181_v51 = vrot.slane %v12984_v60, 1 }
 0x64f   : > { %7507 = vmatprep.mubr.f32.mxu1 %v7149_v26  ;;  %9940 = vmatpush1.bf16.msra.mxu1 %v9939_v22  ;;  %v8114_v22 = vld [vmem:[#allocation11 + $0x1198] sm:$0xff]  ;;  %v8113_v26 = vld [vmem:[#allocation11 + $0x1190] sm:$0xff] }
 0x650   : > { %9942 = vmatprep.subr.bf16.mxu1 %v9941_v56  ;;  %v7159_v56 = vsel %vm2924_vm1, %v7154_v38, %v7158_v19  ;;  %v9953_v36 = vpack.c.bf16 %v8114_v22, %v8112_v8  ;;  %v7165_v38 = vsel %vm2924_vm1, %v7163_v3, %v7164_v13  ;;  %v9955_v63 = vpack.c.bf16 %v8113_v26, %v8111_v9  ;;  %v6951_v19 = vld [vmem:[#allocation2 + $0x1b8] sm:$0xfe]  ;;  %v6954_v3 = vld [vmem:[#allocation2 + $0x1d0] sm:$0x1]  ;;  %v8123_v26 = vld [vmem:[#allocation11 + $0x11e0] sm:$0xff] }
 0x651   : > { %v7173_v30 = vrot.slane %v6951_v19, 1  ;;  %v8121_v8 = vld [vmem:[#allocation11 + $0x11d0] sm:$0xff] }
 0x652   : > { %7508 = vmatmul.mubr.f32.gmra.mrb[18].mxu1 %v7147_v1  ;;  %v9957_v1 = vpack.c.bf16 %v8118_v2, %v8116_v53  ;;  %v6957_v2 = vld [vmem:[#allocation2 + $0x1e8] sm:$0xfe] }
 0x653   : > { %7513 = vmatprep.mubr.f32.mxu1 %v7155_v4  ;;  %9944 = vmatpush1.bf16.msra.mxu1 %v9943_v54  ;;  %v7161_v54 = vrot.slane %v12972_v24, 1  ;;  %v8120_v24 = vld [vmem:[#allocation11 + $0x11c8] sm:$0xff] }
 0x654   : > { %9946 = vmatprep.subr.bf16.mxu1 %v9945_v23  ;;  %v6948_v23 = vld [vmem:[#allocation2 + $0x1a0] sm:$0x1]  ;;  %v9961_v47 = vpack.c.bf16 %v8122_v6, %v8120_v24  ;;  %v6963_v6 = vld [vmem:[#allocation2 + $0x218] sm:$0xfe] }
 0x655   : > { %v7162_v4 = vsel %vm2924_vm1, %v7160_v41, %v7161_v54  ;;  %v7166_v46 = vrot.slane %v6948_v23, 1  ;;  %v7183_v41 = vrot.slane %v6957_v2, 1  ;;  %v7193_v60 = vrot.slane %v6963_v6, 1  ;;  %v6985_v6 = vld [vmem:[#allocation2 + $0x2c8] sm:$0x1] }
 0x656   : > { %7514 = vmatmul.mubr.f32.gmra.mrb[20].mxu1 %v7152_v55  ;;  %v6950_v55 = vld [vmem:[#allocation2 + $0x1b0] sm:$0xfe] }
 0x657   : > { %7519 = vmatprep.mubr.f32.mxu1 %v7159_v56  ;;  %9948 = vmatpush1.bf16.msra.mxu1 %v9947_v17  ;;  %v7174_v17 = vrot.slane %v12975_v7, 1  ;;  %v7167_v22 = vsel %vm2924_vm1, %v7161_v54, %v7166_v46  ;;  %v7171_v56 = vrot.slane %v12978_v11, 1  ;;  %v7170_v45 = vrot.slane %v6950_v55, 1  ;;  %v6960_v46 = vld [vmem:[#allocation2 + $0x200] sm:$0x1] }
 0x658   : > { %9950 = vmatprep.subr.bf16.mxu1 %v9949_v18  ;;  %v6955_v18 = vld [vmem:[#allocation2 + $0x1d8] sm:$0x1]  ;;  %v7176_v54 = vrot.slane %v6954_v3, 1  ;;  %v7186_v24 = vrot.slane %v6960_v46, 1  ;;  %v7191_v55 = vrot.slane %v12990_v39, 1 }
 0x659   : > { %v7175_v13 = vsel %vm2924_vm1, %v7173_v30, %v7174_v17  ;;  %v7178_v7 = vrot.slane %v6955_v18, 1  ;;  %v7172_v53 = vsel %vm2924_vm1, %v7170_v45, %v7171_v56  ;;  %v6967_v18 = vld [vmem:[#allocation2 + $0x238] sm:$0x1]  ;;  %v6968_v39 = vld [vmem:[#allocation2 + $0x240] sm:$0xfe] }
 0x65a   : > { %7520 = vmatmul.mubr.f32.gmra.mrb[22].mxu1 %v7157_v34  ;;  %v8125_v34 = vld [vmem:[#allocation11 + $0x11f0] sm:$0xff]  ;;  %v7187_v30 = vsel %vm2924_vm1, %v7181_v51, %v7186_v24  ;;  %v7224_v24 = vrot.slane %v13005_v33, 1 }
 0x65b   : > { %7525 = vmatprep.mubr.f32.mxu1 %v7165_v38  ;;  %9952 = vmatpush1.bf16.msra.mxu1 %v9951_v37  ;;  %v8126_v37 = vld [vmem:[#allocation11 + $0x11f8] sm:$0xff]  ;;  %v7179_v11 = vsel %vm2924_vm1, %v7174_v17, %v7178_v7  ;;  %v7184_v38 = vrot.slane %v12981_v48, 1  ;;  %v9967_v23 = vpack.c.bf16 %v8125_v34, %v8123_v26  ;;  %v7194_v17 = vrot.slane %v12987_v44, 1  ;;  %v6973_v7 = vld [vmem:[#allocation2 + $0x268] sm:$0x1] }
 0x65c   : > { %9954 = vmatprep.subr.bf16.mxu1 %v9953_v36  ;;  %v9963_v36 = vpack.c.bf16 %v8121_v8, %v8119_v35  ;;  %v9965_v9 = vpack.c.bf16 %v8126_v37, %v8124_v14  ;;  %v7198_v35 = vrot.slane %v6967_v18, 1  ;;  %v6966_v8 = vld [vmem:[#allocation2 + $0x230] sm:$0x1]  ;;  %v6969_v37 = vld [vmem:[#allocation2 + $0x248] sm:$0xfe]  ;;  %v7208_v26 = vrot.slane %v6973_v7, 1 }
 0x65d   : > { %v7185_v27 = vsel %vm2924_vm1, %v7183_v41, %v7184_v38  ;;  %v7196_v14 = vrot.slane %v6966_v8, 1  ;;  %v7203_v3 = vrot.slane %v6969_v37, 1  ;;  %v6972_v34 = vld [vmem:[#allocation2 + $0x260] sm:$0x1]  ;;  %v7221_v18 = vrot.slane %v13008_v52, 1 }
 0x65e   : > { %7526 = vmatmul.mubr.f32.gmra.mrb[24].mxu1 %v7162_v4  ;;  %v7188_v4 = vrot.slane %v6961_v58, 1  ;;  %v7199_v44 = vsel %vm2924_vm1, %v7194_v17, %v7198_v35  ;;  %v7206_v2 = vrot.slane %v6972_v34, 1  ;;  %v6979_v58 = vld [vmem:[#allocation2 + $0x298] sm:$0x1]  ;;  %v8665_v35 = vld [vmem:[#allocation15 + $0x8] sm:$0xff]  ;;  %v11265_v8 = vmov 0.0|0.0  }
 0x65f   : > { %7531 = vmatprep.mubr.f32.mxu1 %v7169_v0  ;;  %9956 = vmatpush1.bf16.msra.mxu1 %v9955_v63  ;;  %v6956_v63 = vld [vmem:[#allocation2 + $0x1e0] sm:$0xfe]  ;;  %v7197_v45 = vsel %vm2924_vm1, %v7191_v55, %v7196_v14  ;;  %v6987_v14 = vld [vmem:[#allocation2 + $0x2d8] sm:$0xfe]  ;;  %v7234_v37 = vrot.slane %v13011_v57, 1 }
 0x660   : > { %9958 = vmatprep.subr.bf16.mxu1 %v9957_v1  ;;  %v7177_v1 = vsel %vm2924_vm1, %v7171_v56, %v7176_v54  ;;  %v7180_v19 = vrot.slane %v6956_v63, 1  ;;  %v7189_v0 = vsel %vm2924_vm1, %v7184_v38, %v7188_v4  ;;  %v7214_v38 = vrot.slane %v12999_v29, 1  ;;  %9969 = vmatprep.subr.bf16.mxu0 %v11265_v8  ;;  %v6986_v7 = vld [vmem:[#allocation2 + $0x2d0] sm:$0xfe]  ;;  %v8666_v34 = vld [vmem:[#allocation15 + $0x10] sm:$0xff]  ;;  %v8667_v57 = vld [vmem:[#allocation15 + $0x18] sm:$0xff] }
 0x661   : > { %v7211_v63 = vrot.slane %v13002_v16, 1  ;;  %v6980_v16 = vld [vmem:[#allocation2 + $0x2a0] sm:$0xfe] }
 0x662   : > { %7532 = vmatmul.mubr.f32.gmra.mrb[26].mxu1 %v7167_v22  ;;  %v7182_v48 = vsel %vm2924_vm1, %v7180_v19, %v7181_v51  ;;  %v7218_v51 = vrot.slane %v6979_v58, 1 }
 0x663   : > { %7537 = vmatprep.mubr.f32.mxu1 %v7175_v13  ;;  %9960 = vmatpush1.bf16.msra.mxu1 %v9959_v12  ;;  %v6962_v12 = vld [vmem:[#allocation2 + $0x210] sm:$0xfe]  ;;  %v7204_v13 = vrot.slane %v12993_v42, 1 }
 0x664   : > { %9962 = vmatprep.subr.bf16.mxu1 %v9961_v47  ;;  %v7195_v47 = vsel %vm2924_vm1, %v7193_v60, %v7194_v17  ;;  %v7190_v22 = vrot.slane %v6962_v12, 1  ;;  %v7219_v29 = vsel %vm2924_vm1, %v7214_v38, %v7218_v51  ;;  %v7228_v12 = vrot.slane %v6985_v6, 1 }
 0x665   : > { %v7209_v42 = vsel %vm2924_vm1, %v7204_v13, %v7208_v26  ;;  %v7230_v26 = vrot.slane %v6986_v7, 1  ;;  %v7710_v7 = vld [vmem:[#allocation2 + $0x60] sm:$0xfc] }
 0x666   : > { %7538 = vmatmul.mubr.f32.gmra.mrb[28].mxu1 %v7172_v53  ;;  %v7192_v56 = vsel %vm2924_vm1, %v7190_v22, %v7191_v55  ;;  %v7200_v53 = vrot.slane %v6968_v39, 1  ;;  %v7220_v55 = vrot.slane %v6980_v16, 1  ;;  %v7229_v52 = vsel %vm2924_vm1, %v7224_v24, %v7228_v12  ;;  %v7003_v16 = vld [vmem:[#allocation2 + $0x358] sm:$0x1]  ;;  %v7002_v12 = vld [vmem:[#allocation2 + $0x350] sm:$0x1] }
 0x667   : > { %7543 = vmatprep.mubr.f32.mxu1 %v7179_v11  ;;  %9964 = vmatpush1.bf16.msra.mxu1 %v9963_v36  ;;  %v7201_v36 = vrot.slane %v12996_v15, 1  ;;  %v6975_v11 = vld [vmem:[#allocation2 + $0x278] sm:$0xfe]  ;;  %v6974_v15 = vld [vmem:[#allocation2 + $0x270] sm:$0xfe]  ;;  %v7231_v39 = vrot.slane %v13014_v28, 1 }
 0x668   : > { %9966 = vmatprep.subr.bf16.mxu1 %v9965_v9  ;;  %v7205_v9 = vsel %vm2924_vm1, %v7203_v3, %v7204_v13  ;;  %v7210_v4 = vrot.slane %v6974_v15, 1  ;;  %v7222_v22 = vsel %vm2924_vm1, %v7220_v55, %v7221_v18  ;;  %v7233_v13 = vrot.slane %v6987_v14, 1  ;;  %v6997_v28 = vld [vmem:[#allocation2 + $0x328] sm:$0x1]  ;;  %v10909_v14 = vld [vmem:[#allocation2 + $0x78] sm:$0xff] }
 0x669   : > { %v7202_v54 = vsel %vm2924_vm1, %v7200_v53, %v7201_v36  ;;  %v7207_v41 = vsel %vm2924_vm1, %v7201_v36, %v7206_v2  ;;  %v9973_v53 = vpack.c.bf16 %v8667_v57, %v8666_v34  ;;  %v7248_v51 = vrot.slane %v6997_v28, 1  ;;  %v8673_v34 = vld [vmem:[#allocation15 + $0x48] sm:$0xff]  ;;  %v8674_v57 = vld [vmem:[#allocation15 + $0x50] sm:$0xff] }
 0x66a   : > { %7544 = vmatmul.mubr.f32.gmra.mrb[30].mxu1 %v7177_v1  ;;  %v7212_v46 = vsel %vm2924_vm1, %v7210_v4, %v7211_v63  ;;  %v7256_v55 = vrot.slane %v7002_v12, 1 }
 0x66b   : > { %7549 = vmatprep.mubr.f32.mxu1 %v7185_v27  ;;  %9968 = vmatpush1.bf16.msra.mxu1 %v9967_v23  ;;  %v7213_v23 = vrot.slane %v6975_v11, 1  ;;  %v6978_v27 = vld [vmem:[#allocation2 + $0x290] sm:$0x1]  ;;  %v6993_v11 = vld [vmem:[#allocation2 + $0x308] sm:$0xfe] }
 0x66c   : > { %v7216_v19 = vrot.slane %v6978_v27, 1  ;;  %v7243_v58 = vrot.slane %v6993_v11, 1  ;;  %v6996_v27 = vld [vmem:[#allocation2 + $0x320] sm:$0x1] }
 0x66d   : > { %v7215_v1 = vsel %vm2924_vm1, %v7213_v23, %v7214_v38  ;;  %v7244_v38 = vrot.slane %v13017_v32, 1  ;;  %v6992_v23 = vld [vmem:[#allocation2 + $0x300] sm:$0xfe]  ;;  %v8668_v32 = vld [vmem:[#allocation15 + $0x20] sm:$0xff] }
 0x66e   : > { %7550 = vmatmul.mubr.f32.gmra.mrb[32].mxu1 %v7182_v48  ;;  %v6981_v48 = vld [vmem:[#allocation2 + $0x2a8] sm:$0xfe]  ;;  %v7217_v17 = vsel %vm2924_vm1, %v7211_v63, %v7216_v19  ;;  %v6999_v63 = vld [vmem:[#allocation2 + $0x338] sm:$0xfe]  ;;  %v7240_v4 = vrot.slane %v6992_v23, 1 }
 0x66f   : > { %7555 = vmatprep.mubr.f32.mxu1 %v7189_v0  ;;  %v7223_v0 = vrot.slane %v6981_v48, 1  ;;  %v7253_v19 = vrot.slane %v6999_v63, 1  ;;  %v7254_v48 = vrot.slane %v13023_v50, 1  ;;  %v10911_v23 = vld [vmem:[#allocation2 + $0xa8] sm:$0xff]  ;;  %v8677_v63 = vld [vmem:[#allocation15 + $0x68] sm:$0xff] }
 0x671   : > { %v7225_v60 = vsel %vm2924_vm1, %v7223_v0, %v7224_v24  ;;  %v7246_v0 = vrot.slane %v6996_v27, 1  ;;  %v7714_v27 = vld [vmem:[#allocation2 + $0x90] sm:$0xfc] }
 0x672   : > { %7556 = vmatmul.mubr.f32.gmra.mrb[34].mxu1 %v7187_v30  ;;  %v6984_v30 = vld [vmem:[#allocation2 + $0x2c0] sm:$0x1] }
 0x673   : > { %7561 = vmatprep.mubr.f32.mxu1 %v7195_v47  ;;  %v8664_v47 = vld [vmem:[#allocation15] sm:$0xff] }
 0x674   : > { %v9970_v33 = vpack.c.bf16 %v8665_v35, %v8664_v47  ;;  %v8670_v47 = vld [vmem:[#allocation15 + $0x30] sm:$0xff]  ;;  %v8671_v35 = vld [vmem:[#allocation15 + $0x38] sm:$0xff] }
 0x676   : > { %7562 = vmatmul.mubr.f32.gmra.mrb[36].mxu1 %v7192_v56  ;;  %v7226_v56 = vrot.slane %v6984_v30, 1  ;;  %9971 = vmatpush1.bf16.msra.mxu0 %v9970_v33 }
 0x677   : > { %7567 = vmatprep.mubr.f32.mxu1 %v7199_v44  ;;  %v6991_v44 = vld [vmem:[#allocation2 + $0x2f8] sm:$0x1]  ;;  %9972 = vmatprep.subr.bf16.mxu0 %v11265_v8 }
 0x678   : > { %v7227_v3 = vsel %vm2924_vm1, %v7221_v18, %v7226_v56  ;;  %v7238_v36 = vrot.slane %v6991_v44, 1  ;;  %v7255_v18 = vsel %vm2924_vm1, %v7253_v19, %v7254_v48  ;;  %v7711_v56 = vld [vmem:[#allocation2 + $0x68] sm:$0xfc]  ;;  %v7713_v44 = vld [vmem:[#allocation2 + $0x88] sm:$0x3] }
 0x67a   : > { %7568 = vmatmul.mubr.f32.gmra.mrb[38].mxu1 %v7197_v45  ;;  %v7235_v45 = vsel %vm2924_vm1, %v7233_v13, %v7234_v37  ;;  %9974 = vmatpush1.bf16.msra.mxu0 %v9973_v53  ;;  %v7841_v13 = vrot.slane %v7711_v56, 2  ;;  %v7838_v53 = vrot.slane %v7710_v7, 2  ;;  %v7720_v7 = vld [vmem:[#allocation2 + $0xe0] sm:$0x3] }
 0x67b   : > { %7573 = vmatprep.mubr.f32.mxu1 %v7205_v9  ;;  %v6990_v9 = vld [vmem:[#allocation2 + $0x2f0] sm:$0x1]  ;;  %9975 = vmatprep.subr.bf16.mxu0 %v11265_v8 }
 0x67c   : > { %v7236_v2 = vrot.slane %v6990_v9, 1  ;;  %v7846_v9 = vrot.slane %v7713_v44, 2 }
 0x67e   : > { %7574 = vmatmul.mubr.f32.gmra.mrb[40].mxu1 %v7202_v54  ;;  %v7232_v54 = vsel %vm2924_vm1, %v7230_v26, %v7231_v39  ;;  %v7237_v15 = vsel %vm2924_vm1, %v7231_v39, %v7236_v2  ;;  %v8672_v26 = vld [vmem:[#allocation15 + $0x40] sm:$0xff]  ;;  %v8675_v2 = vld [vmem:[#allocation15 + $0x58] sm:$0xff] }
 0x67f   : > { %7579 = vmatprep.mubr.f32.mxu1 %v7209_v42  ;;  %v7239_v42 = vsel %vm2924_vm1, %v7234_v37, %v7238_v36  ;;  %v7257_v37 = vsel %vm2924_vm1, %v7254_v48, %v7256_v55  ;;  %v9985_v28 = vpack.c.bf16 %v8675_v2, %v8674_v57  ;;  %v8680_v55 = vld [vmem:[#allocation15 + $0x80] sm:$0xff] }
 0x680   : > { %v8684_v2 = vld [vmem:[#allocation15 + $0xa0] sm:$0xff] }
 0x682   : > { %7580 = vmatmul.mubr.f32.gmra.mrb[42].mxu1 %v7207_v41  ;;  %v7241_v41 = vrot.slane %v13020_v10, 1  ;;  %v7249_v10 = vsel %vm2924_vm1, %v7244_v38, %v7248_v51 }
 0x683   : > { %7585 = vmatprep.mubr.f32.mxu1 %v7215_v1  ;;  %v7245_v1 = vsel %vm2924_vm1, %v7243_v58, %v7244_v38  ;;  %v7715_v38 = vld [vmem:[#allocation2 + $0x98] sm:$0xfc] }
 0x684   : > { %v7242_v6 = vsel %vm2924_vm1, %v7240_v4, %v7241_v41  ;;  %v7247_v50 = vsel %vm2924_vm1, %v7241_v41, %v7246_v0  ;;  %v8676_v41 = vld [vmem:[#allocation15 + $0x60] sm:$0xff]  ;;  %v7851_v51 = vrot.slane %v7715_v38, 2  ;;  %v8679_v0 = vld [vmem:[#allocation15 + $0x78] sm:$0xff] }
 0x685   : > { %v9988_v19 = vpack.c.bf16 %v8677_v63, %v8676_v41 }
 0x686   : > { %7586 = vmatmul.mubr.f32.gmra.mrb[44].mxu1 %v7212_v46  ;;  %v8669_v46 = vld [vmem:[#allocation15 + $0x28] sm:$0xff] }
 0x687   : > { %7591 = vmatprep.mubr.f32.mxu1 %v7219_v29  ;;  %v6998_v29 = vld [vmem:[#allocation2 + $0x330] sm:$0xfe]  ;;  %v9976_v24 = vpack.c.bf16 %v8669_v46, %v8668_v32  ;;  %v10912_v32 = vld [vmem:[#allocation2 + $0xa0] sm:$0xff] }
 0x688   : > { %v7849_v46 = vrot.slane %v10912_v32, 2 }
 0x689   : > { %9977 = vmatpush1.bf16.msra.mxu0 %v9976_v24  ;;  %v7716_v24 = vld [vmem:[#allocation2 + $0xb0] sm:$0x3] }
 0x68a   : > { %7592 = vmatmul.mubr.f32.gmra.mrb[46].mxu1 %v7217_v17  ;;  %v7250_v17 = vrot.slane %v6998_v29, 1  ;;  %9978 = vmatprep.subr.bf16.mxu0 %v11265_v8 }
 0x68b   : > { %7597 = vmatprep.mubr.f32.mxu1 %v7225_v60  ;;  %v7258_v60 = vrot.slane %v7003_v16, 1  ;;  %v7848_v16 = vrot.slane %v7714_v27, 2  ;;  %v8686_v27 = vld [vmem:[#allocation15 + $0xb0] sm:$0xff] }
 0x68c   : > { %v7252_v30 = vsel %vm2924_vm1, %v7250_v17, %v7254_v48  ;;  %v7854_v17 = vrot.slane %v7716_v24, 2 }
 0x68d   : > { %v7259_v33 = vsel %vm2924_vm1, %v7254_v48, %v7258_v60 }
 0x68e   : > { %7598 = vmatmul.mubr.f32.gmra.mrb[48].mxu1 %v7222_v22  ;;  %v9979_v22 = vpack.c.bf16 %v8671_v35, %v8670_v47  ;;  %v8681_v47 = vld [vmem:[#allocation15 + $0x88] sm:$0xff]  ;;  %v7721_v35 = vld [vmem:[#allocation2 + $0xe8] sm:$0x3]  ;;  %v7855_v56 = vsel %vm3856_vm0, %v7849_v46, %v7854_v17 }
 0x68f   : > { %7603 = vmatprep.mubr.f32.mxu1 %v7229_v52  ;;  %v7842_v52 = vrot.slane %v10909_v14, 2  ;;  %v10914_v14 = vld [vmem:[#allocation2 + $0xd0] sm:$0xff]  ;;  %v7729_v17 = vld [vmem:[#allocation2 + $0x148] sm:$0x3] }
 0x690   : > { %9980 = vmatpush1.bf16.msra.mxu0 %v9979_v22  ;;  %v7718_v22 = vld [vmem:[#allocation2 + $0xc0] sm:$0xfc] }
 0x691   : > { %9981 = vmatprep.subr.bf16.mxu0 %v11265_v8  ;;  %v7843_v36 = vsel %vm3856_vm0, %v7841_v13, %v7842_v52  ;;  %v7847_v58 = vsel %vm3856_vm0, %v7842_v52, %v7846_v9  ;;  %v7859_v52 = vrot.slane %v10914_v14, 2  ;;  %v7866_v13 = vrot.slane %v7721_v35, 2 }
 0x692   : > { %7604 = vmatmul.mubr.f32.gmra.mrb[50].mxu1 %v7227_v3  ;;  %v10910_v3 = vld [vmem:[#allocation2 + $0x70] sm:$0xff]  ;;  %v7864_v9 = vrot.slane %v7720_v7, 2  ;;  %v7886_v35 = vrot.slane %v7729_v17, 2  ;;  %v10923_v17 = vld [vmem:[#allocation2 + $0x1c8] sm:$0xff] }
 0x693   : > { %7609 = vmatprep.mubr.f32.mxu1 %v7235_v45  ;;  %v7839_v39 = vrot.slane %v10910_v3, 2  ;;  %v7712_v45 = vld [vmem:[#allocation2 + $0x80] sm:$0x3]  ;;  %v8682_v3 = vld [vmem:[#allocation15 + $0x90] sm:$0xff] }
 0x695   : > { %v7840_v11 = vsel %vm3856_vm0, %v7838_v53, %v7839_v39  ;;  %v10915_v53 = vld [vmem:[#allocation2 + $0x108] sm:$0xff] }
 0x696   : > { %7610 = vmatmul.mubr.f32.gmra.mrb[52].mxu1 %v7232_v54  ;;  %v9982_v54 = vpack.c.bf16 %v8673_v34, %v8672_v26  ;;  %v7723_v26 = vld [vmem:[#allocation2 + $0xf8] sm:$0xfc] }
 0x697   : > { %7615 = vmatprep.mubr.f32.mxu1 %v7239_v42  ;;  %v7844_v42 = vrot.slane %v7712_v45, 2  ;;  %v7858_v45 = vrot.slane %v7718_v22, 2  ;;  %v7871_v38 = vrot.slane %v7723_v26, 2  ;;  %v8690_v22 = vld [vmem:[#allocation15 + $0xd0] sm:$0xff] }
 0x698   : > { %9983 = vmatpush1.bf16.msra.mxu0 %v9982_v54  ;;  %v7872_v54 = vrot.slane %v10915_v53, 2  ;;  %v10920_v53 = vld [vmem:[#allocation2 + $0x160] sm:$0xff] }
 0x699   : > { %9984 = vmatprep.subr.bf16.mxu0 %v11265_v8  ;;  %v7845_v4 = vsel %vm3856_vm0, %v7839_v39, %v7844_v42  ;;  %v8683_v39 = vld [vmem:[#allocation15 + $0x98] sm:$0xff]  ;;  %v7725_v42 = vld [vmem:[#allocation2 + $0x118] sm:$0x3] }
 0x69a   : > { %7616 = vmatmul.mubr.f32.gmra.mrb[54].mxu1 %v7237_v15  ;;  %v7852_v15 = vrot.slane %v10911_v23, 2  ;;  %v9997_v34 = vpack.c.bf16 %v8683_v39, %v8682_v3  ;;  %v10916_v23 = vld [vmem:[#allocation2 + $0x100] sm:$0xff]  ;;  %v7873_v63 = vsel %vm3856_vm0, %v7871_v38, %v7872_v54  ;;  %v10919_v3 = vld [vmem:[#allocation2 + $0x168] sm:$0xff]  ;;  %v7732_v38 = vld [vmem:[#allocation2 + $0x170] sm:$0x3] }
 0x69b   : > { %7621 = vmatprep.mubr.f32.mxu1 %v7245_v1  ;;  %v7717_v1 = vld [vmem:[#allocation2 + $0xb8] sm:$0x3]  ;;  %v7892_v39 = vrot.slane %v10919_v3, 2  ;;  %v7745_v3 = vld [vmem:[#allocation2 + $0x208] sm:$0x3] }
 0x69c   : > { %9986 = vmatpush1.bf16.msra.mxu0 %v9985_v28  ;;  %v7853_v48 = vsel %vm3856_vm0, %v7851_v51, %v7852_v15  ;;  %v7856_v29 = vrot.slane %v7717_v1, 2  ;;  %v7722_v28 = vld [vmem:[#allocation2 + $0xf0] sm:$0xfc]  ;;  %v7876_v1 = vrot.slane %v7725_v42, 2  ;;  %v7724_v51 = vld [vmem:[#allocation2 + $0x110] sm:$0x3] }
 0x69d   : > { %9987 = vmatprep.subr.bf16.mxu0 %v11265_v8  ;;  %v7868_v32 = vrot.slane %v7722_v28, 2 }
 0x69e   : > { %7622 = vmatmul.mubr.f32.gmra.mrb[56].mxu1 %v7242_v6  ;;  %v8678_v6 = vld [vmem:[#allocation15 + $0x70] sm:$0xff]  ;;  %v7857_v12 = vsel %vm3856_vm0, %v7852_v15, %v7856_v29  ;;  %v7869_v15 = vrot.slane %v10916_v23, 2  ;;  %v7877_v24 = vsel %vm3856_vm0, %v7872_v54, %v7876_v1  ;;  %v7889_v54 = vrot.slane %v10920_v53, 2  ;;  %v7744_v53 = vld [vmem:[#allocation2 + $0x200] sm:$0x3] }
 0x69f   : > { %7627 = vmatprep.mubr.f32.mxu1 %v7249_v10  ;;  %v7850_v10 = vsel %vm3856_vm0, %v7848_v16, %v7849_v46  ;;  %v9991_v60 = vpack.c.bf16 %v8679_v0, %v8678_v6  ;;  %v10917_v6 = vld [vmem:[#allocation2 + $0x138] sm:$0xff]  ;;  %v8688_v16 = vld [vmem:[#allocation15 + $0xc0] sm:$0xff]  ;;  %v7894_v23 = vrot.slane %v7732_v38, 2 }
 0x6a0   : > { %9989 = vmatpush1.bf16.msra.mxu0 %v9988_v19  ;;  %v7870_v46 = vsel %vm3856_vm0, %v7868_v32, %v7869_v15  ;;  %v7874_v19 = vrot.slane %v7724_v51, 2  ;;  %v7882_v0 = vrot.slane %v10917_v6, 2  ;;  %v7737_v51 = vld [vmem:[#allocation2 + $0x1a8] sm:$0x3] }
 0x6a1   : > { %9990 = vmatprep.subr.bf16.mxu0 %v11265_v8  ;;  %v7895_v32 = vsel %vm3856_vm0, %v7889_v54, %v7894_v23  ;;  %v7749_v23 = vld [vmem:[#allocation2 + $0x238] sm:$0x3] }
 0x6a2   : > { %7628 = vmatmul.mubr.f32.gmra.mrb[58].mxu1 %v7247_v50  ;;  %v10913_v50 = vld [vmem:[#allocation2 + $0xd8] sm:$0xff]  ;;  %v7887_v7 = vsel %vm3856_vm0, %v7882_v0, %v7886_v35 }
 0x6a3   : > { %7633 = vmatprep.mubr.f32.mxu1 %v7255_v18  ;;  %v7719_v18 = vld [vmem:[#allocation2 + $0xc8] sm:$0xfc] }
 0x6a4   : > { %9992 = vmatpush1.bf16.msra.mxu0 %v9991_v60  ;;  %v7726_v60 = vld [vmem:[#allocation2 + $0x120] sm:$0xfc] }
 0x6a5   : > { %9993 = vmatprep.subr.bf16.mxu0 %v11265_v8  ;;  %v7878_v14 = vrot.slane %v7726_v60, 2  ;;  %v7741_v60 = vld [vmem:[#allocation2 + $0x1d8] sm:$0x3] }
 0x6a6   : > { %7634 = vmatmul.mubr.f32.gmra.mrb[60].mxu1 %v7252_v30  ;;  %v7862_v30 = vrot.slane %v10913_v50, 2  ;;  %v10918_v50 = vld [vmem:[#allocation2 + $0x130] sm:$0xff] }
 0x6a7   : > { %7639 = vmatprep.mubr.f32.mxu1 %v7259_v33  ;;  %v7861_v33 = vrot.slane %v7719_v18, 2 }
 0x6a8   : > { %v7867_v57 = vsel %vm3856_vm0, %v7862_v30, %v7866_v13 }
 0x6a9   : > { %v7863_v44 = vsel %vm3856_vm0, %v7861_v33, %v7862_v30  ;;  %v7879_v30 = vrot.slane %v10918_v50, 2  ;;  %v7728_v33 = vld [vmem:[#allocation2 + $0x140] sm:$0x3]  ;;  %v7738_v50 = vld [vmem:[#allocation2 + $0x1b0] sm:$0xfc] }
 0x6aa   : > { %7640 = vmatmul.mubr.f32.gmra.mrb[62].mxu1 %v7257_v37  ;;  %v9994_v37 = vpack.c.bf16 %v8681_v47, %v8680_v55 }
 0x6ab   : > { %8191 = vmatprep.mubr.f32.mxu1 %v7843_v36  ;;  %v7860_v36 = vsel %vm3856_vm0, %v7858_v45, %v7859_v52  ;;  %v8692_v45 = vld [vmem:[#allocation15 + $0xe0] sm:$0xff] }
 0x6ac   : > { %9995 = vmatpush1.bf16.msra.mxu0 %v9994_v37  ;;  %v7884_v37 = vrot.slane %v7728_v33, 2  ;;  %v7916_v33 = vrot.slane %v7741_v60, 2 }
 0x6ad   : > { %9996 = vmatprep.subr.bf16.mxu0 %v11265_v8 }
 0x6ae   : > { %8192 = vmatmul.mubr.f32.vlgmr.msra.gmra.mrb[0].mxu1 %v7840_v11  ;;  %v8685_v11 = vld [vmem:[#allocation15 + $0xa8] sm:$0xff] }
 0x6af   : > { %8197 = vmatprep.mubr.f32.mxu1 %v7847_v58  ;;  %v7865_v58 = vsel %vm3856_vm0, %v7859_v52, %v7864_v9  ;;  %v10000_v41 = vpack.c.bf16 %v8685_v11, %v8684_v2  ;;  %v7880_v52 = vsel %vm3856_vm0, %v7878_v14, %v7879_v30  ;;  %v7733_v9 = vld [vmem:[#allocation2 + $0x178] sm:$0x3] }
 0x6b0   : > { %9998 = vmatpush1.bf16.msra.mxu0 %v9997_v34  ;;  %v7730_v34 = vld [vmem:[#allocation2 + $0x150] sm:$0xfc]  ;;  %v7896_v42 = vrot.slane %v7733_v9, 2 }
 0x6b1   : > { %9999 = vmatprep.subr.bf16.mxu0 %v11265_v8  ;;  %v7888_v28 = vrot.slane %v7730_v34, 2  ;;  %v10926_v9 = vld [vmem:[#allocation2 + $0x1f0] sm:$0xff] }
 0x6b2   : > { %8198 = vmatmul.mubr.f32.gmra.mrb[2].mxu1 %v7845_v4  ;;  %v8687_v4 = vld [vmem:[#allocation15 + $0xb8] sm:$0xff] }
 0x6b3   : > { %8203 = vmatprep.mubr.f32.mxu1 %v7853_v48  ;;  %v7727_v48 = vld [vmem:[#allocation2 + $0x128] sm:$0xfc]  ;;  %v10003_v29 = vpack.c.bf16 %v8687_v4, %v8686_v27  ;;  %v7734_v4 = vld [vmem:[#allocation2 + $0x180] sm:$0xfc] }
 0x6b4   : > { %10001 = vmatpush1.bf16.msra.mxu0 %v10000_v41  ;;  %v7881_v18 = vrot.slane %v7727_v48, 2  ;;  %v7897_v41 = vsel %vm3856_vm0, %v7892_v39, %v7896_v42  ;;  %v7898_v6 = vrot.slane %v7734_v4, 2  ;;  %v7747_v42 = vld [vmem:[#allocation2 + $0x218] sm:$0xfc]  ;;  %v7936_v4 = vrot.slane %v7749_v23, 2 }
 0x6b5   : > { %10002 = vmatprep.subr.bf16.mxu0 %v11265_v8 }
 0x6b6   : > { %8204 = vmatmul.mubr.f32.gmra.mrb[4].mxu1 %v7850_v10  ;;  %v8689_v10 = vld [vmem:[#allocation15 + $0xc8] sm:$0xff]  ;;  %v7883_v47 = vsel %vm3856_vm0, %v7881_v18, %v7882_v0  ;;  %v7912_v18 = vrot.slane %v10923_v17, 2 }
 0x6b7   : > { %8209 = vmatprep.mubr.f32.mxu1 %v7857_v12  ;;  %v7875_v12 = vsel %vm3856_vm0, %v7869_v15, %v7874_v19  ;;  %v10006_v55 = vpack.c.bf16 %v8689_v10, %v8688_v16  ;;  %v7735_v15 = vld [vmem:[#allocation2 + $0x188] sm:$0xfc]  ;;  %v7739_v10 = vld [vmem:[#allocation2 + $0x1b8] sm:$0xfc] }
 0x6b8   : > { %10004 = vmatpush1.bf16.msra.mxu0 %v10003_v29  ;;  %v7901_v27 = vrot.slane %v7735_v15, 2  ;;  %v7906_v29 = vrot.slane %v7737_v51, 2  ;;  %v7931_v15 = vrot.slane %v7747_v42, 2 }
 0x6b9   : > { %10005 = vmatprep.subr.bf16.mxu0 %v11265_v8 }
 0x6ba   : > { %8210 = vmatmul.mubr.f32.gmra.mrb[6].mxu1 %v7855_v56  ;;  %v8691_v56 = vld [vmem:[#allocation15 + $0xd8] sm:$0xff] }
 0x6bb   : > { %8215 = vmatprep.mubr.f32.mxu1 %v7863_v44  ;;  %v7731_v44 = vld [vmem:[#allocation2 + $0x158] sm:$0xfc]  ;;  %v10009_v13 = vpack.c.bf16 %v8691_v56, %v8690_v22  ;;  %v7740_v22 = vld [vmem:[#allocation2 + $0x1d0] sm:$0x3]  ;;  %v7908_v56 = vrot.slane %v7738_v50, 2 }
 0x6bc   : > { %10007 = vmatpush1.bf16.msra.mxu0 %v10006_v55  ;;  %v7891_v26 = vrot.slane %v7731_v44, 2  ;;  %v10924_v55 = vld [vmem:[#allocation2 + $0x1c0] sm:$0xff]  ;;  %v7917_v44 = vsel %vm3856_vm0, %v7912_v18, %v7916_v33  ;;  %v7755_v33 = vld [vmem:[#allocation2 + $0x278] sm:$0xfc] }
 0x6bd   : > { %10008 = vmatprep.subr.bf16.mxu0 %v11265_v8 }
 0x6be   : > { %8216 = vmatmul.mubr.f32.gmra.mrb[8].mxu1 %v7860_v36  ;;  %v8693_v36 = vld [vmem:[#allocation15 + $0xe8] sm:$0xff]  ;;  %v7893_v11 = vsel %vm3856_vm0, %v7891_v26, %v7892_v39  ;;  %v7919_v26 = vrot.slane %v10926_v9, 2 }
 0x6bf   : > { %8221 = vmatprep.mubr.f32.mxu1 %v7867_v57  ;;  %v7885_v57 = vsel %vm3856_vm0, %v7879_v30, %v7884_v37  ;;  %v10012_v2 = vpack.c.bf16 %v8693_v36, %v8692_v45  ;;  %v7743_v37 = vld [vmem:[#allocation2 + $0x1e8] sm:$0xfc]  ;;  %v7742_v45 = vld [vmem:[#allocation2 + $0x1e0] sm:$0xfc] }
 0x6c0   : > { %10010 = vmatpush1.bf16.msra.mxu0 %v10009_v13  ;;  %v10925_v13 = vld [vmem:[#allocation2 + $0x1f8] sm:$0xff]  ;;  %v7921_v39 = vrot.slane %v7743_v37, 2  ;;  %v7951_v37 = vrot.slane %v7755_v33, 2 }
 0x6c1   : > { %10011 = vmatprep.subr.bf16.mxu0 %v11265_v8  ;;  %v10937_v33 = vld [vmem:[#allocation2 + $0x318] sm:$0xff] }
 0x6c2   : > { %8222 = vmatmul.mubr.f32.gmra.mrb[10].mxu1 %v7865_v58  ;;  %v7890_v58 = vsel %vm3856_vm0, %v7888_v28, %v7889_v54  ;;  %v7918_v54 = vrot.slane %v7742_v45, 2  ;;  %v10927_v28 = vld [vmem:[#allocation2 + $0x228] sm:$0xff] }
 0x6c3   : > { %8227 = vmatprep.mubr.f32.mxu1 %v7873_v63  ;;  %v10921_v63 = vld [vmem:[#allocation2 + $0x198] sm:$0xff] }
 0x6c4   : > { %10013 = vmatpush1.bf16.msra.mxu0 %v10012_v2  ;;  %v7902_v1 = vrot.slane %v10921_v63, 2  ;;  %v7920_v2 = vsel %vm3856_vm0, %v7918_v54, %v7919_v26  ;;  %v10933_v54 = vld [vmem:[#allocation2 + $0x2b8] sm:$0xff] }
 0x6c5   : > { %10014 = vmatprep.subr.bf16.mxu0 %v11265_v8 }
 0x6c6   : > { %8228 = vmatmul.mubr.f32.gmra.mrb[12].mxu1 %v7870_v46  ;;  %v10922_v46 = vld [vmem:[#allocation2 + $0x190] sm:$0xff]  ;;  %v7903_v48 = vsel %vm3856_vm0, %v7901_v27, %v7902_v1  ;;  %v7907_v8 = vsel %vm3856_vm0, %v7902_v1, %v7906_v29  ;;  %v10928_v1 = vld [vmem:[#allocation2 + $0x220] sm:$0xff]  ;;  %v7751_v29 = vld [vmem:[#allocation2 + $0x248] sm:$0xfc] }
 0x6c7   : > { %8233 = vmatprep.mubr.f32.mxu1 %v7877_v24  ;;  %v7899_v19 = vrot.slane %v10922_v46, 2  ;;  %v7736_v24 = vld [vmem:[#allocation2 + $0x1a0] sm:$0x3]  ;;  %v7929_v51 = vrot.slane %v10928_v1, 2 }
 0x6c8   : > { %v7904_v16 = vrot.slane %v7736_v24, 2 }
 0x6c9   : > { %v7900_v0 = vsel %vm3856_vm0, %v7898_v6, %v7899_v19  ;;  %v10929_v6 = vld [vmem:[#allocation2 + $0x258] sm:$0xff] }
 0x6ca   : > { %8234 = vmatmul.mubr.f32.gmra.mrb[14].mxu1 %v7875_v12  ;;  %v7911_v12 = vrot.slane %v7739_v10, 2  ;;  %v7905_v30 = vsel %vm3856_vm0, %v7899_v19, %v7904_v16  ;;  %v7753_v16 = vld [vmem:[#allocation2 + $0x268] sm:$0x3]  ;;  %v7941_v10 = vrot.slane %v7751_v29, 2 }
 0x6cb   : > { %8239 = vmatprep.mubr.f32.mxu1 %v7883_v47  ;;  %v7909_v47 = vrot.slane %v10924_v55, 2  ;;  %v7946_v50 = vrot.slane %v7753_v16, 2  ;;  %v10935_v29 = vld [vmem:[#allocation2 + $0x2e8] sm:$0xff]  ;;  %v7762_v16 = vld [vmem:[#allocation2 + $0x2d0] sm:$0xfc] }
 0x6cc   : > { %v7913_v35 = vsel %vm3856_vm0, %v7911_v12, %v7912_v18  ;;  %v10930_v18 = vld [vmem:[#allocation2 + $0x250] sm:$0xff] }
 0x6cd   : > { %v7910_v14 = vsel %vm3856_vm0, %v7908_v56, %v7909_v47  ;;  %v7939_v60 = vrot.slane %v10930_v18, 2  ;;  %v10931_v56 = vld [vmem:[#allocation2 + $0x288] sm:$0xff] }
 0x6ce   : > { %8240 = vmatmul.mubr.f32.gmra.mrb[16].mxu1 %v7880_v52  ;;  %v7914_v52 = vrot.slane %v7740_v22, 2 }
 0x6cf   : > { %8245 = vmatprep.mubr.f32.mxu1 %v7887_v7  ;;  %v7922_v7 = vrot.slane %v10925_v13, 2 }
 0x6d0   : > { %v7915_v36 = vsel %vm3856_vm0, %v7909_v47, %v7914_v52  ;;  %v7757_v52 = vld [vmem:[#allocation2 + $0x298] sm:$0x3] }
 0x6d1   : > { %v7923_v34 = vsel %vm3856_vm0, %v7921_v39, %v7922_v7  ;;  %v7956_v45 = vrot.slane %v7757_v52, 2  ;;  %v7766_v52 = vld [vmem:[#allocation2 + $0x300] sm:$0xfc] }
 0x6d2   : > { %8246 = vmatmul.mubr.f32.gmra.mrb[18].mxu1 %v7885_v57  ;;  %v7926_v57 = vrot.slane %v7745_v3, 2 }
 0x6d3   : > { %8251 = vmatprep.mubr.f32.mxu1 %v7893_v11  ;;  %v7924_v11 = vrot.slane %v7744_v53, 2 }
 0x6d4   : > { %v7927_v38 = vsel %vm3856_vm0, %v7922_v7, %v7926_v57  ;;  %v10932_v7 = vld [vmem:[#allocation2 + $0x280] sm:$0xff]  ;;  %v7759_v57 = vld [vmem:[#allocation2 + $0x2a8] sm:$0xfc] }
 0x6d5   : > { %v7925_v63 = vsel %vm3856_vm0, %v7919_v26, %v7924_v11  ;;  %v7949_v3 = vrot.slane %v10932_v7, 2  ;;  %v7761_v11 = vld [vmem:[#allocation2 + $0x2c8] sm:$0x3]  ;;  %v7961_v42 = vrot.slane %v7759_v57, 2  ;;  %v7771_v7 = vld [vmem:[#allocation2 + $0x338] sm:$0xfc] }
 0x6d6   : > { %8252 = vmatmul.mubr.f32.gmra.mrb[20].mxu1 %v7890_v58  ;;  %v7932_v58 = vrot.slane %v10927_v28, 2  ;;  %v8694_v28 = vld [vmem:[#allocation15 + $0xf0] sm:$0xff]  ;;  %v7770_v57 = vld [vmem:[#allocation2 + $0x330] sm:$0xfc] }
 0x6d7   : > { %8257 = vmatprep.mubr.f32.mxu1 %v7897_v41  ;;  %v7746_v41 = vld [vmem:[#allocation2 + $0x210] sm:$0xfc] }
 0x6d8   : > { %v7933_v27 = vsel %vm3856_vm0, %v7931_v15, %v7932_v58  ;;  %v7928_v46 = vrot.slane %v7746_v41, 2  ;;  %v7937_v24 = vsel %vm3856_vm0, %v7932_v58, %v7936_v4  ;;  %v8695_v58 = vld [vmem:[#allocation15 + $0xf8] sm:$0xff]  ;;  %v10934_v15 = vld [vmem:[#allocation2 + $0x2b0] sm:$0xff] }
 0x6d9   : > { %v7959_v41 = vrot.slane %v10934_v15, 2 }
 0x6da   : > { %8258 = vmatmul.mubr.f32.gmra.mrb[22].mxu1 %v7895_v32  ;;  %v7748_v32 = vld [vmem:[#allocation2 + $0x230] sm:$0x3]  ;;  %v7930_v19 = vsel %vm3856_vm0, %v7928_v46, %v7929_v51 }
 0x6db   : > { %8263 = vmatprep.mubr.f32.mxu1 %v7903_v48  ;;  %v7934_v48 = vrot.slane %v7748_v32, 2 }
 0x6dd   : > { %v7935_v17 = vsel %vm3856_vm0, %v7929_v51, %v7934_v48  ;;  %v7966_v51 = vrot.slane %v7761_v11, 2 }
 0x6de   : > { %8264 = vmatmul.mubr.f32.gmra.mrb[24].mxu1 %v7900_v0  ;;  %v7942_v0 = vrot.slane %v10929_v6, 2  ;;  %v7765_v6 = vld [vmem:[#allocation2 + $0x2f8] sm:$0x3] }
 0x6df   : > { %8269 = vmatprep.mubr.f32.mxu1 %v7907_v8  ;;  %v7750_v8 = vld [vmem:[#allocation2 + $0x240] sm:$0xfc] }
 0x6e0   : > { %v7943_v12 = vsel %vm3856_vm0, %v7941_v10, %v7942_v0  ;;  %v7938_v55 = vrot.slane %v7750_v8, 2  ;;  %v7947_v22 = vsel %vm3856_vm0, %v7942_v0, %v7946_v50  ;;  %v10936_v8 = vld [vmem:[#allocation2 + $0x2e0] sm:$0xff]  ;;  %v7968_v50 = vrot.slane %v7762_v16, 2 }
 0x6e2   : > { %8270 = vmatmul.mubr.f32.gmra.mrb[26].mxu1 %v7905_v30  ;;  %v7752_v30 = vld [vmem:[#allocation2 + $0x260] sm:$0x3]  ;;  %v7940_v47 = vsel %vm3856_vm0, %v7938_v55, %v7939_v60 }
 0x6e3   : > { %8275 = vmatprep.mubr.f32.mxu1 %v7913_v35  ;;  %v7944_v35 = vrot.slane %v7752_v30, 2 }
 0x6e5   : > { %v7945_v13 = vsel %vm3856_vm0, %v7939_v60, %v7944_v35  ;;  %v7976_v60 = vrot.slane %v7765_v6, 2 }
 0x6e6   : > { %8276 = vmatmul.mubr.f32.gmra.mrb[28].mxu1 %v7910_v14  ;;  %v7952_v14 = vrot.slane %v10931_v56, 2  ;;  %v7769_v56 = vld [vmem:[#allocation2 + $0x328] sm:$0x3] }
 0x6e7   : > { %8281 = vmatprep.mubr.f32.mxu1 %v7917_v44  ;;  %v7754_v44 = vld [vmem:[#allocation2 + $0x270] sm:$0xfc] }
 0x6e8   : > { %v7953_v39 = vsel %vm3856_vm0, %v7951_v37, %v7952_v14  ;;  %v7948_v9 = vrot.slane %v7754_v44, 2  ;;  %v7957_v53 = vsel %vm3856_vm0, %v7952_v14, %v7956_v45  ;;  %v10938_v44 = vld [vmem:[#allocation2 + $0x310] sm:$0xff]  ;;  %v7768_v45 = vld [vmem:[#allocation2 + $0x320] sm:$0x3] }
 0x6ea   : > { %8282 = vmatmul.mubr.f32.gmra.mrb[30].mxu1 %v7915_v36  ;;  %v7756_v36 = vld [vmem:[#allocation2 + $0x290] sm:$0x3]  ;;  %v7950_v26 = vsel %vm3856_vm0, %v7948_v9, %v7949_v3  ;;  %v7991_v9 = vrot.slane %v7771_v7, 2 }
 0x6eb   : > { %8287 = vmatprep.mubr.f32.mxu1 %v7923_v34  ;;  %v7954_v34 = vrot.slane %v7756_v36, 2  ;;  %v7978_v36 = vrot.slane %v7766_v52, 2 }
 0x6ed   : > { %v7955_v23 = vsel %vm3856_vm0, %v7949_v3, %v7954_v34 }
 0x6ee   : > { %8288 = vmatmul.mubr.f32.gmra.mrb[32].mxu1 %v7920_v2  ;;  %v7962_v2 = vrot.slane %v10933_v54, 2  ;;  %v7984_v54 = vrot.slane %v7768_v45, 2 }
 0x6ef   : > { %8293 = vmatprep.mubr.f32.mxu1 %v7927_v38  ;;  %v7758_v38 = vld [vmem:[#allocation2 + $0x2a0] sm:$0xfc] }
 0x6f0   : > { %v7963_v1 = vsel %vm3856_vm0, %v7961_v42, %v7962_v2  ;;  %v7958_v4 = vrot.slane %v7758_v38, 2  ;;  %v7967_v48 = vsel %vm3856_vm0, %v7962_v2, %v7966_v51  ;;  %v7773_v2 = vld [vmem:[#allocation2 + $0x358] sm:$0x3]  ;;  %v7988_v42 = vrot.slane %v7770_v57, 2  ;;  %v8448_v51 = vld [vmem:[#allocation12] sm:$0x3] }
 0x6f2   : > { %8294 = vmatmul.mubr.f32.gmra.mrb[34].mxu1 %v7925_v63  ;;  %v10015_v63 = vpack.c.bf16 %v8695_v58, %v8694_v28  ;;  %v7960_v32 = vsel %vm3856_vm0, %v7958_v4, %v7959_v41  ;;  %v7996_v28 = vrot.slane %v7773_v2, 2  ;;  %v7772_v58 = vld [vmem:[#allocation2 + $0x350] sm:$0x3]  ;;  %v13205_v4 = vrot.slane %v8448_v51, %v11987_v59 }
 0x6f3   : > { %8299 = vmatprep.mubr.f32.mxu1 %v7933_v27  ;;  %v7760_v27 = vld [vmem:[#allocation2 + $0x2c0] sm:$0x3] }
 0x6f4   : > { %10016 = vmatpush1.bf16.msra.mxu0 %v10015_v63  ;;  %v7964_v46 = vrot.slane %v7760_v27, 2  ;;  %v8524_v27 = vld [vmem:[#allocation14] sm:$0x3] }
 0x6f5   : > { %v13216_v6 = vrot.slane %v8524_v27, %v11989_v62 }
 0x6f6   : > { %8300 = vmatmul.mubr.f32.gmra.mrb[36].mxu1 %v7930_v19  ;;  %v7763_v19 = vld [vmem:[#allocation2 + $0x2d8] sm:$0xfc]  ;;  %v7965_v10 = vsel %vm3856_vm0, %v7959_v41, %v7964_v46  ;;  %v7994_v41 = vrot.slane %v7772_v58, 2  ;;  %v13208_v46 = vrot.slane %v8448_v51, %v11989_v62 }
 0x6f7   : > { %8305 = vmatprep.mubr.f32.mxu1 %v7937_v24  ;;  %v7972_v24 = vrot.slane %v10935_v29, 2  ;;  %v7971_v0 = vrot.slane %v7763_v19, 2  ;;  %v13584_v58 = vld [vmem:[#allocation26_spill] sm:$0xff] }
 0x6f9   : > { %v7973_v18 = vsel %vm3856_vm0, %v7971_v0, %v7972_v24  ;;  %v7977_v35 = vsel %vm3856_vm0, %v7972_v24, %v7976_v60 }
 0x6fa   : > { %8306 = vmatmul.mubr.f32.gmra.mrb[38].mxu1 %v7935_v17  ;;  %v7969_v17 = vrot.slane %v10936_v8, 2 }
 0x6fb   : > { %8311 = vmatprep.mubr.f32.mxu1 %v7943_v12  ;;  %v7764_v12 = vld [vmem:[#allocation2 + $0x2f0] sm:$0x3] }
 0x6fc   : > { %v7970_v30 = vsel %vm3856_vm0, %v7968_v50, %v7969_v17  ;;  %v7974_v55 = vrot.slane %v7764_v12, 2 }
 0x6fe   : > { %8312 = vmatmul.mubr.f32.gmra.mrb[40].mxu1 %v7940_v47  ;;  %v7767_v47 = vld [vmem:[#allocation2 + $0x308] sm:$0xfc]  ;;  %v7975_v37 = vsel %vm3856_vm0, %v7969_v17, %v7974_v55 }
 0x6ff   : > { %8317 = vmatprep.mubr.f32.mxu1 %v7947_v22  ;;  %v7982_v22 = vrot.slane %v10937_v33, 2  ;;  %v7981_v14 = vrot.slane %v7767_v47, 2 }
 0x701   : > { %v7983_v3 = vsel %vm3856_vm0, %v7981_v14, %v7982_v22 }
 0x702   : > { %8318 = vmatmul.mubr.f32.gmra.mrb[42].mxu1 %v7945_v13  ;;  %v7979_v13 = vrot.slane %v10938_v44, 2 }
 0x703   : > { %8323 = vmatprep.mubr.f32.mxu1 %v7953_v39  ;;  %v7986_v39 = vrot.slane %v7769_v56, 2 }
 0x705   : > { %v7987_v11 = vsel %vm3856_vm0, %v7982_v22, %v7986_v39 }
 0x706   : > { %8324 = vmatmul.mubr.f32.gmra.mrb[44].mxu1 %v7950_v26  ;;  %v10939_v26 = vld [vmem:[#allocation2] sm:$0xff] }
 0x707   : > { %8329 = vmatprep.mubr.f32.mxu1 %v7957_v53  ;;  %v7992_v34 = vrot.slane %v10939_v26, 2  ;;  %v7980_v53 = vsel %vm3856_vm0, %v7978_v36, %v7979_v13  ;;  %v13582_v26 = vld [vmem:[#allocation24_spill] sm:$0xff] }
 0x709   : > { %v7993_v38 = vsel %vm3856_vm0, %v7991_v9, %v7992_v34  ;;  %v7990_v15 = vsel %vm3856_vm0, %v7988_v42, %v7992_v34  ;;  %v7997_v63 = vsel %vm3856_vm0, %v7992_v34, %v7996_v28 }
 0x70a   : > { %8330 = vmatmul.mubr.f32.gmra.mrb[46].mxu1 %v7955_v23  ;;  %v7985_v23 = vsel %vm3856_vm0, %v7979_v13, %v7984_v54 }
 0x70b   : > { %8335 = vmatprep.mubr.f32.mxu1 %v7963_v1  ;;  %v7995_v1 = vsel %vm3856_vm0, %v7992_v34, %v7994_v41 }
 0x70e   : > { %8336 = vmatmul.mubr.f32.gmra.mrb[48].mxu1 %v7960_v32 }
 0x70f   : > { %8341 = vmatprep.mubr.f32.mxu1 %v7967_v48  ;;  %v13212_v48 = vrot.slane %v8524_v27, %v11987_v59  ;;  %v13585_v27 = vld [vmem:[#allocation27_spill] sm:$0xff] }
 0x712   : > { %8342 = vmatmul.mubr.f32.gmra.mrb[50].mxu1 %v7965_v10 }
 0x713   : > { %8347 = vmatprep.mubr.f32.mxu1 %v7973_v18 }
 0x716   : > { %8348 = vmatmul.mubr.f32.gmra.mrb[52].mxu1 %v7970_v30 }
 0x717   : > { %8353 = vmatprep.mubr.f32.mxu1 %v7977_v35 }
 0x71a   : > { %8354 = vmatmul.mubr.f32.gmra.mrb[54].mxu1 %v7975_v37 }
 0x71b   : > { %8359 = vmatprep.mubr.f32.mxu1 %v7983_v3 }
 0x71e   : > { %8360 = vmatmul.mubr.f32.gmra.mrb[56].mxu1 %v7980_v53 }
 0x71f   : > { %8365 = vmatprep.mubr.f32.mxu1 %v7987_v11  ;;  %v13583_v11 = vld [vmem:[#allocation25_spill] sm:$0xff] }
 0x722   : > { %8366 = vmatmul.mubr.f32.gmra.mrb[58].mxu1 %v7985_v23 }
 0x723   : > { %8371 = vmatprep.mubr.f32.mxu1 %v7993_v38 }
 0x726   : > { %8372 = vmatmul.mubr.f32.gmra.mrb[60].mxu1 %v7990_v15 }
 0x727   : > { %8377 = vmatprep.mubr.f32.mxu1 %v7997_v63 }
 0x72a   : > { %8378 = vmatmul.mubr.f32.gmra.mrb[62].mxu1 %v7995_v1 }
 0x781   : > { %v8193_v32 = vpop.f32.mrb[0].mxu1 }
 0x782   : > { %v10017_v19 = vadd.f32 %v8193_v32, %v12709_v43  ;;  %v8195_v29 = vpop.f32.mrb[1].mxu1 }
 0x783   : > { %v10018_v24 = vadd.f32 %v8195_v29, %v12713_v20 }
 0x784   : > { %v8460_v0 = vmul.f32 %v10017_v19, %v13205_v4 }
 0x785   : > { %v8461_v16 = vmul.f32 %v10018_v24, %v13208_v46  ;;  %v8199_v10 = vpop.f32.mrb[2].mxu1 }
 0x786   : > { %v8536_v8 = vadd.f32 %v13212_v48, %v8460_v0  ;;  %v10019_v17 = vadd.f32 %v8199_v10, %v12716_v40  ;;  %v8201_v18 = vpop.f32.mrb[3].mxu1  ;;  %v13586_v0 = vld [vmem:[#allocation28_spill] sm:$0xff] }
 0x787   : > { %v10020_v43 = vadd.f32 %v8201_v18, %v12719_v31  ;;  %v8537_v59 = vadd.f32 %v13216_v6, %v8461_v16 }
 0x788   : > { %v8462_v60 = vmul.f32 %v10019_v17, %v13205_v4  ;;  %v8600_v50 = vmax.f32 %v8536_v8, 0.0 }
 0x789   : > { %v8463_v20 = vmul.f32 %v10020_v43, %v13208_v46  ;;  %v8205_v62 = vpop.f32.mrb[4].mxu1  ;;  %v8601_v12 = vmax.f32 %v8537_v59, 0.0  ;;  %v13587_v59 = vld [vmem:[#allocation29_spill] sm:$0xff] }
 0x78a   : > { %v10021_v30 = vadd.f32 %v8205_v62, %v12722_v49  ;;  %v8207_v55 = vpop.f32.mrb[5].mxu1  ;;  %v8538_v47 = vadd.f32 %v13212_v48, %v8462_v60 }
 0x78b   : > { %v10022_v35 = vadd.f32 %v8207_v55, %v12726_v21  ;;  %8760 = vmatprep.mubr.f32.mxu0 %v8601_v12  ;;  %v8539_v40 = vadd.f32 %v13216_v6, %v8463_v20 }
 0x78c   : > { %v8464_v31 = vmul.f32 %v10021_v30, %v13205_v4  ;;  %8761 = vmatmul.mubr.f32.vlgmr.msra.gmra.mrb[128].mxu0 %v8600_v50  ;;  %v8602_v37 = vmax.f32 %v8538_v47, 0.0  ;;  %v13588_v50 = vld [vmem:[#allocation30_spill] sm:$0xff] }
 0x78d   : > { %v8465_v33 = vmul.f32 %v10022_v35, %v13208_v46  ;;  %v8211_v22 = vpop.f32.mrb[6].mxu1  ;;  %v8603_v56 = vmax.f32 %v8539_v40, 0.0 }
 0x78e   : > { %v10023_v14 = vadd.f32 %v8211_v22, %v12729_v5  ;;  %v8213_v52 = vpop.f32.mrb[7].mxu1  ;;  %v8540_v49 = vadd.f32 %v13212_v48, %v8464_v31 }
 0x78f   : > { %v10024_v44 = vadd.f32 %v8213_v52, %v12732_v61  ;;  %8765 = vmatprep.mubr.f32.mxu0 %v8603_v56  ;;  %v8541_v21 = vadd.f32 %v13216_v6, %v8465_v33  ;;  %v13589_v33 = vld [vmem:[#allocation31_spill] sm:$0xff] }
 0x790   : > { %v8466_v13 = vmul.f32 %v10023_v14, %v13205_v4  ;;  %8766 = vmatmul.mubr.f32.gmra.mrb[130].mxu0 %v8602_v37  ;;  %v8604_v5 = vmax.f32 %v8540_v49, 0.0  ;;  %v13590_v37 = vld [vmem:[#allocation32_spill] sm:$0xff] }
 0x791   : > { %v8467_v7 = vmul.f32 %v10024_v44, %v13208_v46  ;;  %v8217_v3 = vpop.f32.mrb[8].mxu1  ;;  %v8605_v39 = vmax.f32 %v8541_v21, 0.0 }
 0x792   : > { %v10025_v45 = vadd.f32 %v8217_v3, %v12736_v25  ;;  %v8219_v36 = vpop.f32.mrb[9].mxu1  ;;  %v8542_v9 = vadd.f32 %v13212_v48, %v8466_v13 }
 0x793   : > { %v10026_v34 = vadd.f32 %v8219_v36, %v13582_v26  ;;  %8770 = vmatprep.mubr.f32.mxu0 %v8605_v39  ;;  %v8543_v61 = vadd.f32 %v13216_v6, %v8467_v7  ;;  %v13591_v39 = vld [vmem:[#allocation33_spill] sm:$0xff]  ;;  %v13592_v26 = vld [vmem:[#allocation34_spill] sm:$0xff] }
 0x794   : > { %v8468_v57 = vmul.f32 %v10025_v45, %v13205_v4  ;;  %8771 = vmatmul.mubr.f32.gmra.mrb[132].mxu0 %v8604_v5  ;;  %v8606_v25 = vmax.f32 %v8542_v9, 0.0 }
 0x795   : > { %v8469_v53 = vmul.f32 %v10026_v34, %v13208_v46  ;;  %v8223_v54 = vpop.f32.mrb[10].mxu1  ;;  %v8607_v2 = vmax.f32 %v8543_v61, 0.0 }
 0x796   : > { %v10027_v42 = vadd.f32 %v8223_v54, %v13583_v11  ;;  %v8225_v38 = vpop.f32.mrb[11].mxu1  ;;  %v8544_v28 = vadd.f32 %v13212_v48, %v8468_v57  ;;  %v13593_v11 = vld [vmem:[#allocation35_spill] sm:$0xff] }
 0x797   : > { %v10028_v23 = vadd.f32 %v8225_v38, %v13584_v58  ;;  %8775 = vmatprep.mubr.f32.mxu0 %v8607_v2  ;;  %v8545_v15 = vadd.f32 %v13216_v6, %v8469_v53  ;;  %v13594_v58 = vld [vmem:[#allocation36_spill] sm:$0xff] }
 0x798   : > { %v8470_v41 = vmul.f32 %v10027_v42, %v13205_v4  ;;  %8776 = vmatmul.mubr.f32.gmra.mrb[134].mxu0 %v8606_v25  ;;  %v8608_v29 = vmax.f32 %v8544_v28, 0.0 }
 0x799   : > { %v8471_v63 = vmul.f32 %v10028_v23, %v13208_v46  ;;  %v8229_v1 = vpop.f32.mrb[12].mxu1  ;;  %v8609_v51 = vmax.f32 %v8545_v15, 0.0 }
 0x79a   : > { %v10029_v32 = vadd.f32 %v8229_v1, %v13585_v27  ;;  %v8231_v19 = vpop.f32.mrb[13].mxu1  ;;  %v8546_v24 = vadd.f32 %v13212_v48, %v8470_v41  ;;  %v13595_v27 = vld [vmem:[#allocation37_spill] sm:$0xff] }
 0x79b   : > { %v10030_v16 = vadd.f32 %v8231_v19, %v13586_v0  ;;  %8780 = vmatprep.mubr.f32.mxu0 %v8609_v51  ;;  %v8547_v10 = vadd.f32 %v13216_v6, %v8471_v63  ;;  %v13596_v0 = vld [vmem:[#allocation38_spill] sm:$0xff] }
 0x79c   : > { %v8472_v8 = vmul.f32 %v10029_v32, %v13205_v4  ;;  %8781 = vmatmul.mubr.f32.gmra.mrb[136].mxu0 %v8608_v29  ;;  %v8610_v62 = vmax.f32 %v8546_v24, 0.0 }
 0x79d   : > { %v8473_v17 = vmul.f32 %v10030_v16, %v13208_v46  ;;  %v8235_v18 = vpop.f32.mrb[14].mxu1  ;;  %v8611_v43 = vmax.f32 %v8547_v10, 0.0 }
 0x79e   : > { %v10031_v60 = vadd.f32 %v8235_v18, %v13587_v59  ;;  %v8237_v20 = vpop.f32.mrb[15].mxu1  ;;  %v8548_v12 = vadd.f32 %v13212_v48, %v8472_v8  ;;  %v13597_v59 = vld [vmem:[#allocation39_spill] sm:$0xff] }
 0x79f   : > { %v10032_v30 = vadd.f32 %v8237_v20, %v13588_v50  ;;  %8785 = vmatprep.mubr.f32.mxu0 %v8611_v43  ;;  %v8549_v55 = vadd.f32 %v13216_v6, %v8473_v17  ;;  %v13598_v50 = vld [vmem:[#allocation40_spill] sm:$0xff] }
 0x7a0   : > { %v8474_v47 = vmul.f32 %v10031_v60, %v13205_v4  ;;  %8786 = vmatmul.mubr.f32.gmra.mrb[138].mxu0 %v8610_v62  ;;  %v8612_v14 = vmax.f32 %v8548_v12, 0.0 }
 0x7a1   : > { %v8475_v35 = vmul.f32 %v10032_v30, %v13208_v46  ;;  %v8241_v40 = vpop.f32.mrb[16].mxu1  ;;  %v8613_v31 = vmax.f32 %v8549_v55, 0.0 }
 0x7a2   : > { %v10033_v22 = vadd.f32 %v8241_v40, %v13589_v33  ;;  %v8243_v56 = vpop.f32.mrb[17].mxu1  ;;  %v8550_v52 = vadd.f32 %v13212_v48, %v8474_v47  ;;  %v13599_v33 = vld [vmem:[#allocation41_spill] sm:$0xff] }
 0x7a3   : > { %v10034_v49 = vadd.f32 %v8243_v56, %v13590_v37  ;;  %8790 = vmatprep.mubr.f32.mxu0 %v8613_v31  ;;  %v8551_v44 = vadd.f32 %v13216_v6, %v8475_v35  ;;  %v13600_v37 = vld [vmem:[#allocation42_spill] sm:$0xff] }
 0x7a4   : > { %v8476_v21 = vmul.f32 %v10033_v22, %v13205_v4  ;;  %8791 = vmatmul.mubr.f32.gmra.mrb[140].mxu0 %v8612_v14  ;;  %v8614_v5 = vmax.f32 %v8550_v52, 0.0 }
 0x7a5   : > { %v8477_v13 = vmul.f32 %v10034_v49, %v13208_v46  ;;  %v8247_v7 = vpop.f32.mrb[18].mxu1  ;;  %v8615_v3 = vmax.f32 %v8551_v44, 0.0 }
 0x7a6   : > { %v10035_v45 = vadd.f32 %v8247_v7, %v13591_v39  ;;  %v8249_v36 = vpop.f32.mrb[19].mxu1  ;;  %v8552_v9 = vadd.f32 %v13212_v48, %v8476_v21  ;;  %v13601_v39 = vld [vmem:[#allocation43_spill] sm:$0xff] }
 0x7a7   : > { %v10036_v34 = vadd.f32 %v8249_v36, %v13592_v26  ;;  %8795 = vmatprep.mubr.f32.mxu0 %v8615_v3  ;;  %v8553_v61 = vadd.f32 %v13216_v6, %v8477_v13  ;;  %v13602_v26 = vld [vmem:[#allocation44_spill] sm:$0xff] }
 0x7a8   : > { %v8478_v57 = vmul.f32 %v10035_v45, %v13205_v4  ;;  %8796 = vmatmul.mubr.f32.gmra.mrb[142].mxu0 %v8614_v5  ;;  %v8616_v25 = vmax.f32 %v8552_v9, 0.0 }
 0x7a9   : > { %v8479_v53 = vmul.f32 %v10036_v34, %v13208_v46  ;;  %v8253_v54 = vpop.f32.mrb[20].mxu1  ;;  %v8617_v2 = vmax.f32 %v8553_v61, 0.0 }
 0x7aa   : > { %v10037_v42 = vadd.f32 %v8253_v54, %v13593_v11  ;;  %v8255_v38 = vpop.f32.mrb[21].mxu1  ;;  %v8554_v28 = vadd.f32 %v13212_v48, %v8478_v57  ;;  %v13603_v11 = vld [vmem:[#allocation45_spill] sm:$0xff] }
 0x7ab   : > { %v10038_v23 = vadd.f32 %v8255_v38, %v13594_v58  ;;  %8800 = vmatprep.mubr.f32.mxu0 %v8617_v2  ;;  %v8555_v15 = vadd.f32 %v13216_v6, %v8479_v53  ;;  %v13604_v58 = vld [vmem:[#allocation46_spill] sm:$0xff] }
 0x7ac   : > { %v8480_v41 = vmul.f32 %v10037_v42, %v13205_v4  ;;  %8801 = vmatmul.mubr.f32.gmra.mrb[144].mxu0 %v8616_v25  ;;  %v8618_v29 = vmax.f32 %v8554_v28, 0.0 }
 0x7ad   : > { %v8481_v63 = vmul.f32 %v10038_v23, %v13208_v46  ;;  %v8259_v1 = vpop.f32.mrb[22].mxu1  ;;  %v8619_v51 = vmax.f32 %v8555_v15, 0.0 }
 0x7ae   : > { %v10039_v32 = vadd.f32 %v8259_v1, %v13595_v27  ;;  %v8261_v19 = vpop.f32.mrb[23].mxu1  ;;  %v8556_v24 = vadd.f32 %v13212_v48, %v8480_v41  ;;  %v13605_v27 = vld [vmem:[#allocation47_spill] sm:$0xff] }
 0x7af   : > { %v10040_v16 = vadd.f32 %v8261_v19, %v13596_v0  ;;  %8805 = vmatprep.mubr.f32.mxu0 %v8619_v51  ;;  %v8557_v10 = vadd.f32 %v13216_v6, %v8481_v63  ;;  %v13606_v0 = vld [vmem:[#allocation48_spill] sm:$0xff] }
 0x7b0   : > { %v8482_v8 = vmul.f32 %v10039_v32, %v13205_v4  ;;  %8806 = vmatmul.mubr.f32.gmra.mrb[146].mxu0 %v8618_v29  ;;  %v8620_v62 = vmax.f32 %v8556_v24, 0.0 }
 0x7b1   : > { %v8483_v17 = vmul.f32 %v10040_v16, %v13208_v46  ;;  %v8265_v18 = vpop.f32.mrb[24].mxu1  ;;  %v8621_v43 = vmax.f32 %v8557_v10, 0.0 }
 0x7b2   : > { %v10041_v60 = vadd.f32 %v8265_v18, %v13597_v59  ;;  %v8267_v20 = vpop.f32.mrb[25].mxu1  ;;  %v8558_v12 = vadd.f32 %v13212_v48, %v8482_v8  ;;  %v13607_v59 = vld [vmem:[#allocation49_spill] sm:$0xff] }
 0x7b3   : > { %v10042_v30 = vadd.f32 %v8267_v20, %v13598_v50  ;;  %8810 = vmatprep.mubr.f32.mxu0 %v8621_v43  ;;  %v8559_v55 = vadd.f32 %v13216_v6, %v8483_v17  ;;  %v13608_v50 = vld [vmem:[#allocation50_spill] sm:$0xff] }
 0x7b4   : > { %v8484_v47 = vmul.f32 %v10041_v60, %v13205_v4  ;;  %8811 = vmatmul.mubr.f32.gmra.mrb[148].mxu0 %v8620_v62  ;;  %v8622_v14 = vmax.f32 %v8558_v12, 0.0 }
 0x7b5   : > { %v8485_v35 = vmul.f32 %v10042_v30, %v13208_v46  ;;  %v8271_v40 = vpop.f32.mrb[26].mxu1  ;;  %v8623_v31 = vmax.f32 %v8559_v55, 0.0 }
 0x7b6   : > { %v10043_v22 = vadd.f32 %v8271_v40, %v13599_v33  ;;  %v8273_v56 = vpop.f32.mrb[27].mxu1  ;;  %v8560_v52 = vadd.f32 %v13212_v48, %v8484_v47  ;;  %v13609_v33 = vld [vmem:[#allocation51_spill] sm:$0xff] }
 0x7b7   : > { %v10044_v49 = vadd.f32 %v8273_v56, %v13600_v37  ;;  %8815 = vmatprep.mubr.f32.mxu0 %v8623_v31  ;;  %v8561_v44 = vadd.f32 %v13216_v6, %v8485_v35  ;;  %v13610_v37 = vld [vmem:[#allocation52_spill] sm:$0xff] }
 0x7b8   : > { %v8486_v21 = vmul.f32 %v10043_v22, %v13205_v4  ;;  %8816 = vmatmul.mubr.f32.gmra.mrb[150].mxu0 %v8622_v14  ;;  %v8624_v5 = vmax.f32 %v8560_v52, 0.0 }
 0x7b9   : > { %v8487_v13 = vmul.f32 %v10044_v49, %v13208_v46  ;;  %v8277_v7 = vpop.f32.mrb[28].mxu1  ;;  %v8625_v3 = vmax.f32 %v8561_v44, 0.0 }
 0x7ba   : > { %v10045_v45 = vadd.f32 %v8277_v7, %v13601_v39  ;;  %v8279_v36 = vpop.f32.mrb[29].mxu1  ;;  %v8562_v9 = vadd.f32 %v13212_v48, %v8486_v21  ;;  %v13611_v39 = vld [vmem:[#allocation53_spill] sm:$0xff] }
 0x7bb   : > { %v10046_v34 = vadd.f32 %v8279_v36, %v13602_v26  ;;  %8820 = vmatprep.mubr.f32.mxu0 %v8625_v3  ;;  %v8563_v61 = vadd.f32 %v13216_v6, %v8487_v13  ;;  %v13612_v26 = vld [vmem:[#allocation54_spill] sm:$0xff] }
 0x7bc   : > { %v8488_v57 = vmul.f32 %v10045_v45, %v13205_v4  ;;  %8821 = vmatmul.mubr.f32.gmra.mrb[152].mxu0 %v8624_v5  ;;  %v8626_v25 = vmax.f32 %v8562_v9, 0.0 }
 0x7bd   : > { %v8489_v53 = vmul.f32 %v10046_v34, %v13208_v46  ;;  %v8283_v54 = vpop.f32.mrb[30].mxu1  ;;  %v8627_v2 = vmax.f32 %v8563_v61, 0.0 }
 0x7be   : > { %v10047_v42 = vadd.f32 %v8283_v54, %v13603_v11  ;;  %v8285_v38 = vpop.f32.mrb[31].mxu1  ;;  %v8564_v28 = vadd.f32 %v13212_v48, %v8488_v57  ;;  %v13613_v11 = vld [vmem:[#allocation55_spill] sm:$0xff] }
 0x7bf   : > { %v10048_v23 = vadd.f32 %v8285_v38, %v13604_v58  ;;  %8825 = vmatprep.mubr.f32.mxu0 %v8627_v2  ;;  %v8565_v15 = vadd.f32 %v13216_v6, %v8489_v53  ;;  %v13614_v58 = vld [vmem:[#allocation56_spill] sm:$0xff] }
 0x7c0   : > { %v8490_v41 = vmul.f32 %v10047_v42, %v13205_v4  ;;  %8826 = vmatmul.mubr.f32.gmra.mrb[154].mxu0 %v8626_v25  ;;  %v8628_v29 = vmax.f32 %v8564_v28, 0.0 }
 0x7c1   : > { %v8491_v63 = vmul.f32 %v10048_v23, %v13208_v46  ;;  %v8289_v1 = vpop.f32.mrb[32].mxu1  ;;  %v8629_v51 = vmax.f32 %v8565_v15, 0.0 }
 0x7c2   : > { %v10049_v32 = vadd.f32 %v8289_v1, %v13605_v27  ;;  %v8291_v19 = vpop.f32.mrb[33].mxu1  ;;  %v8566_v24 = vadd.f32 %v13212_v48, %v8490_v41  ;;  %v13615_v27 = vld [vmem:[#allocation57_spill] sm:$0xff] }
 0x7c3   : > { %v10050_v16 = vadd.f32 %v8291_v19, %v13606_v0  ;;  %8830 = vmatprep.mubr.f32.mxu0 %v8629_v51  ;;  %v8567_v10 = vadd.f32 %v13216_v6, %v8491_v63  ;;  %v13616_v0 = vld [vmem:[#allocation58_spill] sm:$0xff] }
 0x7c4   : > { %v8492_v8 = vmul.f32 %v10049_v32, %v13205_v4  ;;  %8831 = vmatmul.mubr.f32.gmra.mrb[156].mxu0 %v8628_v29  ;;  %v8630_v62 = vmax.f32 %v8566_v24, 0.0 }
 0x7c5   : > { %v8493_v17 = vmul.f32 %v10050_v16, %v13208_v46  ;;  %v8295_v18 = vpop.f32.mrb[34].mxu1  ;;  %v8631_v43 = vmax.f32 %v8567_v10, 0.0 }
 0x7c6   : > { %v10051_v60 = vadd.f32 %v8295_v18, %v13607_v59  ;;  %v8297_v20 = vpop.f32.mrb[35].mxu1  ;;  %v8568_v12 = vadd.f32 %v13212_v48, %v8492_v8  ;;  %v13617_v59 = vld [vmem:[#allocation59_spill] sm:$0xff] }
 0x7c7   : > { %v10052_v30 = vadd.f32 %v8297_v20, %v13608_v50  ;;  %8835 = vmatprep.mubr.f32.mxu0 %v8631_v43  ;;  %v8569_v55 = vadd.f32 %v13216_v6, %v8493_v17  ;;  %v13618_v50 = vld [vmem:[#allocation60_spill] sm:$0xff] }
 0x7c8   : > { %v8494_v47 = vmul.f32 %v10051_v60, %v13205_v4  ;;  %8836 = vmatmul.mubr.f32.gmra.mrb[158].mxu0 %v8630_v62  ;;  %v8632_v14 = vmax.f32 %v8568_v12, 0.0 }
 0x7c9   : > { %v8495_v35 = vmul.f32 %v10052_v30, %v13208_v46  ;;  %v8301_v40 = vpop.f32.mrb[36].mxu1  ;;  %v8633_v31 = vmax.f32 %v8569_v55, 0.0 }
 0x7ca   : > { %v10053_v22 = vadd.f32 %v8301_v40, %v13609_v33  ;;  %v8303_v56 = vpop.f32.mrb[37].mxu1  ;;  %v8570_v52 = vadd.f32 %v13212_v48, %v8494_v47  ;;  %v13619_v33 = vld [vmem:[#allocation61_spill] sm:$0xff] }
 0x7cb   : > { %v10054_v49 = vadd.f32 %v8303_v56, %v13610_v37  ;;  %8840 = vmatprep.mubr.f32.mxu0 %v8633_v31  ;;  %v8571_v44 = vadd.f32 %v13216_v6, %v8495_v35  ;;  %v13620_v37 = vld [vmem:[#allocation62_spill] sm:$0xff] }
 0x7cc   : > { %v8496_v21 = vmul.f32 %v10053_v22, %v13205_v4  ;;  %8841 = vmatmul.mubr.f32.gmra.mrb[160].mxu0 %v8632_v14  ;;  %v8634_v5 = vmax.f32 %v8570_v52, 0.0 }
 0x7cd   : > { %v8497_v13 = vmul.f32 %v10054_v49, %v13208_v46  ;;  %v8307_v7 = vpop.f32.mrb[38].mxu1  ;;  %v8635_v3 = vmax.f32 %v8571_v44, 0.0 }
 0x7ce   : > { %v10055_v45 = vadd.f32 %v8307_v7, %v13611_v39  ;;  %v8309_v36 = vpop.f32.mrb[39].mxu1  ;;  %v8572_v9 = vadd.f32 %v13212_v48, %v8496_v21  ;;  %v13621_v39 = vld [vmem:[#allocation63_spill] sm:$0xff] }
 0x7cf   : > { %v10056_v34 = vadd.f32 %v8309_v36, %v13612_v26  ;;  %8845 = vmatprep.mubr.f32.mxu0 %v8635_v3  ;;  %v8573_v61 = vadd.f32 %v13216_v6, %v8497_v13  ;;  %v13622_v26 = vld [vmem:[#allocation64_spill] sm:$0xff] }
 0x7d0   : > { %v8498_v57 = vmul.f32 %v10055_v45, %v13205_v4  ;;  %8846 = vmatmul.mubr.f32.gmra.mrb[162].mxu0 %v8634_v5  ;;  %v8636_v25 = vmax.f32 %v8572_v9, 0.0 }
 0x7d1   : > { %v8499_v53 = vmul.f32 %v10056_v34, %v13208_v46  ;;  %v8313_v54 = vpop.f32.mrb[40].mxu1  ;;  %v8637_v2 = vmax.f32 %v8573_v61, 0.0 }
 0x7d2   : > { %v10057_v42 = vadd.f32 %v8313_v54, %v13613_v11  ;;  %v8315_v38 = vpop.f32.mrb[41].mxu1  ;;  %v8574_v28 = vadd.f32 %v13212_v48, %v8498_v57  ;;  %v13623_v11 = vld [vmem:[#allocation65_spill] sm:$0xff] }
 0x7d3   : > { %v10058_v23 = vadd.f32 %v8315_v38, %v13614_v58  ;;  %8850 = vmatprep.mubr.f32.mxu0 %v8637_v2  ;;  %v8575_v15 = vadd.f32 %v13216_v6, %v8499_v53  ;;  %v13624_v58 = vld [vmem:[#allocation66_spill] sm:$0xff] }
 0x7d4   : > { %v8500_v41 = vmul.f32 %v10057_v42, %v13205_v4  ;;  %8851 = vmatmul.mubr.f32.gmra.mrb[164].mxu0 %v8636_v25  ;;  %v8638_v29 = vmax.f32 %v8574_v28, 0.0 }
 0x7d5   : > { %v8501_v63 = vmul.f32 %v10058_v23, %v13208_v46  ;;  %v8319_v1 = vpop.f32.mrb[42].mxu1  ;;  %v8639_v51 = vmax.f32 %v8575_v15, 0.0 }
 0x7d6   : > { %v10059_v32 = vadd.f32 %v8319_v1, %v13615_v27  ;;  %v8321_v19 = vpop.f32.mrb[43].mxu1  ;;  %v8576_v24 = vadd.f32 %v13212_v48, %v8500_v41  ;;  %v13625_v27 = vld [vmem:[#allocation67_spill] sm:$0xff] }
 0x7d7   : > { %v10060_v16 = vadd.f32 %v8321_v19, %v13616_v0  ;;  %8855 = vmatprep.mubr.f32.mxu0 %v8639_v51  ;;  %v8577_v10 = vadd.f32 %v13216_v6, %v8501_v63  ;;  %v13626_v0 = vld [vmem:[#allocation68_spill] sm:$0xff] }
 0x7d8   : > { %v8502_v8 = vmul.f32 %v10059_v32, %v13205_v4  ;;  %8856 = vmatmul.mubr.f32.gmra.mrb[166].mxu0 %v8638_v29  ;;  %v8640_v62 = vmax.f32 %v8576_v24, 0.0 }
 0x7d9   : > { %v8503_v17 = vmul.f32 %v10060_v16, %v13208_v46  ;;  %v8325_v18 = vpop.f32.mrb[44].mxu1  ;;  %v8641_v43 = vmax.f32 %v8577_v10, 0.0 }
 0x7da   : > { %v10061_v60 = vadd.f32 %v8325_v18, %v13617_v59  ;;  %v8327_v20 = vpop.f32.mrb[45].mxu1  ;;  %v8578_v12 = vadd.f32 %v13212_v48, %v8502_v8  ;;  %v13627_v59 = vld [vmem:[#allocation69_spill] sm:$0xff] }
 0x7db   : > { %v10062_v30 = vadd.f32 %v8327_v20, %v13618_v50  ;;  %8860 = vmatprep.mubr.f32.mxu0 %v8641_v43  ;;  %v8579_v55 = vadd.f32 %v13216_v6, %v8503_v17  ;;  %v13628_v50 = vld [vmem:[#allocation70_spill] sm:$0xff] }
 0x7dc   : > { %v8504_v47 = vmul.f32 %v10061_v60, %v13205_v4  ;;  %8861 = vmatmul.mubr.f32.gmra.mrb[168].mxu0 %v8640_v62  ;;  %v8642_v14 = vmax.f32 %v8578_v12, 0.0 }
 0x7dd   : > { %v8505_v35 = vmul.f32 %v10062_v30, %v13208_v46  ;;  %v8331_v40 = vpop.f32.mrb[46].mxu1  ;;  %v8643_v31 = vmax.f32 %v8579_v55, 0.0 }
 0x7de   : > { %v10063_v22 = vadd.f32 %v8331_v40, %v13619_v33  ;;  %v8333_v56 = vpop.f32.mrb[47].mxu1  ;;  %v8580_v52 = vadd.f32 %v13212_v48, %v8504_v47  ;;  %v13629_v33 = vld [vmem:[#allocation71_spill] sm:$0xff] }
 0x7df   : > { %v10064_v49 = vadd.f32 %v8333_v56, %v13620_v37  ;;  %8865 = vmatprep.mubr.f32.mxu0 %v8643_v31  ;;  %v8581_v44 = vadd.f32 %v13216_v6, %v8505_v35  ;;  %v13630_v37 = vld [vmem:[#allocation72_spill] sm:$0xff] }
 0x7e0   : > { %v8506_v21 = vmul.f32 %v10063_v22, %v13205_v4  ;;  %8866 = vmatmul.mubr.f32.gmra.mrb[170].mxu0 %v8642_v14  ;;  %v8644_v5 = vmax.f32 %v8580_v52, 0.0 }
 0x7e1   : > { %v8507_v13 = vmul.f32 %v10064_v49, %v13208_v46  ;;  %v8337_v7 = vpop.f32.mrb[48].mxu1  ;;  %v8645_v3 = vmax.f32 %v8581_v44, 0.0 }
 0x7e2   : > { %v10065_v45 = vadd.f32 %v8337_v7, %v13621_v39  ;;  %v8339_v36 = vpop.f32.mrb[49].mxu1  ;;  %v8582_v9 = vadd.f32 %v13212_v48, %v8506_v21  ;;  %v13631_v39 = vld [vmem:[#allocation73_spill] sm:$0xff] }
 0x7e3   : > { %v10066_v34 = vadd.f32 %v8339_v36, %v13622_v26  ;;  %8870 = vmatprep.mubr.f32.mxu0 %v8645_v3  ;;  %v8583_v61 = vadd.f32 %v13216_v6, %v8507_v13  ;;  %v13632_v26 = vld [vmem:[#allocation74_spill] sm:$0xff] }
 0x7e4   : > { %v8508_v57 = vmul.f32 %v10065_v45, %v13205_v4  ;;  %8871 = vmatmul.mubr.f32.gmra.mrb[172].mxu0 %v8644_v5  ;;  %v8646_v25 = vmax.f32 %v8582_v9, 0.0 }
 0x7e5   : > { %v8509_v53 = vmul.f32 %v10066_v34, %v13208_v46  ;;  %v8343_v54 = vpop.f32.mrb[50].mxu1  ;;  %v8647_v2 = vmax.f32 %v8583_v61, 0.0 }
 0x7e6   : > { %v10067_v42 = vadd.f32 %v8343_v54, %v13623_v11  ;;  %v8345_v38 = vpop.f32.mrb[51].mxu1  ;;  %v8584_v28 = vadd.f32 %v13212_v48, %v8508_v57  ;;  %v13633_v11 = vld [vmem:[#allocation75_spill] sm:$0xff] }
 0x7e7   : > { %v10068_v23 = vadd.f32 %v8345_v38, %v13624_v58  ;;  %8875 = vmatprep.mubr.f32.mxu0 %v8647_v2  ;;  %v8585_v15 = vadd.f32 %v13216_v6, %v8509_v53  ;;  %v13634_v58 = vld [vmem:[#allocation76_spill] sm:$0xff] }
 0x7e8   : > { %v8510_v41 = vmul.f32 %v10067_v42, %v13205_v4  ;;  %8876 = vmatmul.mubr.f32.gmra.mrb[174].mxu0 %v8646_v25  ;;  %v8648_v29 = vmax.f32 %v8584_v28, 0.0 }
 0x7e9   : > { %v8511_v63 = vmul.f32 %v10068_v23, %v13208_v46  ;;  %v8349_v1 = vpop.f32.mrb[52].mxu1  ;;  %v8649_v51 = vmax.f32 %v8585_v15, 0.0 }
 0x7ea   : > { %v10069_v32 = vadd.f32 %v8349_v1, %v13625_v27  ;;  %v8351_v19 = vpop.f32.mrb[53].mxu1  ;;  %v8586_v24 = vadd.f32 %v13212_v48, %v8510_v41  ;;  %v13635_v27 = vld [vmem:[#allocation77_spill] sm:$0xff] }
 0x7eb   : > { %v10070_v16 = vadd.f32 %v8351_v19, %v13626_v0  ;;  %8880 = vmatprep.mubr.f32.mxu0 %v8649_v51  ;;  %v8587_v10 = vadd.f32 %v13216_v6, %v8511_v63  ;;  %v13636_v0 = vld [vmem:[#allocation78_spill] sm:$0xff] }
 0x7ec   : > { %v8512_v8 = vmul.f32 %v10069_v32, %v13205_v4  ;;  %8881 = vmatmul.mubr.f32.gmra.mrb[176].mxu0 %v8648_v29  ;;  %v8650_v62 = vmax.f32 %v8586_v24, 0.0 }
 0x7ed   : > { %v8513_v17 = vmul.f32 %v10070_v16, %v13208_v46  ;;  %v8355_v18 = vpop.f32.mrb[54].mxu1  ;;  %v8651_v43 = vmax.f32 %v8587_v10, 0.0 }
 0x7ee   : > { %v10071_v60 = vadd.f32 %v8355_v18, %v13627_v59  ;;  %v8357_v20 = vpop.f32.mrb[55].mxu1  ;;  %v8588_v12 = vadd.f32 %v13212_v48, %v8512_v8 }
 0x7ef   : > { %v10072_v30 = vadd.f32 %v8357_v20, %v13628_v50  ;;  %8885 = vmatprep.mubr.f32.mxu0 %v8651_v43  ;;  %v8589_v55 = vadd.f32 %v13216_v6, %v8513_v17 }
 0x7f0   : > { %v8514_v47 = vmul.f32 %v10071_v60, %v13205_v4  ;;  %8886 = vmatmul.mubr.f32.gmra.mrb[178].mxu0 %v8650_v62  ;;  %v8652_v14 = vmax.f32 %v8588_v12, 0.0 }
 0x7f1   : > { %v8515_v35 = vmul.f32 %v10072_v30, %v13208_v46  ;;  %v8361_v40 = vpop.f32.mrb[56].mxu1  ;;  %v8653_v31 = vmax.f32 %v8589_v55, 0.0 }
 0x7f2   : > { %v10073_v22 = vadd.f32 %v8361_v40, %v13629_v33  ;;  %v8363_v56 = vpop.f32.mrb[57].mxu1  ;;  %v8590_v52 = vadd.f32 %v13212_v48, %v8514_v47 }
 0x7f3   : > { %v10074_v49 = vadd.f32 %v8363_v56, %v13630_v37  ;;  %8890 = vmatprep.mubr.f32.mxu0 %v8653_v31  ;;  %v8591_v44 = vadd.f32 %v13216_v6, %v8515_v35 }
 0x7f4   : > { %v8516_v21 = vmul.f32 %v10073_v22, %v13205_v4  ;;  %8891 = vmatmul.mubr.f32.gmra.mrb[180].mxu0 %v8652_v14  ;;  %v8654_v5 = vmax.f32 %v8590_v52, 0.0 }
 0x7f5   : > { %v8517_v13 = vmul.f32 %v10074_v49, %v13208_v46  ;;  %v8367_v7 = vpop.f32.mrb[58].mxu1  ;;  %v8655_v3 = vmax.f32 %v8591_v44, 0.0 }
 0x7f6   : > { %v10075_v45 = vadd.f32 %v8367_v7, %v13631_v39  ;;  %v8369_v36 = vpop.f32.mrb[59].mxu1  ;;  %v8592_v9 = vadd.f32 %v13212_v48, %v8516_v21 }
 0x7f7   : > { %v10076_v34 = vadd.f32 %v8369_v36, %v13632_v26  ;;  %8895 = vmatprep.mubr.f32.mxu0 %v8655_v3  ;;  %v8593_v61 = vadd.f32 %v13216_v6, %v8517_v13 }
 0x7f8   : > { %v8518_v57 = vmul.f32 %v10075_v45, %v13205_v4  ;;  %8896 = vmatmul.mubr.f32.gmra.mrb[182].mxu0 %v8654_v5  ;;  %v8656_v25 = vmax.f32 %v8592_v9, 0.0 }
 0x7f9   : > { %v8519_v53 = vmul.f32 %v10076_v34, %v13208_v46  ;;  %v8373_v54 = vpop.f32.mrb[60].mxu1  ;;  %v8657_v2 = vmax.f32 %v8593_v61, 0.0 }
 0x7fa   : > { %v10077_v42 = vadd.f32 %v8373_v54, %v13633_v11  ;;  %v8375_v38 = vpop.f32.mrb[61].mxu1  ;;  %v8594_v28 = vadd.f32 %v13212_v48, %v8518_v57 }
 0x7fb   : > { %v10078_v23 = vadd.f32 %v8375_v38, %v13634_v58  ;;  %8900 = vmatprep.mubr.f32.mxu0 %v8657_v2  ;;  %v8595_v15 = vadd.f32 %v13216_v6, %v8519_v53 }
 0x7fc   : > { %v8520_v41 = vmul.f32 %v10077_v42, %v13205_v4  ;;  %8901 = vmatmul.mubr.f32.gmra.mrb[184].mxu0 %v8656_v25  ;;  %v8658_v29 = vmax.f32 %v8594_v28, 0.0 }
 0x7fd   : > { %v8521_v63 = vmul.f32 %v10078_v23, %v13208_v46  ;;  %v8379_v1 = vpop.f32.mrb[62].mxu1  ;;  %v8659_v51 = vmax.f32 %v8595_v15, 0.0 }
 0x7fe   : > { %v10079_v32 = vadd.f32 %v8379_v1, %v13635_v27  ;;  %v8381_v19 = vpop.f32.mrb[63].mxu1  ;;  %v8596_v24 = vadd.f32 %v13212_v48, %v8520_v41 }
 0x7ff   : > { %v10080_v16 = vadd.f32 %v8381_v19, %v13636_v0  ;;  %8905 = vmatprep.mubr.f32.mxu0 %v8659_v51  ;;  %v8597_v10 = vadd.f32 %v13216_v6, %v8521_v63 }
 0x800   : > { %v8522_v8 = vmul.f32 %v10079_v32, %v13205_v4  ;;  %8906 = vmatmul.mubr.f32.gmra.mrb[186].mxu0 %v8658_v29  ;;  %v8660_v43 = vmax.f32 %v8596_v24, 0.0 }
 0x801   : > { %v8523_v17 = vmul.f32 %v10080_v16, %v13208_v46  ;;  %v8661_v18 = vmax.f32 %v8597_v10, 0.0 }
 0x802   : > { %v8598_v59 = vadd.f32 %v13212_v48, %v8522_v8 }
 0x803   : > { %8910 = vmatprep.mubr.f32.mxu0 %v8661_v18  ;;  %v8599_v60 = vadd.f32 %v13216_v6, %v8523_v17 }
 0x804   : > { %8911 = vmatmul.mubr.f32.gmra.mrb[188].mxu0 %v8660_v43  ;;  %v8662_v62 = vmax.f32 %v8598_v59, 0.0 }
 0x805   : > { %v8663_v20 = vmax.f32 %v8599_v60, 0.0 }
 0x807   : > { %8915 = vmatprep.mubr.f32.mxu0 %v8663_v20 }
 0x808   : > { %8916 = vmatmul.mubr.f32.gmra.mrb[190].mxu0 %v8662_v62 }
 0x85f   : > { %v8762_v12 = vpop.f32.mrb[128].mxu0 }
 0x860   : > { %8921 = vst [vmem:[%s13409_s15] sm:$0xff] %v8762_v12  ;;  %v8764_v4 = vpop.f32.mrb[129].mxu0 }
 0x863   : > { %v8767_v46 = vpop.f32.mrb[130].mxu0 }
 0x864   : > { %8922 = vst [vmem:[%s13409_s15 + $0x8] sm:$0xff] %v8767_v46  ;;  %v8769_v48 = vpop.f32.mrb[131].mxu0 }
 0x867   : > { %v8772_v6 = vpop.f32.mrb[132].mxu0 }
 0x868   : > { %8923 = vst [vmem:[%s13409_s15 + $0x10] sm:$0xff] %v8772_v6  ;;  %v8774_v50 = vpop.f32.mrb[133].mxu0 }
 0x86b   : > { %v8777_v30 = vpop.f32.mrb[134].mxu0 }
 0x86c   : > { %8924 = vst [vmem:[%s13409_s15 + $0x18] sm:$0xff] %v8777_v30  ;;  %v8779_v55 = vpop.f32.mrb[135].mxu0 }
 0x86f   : > { %v8782_v47 = vpop.f32.mrb[136].mxu0 }
 0x870   : > { %8925 = vst [vmem:[%s13409_s15 + $0x20] sm:$0xff] %v8782_v47  ;;  %v8784_v35 = vpop.f32.mrb[137].mxu0 }
 0x873   : > { %v8787_v40 = vpop.f32.mrb[138].mxu0 }
 0x874   : > { %8926 = vst [vmem:[%s13409_s15 + $0x28] sm:$0xff] %v8787_v40  ;;  %v8789_v31 = vpop.f32.mrb[139].mxu0 }
 0x877   : > { %v8792_v33 = vpop.f32.mrb[140].mxu0 }
 0x878   : > { %8927 = vst [vmem:[%s13409_s15 + $0x30] sm:$0xff] %v8792_v33  ;;  %v8794_v22 = vpop.f32.mrb[141].mxu0 }
 0x87b   : > { %v8797_v56 = vpop.f32.mrb[142].mxu0 }
 0x87c   : > { %8928 = vst [vmem:[%s13409_s15 + $0x38] sm:$0xff] %v8797_v56  ;;  %v8799_v14 = vpop.f32.mrb[143].mxu0 }
 0x87f   : > { %v8802_v52 = vpop.f32.mrb[144].mxu0 }
 0x880   : > { %8929 = vst [vmem:[%s13409_s15 + $0x40] sm:$0xff] %v8802_v52  ;;  %v8804_v37 = vpop.f32.mrb[145].mxu0 }
 0x883   : > { %v8807_v49 = vpop.f32.mrb[146].mxu0 }
 0x884   : > { %8930 = vst [vmem:[%s13409_s15 + $0x48] sm:$0xff] %v8807_v49  ;;  %v8809_v44 = vpop.f32.mrb[147].mxu0 }
 0x887   : > { %v8812_v21 = vpop.f32.mrb[148].mxu0 }
 0x888   : > { %8931 = vst [vmem:[%s13409_s15 + $0x50] sm:$0xff] %v8812_v21  ;;  %v8814_v13 = vpop.f32.mrb[149].mxu0 }
 0x88b   : > { %v8817_v7 = vpop.f32.mrb[150].mxu0 }
 0x88c   : > { %8932 = vst [vmem:[%s13409_s15 + $0x58] sm:$0xff] %v8817_v7  ;;  %v8819_v3 = vpop.f32.mrb[151].mxu0 }
 0x88f   : > { %v8822_v39 = vpop.f32.mrb[152].mxu0 }
 0x890   : > { %8933 = vst [vmem:[%s13409_s15 + $0x60] sm:$0xff] %v8822_v39  ;;  %v8824_v45 = vpop.f32.mrb[153].mxu0 }
 0x893   : > { %v8827_v36 = vpop.f32.mrb[154].mxu0 }
 0x894   : > { %8934 = vst [vmem:[%s13409_s15 + $0x68] sm:$0xff] %v8827_v36  ;;  %v8829_v5 = vpop.f32.mrb[155].mxu0 }
 0x897   : > { %v8832_v9 = vpop.f32.mrb[156].mxu0 }
 0x898   : > { %8935 = vst [vmem:[%s13409_s15 + $0x70] sm:$0xff] %v8832_v9  ;;  %v8834_v26 = vpop.f32.mrb[157].mxu0 }
 0x89b   : > { %v8837_v34 = vpop.f32.mrb[158].mxu0 }
 0x89c   : > { %8936 = vst [vmem:[%s13409_s15 + $0x78] sm:$0xff] %v8837_v34  ;;  %v8839_v61 = vpop.f32.mrb[159].mxu0 }
 0x89f   : > { %v8842_v57 = vpop.f32.mrb[160].mxu0 }
 0x8a0   : > { %8937 = vst [vmem:[%s13409_s15 + $0x80] sm:$0xff] %v8842_v57  ;;  %v8844_v53 = vpop.f32.mrb[161].mxu0 }
 0x8a3   : > { %v8847_v54 = vpop.f32.mrb[162].mxu0 }
 0x8a4   : > { %8938 = vst [vmem:[%s13409_s15 + $0x88] sm:$0xff] %v8847_v54  ;;  %v8849_v2 = vpop.f32.mrb[163].mxu0 }
 0x8a7   : > { %v8852_v11 = vpop.f32.mrb[164].mxu0 }
 0x8a8   : > { %8939 = vst [vmem:[%s13409_s15 + $0x90] sm:$0xff] %v8852_v11  ;;  %v8854_v42 = vpop.f32.mrb[165].mxu0 }
 0x8ab   : > { %v8857_v38 = vpop.f32.mrb[166].mxu0 }
 0x8ac   : > { %8940 = vst [vmem:[%s13409_s15 + $0x98] sm:$0xff] %v8857_v38  ;;  %v8859_v25 = vpop.f32.mrb[167].mxu0 }
 0x8af   : > { %v8862_v28 = vpop.f32.mrb[168].mxu0 }
 0x8b0   : > { %8941 = vst [vmem:[%s13409_s15 + $0xa0] sm:$0xff] %v8862_v28  ;;  %v8864_v58 = vpop.f32.mrb[169].mxu0 }
 0x8b3   : > { %v8867_v23 = vpop.f32.mrb[170].mxu0 }
 0x8b4   : > { %8942 = vst [vmem:[%s13409_s15 + $0xa8] sm:$0xff] %v8867_v23  ;;  %v8869_v15 = vpop.f32.mrb[171].mxu0 }
 0x8b7   : > { %v8872_v41 = vpop.f32.mrb[172].mxu0 }
 0x8b8   : > { %8943 = vst [vmem:[%s13409_s15 + $0xb0] sm:$0xff] %v8872_v41  ;;  %v8874_v63 = vpop.f32.mrb[173].mxu0 }
 0x8bb   : > { %v8877_v1 = vpop.f32.mrb[174].mxu0 }
 0x8bc   : > { %8944 = vst [vmem:[%s13409_s15 + $0xb8] sm:$0xff] %v8877_v1  ;;  %v8879_v51 = vpop.f32.mrb[175].mxu0 }
 0x8bf   : > { %v8882_v27 = vpop.f32.mrb[176].mxu0 }
 0x8c0   : > { %8945 = vst [vmem:[%s13409_s15 + $0xc0] sm:$0xff] %v8882_v27  ;;  %v8884_v32 = vpop.f32.mrb[177].mxu0 }
 0x8c3   : > { %v8887_v19 = vpop.f32.mrb[178].mxu0 }
 0x8c4   : > { %8946 = vst [vmem:[%s13409_s15 + $0xc8] sm:$0xff] %v8887_v19  ;;  %v8889_v29 = vpop.f32.mrb[179].mxu0 }
 0x8c7   : > { %v8892_v24 = vpop.f32.mrb[180].mxu0 }
 0x8c8   : > { %8947 = vst [vmem:[%s13409_s15 + $0xd0] sm:$0xff] %v8892_v24  ;;  %v8894_v0 = vpop.f32.mrb[181].mxu0 }
 0x8cb   : > { %v8897_v16 = vpop.f32.mrb[182].mxu0 }
 0x8cc   : > { %8948 = vst [vmem:[%s13409_s15 + $0xd8] sm:$0xff] %v8897_v16  ;;  %v8899_v10 = vpop.f32.mrb[183].mxu0 }
 0x8cf   : > { %v8902_v8 = vpop.f32.mrb[184].mxu0 }
 0x8d0   : > { %8949 = vst [vmem:[%s13409_s15 + $0xe0] sm:$0xff] %v8902_v8  ;;  %v8904_v17 = vpop.f32.mrb[185].mxu0 }
 0x8d3   : > { %v8907_v18 = vpop.f32.mrb[186].mxu0 }
 0x8d4   : > { %8950 = vst [vmem:[%s13409_s15 + $0xe8] sm:$0xff] %v8907_v18  ;;  %v8909_v43 = vpop.f32.mrb[187].mxu0 }
 0x8d7   : > { %v8912_v59 = vpop.f32.mrb[188].mxu0 }
 0x8d8   : > { %8951 = vst [vmem:[%s13409_s15 + $0xf0] sm:$0xff] %v8912_v59  ;;  %v8914_v60 = vpop.f32.mrb[189].mxu0 }
 0x8db   : > { %v8917_v20 = vpop.f32.mrb[190].mxu0 }
 0x8dc   : > { %8952 = vst [vmem:[%s13409_s15 + $0xf8] sm:$0xff] %v8917_v20  ;;  %v8919_v62 = vpop.f32.mrb[191].mxu0 }
 0x8dd   : > { %11179 = shalt.err (!%p11176_p10)
}
 0x8de   : > { %s11180_s18 = scalar_lea.hbm %s13447_s1, 4096  ;;  %s11184_s15 = scalar_lea.hbm %s13502_s8, 8192 }
 0x8df   : > { %p11181_p11 = scmp.ne.s32.totalorder %s13447_s1, %s11180_s18  ;;  %p11185_p9 = scmp.lt.u32.totalorder %s13447_s1, %s13502_s8 }
 0x8e0   : > { %p11186_p7 = scmp.lt.u32.totalorder %s11184_s15, %s11180_s18  ;;  %p11188_p12 = scmp.lt.u32.totalorder %s11180_s18, %s13447_s1 }
 0x8e1   : > { %p11182_p0 = pnand %p11181_p11, %p13637_p13 }
 0x8e2   : > { %p11187_p4 = por %p11186_p7, %p11185_p9 }
 0x8e3   : > { %p11183_p5 = pneg %p11182_p0 }
 0x8e4   : > { %p11189_p1 = por %p11188_p12, %p11187_p4 }
 0x8e6   : > { %p11190_p3 = pnand %p11189_p1, %p11183_p5 }
 0x8e8   : > { %11193 = shalt.err (!%p11190_p3)
}
 0x8e9   : > { %s11267_s13 = smov 128   ;;  %s11268_s19 = smov 8  }
 0x8ea   : > { %10751 = dma.vmem_to_hbm [thread:$0]  (%p13637_p13), %s13449_s10, 4096, %s13447_s1, %s8954_s24, %s11267_s13, %s11267_s13, %s11268_s19  }
 0x8eb PF: > { %s8982_s11 = sand.u32 1, %s11236_s27   ;;  %p13638_p2 = scmp.ne.s32.totalorder %s13516_s20, 0 }
 0x8ec   : > { %p13639_p8 = scmp.ge.s32.totalorder %s11248_s30, 2  ;;  %s8983_s25 = scalar_lea.sflag [#allocation5], %s8982_s11 }
 0x8ee   : > { %p10780_p6 = pnand %p13639_p8, %p13638_p2 }
 0x8f0   : > { %11231 = dma.done.wait (!%p10780_p6), %s8983_s25, 4096  }
 0x8f1   : > { %11233 = vsyncadd (!%p10780_p6), %s8983_s25, 4294963200  ;;  %p25_p10 = scmp.ge.s32.totalorder %s11514_s21, 4   ;;  %s13640_s27 = smov %s11240_s28 }
 0x8f2   : > { %s13641_s28 = smov %s11244_s29  ;;  %s13642_s29 = smov %s11526_s16 }
 0x8f3   : > { %s13643_s30 = smov %s11514_s21  ;;  %27 = sbr.rel (!%p25_p10) target bundleno = 11 (0xb), region = 135 }
 0x8fa   :  { %8988 = vsyncpa [#allocation4], 1 }
 0x8fb   :  { %8990 = vsyncpa [#allocation4 + $0x1], 1 }
 0x8fc   :  { %8991 = vsyncpa [#allocation7], 1 }
 0x8fd   :  { %8992 = vsyncpa [#allocation10], 1 }
 0x8fe   :  { %8993 = vsyncpa [#allocation13], 1 }
 0x8ff   :  { %8994 = vsyncpa [#allocation16], 1 }
 0x900   :  { %8995 = vsyncpa [#allocation5], 1 }
 0x901   :  { %8997 = vsyncpa [#allocation5 + $0x1], 1 }

</bundles_post_ra>
